<compile_context>
chip_gen: v7x
topology: tpu7x:2x2x1
jax: 0.10.0
libtpu: 0.0.40
codegen_flags: <defaults>
</compile_context>

<pallas_src>
import functools

import jax
import jax.numpy as jnp
from jax.experimental import pallas as pl
from jax.experimental.pallas import tpu as pltpu


def _round_up(a, m):
    return (a + m - 1) // m * m


def _tpu_generation():
    """Best-effort TPU generation (4/5/6/7); defaults to 6."""
    try:
        kind = jax.devices()[0].device_kind.lower()
    except Exception:
        return 6
    for g in (7, 6, 5, 4):
        if f"v{g}" in kind or f"tpu{g}" in kind:
            return g
    return 6


def _vmem_capacity_bytes(gen):
    try:
        return int(pltpu.get_tpu_info().vmem_capacity_bytes)
    except Exception:
        return (64 << 20) if gen >= 7 else (128 << 20)


def _make_kernel(num_layers, T_CHUNK, B_TILE, Hp, unroll):
    """Kernel ref layout:
      [0]            counts     (Sp,) int32                 SMEM (scalar prefetch)
      [1]            x block    (T_CHUNK*B_TILE, I) bf16
      [2 + 4l + 0]   w_ih_T     (in_l, 3*Hp) bf16           gate-major, zero-padded
      [2 + 4l + 1]   w_hh_T     (Hp, 3*Hp)   bf16
      [2 + 4l + 2]   b_g        (1, 3*Hp)    f32            b_ih (+ b_hh for r,z)
      [2 + 4l + 3]   b_hn       (1, Hp)      f32            hidden bias of n gate
      [2 + 4L]       out block  (T_CHUNK*B_TILE, Hp) bf16   last-layer activations
      [3 + 4L]       h scratch  (L, B_TILE, Hp) f32         VMEM
      [4 + 4L]       gi scratch (T_CHUNK*B_TILE, 3*Hp) f32  VMEM
    """

    def kernel(*refs):
        counts_ref = refs[0]
        x_ref = refs[1]
        lw = refs[2:2 + 4 * num_layers]
        out_ref = refs[2 + 4 * num_layers]
        h_ref = refs[3 + 4 * num_layers]
        gi_ref = refs[4 + 4 * num_layers]

        b = pl.program_id(0)          # batch tile (parallel)
        c = pl.program_id(1)          # time chunk (sequential recurrence)

        @pl.when(c == 0)
        def _():
            h_ref[...] = jnp.zeros_like(h_ref)

        # Global batch row ids of this batch tile (for the length mask).
        row_ids = (jax.lax.broadcasted_iota(jnp.int32, (B_TILE, 1), 0)
                   + b * B_TILE)
        t0 = c * T_CHUNK

        for l in range(num_layers):
            w_ih_t = lw[4 * l + 0][...]                          # (in_l, 3Hp) bf16
            w_hh_t = lw[4 * l + 1][...]                          # (Hp, 3Hp)   bf16
            b_g = lw[4 * l + 2][...]                             # (1, 3Hp)    f32
            b_hn = jnp.broadcast_to(lw[4 * l + 3][...],
                                    (B_TILE, Hp))                # hoisted broadcast

            # Layer input: x for layer 0; previous layer's bf16 activations
            # (they live in the output block) for the rest — no cast passes.
            inp = x_ref[...] if l == 0 else out_ref[...]

            # Input-to-hidden gates for the whole time chunk: one big MXU
            # matmul outside the serial dependency chain.
            gi_ref[...] = (jnp.dot(inp, w_ih_t,
                                   preferred_element_type=jnp.float32) + b_g)

            # TODO(synk): keep W_hh stationary on the MXU across the time loop
            # via pltpu.matmul_push_rhs/acc_lhs/pop once that path is validated;
            # jnp.dot re-stages the (Hp, 3Hp) RHS every step.
            def step(i, carry):
                count = counts_ref[t0 + i]                       # SMEM scalar
                valid = row_ids < count                          # (B_TILE, 1)
                off = pl.multiple_of(i * B_TILE, B_TILE)
                gi = gi_ref[pl.ds(off, B_TILE), :]               # (B_TILE, 3Hp)
                h_prev = h_ref[l]                                # (B_TILE, Hp) f32
                gh = jnp.dot(h_prev.astype(jnp.bfloat16), w_hh_t,
                             preferred_element_type=jnp.float32)
                # Lane-aligned gate slices (Hp is a multiple of 128).
                r = jax.nn.sigmoid(gi[:, 0:Hp] + gh[:, 0:Hp])
                z = jax.nn.sigmoid(gi[:, Hp:2 * Hp] + gh[:, Hp:2 * Hp])
                n = jnp.tanh(gi[:, 2 * Hp:] + r * (gh[:, 2 * Hp:] + b_hn))
                # Reassociated blend: one fewer VPU mul on the serial path.
                h_new = n + z * (h_prev - n)
                # packed-sequence semantics: freeze state past length[b].
                h_new = jnp.where(valid, h_new, h_prev)
                h_ref[l] = h_new
                # pad_packed_sequence: padded steps feed zeros downstream.
                out_ref[pl.ds(off, B_TILE), :] = jnp.where(
                    valid, h_new, 0.0).astype(out_ref.dtype)
                return carry

            jax.lax.fori_loop(0, T_CHUNK, step, 0, unroll=unroll)

    return kernel


def _pad_gate_weight_T(w, H, Hp, in_dim, in_pad):
    """(3H, in_dim) PyTorch [r;z;n] weight -> zero-padded, gate-major (in_pad, 3*Hp)."""
    w3 = w.reshape(3, H, in_dim)
    wp = jnp.zeros((3, Hp, in_pad), jnp.float32).at[:, :H, :in_dim].set(w3)
    return jnp.transpose(wp, (2, 0, 1)).reshape(in_pad, 3 * Hp).astype(jnp.bfloat16)


def vanilla_gru_forward(x, lengths, params, *, hidden_size, num_layers,
                        output_size, time_chunk=None, batch_tile=None,
                        validate_lengths=False):
    """x: (batch, seq, input) f32 (batch_first).  lengths: (batch,) int, sorted
    descending with max == seq.  Returns (batch*seq, output_size) f32."""
    B, S, I = x.shape
    H = hidden_size
    Hp = _round_up(H, 128)

    lengths = jnp.asarray(lengths, jnp.int32)
    if validate_lengths:  # optional host check; never done implicitly (jit-safe)
        ln = jax.device_get(lengths)
        assert int(ln.max()) <= S, "lengths must be <= padded seq len"
        assert all(int(ln[i]) >= int(ln[i + 1]) for i in range(len(ln) - 1)), \
            "lengths must be sorted descending (pack_padded_sequence contract)"

    # --- chip-aware tiling ----------------------------------------------------
    gen = _tpu_generation()
    num_tc = 2 if gen >= 7 else 1            # v7x: 2 TensorCores per chip
    row_cap = 256 if gen >= 6 else 128       # v6e/v7x MXUs are 256-wide
    vmem_cap = _vmem_capacity_bytes(gen)
    budget = min(100 << 20, int(vmem_cap * 0.85))   # scoped-VMEM ceiling

    if batch_tile is not None:
        B_TILE = _round_up(batch_tile, 8)
    else:
        if num_tc >= 2 and B >= 16:
            # Guarantee >= 2 batch tiles so both v7x TensorCores get work.
            B_TILE = _round_up((B + num_tc - 1) // num_tc, 8)
        else:
            B_TILE = _round_up(max(B, 1), 8)
        B_TILE = max(8, min(B_TILE, row_cap))
    Bp = _round_up(B, B_TILE)
    n_bt = Bp // B_TILE

    # --- weights: zero-padded, gate-major, bf16 -------------------------------
    weight_inputs = []
    for l in range(num_layers):
        w_ih, w_hh, b_ih, b_hh = params[f"layer{l}"]
        in_dim = I if l == 0 else H
        in_pad = I if l == 0 else Hp
        bi = b_ih.reshape(3, H).astype(jnp.float32)
        bh = b_hh.reshape(3, H).astype(jnp.float32)
        b_g = jnp.zeros((3, Hp), jnp.float32)
        b_g = b_g.at[0, :H].set(bi[0] + bh[0])      # r: fold b_hh into gi bias
        b_g = b_g.at[1, :H].set(bi[1] + bh[1])      # z: fold b_hh into gi bias
        b_g = b_g.at[2, :H].set(bi[2])              # n: only b_in (b_hn stays inside r*(.))
        b_hn = jnp.zeros((1, Hp), jnp.float32).at[0, :H].set(bh[2])
        weight_inputs += [
            _pad_gate_weight_T(w_ih, H, Hp, in_dim, in_pad),     # (in_pad, 3Hp) bf16
            _pad_gate_weight_T(w_hh, H, Hp, H, Hp),              # (Hp, 3Hp)    bf16
            b_g.reshape(1, 3 * Hp),                              # (1, 3Hp)     f32
            b_hn,                                                # (1, Hp)      f32
        ]
    wbytes = sum(int(w.size) * w.dtype.itemsize for w in weight_inputs)

    # --- T_CHUNK derived from the VMEM budget ---------------------------------
    def _est(tc, w_buf=2):
        rows = tc * B_TILE
        return (2 * rows * I * 2                 # x block (double-buffered, bf16)
                + 2 * rows * Hp * 2              # out block (double-buffered, bf16)
                + w_buf * wbytes                 # resident weights/biases
                + rows * 3 * Hp * 4              # gi scratch (f32)
                + num_layers * B_TILE * Hp * 4)  # hidden-state scratch (f32)

    if time_chunk is not None:
        T_CHUNK = max(1, time_chunk)
    else:
        cap = max(8, min(128, _round_up(S, 8)))
        T_CHUNK = 8
        for tc in (128, 64, 32, 16, 8):
            if tc <= cap and _est(tc) <= int(budget * 0.75):
                T_CHUNK = tc
                break
    Sp = _round_up(S, T_CHUNK)
    n_ch = Sp // T_CHUNK
    unroll = True if T_CHUNK <= 32 else 8
    # Always set the scoped-VMEM limit (v5e default is only 16 MiB).
    vmem_limit = int(min(budget, max(32 << 20, 2 * _est(T_CHUNK))))

    # --- mask schedule (SMEM) + rearranged x ----------------------------------
    counts = jnp.sum(lengths[None, :] > jnp.arange(Sp)[:, None],
                     axis=1).astype(jnp.int32)                    # (Sp,)

    xp = jnp.zeros((Bp, Sp, I), jnp.float32).at[:B, :S, :].set(x)
    # rows ordered as [batch_tile, time, row-in-tile] so each (tile, chunk)
    # block is a contiguous 2-D slab -> no in-kernel reshapes.
    x_arr = (xp.reshape(n_bt, B_TILE, Sp, I)
               .transpose(0, 2, 1, 3)
               .reshape(n_bt * Sp * B_TILE, I)
               .astype(jnp.bfloat16))

    kernel = _make_kernel(num_layers, T_CHUNK, B_TILE, Hp, unroll)

    x_spec = pl.BlockSpec((T_CHUNK * B_TILE, I),
                          lambda b, c, counts: (b * n_ch + c, 0))
    out_spec = pl.BlockSpec((T_CHUNK * B_TILE, Hp),
                            lambda b, c, counts: (b * n_ch + c, 0))
    scratch_shapes = [
        pltpu.VMEM((num_layers, B_TILE, Hp), jnp.float32),        # hidden states
        pltpu.VMEM((T_CHUNK * B_TILE, 3 * Hp), jnp.float32),      # chunk gi
    ]

    def _run(single_buffer_weights):
        if single_buffer_weights:
            # Grid-invariant weights: one VMEM copy instead of a double buffer.
            def w_spec(shape):
                return pl.BlockSpec(shape, lambda b, c, counts: (0, 0),
                                    pipeline_mode=pl.Buffered(1))
        else:
            def w_spec(shape):
                return pl.BlockSpec(shape, lambda b, c, counts: (0, 0))
        in_specs = [x_spec] + [w_spec(w.shape) for w in weight_inputs]
        return pl.pallas_call(
            kernel,
            out_shape=jax.ShapeDtypeStruct((n_bt * Sp * B_TILE, Hp),
                                           jnp.bfloat16),
            grid_spec=pltpu.PrefetchScalarGridSpec(
                num_scalar_prefetch=1,
                grid=(n_bt, n_ch),
                in_specs=in_specs,
                out_specs=out_spec,
                scratch_shapes=scratch_shapes,
            ),
            compiler_params=pltpu.CompilerParams(
                # batch tiles are independent (v7x megacore); time is a recurrence.
                dimension_semantics=("parallel", "arbitrary"),
                vmem_limit_bytes=vmem_limit,
            ),
        )(counts, x_arr, *weight_inputs)

    try:
        y_arr = _run(True)
    except Exception:
        # pipeline_mode=Buffered(1) unsupported on this jax/libtpu combo:
        # fall back to default double-buffered weights.
        y_arr = _run(False)

    act = (y_arr.reshape(n_bt, Sp, B_TILE, Hp)
                .transpose(0, 2, 1, 3)
                .reshape(Bp, Sp, Hp))[:B, :S, :H]

    # Final Linear + Sigmoid outside the kernel: output_size << 128, so
    # emitting lane-dense bf16 activations avoids the padded f32 output write.
    w_fc, b_fc = params["fc"]
    logits = (jnp.dot(act.reshape(B * S, H),
                      jnp.transpose(w_fc).astype(jnp.bfloat16),
                      preferred_element_type=jnp.float32) + b_fc)
    return jax.nn.sigmoid(logits)


def _reference(x, lengths, params, *, hidden_size, num_layers, output_size):
    """Pure-JAX reference with the same packed-GRU semantics and the same
    bf16-operand / f32-accumulate matmul precision as the kernel."""
    B, S, _ = x.shape
    H = hidden_size
    bf = lambda a: a.astype(jnp.bfloat16)
    dot = functools.partial(jnp.dot, preferred_element_type=jnp.float32)
    h = [jnp.zeros((B, H), jnp.float32) for _ in range(num_layers)]
    outs = []
    w_fc, b_fc = params["fc"]
    for t in range(S):
        valid = (lengths > t)[:, None]
        inp = x[:, t, :]
        for l in range(num_layers):
            w_ih, w_hh, b_ih, b_hh = params[f"layer{l}"]
            gi = dot(bf(inp), bf(w_ih.T)) + b_ih
            gh = dot(bf(h[l]), bf(w_hh.T)) + b_hh
            r = jax.nn.sigmoid(gi[:, :H] + gh[:, :H])
            z = jax.nn.sigmoid(gi[:, H:2 * H] + gh[:, H:2 * H])
            n = jnp.tanh(gi[:, 2 * H:] + r * gh[:, 2 * H:])
            h_new = (1.0 - z) * n + z * h[l]
            h_new = jnp.where(valid, h_new, h[l])
            h[l] = h_new
            inp = jnp.where(valid, h_new, 0.0)
        outs.append(jax.nn.sigmoid(dot(bf(inp), bf(w_fc.T)) + b_fc))
    y = jnp.stack(outs, axis=1)
    return y.reshape(B * S, output_size)


def init_params(key, input_size, hidden_size, num_layers, output_size):
    H = hidden_size
    bound = 1.0 / jnp.sqrt(H)
    params = {}
    for l in range(num_layers):
        in_l = input_size if l == 0 else hidden_size
        key, k1, k2, k3, k4 = jax.random.split(key, 5)
        params[f"layer{l}"] = (
            jax.random.uniform(k1, (3 * H, in_l), jnp.float32, -bound, bound),
            jax.random.uniform(k2, (3 * H, H), jnp.float32, -bound, bound),
            jax.random.uniform(k3, (3 * H,), jnp.float32, -bound, bound),
            jax.random.uniform(k4, (3 * H,), jnp.float32, -bound, bound),
        )
    key, k1, k2 = jax.random.split(key, 3)
    params["fc"] = (
        jax.random.uniform(k1, (output_size, H), jnp.float32, -bound, bound),
        jax.random.uniform(k2, (output_size,), jnp.float32, -bound, bound),
    )
    return params


if __name__ == "__main__":
    # Small shapes consistent with the module's forward.
    batch, seq, input_size = 4, 8, 16
    hidden_size, num_layers, output_size = 32, 2, 3

    key = jax.random.PRNGKey(0)
    key, kx = jax.random.split(key)
    x = jax.random.normal(kx, (batch, seq, input_size), jnp.float32)
    # pack_padded_sequence requires lengths sorted descending; max == seq.
    lengths = jnp.array([8, 6, 5, 3], dtype=jnp.int32)

    params = init_params(key, input_size, hidden_size, num_layers, output_size)

    out = vanilla_gru_forward(
        x, lengths, params,
        hidden_size=hidden_size, num_layers=num_layers,
        output_size=output_size, validate_lengths=True)
    out = jax.block_until_ready(out)

    ref = _reference(
        x, lengths, params,
        hidden_size=hidden_size, num_layers=num_layers, output_size=output_size)

    assert out.shape == (batch * seq, output_size)
    err = float(jnp.max(jnp.abs(out - ref)))
    assert err < 2e-3, f"mismatch vs reference: max abs err {err}"
    print("KERNEL_OK")
</pallas_src>

<mosaic_0001>
module attributes {stable_mosaic.version = 11 : i64} {
  func.func @kernel(%arg0: i32, %arg1: i32, %arg2: memref<8xi32, #tpu.memory_space<smem>>, %arg3: memref<64x16xbf16, #tpu.memory_space<vmem>>, %arg4: memref<16x384xbf16, #tpu.memory_space<vmem>>, %arg5: memref<128x384xbf16, #tpu.memory_space<vmem>>, %arg6: memref<1x384xf32, #tpu.memory_space<vmem>>, %arg7: memref<1x128xf32, #tpu.memory_space<vmem>>, %arg8: memref<128x384xbf16, #tpu.memory_space<vmem>>, %arg9: memref<128x384xbf16, #tpu.memory_space<vmem>>, %arg10: memref<1x384xf32, #tpu.memory_space<vmem>>, %arg11: memref<1x128xf32, #tpu.memory_space<vmem>>, %arg12: memref<64x128xbf16, #tpu.memory_space<vmem>>, %arg13: memref<2x8x128xf32, #tpu.memory_space<vmem>>, %arg14: memref<64x384xf32, #tpu.memory_space<vmem>>) attributes {dimension_semantics = [#tpu.dimension_semantics<parallel>, #tpu.dimension_semantics<arbitrary>], iteration_bounds = array<i64: 1, 1>, scalar_prefetch = 1 : i64, scratch_operands = 2 : i64, tpu.core_type = #tpu.core_type<tc>, window_params = [{transform_indices = @transform_0, window_bounds = array<i64: 64, 16>}, {pipeline_mode = #tpu.pipeline_mode<synchronous>, transform_indices = @transform_1, window_bounds = array<i64: 16, 384>}, {pipeline_mode = #tpu.pipeline_mode<synchronous>, transform_indices = @transform_2, window_bounds = array<i64: 128, 384>}, {pipeline_mode = #tpu.pipeline_mode<synchronous>, transform_indices = @transform_3, window_bounds = array<i64: 1, 384>}, {pipeline_mode = #tpu.pipeline_mode<synchronous>, transform_indices = @transform_4, window_bounds = array<i64: 1, 128>}, {pipeline_mode = #tpu.pipeline_mode<synchronous>, transform_indices = @transform_5, window_bounds = array<i64: 128, 384>}, {pipeline_mode = #tpu.pipeline_mode<synchronous>, transform_indices = @transform_6, window_bounds = array<i64: 128, 384>}, {pipeline_mode = #tpu.pipeline_mode<synchronous>, transform_indices = @transform_7, window_bounds = array<i64: 1, 384>}, {pipeline_mode = #tpu.pipeline_mode<synchronous>, transform_indices = @transform_8, window_bounds = array<i64: 1, 128>}, {transform_indices = @transform_9, window_bounds = array<i64: 64, 128>}]} {
    %c0_i32 = arith.constant 0 : i32
    %0 = arith.cmpi eq, %arg1, %c0_i32 : i32
    %1 = arith.extui %0 : i1 to i32
    %c0_i32_0 = arith.constant 0 : i32
    %2 = arith.cmpi ne, %1, %c0_i32_0 : i32
    scf.if %2 {
      %cst_244 = arith.constant 0.000000e+00 : f32
      %846 = vector.broadcast %cst_244 : f32 to vector<2x8x128xf32>
      %c0_245 = arith.constant 0 : index
      %c0_246 = arith.constant 0 : index
      %c0_247 = arith.constant 0 : index
      %847 = vector.load %arg13[%c0_245, %c0_246, %c0_247] : memref<2x8x128xf32, #tpu.memory_space<vmem>>, vector<2x8x128xf32>
      tpu.vector_store %arg13[%c0_245, %c0_246, %c0_247], %846 {strides = array<i32>} : memref<2x8x128xf32, #tpu.memory_space<vmem>>, vector<2x8x128xf32>,
    } else {
    }
    %3 = tpu.iota {dimensions = array<i32: 0>} : vector<8x1xi32>
    %c8_i32 = arith.constant 8 : i32
    %4 = arith.muli %arg0, %c8_i32 : i32
    %5 = vector.broadcast %4 : i32 to vector<8x1xi32>
    %6 = arith.addi %3, %5 : vector<8x1xi32>
    %c8_i32_1 = arith.constant 8 : i32
    %7 = arith.muli %arg1, %c8_i32_1 : i32
    %c0 = arith.constant 0 : index
    %c0_2 = arith.constant 0 : index
    %8 = vector.load %arg4[%c0, %c0_2] : memref<16x384xbf16, #tpu.memory_space<vmem>>, vector<16x384xbf16>
    %c0_3 = arith.constant 0 : index
    %c0_4 = arith.constant 0 : index
    %9 = vector.load %arg5[%c0_3, %c0_4] : memref<128x384xbf16, #tpu.memory_space<vmem>>, vector<128x384xbf16>
    %c0_5 = arith.constant 0 : index
    %c0_6 = arith.constant 0 : index
    %10 = vector.load %arg6[%c0_5, %c0_6] : memref<1x384xf32, #tpu.memory_space<vmem>>, vector<1x384xf32>
    %c0_7 = arith.constant 0 : index
    %c0_8 = arith.constant 0 : index
    %11 = vector.load %arg7[%c0_7, %c0_8] : memref<1x128xf32, #tpu.memory_space<vmem>>, vector<1x128xf32>
    %12 = vector.shape_cast %11 : vector<1x128xf32> to vector<1x128xf32>
    %13 = vector.broadcast %12 : vector<1x128xf32> to vector<8x128xf32>
    %c0_9 = arith.constant 0 : index
    %c0_10 = arith.constant 0 : index
    %14 = vector.load %arg3[%c0_9, %c0_10] : memref<64x16xbf16, #tpu.memory_space<vmem>>, vector<64x16xbf16>
    %cst = arith.constant dense<0.000000e+00> : vector<64x384xf32>
    %15 = tpu.matmul %14, %8, %cst {dimension_numbers = #tpu.dot_dimension_numbers<[1], [0], [0], [1], [0, 0, 1, 1], [], []>} : vector<64x16xbf16>, vector<16x384xbf16>, vector<64x384xf32> -> vector<64x384xf32>
    %16 = vector.broadcast %10 : vector<1x384xf32> to vector<64x384xf32>
    %17 = arith.addf %15, %16 : vector<64x384xf32>
    %c0_11 = arith.constant 0 : index
    %c0_12 = arith.constant 0 : index
    %18 = vector.load %arg14[%c0_11, %c0_12] : memref<64x384xf32, #tpu.memory_space<vmem>>, vector<64x384xf32>
    tpu.vector_store %arg14[%c0_11, %c0_12], %17 {strides = array<i32>} : memref<64x384xf32, #tpu.memory_space<vmem>>, vector<64x384xf32>,
    %c0_i32_13 = arith.constant 0 : i32
    %19 = arith.addi %7, %c0_i32_13 : i32
    %20 = arith.index_cast %19 : i32 to index
    %21 = memref.load %arg2[%20] : memref<8xi32, #tpu.memory_space<smem>>
    %22 = vector.broadcast %21 : i32 to vector<8x1xi32>
    %23 = arith.cmpi slt, %6, %22 : vector<8x1xi32>
    %c8_i32_14 = arith.constant 8 : i32
    %24 = arith.muli %c0_i32_13, %c8_i32_14 : i32
    %25 = tpu.assume_multiple %24, 8 : i32
    %26 = arith.index_cast %25 : i32 to index
    %c0_15 = arith.constant 0 : index
    %27 = vector.load %arg14[%26, %c0_15] : memref<64x384xf32, #tpu.memory_space<vmem>>, vector<8x384xf32>
    %c0_16 = arith.constant 0 : index
    %c0_17 = arith.constant 0 : index
    %c0_18 = arith.constant 0 : index
    %28 = vector.load %arg13[%c0_16, %c0_17, %c0_18] : memref<2x8x128xf32, #tpu.memory_space<vmem>>, vector<1x8x128xf32>
    %29 = vector.shape_cast %28 : vector<1x8x128xf32> to vector<8x128xf32>
    %30 = arith.truncf %29 : vector<8x128xf32> to vector<8x128xbf16>
    %cst_19 = arith.constant dense<0.000000e+00> : vector<8x384xf32>
    %31 = tpu.matmul %30, %9, %cst_19 {dimension_numbers = #tpu.dot_dimension_numbers<[1], [0], [0], [1], [0, 0, 1, 1], [], []>} : vector<8x128xbf16>, vector<128x384xbf16>, vector<8x384xf32> -> vector<8x384xf32>
    %32 = vector.extract_strided_slice %27 {offsets = [0, 0], sizes = [8, 128], strides = [1, 1]} : vector<8x384xf32> to vector<8x128xf32>
    %33 = vector.extract_strided_slice %31 {offsets = [0, 0], sizes = [8, 128], strides = [1, 1]} : vector<8x384xf32> to vector<8x128xf32>
    %34 = arith.addf %32, %33 : vector<8x128xf32>
    %35 = arith.negf %34 : vector<8x128xf32>
    %36 = math.exp %35 : vector<8x128xf32>
    %cst_20 = arith.constant 1.000000e+00 : f32
    %37 = vector.broadcast %cst_20 : f32 to vector<8x128xf32>
    %38 = arith.addf %37, %36 : vector<8x128xf32>
    %39 = arith.divf %37, %38 : vector<8x128xf32>
    %40 = vector.extract_strided_slice %27 {offsets = [0, 128], sizes = [8, 128], strides = [1, 1]} : vector<8x384xf32> to vector<8x128xf32>
    %41 = vector.extract_strided_slice %31 {offsets = [0, 128], sizes = [8, 128], strides = [1, 1]} : vector<8x384xf32> to vector<8x128xf32>
    %42 = arith.addf %40, %41 : vector<8x128xf32>
    %43 = arith.negf %42 : vector<8x128xf32>
    %44 = math.exp %43 : vector<8x128xf32>
    %cst_21 = arith.constant 1.000000e+00 : f32
    %45 = vector.broadcast %cst_21 : f32 to vector<8x128xf32>
    %46 = arith.addf %45, %44 : vector<8x128xf32>
    %47 = arith.divf %45, %46 : vector<8x128xf32>
    %48 = vector.extract_strided_slice %27 {offsets = [0, 256], sizes = [8, 128], strides = [1, 1]} : vector<8x384xf32> to vector<8x128xf32>
    %49 = vector.extract_strided_slice %31 {offsets = [0, 256], sizes = [8, 128], strides = [1, 1]} : vector<8x384xf32> to vector<8x128xf32>
    %50 = arith.addf %49, %13 : vector<8x128xf32>
    %51 = arith.mulf %39, %50 : vector<8x128xf32>
    %52 = arith.addf %48, %51 : vector<8x128xf32>
    %53 = math.tanh %52 : vector<8x128xf32>
    %54 = arith.subf %29, %53 : vector<8x128xf32>
    %55 = arith.mulf %47, %54 : vector<8x128xf32>
    %56 = arith.addf %53, %55 : vector<8x128xf32>
    %57 = vector.shape_cast %23 : vector<8x1xi1> to vector<8x1xi1>
    %58 = vector.broadcast %57 : vector<8x1xi1> to vector<8x128xi1>
    %59 = arith.select %58, %56, %29 : vector<8x128xi1>, vector<8x128xf32>
    %c0_22 = arith.constant 0 : index
    %c0_23 = arith.constant 0 : index
    %c0_24 = arith.constant 0 : index
    %60 = vector.load %arg13[%c0_22, %c0_23, %c0_24] : memref<2x8x128xf32, #tpu.memory_space<vmem>>, vector<1x8x128xf32>
    %61 = vector.shape_cast %60 : vector<1x8x128xf32> to vector<8x128xf32>
    %62 = vector.shape_cast %59 : vector<8x128xf32> to vector<1x8x128xf32>
    tpu.vector_store %arg13[%c0_22, %c0_23, %c0_24], %62 {strides = array<i32>} : memref<2x8x128xf32, #tpu.memory_space<vmem>>, vector<1x8x128xf32>,
    %cst_25 = arith.constant 0.000000e+00 : f32
    %63 = vector.shape_cast %23 : vector<8x1xi1> to vector<8x1xi1>
    %64 = vector.broadcast %63 : vector<8x1xi1> to vector<8x128xi1>
    %65 = vector.broadcast %cst_25 : f32 to vector<8x128xf32>
    %66 = arith.select %64, %59, %65 : vector<8x128xi1>, vector<8x128xf32>
    %67 = arith.truncf %66 : vector<8x128xf32> to vector<8x128xbf16>
    %68 = arith.index_cast %25 : i32 to index
    %c0_26 = arith.constant 0 : index
    %69 = vector.load %arg12[%68, %c0_26] : memref<64x128xbf16, #tpu.memory_space<vmem>>, vector<8x128xbf16>
    tpu.vector_store %arg12[%68, %c0_26], %67 {strides = array<i32>} : memref<64x128xbf16, #tpu.memory_space<vmem>>, vector<8x128xbf16>,
    %c1_i32 = arith.constant 1 : i32
    %70 = arith.addi %7, %c1_i32 : i32
    %71 = arith.index_cast %70 : i32 to index
    %72 = memref.load %arg2[%71] : memref<8xi32, #tpu.memory_space<smem>>
    %73 = vector.broadcast %72 : i32 to vector<8x1xi32>
    %74 = arith.cmpi slt, %6, %73 : vector<8x1xi32>
    %c8_i32_27 = arith.constant 8 : i32
    %75 = arith.muli %c1_i32, %c8_i32_27 : i32
    %76 = tpu.assume_multiple %75, 8 : i32
    %77 = arith.index_cast %76 : i32 to index
    %c0_28 = arith.constant 0 : index
    %78 = vector.load %arg14[%77, %c0_28] : memref<64x384xf32, #tpu.memory_space<vmem>>, vector<8x384xf32>
    %c0_29 = arith.constant 0 : index
    %c0_30 = arith.constant 0 : index
    %c0_31 = arith.constant 0 : index
    %79 = vector.load %arg13[%c0_29, %c0_30, %c0_31] : memref<2x8x128xf32, #tpu.memory_space<vmem>>, vector<1x8x128xf32>
    %80 = vector.shape_cast %79 : vector<1x8x128xf32> to vector<8x128xf32>
    %81 = arith.truncf %80 : vector<8x128xf32> to vector<8x128xbf16>
    %cst_32 = arith.constant dense<0.000000e+00> : vector<8x384xf32>
    %82 = tpu.matmul %81, %9, %cst_32 {dimension_numbers = #tpu.dot_dimension_numbers<[1], [0], [0], [1], [0, 0, 1, 1], [], []>} : vector<8x128xbf16>, vector<128x384xbf16>, vector<8x384xf32> -> vector<8x384xf32>
    %83 = vector.extract_strided_slice %78 {offsets = [0, 0], sizes = [8, 128], strides = [1, 1]} : vector<8x384xf32> to vector<8x128xf32>
    %84 = vector.extract_strided_slice %82 {offsets = [0, 0], sizes = [8, 128], strides = [1, 1]} : vector<8x384xf32> to vector<8x128xf32>
    %85 = arith.addf %83, %84 : vector<8x128xf32>
    %86 = arith.negf %85 : vector<8x128xf32>
    %87 = math.exp %86 : vector<8x128xf32>
    %cst_33 = arith.constant 1.000000e+00 : f32
    %88 = vector.broadcast %cst_33 : f32 to vector<8x128xf32>
    %89 = arith.addf %88, %87 : vector<8x128xf32>
    %90 = arith.divf %88, %89 : vector<8x128xf32>
    %91 = vector.extract_strided_slice %78 {offsets = [0, 128], sizes = [8, 128], strides = [1, 1]} : vector<8x384xf32> to vector<8x128xf32>
    %92 = vector.extract_strided_slice %82 {offsets = [0, 128], sizes = [8, 128], strides = [1, 1]} : vector<8x384xf32> to vector<8x128xf32>
    %93 = arith.addf %91, %92 : vector<8x128xf32>
    %94 = arith.negf %93 : vector<8x128xf32>
    %95 = math.exp %94 : vector<8x128xf32>
    %cst_34 = arith.constant 1.000000e+00 : f32
    %96 = vector.broadcast %cst_34 : f32 to vector<8x128xf32>
    %97 = arith.addf %96, %95 : vector<8x128xf32>
    %98 = arith.divf %96, %97 : vector<8x128xf32>
    %99 = vector.extract_strided_slice %78 {offsets = [0, 256], sizes = [8, 128], strides = [1, 1]} : vector<8x384xf32> to vector<8x128xf32>
    %100 = vector.extract_strided_slice %82 {offsets = [0, 256], sizes = [8, 128], strides = [1, 1]} : vector<8x384xf32> to vector<8x128xf32>
    %101 = arith.addf %100, %13 : vector<8x128xf32>
    %102 = arith.mulf %90, %101 : vector<8x128xf32>
    %103 = arith.addf %99, %102 : vector<8x128xf32>
    %104 = math.tanh %103 : vector<8x128xf32>
    %105 = arith.subf %80, %104 : vector<8x128xf32>
    %106 = arith.mulf %98, %105 : vector<8x128xf32>
    %107 = arith.addf %104, %106 : vector<8x128xf32>
    %108 = vector.shape_cast %74 : vector<8x1xi1> to vector<8x1xi1>
    %109 = vector.broadcast %108 : vector<8x1xi1> to vector<8x128xi1>
    %110 = arith.select %109, %107, %80 : vector<8x128xi1>, vector<8x128xf32>
    %c0_35 = arith.constant 0 : index
    %c0_36 = arith.constant 0 : index
    %c0_37 = arith.constant 0 : index
    %111 = vector.load %arg13[%c0_35, %c0_36, %c0_37] : memref<2x8x128xf32, #tpu.memory_space<vmem>>, vector<1x8x128xf32>
    %112 = vector.shape_cast %111 : vector<1x8x128xf32> to vector<8x128xf32>
    %113 = vector.shape_cast %110 : vector<8x128xf32> to vector<1x8x128xf32>
    tpu.vector_store %arg13[%c0_35, %c0_36, %c0_37], %113 {strides = array<i32>} : memref<2x8x128xf32, #tpu.memory_space<vmem>>, vector<1x8x128xf32>,
    %cst_38 = arith.constant 0.000000e+00 : f32
    %114 = vector.shape_cast %74 : vector<8x1xi1> to vector<8x1xi1>
    %115 = vector.broadcast %114 : vector<8x1xi1> to vector<8x128xi1>
    %116 = vector.broadcast %cst_38 : f32 to vector<8x128xf32>
    %117 = arith.select %115, %110, %116 : vector<8x128xi1>, vector<8x128xf32>
    %118 = arith.truncf %117 : vector<8x128xf32> to vector<8x128xbf16>
    %119 = arith.index_cast %76 : i32 to index
    %c0_39 = arith.constant 0 : index
    %120 = vector.load %arg12[%119, %c0_39] : memref<64x128xbf16, #tpu.memory_space<vmem>>, vector<8x128xbf16>
    tpu.vector_store %arg12[%119, %c0_39], %118 {strides = array<i32>} : memref<64x128xbf16, #tpu.memory_space<vmem>>, vector<8x128xbf16>,
    %c2_i32 = arith.constant 2 : i32
    %121 = arith.addi %7, %c2_i32 : i32
    %122 = arith.index_cast %121 : i32 to index
    %123 = memref.load %arg2[%122] : memref<8xi32, #tpu.memory_space<smem>>
    %124 = vector.broadcast %123 : i32 to vector<8x1xi32>
    %125 = arith.cmpi slt, %6, %124 : vector<8x1xi32>
    %c8_i32_40 = arith.constant 8 : i32
    %126 = arith.muli %c2_i32, %c8_i32_40 : i32
    %127 = tpu.assume_multiple %126, 8 : i32
    %128 = arith.index_cast %127 : i32 to index
    %c0_41 = arith.constant 0 : index
    %129 = vector.load %arg14[%128, %c0_41] : memref<64x384xf32, #tpu.memory_space<vmem>>, vector<8x384xf32>
    %c0_42 = arith.constant 0 : index
    %c0_43 = arith.constant 0 : index
    %c0_44 = arith.constant 0 : index
    %130 = vector.load %arg13[%c0_42, %c0_43, %c0_44] : memref<2x8x128xf32, #tpu.memory_space<vmem>>, vector<1x8x128xf32>
    %131 = vector.shape_cast %130 : vector<1x8x128xf32> to vector<8x128xf32>
    %132 = arith.truncf %131 : vector<8x128xf32> to vector<8x128xbf16>
    %cst_45 = arith.constant dense<0.000000e+00> : vector<8x384xf32>
    %133 = tpu.matmul %132, %9, %cst_45 {dimension_numbers = #tpu.dot_dimension_numbers<[1], [0], [0], [1], [0, 0, 1, 1], [], []>} : vector<8x128xbf16>, vector<128x384xbf16>, vector<8x384xf32> -> vector<8x384xf32>
    %134 = vector.extract_strided_slice %129 {offsets = [0, 0], sizes = [8, 128], strides = [1, 1]} : vector<8x384xf32> to vector<8x128xf32>
    %135 = vector.extract_strided_slice %133 {offsets = [0, 0], sizes = [8, 128], strides = [1, 1]} : vector<8x384xf32> to vector<8x128xf32>
    %136 = arith.addf %134, %135 : vector<8x128xf32>
    %137 = arith.negf %136 : vector<8x128xf32>
    %138 = math.exp %137 : vector<8x128xf32>
    %cst_46 = arith.constant 1.000000e+00 : f32
    %139 = vector.broadcast %cst_46 : f32 to vector<8x128xf32>
    %140 = arith.addf %139, %138 : vector<8x128xf32>
    %141 = arith.divf %139, %140 : vector<8x128xf32>
    %142 = vector.extract_strided_slice %129 {offsets = [0, 128], sizes = [8, 128], strides = [1, 1]} : vector<8x384xf32> to vector<8x128xf32>
    %143 = vector.extract_strided_slice %133 {offsets = [0, 128], sizes = [8, 128], strides = [1, 1]} : vector<8x384xf32> to vector<8x128xf32>
    %144 = arith.addf %142, %143 : vector<8x128xf32>
    %145 = arith.negf %144 : vector<8x128xf32>
    %146 = math.exp %145 : vector<8x128xf32>
    %cst_47 = arith.constant 1.000000e+00 : f32
    %147 = vector.broadcast %cst_47 : f32 to vector<8x128xf32>
    %148 = arith.addf %147, %146 : vector<8x128xf32>
    %149 = arith.divf %147, %148 : vector<8x128xf32>
    %150 = vector.extract_strided_slice %129 {offsets = [0, 256], sizes = [8, 128], strides = [1, 1]} : vector<8x384xf32> to vector<8x128xf32>
    %151 = vector.extract_strided_slice %133 {offsets = [0, 256], sizes = [8, 128], strides = [1, 1]} : vector<8x384xf32> to vector<8x128xf32>
    %152 = arith.addf %151, %13 : vector<8x128xf32>
    %153 = arith.mulf %141, %152 : vector<8x128xf32>
    %154 = arith.addf %150, %153 : vector<8x128xf32>
    %155 = math.tanh %154 : vector<8x128xf32>
    %156 = arith.subf %131, %155 : vector<8x128xf32>
    %157 = arith.mulf %149, %156 : vector<8x128xf32>
    %158 = arith.addf %155, %157 : vector<8x128xf32>
    %159 = vector.shape_cast %125 : vector<8x1xi1> to vector<8x1xi1>
    %160 = vector.broadcast %159 : vector<8x1xi1> to vector<8x128xi1>
    %161 = arith.select %160, %158, %131 : vector<8x128xi1>, vector<8x128xf32>
    %c0_48 = arith.constant 0 : index
    %c0_49 = arith.constant 0 : index
    %c0_50 = arith.constant 0 : index
    %162 = vector.load %arg13[%c0_48, %c0_49, %c0_50] : memref<2x8x128xf32, #tpu.memory_space<vmem>>, vector<1x8x128xf32>
    %163 = vector.shape_cast %162 : vector<1x8x128xf32> to vector<8x128xf32>
    %164 = vector.shape_cast %161 : vector<8x128xf32> to vector<1x8x128xf32>
    tpu.vector_store %arg13[%c0_48, %c0_49, %c0_50], %164 {strides = array<i32>} : memref<2x8x128xf32, #tpu.memory_space<vmem>>, vector<1x8x128xf32>,
    %cst_51 = arith.constant 0.000000e+00 : f32
    %165 = vector.shape_cast %125 : vector<8x1xi1> to vector<8x1xi1>
    %166 = vector.broadcast %165 : vector<8x1xi1> to vector<8x128xi1>
    %167 = vector.broadcast %cst_51 : f32 to vector<8x128xf32>
    %168 = arith.select %166, %161, %167 : vector<8x128xi1>, vector<8x128xf32>
    %169 = arith.truncf %168 : vector<8x128xf32> to vector<8x128xbf16>
    %170 = arith.index_cast %127 : i32 to index
    %c0_52 = arith.constant 0 : index
    %171 = vector.load %arg12[%170, %c0_52] : memref<64x128xbf16, #tpu.memory_space<vmem>>, vector<8x128xbf16>
    tpu.vector_store %arg12[%170, %c0_52], %169 {strides = array<i32>} : memref<64x128xbf16, #tpu.memory_space<vmem>>, vector<8x128xbf16>,
    %c3_i32 = arith.constant 3 : i32
    %172 = arith.addi %7, %c3_i32 : i32
    %173 = arith.index_cast %172 : i32 to index
    %174 = memref.load %arg2[%173] : memref<8xi32, #tpu.memory_space<smem>>
    %175 = vector.broadcast %174 : i32 to vector<8x1xi32>
    %176 = arith.cmpi slt, %6, %175 : vector<8x1xi32>
    %c8_i32_53 = arith.constant 8 : i32
    %177 = arith.muli %c3_i32, %c8_i32_53 : i32
    %178 = tpu.assume_multiple %177, 8 : i32
    %179 = arith.index_cast %178 : i32 to index
    %c0_54 = arith.constant 0 : index
    %180 = vector.load %arg14[%179, %c0_54] : memref<64x384xf32, #tpu.memory_space<vmem>>, vector<8x384xf32>
    %c0_55 = arith.constant 0 : index
    %c0_56 = arith.constant 0 : index
    %c0_57 = arith.constant 0 : index
    %181 = vector.load %arg13[%c0_55, %c0_56, %c0_57] : memref<2x8x128xf32, #tpu.memory_space<vmem>>, vector<1x8x128xf32>
    %182 = vector.shape_cast %181 : vector<1x8x128xf32> to vector<8x128xf32>
    %183 = arith.truncf %182 : vector<8x128xf32> to vector<8x128xbf16>
    %cst_58 = arith.constant dense<0.000000e+00> : vector<8x384xf32>
    %184 = tpu.matmul %183, %9, %cst_58 {dimension_numbers = #tpu.dot_dimension_numbers<[1], [0], [0], [1], [0, 0, 1, 1], [], []>} : vector<8x128xbf16>, vector<128x384xbf16>, vector<8x384xf32> -> vector<8x384xf32>
    %185 = vector.extract_strided_slice %180 {offsets = [0, 0], sizes = [8, 128], strides = [1, 1]} : vector<8x384xf32> to vector<8x128xf32>
    %186 = vector.extract_strided_slice %184 {offsets = [0, 0], sizes = [8, 128], strides = [1, 1]} : vector<8x384xf32> to vector<8x128xf32>
    %187 = arith.addf %185, %186 : vector<8x128xf32>
    %188 = arith.negf %187 : vector<8x128xf32>
    %189 = math.exp %188 : vector<8x128xf32>
    %cst_59 = arith.constant 1.000000e+00 : f32
    %190 = vector.broadcast %cst_59 : f32 to vector<8x128xf32>
    %191 = arith.addf %190, %189 : vector<8x128xf32>
    %192 = arith.divf %190, %191 : vector<8x128xf32>
    %193 = vector.extract_strided_slice %180 {offsets = [0, 128], sizes = [8, 128], strides = [1, 1]} : vector<8x384xf32> to vector<8x128xf32>
    %194 = vector.extract_strided_slice %184 {offsets = [0, 128], sizes = [8, 128], strides = [1, 1]} : vector<8x384xf32> to vector<8x128xf32>
    %195 = arith.addf %193, %194 : vector<8x128xf32>
    %196 = arith.negf %195 : vector<8x128xf32>
    %197 = math.exp %196 : vector<8x128xf32>
    %cst_60 = arith.constant 1.000000e+00 : f32
    %198 = vector.broadcast %cst_60 : f32 to vector<8x128xf32>
    %199 = arith.addf %198, %197 : vector<8x128xf32>
    %200 = arith.divf %198, %199 : vector<8x128xf32>
    %201 = vector.extract_strided_slice %180 {offsets = [0, 256], sizes = [8, 128], strides = [1, 1]} : vector<8x384xf32> to vector<8x128xf32>
    %202 = vector.extract_strided_slice %184 {offsets = [0, 256], sizes = [8, 128], strides = [1, 1]} : vector<8x384xf32> to vector<8x128xf32>
    %203 = arith.addf %202, %13 : vector<8x128xf32>
    %204 = arith.mulf %192, %203 : vector<8x128xf32>
    %205 = arith.addf %201, %204 : vector<8x128xf32>
    %206 = math.tanh %205 : vector<8x128xf32>
    %207 = arith.subf %182, %206 : vector<8x128xf32>
    %208 = arith.mulf %200, %207 : vector<8x128xf32>
    %209 = arith.addf %206, %208 : vector<8x128xf32>
    %210 = vector.shape_cast %176 : vector<8x1xi1> to vector<8x1xi1>
    %211 = vector.broadcast %210 : vector<8x1xi1> to vector<8x128xi1>
    %212 = arith.select %211, %209, %182 : vector<8x128xi1>, vector<8x128xf32>
    %c0_61 = arith.constant 0 : index
    %c0_62 = arith.constant 0 : index
    %c0_63 = arith.constant 0 : index
    %213 = vector.load %arg13[%c0_61, %c0_62, %c0_63] : memref<2x8x128xf32, #tpu.memory_space<vmem>>, vector<1x8x128xf32>
    %214 = vector.shape_cast %213 : vector<1x8x128xf32> to vector<8x128xf32>
    %215 = vector.shape_cast %212 : vector<8x128xf32> to vector<1x8x128xf32>
    tpu.vector_store %arg13[%c0_61, %c0_62, %c0_63], %215 {strides = array<i32>} : memref<2x8x128xf32, #tpu.memory_space<vmem>>, vector<1x8x128xf32>,
    %cst_64 = arith.constant 0.000000e+00 : f32
    %216 = vector.shape_cast %176 : vector<8x1xi1> to vector<8x1xi1>
    %217 = vector.broadcast %216 : vector<8x1xi1> to vector<8x128xi1>
    %218 = vector.broadcast %cst_64 : f32 to vector<8x128xf32>
    %219 = arith.select %217, %212, %218 : vector<8x128xi1>, vector<8x128xf32>
    %220 = arith.truncf %219 : vector<8x128xf32> to vector<8x128xbf16>
    %221 = arith.index_cast %178 : i32 to index
    %c0_65 = arith.constant 0 : index
    %222 = vector.load %arg12[%221, %c0_65] : memref<64x128xbf16, #tpu.memory_space<vmem>>, vector<8x128xbf16>
    tpu.vector_store %arg12[%221, %c0_65], %220 {strides = array<i32>} : memref<64x128xbf16, #tpu.memory_space<vmem>>, vector<8x128xbf16>,
    %c4_i32 = arith.constant 4 : i32
    %223 = arith.addi %7, %c4_i32 : i32
    %224 = arith.index_cast %223 : i32 to index
    %225 = memref.load %arg2[%224] : memref<8xi32, #tpu.memory_space<smem>>
    %226 = vector.broadcast %225 : i32 to vector<8x1xi32>
    %227 = arith.cmpi slt, %6, %226 : vector<8x1xi32>
    %c8_i32_66 = arith.constant 8 : i32
    %228 = arith.muli %c4_i32, %c8_i32_66 : i32
    %229 = tpu.assume_multiple %228, 8 : i32
    %230 = arith.index_cast %229 : i32 to index
    %c0_67 = arith.constant 0 : index
    %231 = vector.load %arg14[%230, %c0_67] : memref<64x384xf32, #tpu.memory_space<vmem>>, vector<8x384xf32>
    %c0_68 = arith.constant 0 : index
    %c0_69 = arith.constant 0 : index
    %c0_70 = arith.constant 0 : index
    %232 = vector.load %arg13[%c0_68, %c0_69, %c0_70] : memref<2x8x128xf32, #tpu.memory_space<vmem>>, vector<1x8x128xf32>
    %233 = vector.shape_cast %232 : vector<1x8x128xf32> to vector<8x128xf32>
    %234 = arith.truncf %233 : vector<8x128xf32> to vector<8x128xbf16>
    %cst_71 = arith.constant dense<0.000000e+00> : vector<8x384xf32>
    %235 = tpu.matmul %234, %9, %cst_71 {dimension_numbers = #tpu.dot_dimension_numbers<[1], [0], [0], [1], [0, 0, 1, 1], [], []>} : vector<8x128xbf16>, vector<128x384xbf16>, vector<8x384xf32> -> vector<8x384xf32>
    %236 = vector.extract_strided_slice %231 {offsets = [0, 0], sizes = [8, 128], strides = [1, 1]} : vector<8x384xf32> to vector<8x128xf32>
    %237 = vector.extract_strided_slice %235 {offsets = [0, 0], sizes = [8, 128], strides = [1, 1]} : vector<8x384xf32> to vector<8x128xf32>
    %238 = arith.addf %236, %237 : vector<8x128xf32>
    %239 = arith.negf %238 : vector<8x128xf32>
    %240 = math.exp %239 : vector<8x128xf32>
    %cst_72 = arith.constant 1.000000e+00 : f32
    %241 = vector.broadcast %cst_72 : f32 to vector<8x128xf32>
    %242 = arith.addf %241, %240 : vector<8x128xf32>
    %243 = arith.divf %241, %242 : vector<8x128xf32>
    %244 = vector.extract_strided_slice %231 {offsets = [0, 128], sizes = [8, 128], strides = [1, 1]} : vector<8x384xf32> to vector<8x128xf32>
    %245 = vector.extract_strided_slice %235 {offsets = [0, 128], sizes = [8, 128], strides = [1, 1]} : vector<8x384xf32> to vector<8x128xf32>
    %246 = arith.addf %244, %245 : vector<8x128xf32>
    %247 = arith.negf %246 : vector<8x128xf32>
    %248 = math.exp %247 : vector<8x128xf32>
    %cst_73 = arith.constant 1.000000e+00 : f32
    %249 = vector.broadcast %cst_73 : f32 to vector<8x128xf32>
    %250 = arith.addf %249, %248 : vector<8x128xf32>
    %251 = arith.divf %249, %250 : vector<8x128xf32>
    %252 = vector.extract_strided_slice %231 {offsets = [0, 256], sizes = [8, 128], strides = [1, 1]} : vector<8x384xf32> to vector<8x128xf32>
    %253 = vector.extract_strided_slice %235 {offsets = [0, 256], sizes = [8, 128], strides = [1, 1]} : vector<8x384xf32> to vector<8x128xf32>
    %254 = arith.addf %253, %13 : vector<8x128xf32>
    %255 = arith.mulf %243, %254 : vector<8x128xf32>
    %256 = arith.addf %252, %255 : vector<8x128xf32>
    %257 = math.tanh %256 : vector<8x128xf32>
    %258 = arith.subf %233, %257 : vector<8x128xf32>
    %259 = arith.mulf %251, %258 : vector<8x128xf32>
    %260 = arith.addf %257, %259 : vector<8x128xf32>
    %261 = vector.shape_cast %227 : vector<8x1xi1> to vector<8x1xi1>
    %262 = vector.broadcast %261 : vector<8x1xi1> to vector<8x128xi1>
    %263 = arith.select %262, %260, %233 : vector<8x128xi1>, vector<8x128xf32>
    %c0_74 = arith.constant 0 : index
    %c0_75 = arith.constant 0 : index
    %c0_76 = arith.constant 0 : index
    %264 = vector.load %arg13[%c0_74, %c0_75, %c0_76] : memref<2x8x128xf32, #tpu.memory_space<vmem>>, vector<1x8x128xf32>
    %265 = vector.shape_cast %264 : vector<1x8x128xf32> to vector<8x128xf32>
    %266 = vector.shape_cast %263 : vector<8x128xf32> to vector<1x8x128xf32>
    tpu.vector_store %arg13[%c0_74, %c0_75, %c0_76], %266 {strides = array<i32>} : memref<2x8x128xf32, #tpu.memory_space<vmem>>, vector<1x8x128xf32>,
    %cst_77 = arith.constant 0.000000e+00 : f32
    %267 = vector.shape_cast %227 : vector<8x1xi1> to vector<8x1xi1>
    %268 = vector.broadcast %267 : vector<8x1xi1> to vector<8x128xi1>
    %269 = vector.broadcast %cst_77 : f32 to vector<8x128xf32>
    %270 = arith.select %268, %263, %269 : vector<8x128xi1>, vector<8x128xf32>
    %271 = arith.truncf %270 : vector<8x128xf32> to vector<8x128xbf16>
    %272 = arith.index_cast %229 : i32 to index
    %c0_78 = arith.constant 0 : index
    %273 = vector.load %arg12[%272, %c0_78] : memref<64x128xbf16, #tpu.memory_space<vmem>>, vector<8x128xbf16>
    tpu.vector_store %arg12[%272, %c0_78], %271 {strides = array<i32>} : memref<64x128xbf16, #tpu.memory_space<vmem>>, vector<8x128xbf16>,
    %c5_i32 = arith.constant 5 : i32
    %274 = arith.addi %7, %c5_i32 : i32
    %275 = arith.index_cast %274 : i32 to index
    %276 = memref.load %arg2[%275] : memref<8xi32, #tpu.memory_space<smem>>
    %277 = vector.broadcast %276 : i32 to vector<8x1xi32>
    %278 = arith.cmpi slt, %6, %277 : vector<8x1xi32>
    %c8_i32_79 = arith.constant 8 : i32
    %279 = arith.muli %c5_i32, %c8_i32_79 : i32
    %280 = tpu.assume_multiple %279, 8 : i32
    %281 = arith.index_cast %280 : i32 to index
    %c0_80 = arith.constant 0 : index
    %282 = vector.load %arg14[%281, %c0_80] : memref<64x384xf32, #tpu.memory_space<vmem>>, vector<8x384xf32>
    %c0_81 = arith.constant 0 : index
    %c0_82 = arith.constant 0 : index
    %c0_83 = arith.constant 0 : index
    %283 = vector.load %arg13[%c0_81, %c0_82, %c0_83] : memref<2x8x128xf32, #tpu.memory_space<vmem>>, vector<1x8x128xf32>
    %284 = vector.shape_cast %283 : vector<1x8x128xf32> to vector<8x128xf32>
    %285 = arith.truncf %284 : vector<8x128xf32> to vector<8x128xbf16>
    %cst_84 = arith.constant dense<0.000000e+00> : vector<8x384xf32>
    %286 = tpu.matmul %285, %9, %cst_84 {dimension_numbers = #tpu.dot_dimension_numbers<[1], [0], [0], [1], [0, 0, 1, 1], [], []>} : vector<8x128xbf16>, vector<128x384xbf16>, vector<8x384xf32> -> vector<8x384xf32>
    %287 = vector.extract_strided_slice %282 {offsets = [0, 0], sizes = [8, 128], strides = [1, 1]} : vector<8x384xf32> to vector<8x128xf32>
    %288 = vector.extract_strided_slice %286 {offsets = [0, 0], sizes = [8, 128], strides = [1, 1]} : vector<8x384xf32> to vector<8x128xf32>
    %289 = arith.addf %287, %288 : vector<8x128xf32>
    %290 = arith.negf %289 : vector<8x128xf32>
    %291 = math.exp %290 : vector<8x128xf32>
    %cst_85 = arith.constant 1.000000e+00 : f32
    %292 = vector.broadcast %cst_85 : f32 to vector<8x128xf32>
    %293 = arith.addf %292, %291 : vector<8x128xf32>
    %294 = arith.divf %292, %293 : vector<8x128xf32>
    %295 = vector.extract_strided_slice %282 {offsets = [0, 128], sizes = [8, 128], strides = [1, 1]} : vector<8x384xf32> to vector<8x128xf32>
    %296 = vector.extract_strided_slice %286 {offsets = [0, 128], sizes = [8, 128], strides = [1, 1]} : vector<8x384xf32> to vector<8x128xf32>
    %297 = arith.addf %295, %296 : vector<8x128xf32>
    %298 = arith.negf %297 : vector<8x128xf32>
    %299 = math.exp %298 : vector<8x128xf32>
    %cst_86 = arith.constant 1.000000e+00 : f32
    %300 = vector.broadcast %cst_86 : f32 to vector<8x128xf32>
    %301 = arith.addf %300, %299 : vector<8x128xf32>
    %302 = arith.divf %300, %301 : vector<8x128xf32>
    %303 = vector.extract_strided_slice %282 {offsets = [0, 256], sizes = [8, 128], strides = [1, 1]} : vector<8x384xf32> to vector<8x128xf32>
    %304 = vector.extract_strided_slice %286 {offsets = [0, 256], sizes = [8, 128], strides = [1, 1]} : vector<8x384xf32> to vector<8x128xf32>
    %305 = arith.addf %304, %13 : vector<8x128xf32>
    %306 = arith.mulf %294, %305 : vector<8x128xf32>
    %307 = arith.addf %303, %306 : vector<8x128xf32>
    %308 = math.tanh %307 : vector<8x128xf32>
    %309 = arith.subf %284, %308 : vector<8x128xf32>
    %310 = arith.mulf %302, %309 : vector<8x128xf32>
    %311 = arith.addf %308, %310 : vector<8x128xf32>
    %312 = vector.shape_cast %278 : vector<8x1xi1> to vector<8x1xi1>
    %313 = vector.broadcast %312 : vector<8x1xi1> to vector<8x128xi1>
    %314 = arith.select %313, %311, %284 : vector<8x128xi1>, vector<8x128xf32>
    %c0_87 = arith.constant 0 : index
    %c0_88 = arith.constant 0 : index
    %c0_89 = arith.constant 0 : index
    %315 = vector.load %arg13[%c0_87, %c0_88, %c0_89] : memref<2x8x128xf32, #tpu.memory_space<vmem>>, vector<1x8x128xf32>
    %316 = vector.shape_cast %315 : vector<1x8x128xf32> to vector<8x128xf32>
    %317 = vector.shape_cast %314 : vector<8x128xf32> to vector<1x8x128xf32>
    tpu.vector_store %arg13[%c0_87, %c0_88, %c0_89], %317 {strides = array<i32>} : memref<2x8x128xf32, #tpu.memory_space<vmem>>, vector<1x8x128xf32>,
    %cst_90 = arith.constant 0.000000e+00 : f32
    %318 = vector.shape_cast %278 : vector<8x1xi1> to vector<8x1xi1>
    %319 = vector.broadcast %318 : vector<8x1xi1> to vector<8x128xi1>
    %320 = vector.broadcast %cst_90 : f32 to vector<8x128xf32>
    %321 = arith.select %319, %314, %320 : vector<8x128xi1>, vector<8x128xf32>
    %322 = arith.truncf %321 : vector<8x128xf32> to vector<8x128xbf16>
    %323 = arith.index_cast %280 : i32 to index
    %c0_91 = arith.constant 0 : index
    %324 = vector.load %arg12[%323, %c0_91] : memref<64x128xbf16, #tpu.memory_space<vmem>>, vector<8x128xbf16>
    tpu.vector_store %arg12[%323, %c0_91], %322 {strides = array<i32>} : memref<64x128xbf16, #tpu.memory_space<vmem>>, vector<8x128xbf16>,
    %c6_i32 = arith.constant 6 : i32
    %325 = arith.addi %7, %c6_i32 : i32
    %326 = arith.index_cast %325 : i32 to index
    %327 = memref.load %arg2[%326] : memref<8xi32, #tpu.memory_space<smem>>
    %328 = vector.broadcast %327 : i32 to vector<8x1xi32>
    %329 = arith.cmpi slt, %6, %328 : vector<8x1xi32>
    %c8_i32_92 = arith.constant 8 : i32
    %330 = arith.muli %c6_i32, %c8_i32_92 : i32
    %331 = tpu.assume_multiple %330, 8 : i32
    %332 = arith.index_cast %331 : i32 to index
    %c0_93 = arith.constant 0 : index
    %333 = vector.load %arg14[%332, %c0_93] : memref<64x384xf32, #tpu.memory_space<vmem>>, vector<8x384xf32>
    %c0_94 = arith.constant 0 : index
    %c0_95 = arith.constant 0 : index
    %c0_96 = arith.constant 0 : index
    %334 = vector.load %arg13[%c0_94, %c0_95, %c0_96] : memref<2x8x128xf32, #tpu.memory_space<vmem>>, vector<1x8x128xf32>
    %335 = vector.shape_cast %334 : vector<1x8x128xf32> to vector<8x128xf32>
    %336 = arith.truncf %335 : vector<8x128xf32> to vector<8x128xbf16>
    %cst_97 = arith.constant dense<0.000000e+00> : vector<8x384xf32>
    %337 = tpu.matmul %336, %9, %cst_97 {dimension_numbers = #tpu.dot_dimension_numbers<[1], [0], [0], [1], [0, 0, 1, 1], [], []>} : vector<8x128xbf16>, vector<128x384xbf16>, vector<8x384xf32> -> vector<8x384xf32>
    %338 = vector.extract_strided_slice %333 {offsets = [0, 0], sizes = [8, 128], strides = [1, 1]} : vector<8x384xf32> to vector<8x128xf32>
    %339 = vector.extract_strided_slice %337 {offsets = [0, 0], sizes = [8, 128], strides = [1, 1]} : vector<8x384xf32> to vector<8x128xf32>
    %340 = arith.addf %338, %339 : vector<8x128xf32>
    %341 = arith.negf %340 : vector<8x128xf32>
    %342 = math.exp %341 : vector<8x128xf32>
    %cst_98 = arith.constant 1.000000e+00 : f32
    %343 = vector.broadcast %cst_98 : f32 to vector<8x128xf32>
    %344 = arith.addf %343, %342 : vector<8x128xf32>
    %345 = arith.divf %343, %344 : vector<8x128xf32>
    %346 = vector.extract_strided_slice %333 {offsets = [0, 128], sizes = [8, 128], strides = [1, 1]} : vector<8x384xf32> to vector<8x128xf32>
    %347 = vector.extract_strided_slice %337 {offsets = [0, 128], sizes = [8, 128], strides = [1, 1]} : vector<8x384xf32> to vector<8x128xf32>
    %348 = arith.addf %346, %347 : vector<8x128xf32>
    %349 = arith.negf %348 : vector<8x128xf32>
    %350 = math.exp %349 : vector<8x128xf32>
    %cst_99 = arith.constant 1.000000e+00 : f32
    %351 = vector.broadcast %cst_99 : f32 to vector<8x128xf32>
    %352 = arith.addf %351, %350 : vector<8x128xf32>
    %353 = arith.divf %351, %352 : vector<8x128xf32>
    %354 = vector.extract_strided_slice %333 {offsets = [0, 256], sizes = [8, 128], strides = [1, 1]} : vector<8x384xf32> to vector<8x128xf32>
    %355 = vector.extract_strided_slice %337 {offsets = [0, 256], sizes = [8, 128], strides = [1, 1]} : vector<8x384xf32> to vector<8x128xf32>
    %356 = arith.addf %355, %13 : vector<8x128xf32>
    %357 = arith.mulf %345, %356 : vector<8x128xf32>
    %358 = arith.addf %354, %357 : vector<8x128xf32>
    %359 = math.tanh %358 : vector<8x128xf32>
    %360 = arith.subf %335, %359 : vector<8x128xf32>
    %361 = arith.mulf %353, %360 : vector<8x128xf32>
    %362 = arith.addf %359, %361 : vector<8x128xf32>
    %363 = vector.shape_cast %329 : vector<8x1xi1> to vector<8x1xi1>
    %364 = vector.broadcast %363 : vector<8x1xi1> to vector<8x128xi1>
    %365 = arith.select %364, %362, %335 : vector<8x128xi1>, vector<8x128xf32>
    %c0_100 = arith.constant 0 : index
    %c0_101 = arith.constant 0 : index
    %c0_102 = arith.constant 0 : index
    %366 = vector.load %arg13[%c0_100, %c0_101, %c0_102] : memref<2x8x128xf32, #tpu.memory_space<vmem>>, vector<1x8x128xf32>
    %367 = vector.shape_cast %366 : vector<1x8x128xf32> to vector<8x128xf32>
    %368 = vector.shape_cast %365 : vector<8x128xf32> to vector<1x8x128xf32>
    tpu.vector_store %arg13[%c0_100, %c0_101, %c0_102], %368 {strides = array<i32>} : memref<2x8x128xf32, #tpu.memory_space<vmem>>, vector<1x8x128xf32>,
    %cst_103 = arith.constant 0.000000e+00 : f32
    %369 = vector.shape_cast %329 : vector<8x1xi1> to vector<8x1xi1>
    %370 = vector.broadcast %369 : vector<8x1xi1> to vector<8x128xi1>
    %371 = vector.broadcast %cst_103 : f32 to vector<8x128xf32>
    %372 = arith.select %370, %365, %371 : vector<8x128xi1>, vector<8x128xf32>
    %373 = arith.truncf %372 : vector<8x128xf32> to vector<8x128xbf16>
    %374 = arith.index_cast %331 : i32 to index
    %c0_104 = arith.constant 0 : index
    %375 = vector.load %arg12[%374, %c0_104] : memref<64x128xbf16, #tpu.memory_space<vmem>>, vector<8x128xbf16>
    tpu.vector_store %arg12[%374, %c0_104], %373 {strides = array<i32>} : memref<64x128xbf16, #tpu.memory_space<vmem>>, vector<8x128xbf16>,
    %c7_i32 = arith.constant 7 : i32
    %376 = arith.addi %7, %c7_i32 : i32
    %377 = arith.index_cast %376 : i32 to index
    %378 = memref.load %arg2[%377] : memref<8xi32, #tpu.memory_space<smem>>
    %379 = vector.broadcast %378 : i32 to vector<8x1xi32>
    %380 = arith.cmpi slt, %6, %379 : vector<8x1xi32>
    %c8_i32_105 = arith.constant 8 : i32
    %381 = arith.muli %c7_i32, %c8_i32_105 : i32
    %382 = tpu.assume_multiple %381, 8 : i32
    %383 = arith.index_cast %382 : i32 to index
    %c0_106 = arith.constant 0 : index
    %384 = vector.load %arg14[%383, %c0_106] : memref<64x384xf32, #tpu.memory_space<vmem>>, vector<8x384xf32>
    %c0_107 = arith.constant 0 : index
    %c0_108 = arith.constant 0 : index
    %c0_109 = arith.constant 0 : index
    %385 = vector.load %arg13[%c0_107, %c0_108, %c0_109] : memref<2x8x128xf32, #tpu.memory_space<vmem>>, vector<1x8x128xf32>
    %386 = vector.shape_cast %385 : vector<1x8x128xf32> to vector<8x128xf32>
    %387 = arith.truncf %386 : vector<8x128xf32> to vector<8x128xbf16>
    %cst_110 = arith.constant dense<0.000000e+00> : vector<8x384xf32>
    %388 = tpu.matmul %387, %9, %cst_110 {dimension_numbers = #tpu.dot_dimension_numbers<[1], [0], [0], [1], [0, 0, 1, 1], [], []>} : vector<8x128xbf16>, vector<128x384xbf16>, vector<8x384xf32> -> vector<8x384xf32>
    %389 = vector.extract_strided_slice %384 {offsets = [0, 0], sizes = [8, 128], strides = [1, 1]} : vector<8x384xf32> to vector<8x128xf32>
    %390 = vector.extract_strided_slice %388 {offsets = [0, 0], sizes = [8, 128], strides = [1, 1]} : vector<8x384xf32> to vector<8x128xf32>
    %391 = arith.addf %389, %390 : vector<8x128xf32>
    %392 = arith.negf %391 : vector<8x128xf32>
    %393 = math.exp %392 : vector<8x128xf32>
    %cst_111 = arith.constant 1.000000e+00 : f32
    %394 = vector.broadcast %cst_111 : f32 to vector<8x128xf32>
    %395 = arith.addf %394, %393 : vector<8x128xf32>
    %396 = arith.divf %394, %395 : vector<8x128xf32>
    %397 = vector.extract_strided_slice %384 {offsets = [0, 128], sizes = [8, 128], strides = [1, 1]} : vector<8x384xf32> to vector<8x128xf32>
    %398 = vector.extract_strided_slice %388 {offsets = [0, 128], sizes = [8, 128], strides = [1, 1]} : vector<8x384xf32> to vector<8x128xf32>
    %399 = arith.addf %397, %398 : vector<8x128xf32>
    %400 = arith.negf %399 : vector<8x128xf32>
    %401 = math.exp %400 : vector<8x128xf32>
    %cst_112 = arith.constant 1.000000e+00 : f32
    %402 = vector.broadcast %cst_112 : f32 to vector<8x128xf32>
    %403 = arith.addf %402, %401 : vector<8x128xf32>
    %404 = arith.divf %402, %403 : vector<8x128xf32>
    %405 = vector.extract_strided_slice %384 {offsets = [0, 256], sizes = [8, 128], strides = [1, 1]} : vector<8x384xf32> to vector<8x128xf32>
    %406 = vector.extract_strided_slice %388 {offsets = [0, 256], sizes = [8, 128], strides = [1, 1]} : vector<8x384xf32> to vector<8x128xf32>
    %407 = arith.addf %406, %13 : vector<8x128xf32>
    %408 = arith.mulf %396, %407 : vector<8x128xf32>
    %409 = arith.addf %405, %408 : vector<8x128xf32>
    %410 = math.tanh %409 : vector<8x128xf32>
    %411 = arith.subf %386, %410 : vector<8x128xf32>
    %412 = arith.mulf %404, %411 : vector<8x128xf32>
    %413 = arith.addf %410, %412 : vector<8x128xf32>
    %414 = vector.shape_cast %380 : vector<8x1xi1> to vector<8x1xi1>
    %415 = vector.broadcast %414 : vector<8x1xi1> to vector<8x128xi1>
    %416 = arith.select %415, %413, %386 : vector<8x128xi1>, vector<8x128xf32>
    %c0_113 = arith.constant 0 : index
    %c0_114 = arith.constant 0 : index
    %c0_115 = arith.constant 0 : index
    %417 = vector.load %arg13[%c0_113, %c0_114, %c0_115] : memref<2x8x128xf32, #tpu.memory_space<vmem>>, vector<1x8x128xf32>
    %418 = vector.shape_cast %417 : vector<1x8x128xf32> to vector<8x128xf32>
    %419 = vector.shape_cast %416 : vector<8x128xf32> to vector<1x8x128xf32>
    tpu.vector_store %arg13[%c0_113, %c0_114, %c0_115], %419 {strides = array<i32>} : memref<2x8x128xf32, #tpu.memory_space<vmem>>, vector<1x8x128xf32>,
    %cst_116 = arith.constant 0.000000e+00 : f32
    %420 = vector.shape_cast %380 : vector<8x1xi1> to vector<8x1xi1>
    %421 = vector.broadcast %420 : vector<8x1xi1> to vector<8x128xi1>
    %422 = vector.broadcast %cst_116 : f32 to vector<8x128xf32>
    %423 = arith.select %421, %416, %422 : vector<8x128xi1>, vector<8x128xf32>
    %424 = arith.truncf %423 : vector<8x128xf32> to vector<8x128xbf16>
    %425 = arith.index_cast %382 : i32 to index
    %c0_117 = arith.constant 0 : index
    %426 = vector.load %arg12[%425, %c0_117] : memref<64x128xbf16, #tpu.memory_space<vmem>>, vector<8x128xbf16>
    tpu.vector_store %arg12[%425, %c0_117], %424 {strides = array<i32>} : memref<64x128xbf16, #tpu.memory_space<vmem>>, vector<8x128xbf16>,
    %c8_i32_118 = arith.constant 8 : i32
    %c0_119 = arith.constant 0 : index
    %c0_120 = arith.constant 0 : index
    %427 = vector.load %arg8[%c0_119, %c0_120] : memref<128x384xbf16, #tpu.memory_space<vmem>>, vector<128x384xbf16>
    %c0_121 = arith.constant 0 : index
    %c0_122 = arith.constant 0 : index
    %428 = vector.load %arg9[%c0_121, %c0_122] : memref<128x384xbf16, #tpu.memory_space<vmem>>, vector<128x384xbf16>
    %c0_123 = arith.constant 0 : index
    %c0_124 = arith.constant 0 : index
    %429 = vector.load %arg10[%c0_123, %c0_124] : memref<1x384xf32, #tpu.memory_space<vmem>>, vector<1x384xf32>
    %c0_125 = arith.constant 0 : index
    %c0_126 = arith.constant 0 : index
    %430 = vector.load %arg11[%c0_125, %c0_126] : memref<1x128xf32, #tpu.memory_space<vmem>>, vector<1x128xf32>
    %431 = vector.shape_cast %430 : vector<1x128xf32> to vector<1x128xf32>
    %432 = vector.broadcast %431 : vector<1x128xf32> to vector<8x128xf32>
    %c0_127 = arith.constant 0 : index
    %c0_128 = arith.constant 0 : index
    %433 = vector.load %arg12[%c0_127, %c0_128] : memref<64x128xbf16, #tpu.memory_space<vmem>>, vector<64x128xbf16>
    %cst_129 = arith.constant dense<0.000000e+00> : vector<64x384xf32>
    %434 = tpu.matmul %433, %427, %cst_129 {dimension_numbers = #tpu.dot_dimension_numbers<[1], [0], [0], [1], [0, 0, 1, 1], [], []>} : vector<64x128xbf16>, vector<128x384xbf16>, vector<64x384xf32> -> vector<64x384xf32>
    %435 = vector.broadcast %429 : vector<1x384xf32> to vector<64x384xf32>
    %436 = arith.addf %434, %435 : vector<64x384xf32>
    %c0_130 = arith.constant 0 : index
    %c0_131 = arith.constant 0 : index
    %437 = vector.load %arg14[%c0_130, %c0_131] : memref<64x384xf32, #tpu.memory_space<vmem>>, vector<64x384xf32>
    tpu.vector_store %arg14[%c0_130, %c0_131], %436 {strides = array<i32>} : memref<64x384xf32, #tpu.memory_space<vmem>>, vector<64x384xf32>,
    %c0_i32_132 = arith.constant 0 : i32
    %438 = arith.addi %7, %c0_i32_132 : i32
    %439 = arith.index_cast %438 : i32 to index
    %440 = memref.load %arg2[%439] : memref<8xi32, #tpu.memory_space<smem>>
    %441 = vector.broadcast %440 : i32 to vector<8x1xi32>
    %442 = arith.cmpi slt, %6, %441 : vector<8x1xi32>
    %c8_i32_133 = arith.constant 8 : i32
    %443 = arith.muli %c0_i32_132, %c8_i32_133 : i32
    %444 = tpu.assume_multiple %443, 8 : i32
    %445 = arith.index_cast %444 : i32 to index
    %c0_134 = arith.constant 0 : index
    %446 = vector.load %arg14[%445, %c0_134] : memref<64x384xf32, #tpu.memory_space<vmem>>, vector<8x384xf32>
    %c1 = arith.constant 1 : index
    %c0_135 = arith.constant 0 : index
    %c0_136 = arith.constant 0 : index
    %447 = vector.load %arg13[%c1, %c0_135, %c0_136] : memref<2x8x128xf32, #tpu.memory_space<vmem>>, vector<1x8x128xf32>
    %448 = vector.shape_cast %447 : vector<1x8x128xf32> to vector<8x128xf32>
    %449 = arith.truncf %448 : vector<8x128xf32> to vector<8x128xbf16>
    %cst_137 = arith.constant dense<0.000000e+00> : vector<8x384xf32>
    %450 = tpu.matmul %449, %428, %cst_137 {dimension_numbers = #tpu.dot_dimension_numbers<[1], [0], [0], [1], [0, 0, 1, 1], [], []>} : vector<8x128xbf16>, vector<128x384xbf16>, vector<8x384xf32> -> vector<8x384xf32>
    %451 = vector.extract_strided_slice %446 {offsets = [0, 0], sizes = [8, 128], strides = [1, 1]} : vector<8x384xf32> to vector<8x128xf32>
    %452 = vector.extract_strided_slice %450 {offsets = [0, 0], sizes = [8, 128], strides = [1, 1]} : vector<8x384xf32> to vector<8x128xf32>
    %453 = arith.addf %451, %452 : vector<8x128xf32>
    %454 = arith.negf %453 : vector<8x128xf32>
    %455 = math.exp %454 : vector<8x128xf32>
    %cst_138 = arith.constant 1.000000e+00 : f32
    %456 = vector.broadcast %cst_138 : f32 to vector<8x128xf32>
    %457 = arith.addf %456, %455 : vector<8x128xf32>
    %458 = arith.divf %456, %457 : vector<8x128xf32>
    %459 = vector.extract_strided_slice %446 {offsets = [0, 128], sizes = [8, 128], strides = [1, 1]} : vector<8x384xf32> to vector<8x128xf32>
    %460 = vector.extract_strided_slice %450 {offsets = [0, 128], sizes = [8, 128], strides = [1, 1]} : vector<8x384xf32> to vector<8x128xf32>
    %461 = arith.addf %459, %460 : vector<8x128xf32>
    %462 = arith.negf %461 : vector<8x128xf32>
    %463 = math.exp %462 : vector<8x128xf32>
    %cst_139 = arith.constant 1.000000e+00 : f32
    %464 = vector.broadcast %cst_139 : f32 to vector<8x128xf32>
    %465 = arith.addf %464, %463 : vector<8x128xf32>
    %466 = arith.divf %464, %465 : vector<8x128xf32>
    %467 = vector.extract_strided_slice %446 {offsets = [0, 256], sizes = [8, 128], strides = [1, 1]} : vector<8x384xf32> to vector<8x128xf32>
    %468 = vector.extract_strided_slice %450 {offsets = [0, 256], sizes = [8, 128], strides = [1, 1]} : vector<8x384xf32> to vector<8x128xf32>
    %469 = arith.addf %468, %432 : vector<8x128xf32>
    %470 = arith.mulf %458, %469 : vector<8x128xf32>
    %471 = arith.addf %467, %470 : vector<8x128xf32>
    %472 = math.tanh %471 : vector<8x128xf32>
    %473 = arith.subf %448, %472 : vector<8x128xf32>
    %474 = arith.mulf %466, %473 : vector<8x128xf32>
    %475 = arith.addf %472, %474 : vector<8x128xf32>
    %476 = vector.shape_cast %442 : vector<8x1xi1> to vector<8x1xi1>
    %477 = vector.broadcast %476 : vector<8x1xi1> to vector<8x128xi1>
    %478 = arith.select %477, %475, %448 : vector<8x128xi1>, vector<8x128xf32>
    %c1_140 = arith.constant 1 : index
    %c0_141 = arith.constant 0 : index
    %c0_142 = arith.constant 0 : index
    %479 = vector.load %arg13[%c1_140, %c0_141, %c0_142] : memref<2x8x128xf32, #tpu.memory_space<vmem>>, vector<1x8x128xf32>
    %480 = vector.shape_cast %479 : vector<1x8x128xf32> to vector<8x128xf32>
    %481 = vector.shape_cast %478 : vector<8x128xf32> to vector<1x8x128xf32>
    tpu.vector_store %arg13[%c1_140, %c0_141, %c0_142], %481 {strides = array<i32>} : memref<2x8x128xf32, #tpu.memory_space<vmem>>, vector<1x8x128xf32>,
    %cst_143 = arith.constant 0.000000e+00 : f32
    %482 = vector.shape_cast %442 : vector<8x1xi1> to vector<8x1xi1>
    %483 = vector.broadcast %482 : vector<8x1xi1> to vector<8x128xi1>
    %484 = vector.broadcast %cst_143 : f32 to vector<8x128xf32>
    %485 = arith.select %483, %478, %484 : vector<8x128xi1>, vector<8x128xf32>
    %486 = arith.truncf %485 : vector<8x128xf32> to vector<8x128xbf16>
    %487 = arith.index_cast %444 : i32 to index
    %c0_144 = arith.constant 0 : index
    %488 = vector.load %arg12[%487, %c0_144] : memref<64x128xbf16, #tpu.memory_space<vmem>>, vector<8x128xbf16>
    tpu.vector_store %arg12[%487, %c0_144], %486 {strides = array<i32>} : memref<64x128xbf16, #tpu.memory_space<vmem>>, vector<8x128xbf16>,
    %c1_i32_145 = arith.constant 1 : i32
    %489 = arith.addi %7, %c1_i32_145 : i32
    %490 = arith.index_cast %489 : i32 to index
    %491 = memref.load %arg2[%490] : memref<8xi32, #tpu.memory_space<smem>>
    %492 = vector.broadcast %491 : i32 to vector<8x1xi32>
    %493 = arith.cmpi slt, %6, %492 : vector<8x1xi32>
    %c8_i32_146 = arith.constant 8 : i32
    %494 = arith.muli %c1_i32_145, %c8_i32_146 : i32
    %495 = tpu.assume_multiple %494, 8 : i32
    %496 = arith.index_cast %495 : i32 to index
    %c0_147 = arith.constant 0 : index
    %497 = vector.load %arg14[%496, %c0_147] : memref<64x384xf32, #tpu.memory_space<vmem>>, vector<8x384xf32>
    %c1_148 = arith.constant 1 : index
    %c0_149 = arith.constant 0 : index
    %c0_150 = arith.constant 0 : index
    %498 = vector.load %arg13[%c1_148, %c0_149, %c0_150] : memref<2x8x128xf32, #tpu.memory_space<vmem>>, vector<1x8x128xf32>
    %499 = vector.shape_cast %498 : vector<1x8x128xf32> to vector<8x128xf32>
    %500 = arith.truncf %499 : vector<8x128xf32> to vector<8x128xbf16>
    %cst_151 = arith.constant dense<0.000000e+00> : vector<8x384xf32>
    %501 = tpu.matmul %500, %428, %cst_151 {dimension_numbers = #tpu.dot_dimension_numbers<[1], [0], [0], [1], [0, 0, 1, 1], [], []>} : vector<8x128xbf16>, vector<128x384xbf16>, vector<8x384xf32> -> vector<8x384xf32>
    %502 = vector.extract_strided_slice %497 {offsets = [0, 0], sizes = [8, 128], strides = [1, 1]} : vector<8x384xf32> to vector<8x128xf32>
    %503 = vector.extract_strided_slice %501 {offsets = [0, 0], sizes = [8, 128], strides = [1, 1]} : vector<8x384xf32> to vector<8x128xf32>
    %504 = arith.addf %502, %503 : vector<8x128xf32>
    %505 = arith.negf %504 : vector<8x128xf32>
    %506 = math.exp %505 : vector<8x128xf32>
    %cst_152 = arith.constant 1.000000e+00 : f32
    %507 = vector.broadcast %cst_152 : f32 to vector<8x128xf32>
    %508 = arith.addf %507, %506 : vector<8x128xf32>
    %509 = arith.divf %507, %508 : vector<8x128xf32>
    %510 = vector.extract_strided_slice %497 {offsets = [0, 128], sizes = [8, 128], strides = [1, 1]} : vector<8x384xf32> to vector<8x128xf32>
    %511 = vector.extract_strided_slice %501 {offsets = [0, 128], sizes = [8, 128], strides = [1, 1]} : vector<8x384xf32> to vector<8x128xf32>
    %512 = arith.addf %510, %511 : vector<8x128xf32>
    %513 = arith.negf %512 : vector<8x128xf32>
    %514 = math.exp %513 : vector<8x128xf32>
    %cst_153 = arith.constant 1.000000e+00 : f32
    %515 = vector.broadcast %cst_153 : f32 to vector<8x128xf32>
    %516 = arith.addf %515, %514 : vector<8x128xf32>
    %517 = arith.divf %515, %516 : vector<8x128xf32>
    %518 = vector.extract_strided_slice %497 {offsets = [0, 256], sizes = [8, 128], strides = [1, 1]} : vector<8x384xf32> to vector<8x128xf32>
    %519 = vector.extract_strided_slice %501 {offsets = [0, 256], sizes = [8, 128], strides = [1, 1]} : vector<8x384xf32> to vector<8x128xf32>
    %520 = arith.addf %519, %432 : vector<8x128xf32>
    %521 = arith.mulf %509, %520 : vector<8x128xf32>
    %522 = arith.addf %518, %521 : vector<8x128xf32>
    %523 = math.tanh %522 : vector<8x128xf32>
    %524 = arith.subf %499, %523 : vector<8x128xf32>
    %525 = arith.mulf %517, %524 : vector<8x128xf32>
    %526 = arith.addf %523, %525 : vector<8x128xf32>
    %527 = vector.shape_cast %493 : vector<8x1xi1> to vector<8x1xi1>
    %528 = vector.broadcast %527 : vector<8x1xi1> to vector<8x128xi1>
    %529 = arith.select %528, %526, %499 : vector<8x128xi1>, vector<8x128xf32>
    %c1_154 = arith.constant 1 : index
    %c0_155 = arith.constant 0 : index
    %c0_156 = arith.constant 0 : index
    %530 = vector.load %arg13[%c1_154, %c0_155, %c0_156] : memref<2x8x128xf32, #tpu.memory_space<vmem>>, vector<1x8x128xf32>
    %531 = vector.shape_cast %530 : vector<1x8x128xf32> to vector<8x128xf32>
    %532 = vector.shape_cast %529 : vector<8x128xf32> to vector<1x8x128xf32>
    tpu.vector_store %arg13[%c1_154, %c0_155, %c0_156], %532 {strides = array<i32>} : memref<2x8x128xf32, #tpu.memory_space<vmem>>, vector<1x8x128xf32>,
    %cst_157 = arith.constant 0.000000e+00 : f32
    %533 = vector.shape_cast %493 : vector<8x1xi1> to vector<8x1xi1>
    %534 = vector.broadcast %533 : vector<8x1xi1> to vector<8x128xi1>
    %535 = vector.broadcast %cst_157 : f32 to vector<8x128xf32>
    %536 = arith.select %534, %529, %535 : vector<8x128xi1>, vector<8x128xf32>
    %537 = arith.truncf %536 : vector<8x128xf32> to vector<8x128xbf16>
    %538 = arith.index_cast %495 : i32 to index
    %c0_158 = arith.constant 0 : index
    %539 = vector.load %arg12[%538, %c0_158] : memref<64x128xbf16, #tpu.memory_space<vmem>>, vector<8x128xbf16>
    tpu.vector_store %arg12[%538, %c0_158], %537 {strides = array<i32>} : memref<64x128xbf16, #tpu.memory_space<vmem>>, vector<8x128xbf16>,
    %c2_i32_159 = arith.constant 2 : i32
    %540 = arith.addi %7, %c2_i32_159 : i32
    %541 = arith.index_cast %540 : i32 to index
    %542 = memref.load %arg2[%541] : memref<8xi32, #tpu.memory_space<smem>>
    %543 = vector.broadcast %542 : i32 to vector<8x1xi32>
    %544 = arith.cmpi slt, %6, %543 : vector<8x1xi32>
    %c8_i32_160 = arith.constant 8 : i32
    %545 = arith.muli %c2_i32_159, %c8_i32_160 : i32
    %546 = tpu.assume_multiple %545, 8 : i32
    %547 = arith.index_cast %546 : i32 to index
    %c0_161 = arith.constant 0 : index
    %548 = vector.load %arg14[%547, %c0_161] : memref<64x384xf32, #tpu.memory_space<vmem>>, vector<8x384xf32>
    %c1_162 = arith.constant 1 : index
    %c0_163 = arith.constant 0 : index
    %c0_164 = arith.constant 0 : index
    %549 = vector.load %arg13[%c1_162, %c0_163, %c0_164] : memref<2x8x128xf32, #tpu.memory_space<vmem>>, vector<1x8x128xf32>
    %550 = vector.shape_cast %549 : vector<1x8x128xf32> to vector<8x128xf32>
    %551 = arith.truncf %550 : vector<8x128xf32> to vector<8x128xbf16>
    %cst_165 = arith.constant dense<0.000000e+00> : vector<8x384xf32>
    %552 = tpu.matmul %551, %428, %cst_165 {dimension_numbers = #tpu.dot_dimension_numbers<[1], [0], [0], [1], [0, 0, 1, 1], [], []>} : vector<8x128xbf16>, vector<128x384xbf16>, vector<8x384xf32> -> vector<8x384xf32>
    %553 = vector.extract_strided_slice %548 {offsets = [0, 0], sizes = [8, 128], strides = [1, 1]} : vector<8x384xf32> to vector<8x128xf32>
    %554 = vector.extract_strided_slice %552 {offsets = [0, 0], sizes = [8, 128], strides = [1, 1]} : vector<8x384xf32> to vector<8x128xf32>
    %555 = arith.addf %553, %554 : vector<8x128xf32>
    %556 = arith.negf %555 : vector<8x128xf32>
    %557 = math.exp %556 : vector<8x128xf32>
    %cst_166 = arith.constant 1.000000e+00 : f32
    %558 = vector.broadcast %cst_166 : f32 to vector<8x128xf32>
    %559 = arith.addf %558, %557 : vector<8x128xf32>
    %560 = arith.divf %558, %559 : vector<8x128xf32>
    %561 = vector.extract_strided_slice %548 {offsets = [0, 128], sizes = [8, 128], strides = [1, 1]} : vector<8x384xf32> to vector<8x128xf32>
    %562 = vector.extract_strided_slice %552 {offsets = [0, 128], sizes = [8, 128], strides = [1, 1]} : vector<8x384xf32> to vector<8x128xf32>
    %563 = arith.addf %561, %562 : vector<8x128xf32>
    %564 = arith.negf %563 : vector<8x128xf32>
    %565 = math.exp %564 : vector<8x128xf32>
    %cst_167 = arith.constant 1.000000e+00 : f32
    %566 = vector.broadcast %cst_167 : f32 to vector<8x128xf32>
    %567 = arith.addf %566, %565 : vector<8x128xf32>
    %568 = arith.divf %566, %567 : vector<8x128xf32>
    %569 = vector.extract_strided_slice %548 {offsets = [0, 256], sizes = [8, 128], strides = [1, 1]} : vector<8x384xf32> to vector<8x128xf32>
    %570 = vector.extract_strided_slice %552 {offsets = [0, 256], sizes = [8, 128], strides = [1, 1]} : vector<8x384xf32> to vector<8x128xf32>
    %571 = arith.addf %570, %432 : vector<8x128xf32>
    %572 = arith.mulf %560, %571 : vector<8x128xf32>
    %573 = arith.addf %569, %572 : vector<8x128xf32>
    %574 = math.tanh %573 : vector<8x128xf32>
    %575 = arith.subf %550, %574 : vector<8x128xf32>
    %576 = arith.mulf %568, %575 : vector<8x128xf32>
    %577 = arith.addf %574, %576 : vector<8x128xf32>
    %578 = vector.shape_cast %544 : vector<8x1xi1> to vector<8x1xi1>
    %579 = vector.broadcast %578 : vector<8x1xi1> to vector<8x128xi1>
    %580 = arith.select %579, %577, %550 : vector<8x128xi1>, vector<8x128xf32>
    %c1_168 = arith.constant 1 : index
    %c0_169 = arith.constant 0 : index
    %c0_170 = arith.constant 0 : index
    %581 = vector.load %arg13[%c1_168, %c0_169, %c0_170] : memref<2x8x128xf32, #tpu.memory_space<vmem>>, vector<1x8x128xf32>
    %582 = vector.shape_cast %581 : vector<1x8x128xf32> to vector<8x128xf32>
    %583 = vector.shape_cast %580 : vector<8x128xf32> to vector<1x8x128xf32>
    tpu.vector_store %arg13[%c1_168, %c0_169, %c0_170], %583 {strides = array<i32>} : memref<2x8x128xf32, #tpu.memory_space<vmem>>, vector<1x8x128xf32>,
    %cst_171 = arith.constant 0.000000e+00 : f32
    %584 = vector.shape_cast %544 : vector<8x1xi1> to vector<8x1xi1>
    %585 = vector.broadcast %584 : vector<8x1xi1> to vector<8x128xi1>
    %586 = vector.broadcast %cst_171 : f32 to vector<8x128xf32>
    %587 = arith.select %585, %580, %586 : vector<8x128xi1>, vector<8x128xf32>
    %588 = arith.truncf %587 : vector<8x128xf32> to vector<8x128xbf16>
    %589 = arith.index_cast %546 : i32 to index
    %c0_172 = arith.constant 0 : index
    %590 = vector.load %arg12[%589, %c0_172] : memref<64x128xbf16, #tpu.memory_space<vmem>>, vector<8x128xbf16>
    tpu.vector_store %arg12[%589, %c0_172], %588 {strides = array<i32>} : memref<64x128xbf16, #tpu.memory_space<vmem>>, vector<8x128xbf16>,
    %c3_i32_173 = arith.constant 3 : i32
    %591 = arith.addi %7, %c3_i32_173 : i32
    %592 = arith.index_cast %591 : i32 to index
    %593 = memref.load %arg2[%592] : memref<8xi32, #tpu.memory_space<smem>>
    %594 = vector.broadcast %593 : i32 to vector<8x1xi32>
    %595 = arith.cmpi slt, %6, %594 : vector<8x1xi32>
    %c8_i32_174 = arith.constant 8 : i32
    %596 = arith.muli %c3_i32_173, %c8_i32_174 : i32
    %597 = tpu.assume_multiple %596, 8 : i32
    %598 = arith.index_cast %597 : i32 to index
    %c0_175 = arith.constant 0 : index
    %599 = vector.load %arg14[%598, %c0_175] : memref<64x384xf32, #tpu.memory_space<vmem>>, vector<8x384xf32>
    %c1_176 = arith.constant 1 : index
    %c0_177 = arith.constant 0 : index
    %c0_178 = arith.constant 0 : index
    %600 = vector.load %arg13[%c1_176, %c0_177, %c0_178] : memref<2x8x128xf32, #tpu.memory_space<vmem>>, vector<1x8x128xf32>
    %601 = vector.shape_cast %600 : vector<1x8x128xf32> to vector<8x128xf32>
    %602 = arith.truncf %601 : vector<8x128xf32> to vector<8x128xbf16>
    %cst_179 = arith.constant dense<0.000000e+00> : vector<8x384xf32>
    %603 = tpu.matmul %602, %428, %cst_179 {dimension_numbers = #tpu.dot_dimension_numbers<[1], [0], [0], [1], [0, 0, 1, 1], [], []>} : vector<8x128xbf16>, vector<128x384xbf16>, vector<8x384xf32> -> vector<8x384xf32>
    %604 = vector.extract_strided_slice %599 {offsets = [0, 0], sizes = [8, 128], strides = [1, 1]} : vector<8x384xf32> to vector<8x128xf32>
    %605 = vector.extract_strided_slice %603 {offsets = [0, 0], sizes = [8, 128], strides = [1, 1]} : vector<8x384xf32> to vector<8x128xf32>
    %606 = arith.addf %604, %605 : vector<8x128xf32>
    %607 = arith.negf %606 : vector<8x128xf32>
    %608 = math.exp %607 : vector<8x128xf32>
    %cst_180 = arith.constant 1.000000e+00 : f32
    %609 = vector.broadcast %cst_180 : f32 to vector<8x128xf32>
    %610 = arith.addf %609, %608 : vector<8x128xf32>
    %611 = arith.divf %609, %610 : vector<8x128xf32>
    %612 = vector.extract_strided_slice %599 {offsets = [0, 128], sizes = [8, 128], strides = [1, 1]} : vector<8x384xf32> to vector<8x128xf32>
    %613 = vector.extract_strided_slice %603 {offsets = [0, 128], sizes = [8, 128], strides = [1, 1]} : vector<8x384xf32> to vector<8x128xf32>
    %614 = arith.addf %612, %613 : vector<8x128xf32>
    %615 = arith.negf %614 : vector<8x128xf32>
    %616 = math.exp %615 : vector<8x128xf32>
    %cst_181 = arith.constant 1.000000e+00 : f32
    %617 = vector.broadcast %cst_181 : f32 to vector<8x128xf32>
    %618 = arith.addf %617, %616 : vector<8x128xf32>
    %619 = arith.divf %617, %618 : vector<8x128xf32>
    %620 = vector.extract_strided_slice %599 {offsets = [0, 256], sizes = [8, 128], strides = [1, 1]} : vector<8x384xf32> to vector<8x128xf32>
    %621 = vector.extract_strided_slice %603 {offsets = [0, 256], sizes = [8, 128], strides = [1, 1]} : vector<8x384xf32> to vector<8x128xf32>
    %622 = arith.addf %621, %432 : vector<8x128xf32>
    %623 = arith.mulf %611, %622 : vector<8x128xf32>
    %624 = arith.addf %620, %623 : vector<8x128xf32>
    %625 = math.tanh %624 : vector<8x128xf32>
    %626 = arith.subf %601, %625 : vector<8x128xf32>
    %627 = arith.mulf %619, %626 : vector<8x128xf32>
    %628 = arith.addf %625, %627 : vector<8x128xf32>
    %629 = vector.shape_cast %595 : vector<8x1xi1> to vector<8x1xi1>
    %630 = vector.broadcast %629 : vector<8x1xi1> to vector<8x128xi1>
    %631 = arith.select %630, %628, %601 : vector<8x128xi1>, vector<8x128xf32>
    %c1_182 = arith.constant 1 : index
    %c0_183 = arith.constant 0 : index
    %c0_184 = arith.constant 0 : index
    %632 = vector.load %arg13[%c1_182, %c0_183, %c0_184] : memref<2x8x128xf32, #tpu.memory_space<vmem>>, vector<1x8x128xf32>
    %633 = vector.shape_cast %632 : vector<1x8x128xf32> to vector<8x128xf32>
    %634 = vector.shape_cast %631 : vector<8x128xf32> to vector<1x8x128xf32>
    tpu.vector_store %arg13[%c1_182, %c0_183, %c0_184], %634 {strides = array<i32>} : memref<2x8x128xf32, #tpu.memory_space<vmem>>, vector<1x8x128xf32>,
    %cst_185 = arith.constant 0.000000e+00 : f32
    %635 = vector.shape_cast %595 : vector<8x1xi1> to vector<8x1xi1>
    %636 = vector.broadcast %635 : vector<8x1xi1> to vector<8x128xi1>
    %637 = vector.broadcast %cst_185 : f32 to vector<8x128xf32>
    %638 = arith.select %636, %631, %637 : vector<8x128xi1>, vector<8x128xf32>
    %639 = arith.truncf %638 : vector<8x128xf32> to vector<8x128xbf16>
    %640 = arith.index_cast %597 : i32 to index
    %c0_186 = arith.constant 0 : index
    %641 = vector.load %arg12[%640, %c0_186] : memref<64x128xbf16, #tpu.memory_space<vmem>>, vector<8x128xbf16>
    tpu.vector_store %arg12[%640, %c0_186], %639 {strides = array<i32>} : memref<64x128xbf16, #tpu.memory_space<vmem>>, vector<8x128xbf16>,
    %c4_i32_187 = arith.constant 4 : i32
    %642 = arith.addi %7, %c4_i32_187 : i32
    %643 = arith.index_cast %642 : i32 to index
    %644 = memref.load %arg2[%643] : memref<8xi32, #tpu.memory_space<smem>>
    %645 = vector.broadcast %644 : i32 to vector<8x1xi32>
    %646 = arith.cmpi slt, %6, %645 : vector<8x1xi32>
    %c8_i32_188 = arith.constant 8 : i32
    %647 = arith.muli %c4_i32_187, %c8_i32_188 : i32
    %648 = tpu.assume_multiple %647, 8 : i32
    %649 = arith.index_cast %648 : i32 to index
    %c0_189 = arith.constant 0 : index
    %650 = vector.load %arg14[%649, %c0_189] : memref<64x384xf32, #tpu.memory_space<vmem>>, vector<8x384xf32>
    %c1_190 = arith.constant 1 : index
    %c0_191 = arith.constant 0 : index
    %c0_192 = arith.constant 0 : index
    %651 = vector.load %arg13[%c1_190, %c0_191, %c0_192] : memref<2x8x128xf32, #tpu.memory_space<vmem>>, vector<1x8x128xf32>
    %652 = vector.shape_cast %651 : vector<1x8x128xf32> to vector<8x128xf32>
    %653 = arith.truncf %652 : vector<8x128xf32> to vector<8x128xbf16>
    %cst_193 = arith.constant dense<0.000000e+00> : vector<8x384xf32>
    %654 = tpu.matmul %653, %428, %cst_193 {dimension_numbers = #tpu.dot_dimension_numbers<[1], [0], [0], [1], [0, 0, 1, 1], [], []>} : vector<8x128xbf16>, vector<128x384xbf16>, vector<8x384xf32> -> vector<8x384xf32>
    %655 = vector.extract_strided_slice %650 {offsets = [0, 0], sizes = [8, 128], strides = [1, 1]} : vector<8x384xf32> to vector<8x128xf32>
    %656 = vector.extract_strided_slice %654 {offsets = [0, 0], sizes = [8, 128], strides = [1, 1]} : vector<8x384xf32> to vector<8x128xf32>
    %657 = arith.addf %655, %656 : vector<8x128xf32>
    %658 = arith.negf %657 : vector<8x128xf32>
    %659 = math.exp %658 : vector<8x128xf32>
    %cst_194 = arith.constant 1.000000e+00 : f32
    %660 = vector.broadcast %cst_194 : f32 to vector<8x128xf32>
    %661 = arith.addf %660, %659 : vector<8x128xf32>
    %662 = arith.divf %660, %661 : vector<8x128xf32>
    %663 = vector.extract_strided_slice %650 {offsets = [0, 128], sizes = [8, 128], strides = [1, 1]} : vector<8x384xf32> to vector<8x128xf32>
    %664 = vector.extract_strided_slice %654 {offsets = [0, 128], sizes = [8, 128], strides = [1, 1]} : vector<8x384xf32> to vector<8x128xf32>
    %665 = arith.addf %663, %664 : vector<8x128xf32>
    %666 = arith.negf %665 : vector<8x128xf32>
    %667 = math.exp %666 : vector<8x128xf32>
    %cst_195 = arith.constant 1.000000e+00 : f32
    %668 = vector.broadcast %cst_195 : f32 to vector<8x128xf32>
    %669 = arith.addf %668, %667 : vector<8x128xf32>
    %670 = arith.divf %668, %669 : vector<8x128xf32>
    %671 = vector.extract_strided_slice %650 {offsets = [0, 256], sizes = [8, 128], strides = [1, 1]} : vector<8x384xf32> to vector<8x128xf32>
    %672 = vector.extract_strided_slice %654 {offsets = [0, 256], sizes = [8, 128], strides = [1, 1]} : vector<8x384xf32> to vector<8x128xf32>
    %673 = arith.addf %672, %432 : vector<8x128xf32>
    %674 = arith.mulf %662, %673 : vector<8x128xf32>
    %675 = arith.addf %671, %674 : vector<8x128xf32>
    %676 = math.tanh %675 : vector<8x128xf32>
    %677 = arith.subf %652, %676 : vector<8x128xf32>
    %678 = arith.mulf %670, %677 : vector<8x128xf32>
    %679 = arith.addf %676, %678 : vector<8x128xf32>
    %680 = vector.shape_cast %646 : vector<8x1xi1> to vector<8x1xi1>
    %681 = vector.broadcast %680 : vector<8x1xi1> to vector<8x128xi1>
    %682 = arith.select %681, %679, %652 : vector<8x128xi1>, vector<8x128xf32>
    %c1_196 = arith.constant 1 : index
    %c0_197 = arith.constant 0 : index
    %c0_198 = arith.constant 0 : index
    %683 = vector.load %arg13[%c1_196, %c0_197, %c0_198] : memref<2x8x128xf32, #tpu.memory_space<vmem>>, vector<1x8x128xf32>
    %684 = vector.shape_cast %683 : vector<1x8x128xf32> to vector<8x128xf32>
    %685 = vector.shape_cast %682 : vector<8x128xf32> to vector<1x8x128xf32>
    tpu.vector_store %arg13[%c1_196, %c0_197, %c0_198], %685 {strides = array<i32>} : memref<2x8x128xf32, #tpu.memory_space<vmem>>, vector<1x8x128xf32>,
    %cst_199 = arith.constant 0.000000e+00 : f32
    %686 = vector.shape_cast %646 : vector<8x1xi1> to vector<8x1xi1>
    %687 = vector.broadcast %686 : vector<8x1xi1> to vector<8x128xi1>
    %688 = vector.broadcast %cst_199 : f32 to vector<8x128xf32>
    %689 = arith.select %687, %682, %688 : vector<8x128xi1>, vector<8x128xf32>
    %690 = arith.truncf %689 : vector<8x128xf32> to vector<8x128xbf16>
    %691 = arith.index_cast %648 : i32 to index
    %c0_200 = arith.constant 0 : index
    %692 = vector.load %arg12[%691, %c0_200] : memref<64x128xbf16, #tpu.memory_space<vmem>>, vector<8x128xbf16>
    tpu.vector_store %arg12[%691, %c0_200], %690 {strides = array<i32>} : memref<64x128xbf16, #tpu.memory_space<vmem>>, vector<8x128xbf16>,
    %c5_i32_201 = arith.constant 5 : i32
    %693 = arith.addi %7, %c5_i32_201 : i32
    %694 = arith.index_cast %693 : i32 to index
    %695 = memref.load %arg2[%694] : memref<8xi32, #tpu.memory_space<smem>>
    %696 = vector.broadcast %695 : i32 to vector<8x1xi32>
    %697 = arith.cmpi slt, %6, %696 : vector<8x1xi32>
    %c8_i32_202 = arith.constant 8 : i32
    %698 = arith.muli %c5_i32_201, %c8_i32_202 : i32
    %699 = tpu.assume_multiple %698, 8 : i32
    %700 = arith.index_cast %699 : i32 to index
    %c0_203 = arith.constant 0 : index
    %701 = vector.load %arg14[%700, %c0_203] : memref<64x384xf32, #tpu.memory_space<vmem>>, vector<8x384xf32>
    %c1_204 = arith.constant 1 : index
    %c0_205 = arith.constant 0 : index
    %c0_206 = arith.constant 0 : index
    %702 = vector.load %arg13[%c1_204, %c0_205, %c0_206] : memref<2x8x128xf32, #tpu.memory_space<vmem>>, vector<1x8x128xf32>
    %703 = vector.shape_cast %702 : vector<1x8x128xf32> to vector<8x128xf32>
    %704 = arith.truncf %703 : vector<8x128xf32> to vector<8x128xbf16>
    %cst_207 = arith.constant dense<0.000000e+00> : vector<8x384xf32>
    %705 = tpu.matmul %704, %428, %cst_207 {dimension_numbers = #tpu.dot_dimension_numbers<[1], [0], [0], [1], [0, 0, 1, 1], [], []>} : vector<8x128xbf16>, vector<128x384xbf16>, vector<8x384xf32> -> vector<8x384xf32>
    %706 = vector.extract_strided_slice %701 {offsets = [0, 0], sizes = [8, 128], strides = [1, 1]} : vector<8x384xf32> to vector<8x128xf32>
    %707 = vector.extract_strided_slice %705 {offsets = [0, 0], sizes = [8, 128], strides = [1, 1]} : vector<8x384xf32> to vector<8x128xf32>
    %708 = arith.addf %706, %707 : vector<8x128xf32>
    %709 = arith.negf %708 : vector<8x128xf32>
    %710 = math.exp %709 : vector<8x128xf32>
    %cst_208 = arith.constant 1.000000e+00 : f32
    %711 = vector.broadcast %cst_208 : f32 to vector<8x128xf32>
    %712 = arith.addf %711, %710 : vector<8x128xf32>
    %713 = arith.divf %711, %712 : vector<8x128xf32>
    %714 = vector.extract_strided_slice %701 {offsets = [0, 128], sizes = [8, 128], strides = [1, 1]} : vector<8x384xf32> to vector<8x128xf32>
    %715 = vector.extract_strided_slice %705 {offsets = [0, 128], sizes = [8, 128], strides = [1, 1]} : vector<8x384xf32> to vector<8x128xf32>
    %716 = arith.addf %714, %715 : vector<8x128xf32>
    %717 = arith.negf %716 : vector<8x128xf32>
    %718 = math.exp %717 : vector<8x128xf32>
    %cst_209 = arith.constant 1.000000e+00 : f32
    %719 = vector.broadcast %cst_209 : f32 to vector<8x128xf32>
    %720 = arith.addf %719, %718 : vector<8x128xf32>
    %721 = arith.divf %719, %720 : vector<8x128xf32>
    %722 = vector.extract_strided_slice %701 {offsets = [0, 256], sizes = [8, 128], strides = [1, 1]} : vector<8x384xf32> to vector<8x128xf32>
    %723 = vector.extract_strided_slice %705 {offsets = [0, 256], sizes = [8, 128], strides = [1, 1]} : vector<8x384xf32> to vector<8x128xf32>
    %724 = arith.addf %723, %432 : vector<8x128xf32>
    %725 = arith.mulf %713, %724 : vector<8x128xf32>
    %726 = arith.addf %722, %725 : vector<8x128xf32>
    %727 = math.tanh %726 : vector<8x128xf32>
    %728 = arith.subf %703, %727 : vector<8x128xf32>
    %729 = arith.mulf %721, %728 : vector<8x128xf32>
    %730 = arith.addf %727, %729 : vector<8x128xf32>
    %731 = vector.shape_cast %697 : vector<8x1xi1> to vector<8x1xi1>
    %732 = vector.broadcast %731 : vector<8x1xi1> to vector<8x128xi1>
    %733 = arith.select %732, %730, %703 : vector<8x128xi1>, vector<8x128xf32>
    %c1_210 = arith.constant 1 : index
    %c0_211 = arith.constant 0 : index
    %c0_212 = arith.constant 0 : index
    %734 = vector.load %arg13[%c1_210, %c0_211, %c0_212] : memref<2x8x128xf32, #tpu.memory_space<vmem>>, vector<1x8x128xf32>
    %735 = vector.shape_cast %734 : vector<1x8x128xf32> to vector<8x128xf32>
    %736 = vector.shape_cast %733 : vector<8x128xf32> to vector<1x8x128xf32>
    tpu.vector_store %arg13[%c1_210, %c0_211, %c0_212], %736 {strides = array<i32>} : memref<2x8x128xf32, #tpu.memory_space<vmem>>, vector<1x8x128xf32>,
    %cst_213 = arith.constant 0.000000e+00 : f32
    %737 = vector.shape_cast %697 : vector<8x1xi1> to vector<8x1xi1>
    %738 = vector.broadcast %737 : vector<8x1xi1> to vector<8x128xi1>
    %739 = vector.broadcast %cst_213 : f32 to vector<8x128xf32>
    %740 = arith.select %738, %733, %739 : vector<8x128xi1>, vector<8x128xf32>
    %741 = arith.truncf %740 : vector<8x128xf32> to vector<8x128xbf16>
    %742 = arith.index_cast %699 : i32 to index
    %c0_214 = arith.constant 0 : index
    %743 = vector.load %arg12[%742, %c0_214] : memref<64x128xbf16, #tpu.memory_space<vmem>>, vector<8x128xbf16>
    tpu.vector_store %arg12[%742, %c0_214], %741 {strides = array<i32>} : memref<64x128xbf16, #tpu.memory_space<vmem>>, vector<8x128xbf16>,
    %c6_i32_215 = arith.constant 6 : i32
    %744 = arith.addi %7, %c6_i32_215 : i32
    %745 = arith.index_cast %744 : i32 to index
    %746 = memref.load %arg2[%745] : memref<8xi32, #tpu.memory_space<smem>>
    %747 = vector.broadcast %746 : i32 to vector<8x1xi32>
    %748 = arith.cmpi slt, %6, %747 : vector<8x1xi32>
    %c8_i32_216 = arith.constant 8 : i32
    %749 = arith.muli %c6_i32_215, %c8_i32_216 : i32
    %750 = tpu.assume_multiple %749, 8 : i32
    %751 = arith.index_cast %750 : i32 to index
    %c0_217 = arith.constant 0 : index
    %752 = vector.load %arg14[%751, %c0_217] : memref<64x384xf32, #tpu.memory_space<vmem>>, vector<8x384xf32>
    %c1_218 = arith.constant 1 : index
    %c0_219 = arith.constant 0 : index
    %c0_220 = arith.constant 0 : index
    %753 = vector.load %arg13[%c1_218, %c0_219, %c0_220] : memref<2x8x128xf32, #tpu.memory_space<vmem>>, vector<1x8x128xf32>
    %754 = vector.shape_cast %753 : vector<1x8x128xf32> to vector<8x128xf32>
    %755 = arith.truncf %754 : vector<8x128xf32> to vector<8x128xbf16>
    %cst_221 = arith.constant dense<0.000000e+00> : vector<8x384xf32>
    %756 = tpu.matmul %755, %428, %cst_221 {dimension_numbers = #tpu.dot_dimension_numbers<[1], [0], [0], [1], [0, 0, 1, 1], [], []>} : vector<8x128xbf16>, vector<128x384xbf16>, vector<8x384xf32> -> vector<8x384xf32>
    %757 = vector.extract_strided_slice %752 {offsets = [0, 0], sizes = [8, 128], strides = [1, 1]} : vector<8x384xf32> to vector<8x128xf32>
    %758 = vector.extract_strided_slice %756 {offsets = [0, 0], sizes = [8, 128], strides = [1, 1]} : vector<8x384xf32> to vector<8x128xf32>
    %759 = arith.addf %757, %758 : vector<8x128xf32>
    %760 = arith.negf %759 : vector<8x128xf32>
    %761 = math.exp %760 : vector<8x128xf32>
    %cst_222 = arith.constant 1.000000e+00 : f32
    %762 = vector.broadcast %cst_222 : f32 to vector<8x128xf32>
    %763 = arith.addf %762, %761 : vector<8x128xf32>
    %764 = arith.divf %762, %763 : vector<8x128xf32>
    %765 = vector.extract_strided_slice %752 {offsets = [0, 128], sizes = [8, 128], strides = [1, 1]} : vector<8x384xf32> to vector<8x128xf32>
    %766 = vector.extract_strided_slice %756 {offsets = [0, 128], sizes = [8, 128], strides = [1, 1]} : vector<8x384xf32> to vector<8x128xf32>
    %767 = arith.addf %765, %766 : vector<8x128xf32>
    %768 = arith.negf %767 : vector<8x128xf32>
    %769 = math.exp %768 : vector<8x128xf32>
    %cst_223 = arith.constant 1.000000e+00 : f32
    %770 = vector.broadcast %cst_223 : f32 to vector<8x128xf32>
    %771 = arith.addf %770, %769 : vector<8x128xf32>
    %772 = arith.divf %770, %771 : vector<8x128xf32>
    %773 = vector.extract_strided_slice %752 {offsets = [0, 256], sizes = [8, 128], strides = [1, 1]} : vector<8x384xf32> to vector<8x128xf32>
    %774 = vector.extract_strided_slice %756 {offsets = [0, 256], sizes = [8, 128], strides = [1, 1]} : vector<8x384xf32> to vector<8x128xf32>
    %775 = arith.addf %774, %432 : vector<8x128xf32>
    %776 = arith.mulf %764, %775 : vector<8x128xf32>
    %777 = arith.addf %773, %776 : vector<8x128xf32>
    %778 = math.tanh %777 : vector<8x128xf32>
    %779 = arith.subf %754, %778 : vector<8x128xf32>
    %780 = arith.mulf %772, %779 : vector<8x128xf32>
    %781 = arith.addf %778, %780 : vector<8x128xf32>
    %782 = vector.shape_cast %748 : vector<8x1xi1> to vector<8x1xi1>
    %783 = vector.broadcast %782 : vector<8x1xi1> to vector<8x128xi1>
    %784 = arith.select %783, %781, %754 : vector<8x128xi1>, vector<8x128xf32>
    %c1_224 = arith.constant 1 : index
    %c0_225 = arith.constant 0 : index
    %c0_226 = arith.constant 0 : index
    %785 = vector.load %arg13[%c1_224, %c0_225, %c0_226] : memref<2x8x128xf32, #tpu.memory_space<vmem>>, vector<1x8x128xf32>
    %786 = vector.shape_cast %785 : vector<1x8x128xf32> to vector<8x128xf32>
    %787 = vector.shape_cast %784 : vector<8x128xf32> to vector<1x8x128xf32>
    tpu.vector_store %arg13[%c1_224, %c0_225, %c0_226], %787 {strides = array<i32>} : memref<2x8x128xf32, #tpu.memory_space<vmem>>, vector<1x8x128xf32>,
    %cst_227 = arith.constant 0.000000e+00 : f32
    %788 = vector.shape_cast %748 : vector<8x1xi1> to vector<8x1xi1>
    %789 = vector.broadcast %788 : vector<8x1xi1> to vector<8x128xi1>
    %790 = vector.broadcast %cst_227 : f32 to vector<8x128xf32>
    %791 = arith.select %789, %784, %790 : vector<8x128xi1>, vector<8x128xf32>
    %792 = arith.truncf %791 : vector<8x128xf32> to vector<8x128xbf16>
    %793 = arith.index_cast %750 : i32 to index
    %c0_228 = arith.constant 0 : index
    %794 = vector.load %arg12[%793, %c0_228] : memref<64x128xbf16, #tpu.memory_space<vmem>>, vector<8x128xbf16>
    tpu.vector_store %arg12[%793, %c0_228], %792 {strides = array<i32>} : memref<64x128xbf16, #tpu.memory_space<vmem>>, vector<8x128xbf16>,
    %c7_i32_229 = arith.constant 7 : i32
    %795 = arith.addi %7, %c7_i32_229 : i32
    %796 = arith.index_cast %795 : i32 to index
    %797 = memref.load %arg2[%796] : memref<8xi32, #tpu.memory_space<smem>>
    %798 = vector.broadcast %797 : i32 to vector<8x1xi32>
    %799 = arith.cmpi slt, %6, %798 : vector<8x1xi32>
    %c8_i32_230 = arith.constant 8 : i32
    %800 = arith.muli %c7_i32_229, %c8_i32_230 : i32
    %801 = tpu.assume_multiple %800, 8 : i32
    %802 = arith.index_cast %801 : i32 to index
    %c0_231 = arith.constant 0 : index
    %803 = vector.load %arg14[%802, %c0_231] : memref<64x384xf32, #tpu.memory_space<vmem>>, vector<8x384xf32>
    %c1_232 = arith.constant 1 : index
    %c0_233 = arith.constant 0 : index
    %c0_234 = arith.constant 0 : index
    %804 = vector.load %arg13[%c1_232, %c0_233, %c0_234] : memref<2x8x128xf32, #tpu.memory_space<vmem>>, vector<1x8x128xf32>
    %805 = vector.shape_cast %804 : vector<1x8x128xf32> to vector<8x128xf32>
    %806 = arith.truncf %805 : vector<8x128xf32> to vector<8x128xbf16>
    %cst_235 = arith.constant dense<0.000000e+00> : vector<8x384xf32>
    %807 = tpu.matmul %806, %428, %cst_235 {dimension_numbers = #tpu.dot_dimension_numbers<[1], [0], [0], [1], [0, 0, 1, 1], [], []>} : vector<8x128xbf16>, vector<128x384xbf16>, vector<8x384xf32> -> vector<8x384xf32>
    %808 = vector.extract_strided_slice %803 {offsets = [0, 0], sizes = [8, 128], strides = [1, 1]} : vector<8x384xf32> to vector<8x128xf32>
    %809 = vector.extract_strided_slice %807 {offsets = [0, 0], sizes = [8, 128], strides = [1, 1]} : vector<8x384xf32> to vector<8x128xf32>
    %810 = arith.addf %808, %809 : vector<8x128xf32>
    %811 = arith.negf %810 : vector<8x128xf32>
    %812 = math.exp %811 : vector<8x128xf32>
    %cst_236 = arith.constant 1.000000e+00 : f32
    %813 = vector.broadcast %cst_236 : f32 to vector<8x128xf32>
    %814 = arith.addf %813, %812 : vector<8x128xf32>
    %815 = arith.divf %813, %814 : vector<8x128xf32>
    %816 = vector.extract_strided_slice %803 {offsets = [0, 128], sizes = [8, 128], strides = [1, 1]} : vector<8x384xf32> to vector<8x128xf32>
    %817 = vector.extract_strided_slice %807 {offsets = [0, 128], sizes = [8, 128], strides = [1, 1]} : vector<8x384xf32> to vector<8x128xf32>
    %818 = arith.addf %816, %817 : vector<8x128xf32>
    %819 = arith.negf %818 : vector<8x128xf32>
    %820 = math.exp %819 : vector<8x128xf32>
    %cst_237 = arith.constant 1.000000e+00 : f32
    %821 = vector.broadcast %cst_237 : f32 to vector<8x128xf32>
    %822 = arith.addf %821, %820 : vector<8x128xf32>
    %823 = arith.divf %821, %822 : vector<8x128xf32>
    %824 = vector.extract_strided_slice %803 {offsets = [0, 256], sizes = [8, 128], strides = [1, 1]} : vector<8x384xf32> to vector<8x128xf32>
    %825 = vector.extract_strided_slice %807 {offsets = [0, 256], sizes = [8, 128], strides = [1, 1]} : vector<8x384xf32> to vector<8x128xf32>
    %826 = arith.addf %825, %432 : vector<8x128xf32>
    %827 = arith.mulf %815, %826 : vector<8x128xf32>
    %828 = arith.addf %824, %827 : vector<8x128xf32>
    %829 = math.tanh %828 : vector<8x128xf32>
    %830 = arith.subf %805, %829 : vector<8x128xf32>
    %831 = arith.mulf %823, %830 : vector<8x128xf32>
    %832 = arith.addf %829, %831 : vector<8x128xf32>
    %833 = vector.shape_cast %799 : vector<8x1xi1> to vector<8x1xi1>
    %834 = vector.broadcast %833 : vector<8x1xi1> to vector<8x128xi1>
    %835 = arith.select %834, %832, %805 : vector<8x128xi1>, vector<8x128xf32>
    %c1_238 = arith.constant 1 : index
    %c0_239 = arith.constant 0 : index
    %c0_240 = arith.constant 0 : index
    %836 = vector.load %arg13[%c1_238, %c0_239, %c0_240] : memref<2x8x128xf32, #tpu.memory_space<vmem>>, vector<1x8x128xf32>
    %837 = vector.shape_cast %836 : vector<1x8x128xf32> to vector<8x128xf32>
    %838 = vector.shape_cast %835 : vector<8x128xf32> to vector<1x8x128xf32>
    tpu.vector_store %arg13[%c1_238, %c0_239, %c0_240], %838 {strides = array<i32>} : memref<2x8x128xf32, #tpu.memory_space<vmem>>, vector<1x8x128xf32>,
    %cst_241 = arith.constant 0.000000e+00 : f32
    %839 = vector.shape_cast %799 : vector<8x1xi1> to vector<8x1xi1>
    %840 = vector.broadcast %839 : vector<8x1xi1> to vector<8x128xi1>
    %841 = vector.broadcast %cst_241 : f32 to vector<8x128xf32>
    %842 = arith.select %840, %835, %841 : vector<8x128xi1>, vector<8x128xf32>
    %843 = arith.truncf %842 : vector<8x128xf32> to vector<8x128xbf16>
    %844 = arith.index_cast %801 : i32 to index
    %c0_242 = arith.constant 0 : index
    %845 = vector.load %arg12[%844, %c0_242] : memref<64x128xbf16, #tpu.memory_space<vmem>>, vector<8x128xbf16>
    tpu.vector_store %arg12[%844, %c0_242], %843 {strides = array<i32>} : memref<64x128xbf16, #tpu.memory_space<vmem>>, vector<8x128xbf16>,
    %c8_i32_243 = arith.constant 8 : i32
    return
  }
  func.func @transform_0(%arg0: i32, %arg1: i32, %arg2: memref<8xi32, #tpu.memory_space<smem>>) -> (i32, i32) {
    %c1_i32 = arith.constant 1 : i32
    %0 = arith.muli %arg0, %c1_i32 : i32
    %1 = arith.addi %0, %arg1 : i32
    %c0_i32 = arith.constant 0 : i32
    %c0_i32_0 = arith.constant 0 : i32
    return %1, %c0_i32 : i32, i32
  }
  func.func @transform_1(%arg0: i32, %arg1: i32, %arg2: memref<8xi32, #tpu.memory_space<smem>>) -> (i32, i32) {
    %c0_i32 = arith.constant 0 : i32
    %c0_i32_0 = arith.constant 0 : i32
    %c0_i32_1 = arith.constant 0 : i32
    return %c0_i32, %c0_i32_0 : i32, i32
  }
  func.func @transform_2(%arg0: i32, %arg1: i32, %arg2: memref<8xi32, #tpu.memory_space<smem>>) -> (i32, i32) {
    %c0_i32 = arith.constant 0 : i32
    %c0_i32_0 = arith.constant 0 : i32
    %c0_i32_1 = arith.constant 0 : i32
    return %c0_i32, %c0_i32_0 : i32, i32
  }
  func.func @transform_3(%arg0: i32, %arg1: i32, %arg2: memref<8xi32, #tpu.memory_space<smem>>) -> (i32, i32) {
    %c0_i32 = arith.constant 0 : i32
    %c0_i32_0 = arith.constant 0 : i32
    %c0_i32_1 = arith.constant 0 : i32
    return %c0_i32, %c0_i32_0 : i32, i32
  }
  func.func @transform_4(%arg0: i32, %arg1: i32, %arg2: memref<8xi32, #tpu.memory_space<smem>>) -> (i32, i32) {
    %c0_i32 = arith.constant 0 : i32
    %c0_i32_0 = arith.constant 0 : i32
    %c0_i32_1 = arith.constant 0 : i32
    return %c0_i32, %c0_i32_0 : i32, i32
  }
  func.func @transform_5(%arg0: i32, %arg1: i32, %arg2: memref<8xi32, #tpu.memory_space<smem>>) -> (i32, i32) {
    %c0_i32 = arith.constant 0 : i32
    %c0_i32_0 = arith.constant 0 : i32
    %c0_i32_1 = arith.constant 0 : i32
    return %c0_i32, %c0_i32_0 : i32, i32
  }
  func.func @transform_6(%arg0: i32, %arg1: i32, %arg2: memref<8xi32, #tpu.memory_space<smem>>) -> (i32, i32) {
    %c0_i32 = arith.constant 0 : i32
    %c0_i32_0 = arith.constant 0 : i32
    %c0_i32_1 = arith.constant 0 : i32
    return %c0_i32, %c0_i32_0 : i32, i32
  }
  func.func @transform_7(%arg0: i32, %arg1: i32, %arg2: memref<8xi32, #tpu.memory_space<smem>>) -> (i32, i32) {
    %c0_i32 = arith.constant 0 : i32
    %c0_i32_0 = arith.constant 0 : i32
    %c0_i32_1 = arith.constant 0 : i32
    return %c0_i32, %c0_i32_0 : i32, i32
  }
  func.func @transform_8(%arg0: i32, %arg1: i32, %arg2: memref<8xi32, #tpu.memory_space<smem>>) -> (i32, i32) {
    %c0_i32 = arith.constant 0 : i32
    %c0_i32_0 = arith.constant 0 : i32
    %c0_i32_1 = arith.constant 0 : i32
    return %c0_i32, %c0_i32_0 : i32, i32
  }
  func.func @transform_9(%arg0: i32, %arg1: i32, %arg2: memref<8xi32, #tpu.memory_space<smem>>) -> (i32, i32) {
    %c1_i32 = arith.constant 1 : i32
    %0 = arith.muli %arg0, %c1_i32 : i32
    %1 = arith.addi %0, %arg1 : i32
    %c0_i32 = arith.constant 0 : i32
    %c0_i32_0 = arith.constant 0 : i32
    return %1, %c0_i32 : i32, i32
  }
}

module attributes {stable_mosaic.version = 11 : i64} {
  func.func @kernel(%arg0: i32, %arg1: i32, %arg2: memref<8xi32, #tpu.memory_space<smem>>, %arg3: memref<64x16xbf16, #tpu.memory_space<vmem>>, %arg4: memref<16x384xbf16, #tpu.memory_space<vmem>>, %arg5: memref<128x384xbf16, #tpu.memory_space<vmem>>, %arg6: memref<1x384xf32, #tpu.memory_space<vmem>>, %arg7: memref<1x128xf32, #tpu.memory_space<vmem>>, %arg8: memref<128x384xbf16, #tpu.memory_space<vmem>>, %arg9: memref<128x384xbf16, #tpu.memory_space<vmem>>, %arg10: memref<1x384xf32, #tpu.memory_space<vmem>>, %arg11: memref<1x128xf32, #tpu.memory_space<vmem>>, %arg12: memref<64x128xbf16, #tpu.memory_space<vmem>>, %arg13: memref<2x8x128xf32, #tpu.memory_space<vmem>>, %arg14: memref<64x384xf32, #tpu.memory_space<vmem>>) attributes {dimension_semantics = [#tpu.dimension_semantics<parallel>, #tpu.dimension_semantics<arbitrary>], iteration_bounds = array<i64: 1, 1>, scalar_prefetch = 1 : i64, scratch_operands = 2 : i64, tpu.core_type = #tpu.core_type<tc>, window_params = [{transform_indices = @transform_0, window_bounds = array<i64: 64, 16>}, {pipeline_mode = #tpu.pipeline_mode<synchronous>, transform_indices = @transform_1, window_bounds = array<i64: 16, 384>}, {pipeline_mode = #tpu.pipeline_mode<synchronous>, transform_indices = @transform_2, window_bounds = array<i64: 128, 384>}, {pipeline_mode = #tpu.pipeline_mode<synchronous>, transform_indices = @transform_3, window_bounds = array<i64: 1, 384>}, {pipeline_mode = #tpu.pipeline_mode<synchronous>, transform_indices = @transform_4, window_bounds = array<i64: 1, 128>}, {pipeline_mode = #tpu.pipeline_mode<synchronous>, transform_indices = @transform_5, window_bounds = array<i64: 128, 384>}, {pipeline_mode = #tpu.pipeline_mode<synchronous>, transform_indices = @transform_6, window_bounds = array<i64: 128, 384>}, {pipeline_mode = #tpu.pipeline_mode<synchronous>, transform_indices = @transform_7, window_bounds = array<i64: 1, 384>}, {pipeline_mode = #tpu.pipeline_mode<synchronous>, transform_indices = @transform_8, window_bounds = array<i64: 1, 128>}, {transform_indices = @transform_9, window_bounds = array<i64: 64, 128>}]} {
    %c0_i32 = arith.constant 0 : i32
    %0 = arith.cmpi eq, %arg1, %c0_i32 : i32
    %1 = arith.extui %0 : i1 to i32
    %c0_i32_0 = arith.constant 0 : i32
    %2 = arith.cmpi ne, %1, %c0_i32_0 : i32
    scf.if %2 {
      %cst_244 = arith.constant 0.000000e+00 : f32
      %846 = vector.broadcast %cst_244 : f32 to vector<2x8x128xf32>
      %c0_245 = arith.constant 0 : index
      %c0_246 = arith.constant 0 : index
      %c0_247 = arith.constant 0 : index
      %847 = vector.load %arg13[%c0_245, %c0_246, %c0_247] : memref<2x8x128xf32, #tpu.memory_space<vmem>>, vector<2x8x128xf32>
      tpu.vector_store %arg13[%c0_245, %c0_246, %c0_247], %846 {strides = array<i32>} : memref<2x8x128xf32, #tpu.memory_space<vmem>>, vector<2x8x128xf32>,
    } else {
    }
    %3 = tpu.iota {dimensions = array<i32: 0>} : vector<8x1xi32>
    %c8_i32 = arith.constant 8 : i32
    %4 = arith.muli %arg0, %c8_i32 : i32
    %5 = vector.broadcast %4 : i32 to vector<8x1xi32>
    %6 = arith.addi %3, %5 : vector<8x1xi32>
    %c8_i32_1 = arith.constant 8 : i32
    %7 = arith.muli %arg1, %c8_i32_1 : i32
    %c0 = arith.constant 0 : index
    %c0_2 = arith.constant 0 : index
    %8 = vector.load %arg4[%c0, %c0_2] : memref<16x384xbf16, #tpu.memory_space<vmem>>, vector<16x384xbf16>
    %c0_3 = arith.constant 0 : index
    %c0_4 = arith.constant 0 : index
    %9 = vector.load %arg5[%c0_3, %c0_4] : memref<128x384xbf16, #tpu.memory_space<vmem>>, vector<128x384xbf16>
    %c0_5 = arith.constant 0 : index
    %c0_6 = arith.constant 0 : index
    %10 = vector.load %arg6[%c0_5, %c0_6] : memref<1x384xf32, #tpu.memory_space<vmem>>, vector<1x384xf32>
    %c0_7 = arith.constant 0 : index
    %c0_8 = arith.constant 0 : index
    %11 = vector.load %arg7[%c0_7, %c0_8] : memref<1x128xf32, #tpu.memory_space<vmem>>, vector<1x128xf32>
    %12 = vector.shape_cast %11 : vector<1x128xf32> to vector<1x128xf32>
    %13 = vector.broadcast %12 : vector<1x128xf32> to vector<8x128xf32>
    %c0_9 = arith.constant 0 : index
    %c0_10 = arith.constant 0 : index
    %14 = vector.load %arg3[%c0_9, %c0_10] : memref<64x16xbf16, #tpu.memory_space<vmem>>, vector<64x16xbf16>
    %cst = arith.constant dense<0.000000e+00> : vector<64x384xf32>
    %15 = tpu.matmul %14, %8, %cst {dimension_numbers = #tpu.dot_dimension_numbers<[1], [0], [0], [1], [0, 0, 1, 1], [], []>} : vector<64x16xbf16>, vector<16x384xbf16>, vector<64x384xf32> -> vector<64x384xf32>
    %16 = vector.broadcast %10 : vector<1x384xf32> to vector<64x384xf32>
    %17 = arith.addf %15, %16 : vector<64x384xf32>
    %c0_11 = arith.constant 0 : index
    %c0_12 = arith.constant 0 : index
    %18 = vector.load %arg14[%c0_11, %c0_12] : memref<64x384xf32, #tpu.memory_space<vmem>>, vector<64x384xf32>
    tpu.vector_store %arg14[%c0_11, %c0_12], %17 {strides = array<i32>} : memref<64x384xf32, #tpu.memory_space<vmem>>, vector<64x384xf32>,
    %c0_i32_13 = arith.constant 0 : i32
    %19 = arith.addi %7, %c0_i32_13 : i32
    %20 = arith.index_cast %19 : i32 to index
    %21 = memref.load %arg2[%20] : memref<8xi32, #tpu.memory_space<smem>>
    %22 = vector.broadcast %21 : i32 to vector<8x1xi32>
    %23 = arith.cmpi slt, %6, %22 : vector<8x1xi32>
    %c8_i32_14 = arith.constant 8 : i32
    %24 = arith.muli %c0_i32_13, %c8_i32_14 : i32
    %25 = tpu.assume_multiple %24, 8 : i32
    %26 = arith.index_cast %25 : i32 to index
    %c0_15 = arith.constant 0 : index
    %27 = vector.load %arg14[%26, %c0_15] : memref<64x384xf32, #tpu.memory_space<vmem>>, vector<8x384xf32>
    %c0_16 = arith.constant 0 : index
    %c0_17 = arith.constant 0 : index
    %c0_18 = arith.constant 0 : index
    %28 = vector.load %arg13[%c0_16, %c0_17, %c0_18] : memref<2x8x128xf32, #tpu.memory_space<vmem>>, vector<1x8x128xf32>
    %29 = vector.shape_cast %28 : vector<1x8x128xf32> to vector<8x128xf32>
    %30 = arith.truncf %29 : vector<8x128xf32> to vector<8x128xbf16>
    %cst_19 = arith.constant dense<0.000000e+00> : vector<8x384xf32>
    %31 = tpu.matmul %30, %9, %cst_19 {dimension_numbers = #tpu.dot_dimension_numbers<[1], [0], [0], [1], [0, 0, 1, 1], [], []>} : vector<8x128xbf16>, vector<128x384xbf16>, vector<8x384xf32> -> vector<8x384xf32>
    %32 = vector.extract_strided_slice %27 {offsets = [0, 0], sizes = [8, 128], strides = [1, 1]} : vector<8x384xf32> to vector<8x128xf32>
    %33 = vector.extract_strided_slice %31 {offsets = [0, 0], sizes = [8, 128], strides = [1, 1]} : vector<8x384xf32> to vector<8x128xf32>
    %34 = arith.addf %32, %33 : vector<8x128xf32>
    %35 = arith.negf %34 : vector<8x128xf32>
    %36 = math.exp %35 : vector<8x128xf32>
    %cst_20 = arith.constant 1.000000e+00 : f32
    %37 = vector.broadcast %cst_20 : f32 to vector<8x128xf32>
    %38 = arith.addf %37, %36 : vector<8x128xf32>
    %39 = arith.divf %37, %38 : vector<8x128xf32>
    %40 = vector.extract_strided_slice %27 {offsets = [0, 128], sizes = [8, 128], strides = [1, 1]} : vector<8x384xf32> to vector<8x128xf32>
    %41 = vector.extract_strided_slice %31 {offsets = [0, 128], sizes = [8, 128], strides = [1, 1]} : vector<8x384xf32> to vector<8x128xf32>
    %42 = arith.addf %40, %41 : vector<8x128xf32>
    %43 = arith.negf %42 : vector<8x128xf32>
    %44 = math.exp %43 : vector<8x128xf32>
    %cst_21 = arith.constant 1.000000e+00 : f32
    %45 = vector.broadcast %cst_21 : f32 to vector<8x128xf32>
    %46 = arith.addf %45, %44 : vector<8x128xf32>
    %47 = arith.divf %45, %46 : vector<8x128xf32>
    %48 = vector.extract_strided_slice %27 {offsets = [0, 256], sizes = [8, 128], strides = [1, 1]} : vector<8x384xf32> to vector<8x128xf32>
    %49 = vector.extract_strided_slice %31 {offsets = [0, 256], sizes = [8, 128], strides = [1, 1]} : vector<8x384xf32> to vector<8x128xf32>
    %50 = arith.addf %49, %13 : vector<8x128xf32>
    %51 = arith.mulf %39, %50 : vector<8x128xf32>
    %52 = arith.addf %48, %51 : vector<8x128xf32>
    %53 = math.tanh %52 : vector<8x128xf32>
    %54 = arith.subf %29, %53 : vector<8x128xf32>
    %55 = arith.mulf %47, %54 : vector<8x128xf32>
    %56 = arith.addf %53, %55 : vector<8x128xf32>
    %57 = vector.shape_cast %23 : vector<8x1xi1> to vector<8x1xi1>
    %58 = vector.broadcast %57 : vector<8x1xi1> to vector<8x128xi1>
    %59 = arith.select %58, %56, %29 : vector<8x128xi1>, vector<8x128xf32>
    %c0_22 = arith.constant 0 : index
    %c0_23 = arith.constant 0 : index
    %c0_24 = arith.constant 0 : index
    %60 = vector.load %arg13[%c0_22, %c0_23, %c0_24] : memref<2x8x128xf32, #tpu.memory_space<vmem>>, vector<1x8x128xf32>
    %61 = vector.shape_cast %60 : vector<1x8x128xf32> to vector<8x128xf32>
    %62 = vector.shape_cast %59 : vector<8x128xf32> to vector<1x8x128xf32>
    tpu.vector_store %arg13[%c0_22, %c0_23, %c0_24], %62 {strides = array<i32>} : memref<2x8x128xf32, #tpu.memory_space<vmem>>, vector<1x8x128xf32>,
    %cst_25 = arith.constant 0.000000e+00 : f32
    %63 = vector.shape_cast %23 : vector<8x1xi1> to vector<8x1xi1>
    %64 = vector.broadcast %63 : vector<8x1xi1> to vector<8x128xi1>
    %65 = vector.broadcast %cst_25 : f32 to vector<8x128xf32>
    %66 = arith.select %64, %59, %65 : vector<8x128xi1>, vector<8x128xf32>
    %67 = arith.truncf %66 : vector<8x128xf32> to vector<8x128xbf16>
    %68 = arith.index_cast %25 : i32 to index
    %c0_26 = arith.constant 0 : index
    %69 = vector.load %arg12[%68, %c0_26] : memref<64x128xbf16, #tpu.memory_space<vmem>>, vector<8x128xbf16>
    tpu.vector_store %arg12[%68, %c0_26], %67 {strides = array<i32>} : memref<64x128xbf16, #tpu.memory_space<vmem>>, vector<8x128xbf16>,
    %c1_i32 = arith.constant 1 : i32
    %70 = arith.addi %7, %c1_i32 : i32
    %71 = arith.index_cast %70 : i32 to index
    %72 = memref.load %arg2[%71] : memref<8xi32, #tpu.memory_space<smem>>
    %73 = vector.broadcast %72 : i32 to vector<8x1xi32>
    %74 = arith.cmpi slt, %6, %73 : vector<8x1xi32>
    %c8_i32_27 = arith.constant 8 : i32
    %75 = arith.muli %c1_i32, %c8_i32_27 : i32
    %76 = tpu.assume_multiple %75, 8 : i32
    %77 = arith.index_cast %76 : i32 to index
    %c0_28 = arith.constant 0 : index
    %78 = vector.load %arg14[%77, %c0_28] : memref<64x384xf32, #tpu.memory_space<vmem>>, vector<8x384xf32>
    %c0_29 = arith.constant 0 : index
    %c0_30 = arith.constant 0 : index
    %c0_31 = arith.constant 0 : index
    %79 = vector.load %arg13[%c0_29, %c0_30, %c0_31] : memref<2x8x128xf32, #tpu.memory_space<vmem>>, vector<1x8x128xf32>
    %80 = vector.shape_cast %79 : vector<1x8x128xf32> to vector<8x128xf32>
    %81 = arith.truncf %80 : vector<8x128xf32> to vector<8x128xbf16>
    %cst_32 = arith.constant dense<0.000000e+00> : vector<8x384xf32>
    %82 = tpu.matmul %81, %9, %cst_32 {dimension_numbers = #tpu.dot_dimension_numbers<[1], [0], [0], [1], [0, 0, 1, 1], [], []>} : vector<8x128xbf16>, vector<128x384xbf16>, vector<8x384xf32> -> vector<8x384xf32>
    %83 = vector.extract_strided_slice %78 {offsets = [0, 0], sizes = [8, 128], strides = [1, 1]} : vector<8x384xf32> to vector<8x128xf32>
    %84 = vector.extract_strided_slice %82 {offsets = [0, 0], sizes = [8, 128], strides = [1, 1]} : vector<8x384xf32> to vector<8x128xf32>
    %85 = arith.addf %83, %84 : vector<8x128xf32>
    %86 = arith.negf %85 : vector<8x128xf32>
    %87 = math.exp %86 : vector<8x128xf32>
    %cst_33 = arith.constant 1.000000e+00 : f32
    %88 = vector.broadcast %cst_33 : f32 to vector<8x128xf32>
    %89 = arith.addf %88, %87 : vector<8x128xf32>
    %90 = arith.divf %88, %89 : vector<8x128xf32>
    %91 = vector.extract_strided_slice %78 {offsets = [0, 128], sizes = [8, 128], strides = [1, 1]} : vector<8x384xf32> to vector<8x128xf32>
    %92 = vector.extract_strided_slice %82 {offsets = [0, 128], sizes = [8, 128], strides = [1, 1]} : vector<8x384xf32> to vector<8x128xf32>
    %93 = arith.addf %91, %92 : vector<8x128xf32>
    %94 = arith.negf %93 : vector<8x128xf32>
    %95 = math.exp %94 : vector<8x128xf32>
    %cst_34 = arith.constant 1.000000e+00 : f32
    %96 = vector.broadcast %cst_34 : f32 to vector<8x128xf32>
    %97 = arith.addf %96, %95 : vector<8x128xf32>
    %98 = arith.divf %96, %97 : vector<8x128xf32>
    %99 = vector.extract_strided_slice %78 {offsets = [0, 256], sizes = [8, 128], strides = [1, 1]} : vector<8x384xf32> to vector<8x128xf32>
    %100 = vector.extract_strided_slice %82 {offsets = [0, 256], sizes = [8, 128], strides = [1, 1]} : vector<8x384xf32> to vector<8x128xf32>
    %101 = arith.addf %100, %13 : vector<8x128xf32>
    %102 = arith.mulf %90, %101 : vector<8x128xf32>
    %103 = arith.addf %99, %102 : vector<8x128xf32>
    %104 = math.tanh %103 : vector<8x128xf32>
    %105 = arith.subf %80, %104 : vector<8x128xf32>
    %106 = arith.mulf %98, %105 : vector<8x128xf32>
    %107 = arith.addf %104, %106 : vector<8x128xf32>
    %108 = vector.shape_cast %74 : vector<8x1xi1> to vector<8x1xi1>
    %109 = vector.broadcast %108 : vector<8x1xi1> to vector<8x128xi1>
    %110 = arith.select %109, %107, %80 : vector<8x128xi1>, vector<8x128xf32>
    %c0_35 = arith.constant 0 : index
    %c0_36 = arith.constant 0 : index
    %c0_37 = arith.constant 0 : index
    %111 = vector.load %arg13[%c0_35, %c0_36, %c0_37] : memref<2x8x128xf32, #tpu.memory_space<vmem>>, vector<1x8x128xf32>
    %112 = vector.shape_cast %111 : vector<1x8x128xf32> to vector<8x128xf32>
    %113 = vector.shape_cast %110 : vector<8x128xf32> to vector<1x8x128xf32>
    tpu.vector_store %arg13[%c0_35, %c0_36, %c0_37], %113 {strides = array<i32>} : memref<2x8x128xf32, #tpu.memory_space<vmem>>, vector<1x8x128xf32>,
    %cst_38 = arith.constant 0.000000e+00 : f32
    %114 = vector.shape_cast %74 : vector<8x1xi1> to vector<8x1xi1>
    %115 = vector.broadcast %114 : vector<8x1xi1> to vector<8x128xi1>
    %116 = vector.broadcast %cst_38 : f32 to vector<8x128xf32>
    %117 = arith.select %115, %110, %116 : vector<8x128xi1>, vector<8x128xf32>
    %118 = arith.truncf %117 : vector<8x128xf32> to vector<8x128xbf16>
    %119 = arith.index_cast %76 : i32 to index
    %c0_39 = arith.constant 0 : index
    %120 = vector.load %arg12[%119, %c0_39] : memref<64x128xbf16, #tpu.memory_space<vmem>>, vector<8x128xbf16>
    tpu.vector_store %arg12[%119, %c0_39], %118 {strides = array<i32>} : memref<64x128xbf16, #tpu.memory_space<vmem>>, vector<8x128xbf16>,
    %c2_i32 = arith.constant 2 : i32
    %121 = arith.addi %7, %c2_i32 : i32
    %122 = arith.index_cast %121 : i32 to index
    %123 = memref.load %arg2[%122] : memref<8xi32, #tpu.memory_space<smem>>
    %124 = vector.broadcast %123 : i32 to vector<8x1xi32>
    %125 = arith.cmpi slt, %6, %124 : vector<8x1xi32>
    %c8_i32_40 = arith.constant 8 : i32
    %126 = arith.muli %c2_i32, %c8_i32_40 : i32
    %127 = tpu.assume_multiple %126, 8 : i32
    %128 = arith.index_cast %127 : i32 to index
    %c0_41 = arith.constant 0 : index
    %129 = vector.load %arg14[%128, %c0_41] : memref<64x384xf32, #tpu.memory_space<vmem>>, vector<8x384xf32>
    %c0_42 = arith.constant 0 : index
    %c0_43 = arith.constant 0 : index
    %c0_44 = arith.constant 0 : index
    %130 = vector.load %arg13[%c0_42, %c0_43, %c0_44] : memref<2x8x128xf32, #tpu.memory_space<vmem>>, vector<1x8x128xf32>
    %131 = vector.shape_cast %130 : vector<1x8x128xf32> to vector<8x128xf32>
    %132 = arith.truncf %131 : vector<8x128xf32> to vector<8x128xbf16>
    %cst_45 = arith.constant dense<0.000000e+00> : vector<8x384xf32>
    %133 = tpu.matmul %132, %9, %cst_45 {dimension_numbers = #tpu.dot_dimension_numbers<[1], [0], [0], [1], [0, 0, 1, 1], [], []>} : vector<8x128xbf16>, vector<128x384xbf16>, vector<8x384xf32> -> vector<8x384xf32>
    %134 = vector.extract_strided_slice %129 {offsets = [0, 0], sizes = [8, 128], strides = [1, 1]} : vector<8x384xf32> to vector<8x128xf32>
    %135 = vector.extract_strided_slice %133 {offsets = [0, 0], sizes = [8, 128], strides = [1, 1]} : vector<8x384xf32> to vector<8x128xf32>
    %136 = arith.addf %134, %135 : vector<8x128xf32>
    %137 = arith.negf %136 : vector<8x128xf32>
    %138 = math.exp %137 : vector<8x128xf32>
    %cst_46 = arith.constant 1.000000e+00 : f32
    %139 = vector.broadcast %cst_46 : f32 to vector<8x128xf32>
    %140 = arith.addf %139, %138 : vector<8x128xf32>
    %141 = arith.divf %139, %140 : vector<8x128xf32>
    %142 = vector.extract_strided_slice %129 {offsets = [0, 128], sizes = [8, 128], strides = [1, 1]} : vector<8x384xf32> to vector<8x128xf32>
    %143 = vector.extract_strided_slice %133 {offsets = [0, 128], sizes = [8, 128], strides = [1, 1]} : vector<8x384xf32> to vector<8x128xf32>
    %144 = arith.addf %142, %143 : vector<8x128xf32>
    %145 = arith.negf %144 : vector<8x128xf32>
    %146 = math.exp %145 : vector<8x128xf32>
    %cst_47 = arith.constant 1.000000e+00 : f32
    %147 = vector.broadcast %cst_47 : f32 to vector<8x128xf32>
    %148 = arith.addf %147, %146 : vector<8x128xf32>
    %149 = arith.divf %147, %148 : vector<8x128xf32>
    %150 = vector.extract_strided_slice %129 {offsets = [0, 256], sizes = [8, 128], strides = [1, 1]} : vector<8x384xf32> to vector<8x128xf32>
    %151 = vector.extract_strided_slice %133 {offsets = [0, 256], sizes = [8, 128], strides = [1, 1]} : vector<8x384xf32> to vector<8x128xf32>
    %152 = arith.addf %151, %13 : vector<8x128xf32>
    %153 = arith.mulf %141, %152 : vector<8x128xf32>
    %154 = arith.addf %150, %153 : vector<8x128xf32>
    %155 = math.tanh %154 : vector<8x128xf32>
    %156 = arith.subf %131, %155 : vector<8x128xf32>
    %157 = arith.mulf %149, %156 : vector<8x128xf32>
    %158 = arith.addf %155, %157 : vector<8x128xf32>
    %159 = vector.shape_cast %125 : vector<8x1xi1> to vector<8x1xi1>
    %160 = vector.broadcast %159 : vector<8x1xi1> to vector<8x128xi1>
    %161 = arith.select %160, %158, %131 : vector<8x128xi1>, vector<8x128xf32>
    %c0_48 = arith.constant 0 : index
    %c0_49 = arith.constant 0 : index
    %c0_50 = arith.constant 0 : index
    %162 = vector.load %arg13[%c0_48, %c0_49, %c0_50] : memref<2x8x128xf32, #tpu.memory_space<vmem>>, vector<1x8x128xf32>
    %163 = vector.shape_cast %162 : vector<1x8x128xf32> to vector<8x128xf32>
    %164 = vector.shape_cast %161 : vector<8x128xf32> to vector<1x8x128xf32>
    tpu.vector_store %arg13[%c0_48, %c0_49, %c0_50], %164 {strides = array<i32>} : memref<2x8x128xf32, #tpu.memory_space<vmem>>, vector<1x8x128xf32>,
    %cst_51 = arith.constant 0.000000e+00 : f32
    %165 = vector.shape_cast %125 : vector<8x1xi1> to vector<8x1xi1>
    %166 = vector.broadcast %165 : vector<8x1xi1> to vector<8x128xi1>
    %167 = vector.broadcast %cst_51 : f32 to vector<8x128xf32>
    %168 = arith.select %166, %161, %167 : vector<8x128xi1>, vector<8x128xf32>
    %169 = arith.truncf %168 : vector<8x128xf32> to vector<8x128xbf16>
    %170 = arith.index_cast %127 : i32 to index
    %c0_52 = arith.constant 0 : index
    %171 = vector.load %arg12[%170, %c0_52] : memref<64x128xbf16, #tpu.memory_space<vmem>>, vector<8x128xbf16>
    tpu.vector_store %arg12[%170, %c0_52], %169 {strides = array<i32>} : memref<64x128xbf16, #tpu.memory_space<vmem>>, vector<8x128xbf16>,
    %c3_i32 = arith.constant 3 : i32
    %172 = arith.addi %7, %c3_i32 : i32
    %173 = arith.index_cast %172 : i32 to index
    %174 = memref.load %arg2[%173] : memref<8xi32, #tpu.memory_space<smem>>
    %175 = vector.broadcast %174 : i32 to vector<8x1xi32>
    %176 = arith.cmpi slt, %6, %175 : vector<8x1xi32>
    %c8_i32_53 = arith.constant 8 : i32
    %177 = arith.muli %c3_i32, %c8_i32_53 : i32
    %178 = tpu.assume_multiple %177, 8 : i32
    %179 = arith.index_cast %178 : i32 to index
    %c0_54 = arith.constant 0 : index
    %180 = vector.load %arg14[%179, %c0_54] : memref<64x384xf32, #tpu.memory_space<vmem>>, vector<8x384xf32>
    %c0_55 = arith.constant 0 : index
    %c0_56 = arith.constant 0 : index
    %c0_57 = arith.constant 0 : index
    %181 = vector.load %arg13[%c0_55, %c0_56, %c0_57] : memref<2x8x128xf32, #tpu.memory_space<vmem>>, vector<1x8x128xf32>
    %182 = vector.shape_cast %181 : vector<1x8x128xf32> to vector<8x128xf32>
    %183 = arith.truncf %182 : vector<8x128xf32> to vector<8x128xbf16>
    %cst_58 = arith.constant dense<0.000000e+00> : vector<8x384xf32>
    %184 = tpu.matmul %183, %9, %cst_58 {dimension_numbers = #tpu.dot_dimension_numbers<[1], [0], [0], [1], [0, 0, 1, 1], [], []>} : vector<8x128xbf16>, vector<128x384xbf16>, vector<8x384xf32> -> vector<8x384xf32>
    %185 = vector.extract_strided_slice %180 {offsets = [0, 0], sizes = [8, 128], strides = [1, 1]} : vector<8x384xf32> to vector<8x128xf32>
    %186 = vector.extract_strided_slice %184 {offsets = [0, 0], sizes = [8, 128], strides = [1, 1]} : vector<8x384xf32> to vector<8x128xf32>
    %187 = arith.addf %185, %186 : vector<8x128xf32>
    %188 = arith.negf %187 : vector<8x128xf32>
    %189 = math.exp %188 : vector<8x128xf32>
    %cst_59 = arith.constant 1.000000e+00 : f32
    %190 = vector.broadcast %cst_59 : f32 to vector<8x128xf32>
    %191 = arith.addf %190, %189 : vector<8x128xf32>
    %192 = arith.divf %190, %191 : vector<8x128xf32>
    %193 = vector.extract_strided_slice %180 {offsets = [0, 128], sizes = [8, 128], strides = [1, 1]} : vector<8x384xf32> to vector<8x128xf32>
    %194 = vector.extract_strided_slice %184 {offsets = [0, 128], sizes = [8, 128], strides = [1, 1]} : vector<8x384xf32> to vector<8x128xf32>
    %195 = arith.addf %193, %194 : vector<8x128xf32>
    %196 = arith.negf %195 : vector<8x128xf32>
    %197 = math.exp %196 : vector<8x128xf32>
    %cst_60 = arith.constant 1.000000e+00 : f32
    %198 = vector.broadcast %cst_60 : f32 to vector<8x128xf32>
    %199 = arith.addf %198, %197 : vector<8x128xf32>
    %200 = arith.divf %198, %199 : vector<8x128xf32>
    %201 = vector.extract_strided_slice %180 {offsets = [0, 256], sizes = [8, 128], strides = [1, 1]} : vector<8x384xf32> to vector<8x128xf32>
    %202 = vector.extract_strided_slice %184 {offsets = [0, 256], sizes = [8, 128], strides = [1, 1]} : vector<8x384xf32> to vector<8x128xf32>
    %203 = arith.addf %202, %13 : vector<8x128xf32>
    %204 = arith.mulf %192, %203 : vector<8x128xf32>
    %205 = arith.addf %201, %204 : vector<8x128xf32>
    %206 = math.tanh %205 : vector<8x128xf32>
    %207 = arith.subf %182, %206 : vector<8x128xf32>
    %208 = arith.mulf %200, %207 : vector<8x128xf32>
    %209 = arith.addf %206, %208 : vector<8x128xf32>
    %210 = vector.shape_cast %176 : vector<8x1xi1> to vector<8x1xi1>
    %211 = vector.broadcast %210 : vector<8x1xi1> to vector<8x128xi1>
    %212 = arith.select %211, %209, %182 : vector<8x128xi1>, vector<8x128xf32>
    %c0_61 = arith.constant 0 : index
    %c0_62 = arith.constant 0 : index
    %c0_63 = arith.constant 0 : index
    %213 = vector.load %arg13[%c0_61, %c0_62, %c0_63] : memref<2x8x128xf32, #tpu.memory_space<vmem>>, vector<1x8x128xf32>
    %214 = vector.shape_cast %213 : vector<1x8x128xf32> to vector<8x128xf32>
    %215 = vector.shape_cast %212 : vector<8x128xf32> to vector<1x8x128xf32>
    tpu.vector_store %arg13[%c0_61, %c0_62, %c0_63], %215 {strides = array<i32>} : memref<2x8x128xf32, #tpu.memory_space<vmem>>, vector<1x8x128xf32>,
    %cst_64 = arith.constant 0.000000e+00 : f32
    %216 = vector.shape_cast %176 : vector<8x1xi1> to vector<8x1xi1>
    %217 = vector.broadcast %216 : vector<8x1xi1> to vector<8x128xi1>
    %218 = vector.broadcast %cst_64 : f32 to vector<8x128xf32>
    %219 = arith.select %217, %212, %218 : vector<8x128xi1>, vector<8x128xf32>
    %220 = arith.truncf %219 : vector<8x128xf32> to vector<8x128xbf16>
    %221 = arith.index_cast %178 : i32 to index
    %c0_65 = arith.constant 0 : index
    %222 = vector.load %arg12[%221, %c0_65] : memref<64x128xbf16, #tpu.memory_space<vmem>>, vector<8x128xbf16>
    tpu.vector_store %arg12[%221, %c0_65], %220 {strides = array<i32>} : memref<64x128xbf16, #tpu.memory_space<vmem>>, vector<8x128xbf16>,
    %c4_i32 = arith.constant 4 : i32
    %223 = arith.addi %7, %c4_i32 : i32
    %224 = arith.index_cast %223 : i32 to index
    %225 = memref.load %arg2[%224] : memref<8xi32, #tpu.memory_space<smem>>
    %226 = vector.broadcast %225 : i32 to vector<8x1xi32>
    %227 = arith.cmpi slt, %6, %226 : vector<8x1xi32>
    %c8_i32_66 = arith.constant 8 : i32
    %228 = arith.muli %c4_i32, %c8_i32_66 : i32
    %229 = tpu.assume_multiple %228, 8 : i32
    %230 = arith.index_cast %229 : i32 to index
    %c0_67 = arith.constant 0 : index
    %231 = vector.load %arg14[%230, %c0_67] : memref<64x384xf32, #tpu.memory_space<vmem>>, vector<8x384xf32>
    %c0_68 = arith.constant 0 : index
    %c0_69 = arith.constant 0 : index
    %c0_70 = arith.constant 0 : index
    %232 = vector.load %arg13[%c0_68, %c0_69, %c0_70] : memref<2x8x128xf32, #tpu.memory_space<vmem>>, vector<1x8x128xf32>
    %233 = vector.shape_cast %232 : vector<1x8x128xf32> to vector<8x128xf32>
    %234 = arith.truncf %233 : vector<8x128xf32> to vector<8x128xbf16>
    %cst_71 = arith.constant dense<0.000000e+00> : vector<8x384xf32>
    %235 = tpu.matmul %234, %9, %cst_71 {dimension_numbers = #tpu.dot_dimension_numbers<[1], [0], [0], [1], [0, 0, 1, 1], [], []>} : vector<8x128xbf16>, vector<128x384xbf16>, vector<8x384xf32> -> vector<8x384xf32>
    %236 = vector.extract_strided_slice %231 {offsets = [0, 0], sizes = [8, 128], strides = [1, 1]} : vector<8x384xf32> to vector<8x128xf32>
    %237 = vector.extract_strided_slice %235 {offsets = [0, 0], sizes = [8, 128], strides = [1, 1]} : vector<8x384xf32> to vector<8x128xf32>
    %238 = arith.addf %236, %237 : vector<8x128xf32>
    %239 = arith.negf %238 : vector<8x128xf32>
    %240 = math.exp %239 : vector<8x128xf32>
    %cst_72 = arith.constant 1.000000e+00 : f32
    %241 = vector.broadcast %cst_72 : f32 to vector<8x128xf32>
    %242 = arith.addf %241, %240 : vector<8x128xf32>
    %243 = arith.divf %241, %242 : vector<8x128xf32>
    %244 = vector.extract_strided_slice %231 {offsets = [0, 128], sizes = [8, 128], strides = [1, 1]} : vector<8x384xf32> to vector<8x128xf32>
    %245 = vector.extract_strided_slice %235 {offsets = [0, 128], sizes = [8, 128], strides = [1, 1]} : vector<8x384xf32> to vector<8x128xf32>
    %246 = arith.addf %244, %245 : vector<8x128xf32>
    %247 = arith.negf %246 : vector<8x128xf32>
    %248 = math.exp %247 : vector<8x128xf32>
    %cst_73 = arith.constant 1.000000e+00 : f32
    %249 = vector.broadcast %cst_73 : f32 to vector<8x128xf32>
    %250 = arith.addf %249, %248 : vector<8x128xf32>
    %251 = arith.divf %249, %250 : vector<8x128xf32>
    %252 = vector.extract_strided_slice %231 {offsets = [0, 256], sizes = [8, 128], strides = [1, 1]} : vector<8x384xf32> to vector<8x128xf32>
    %253 = vector.extract_strided_slice %235 {offsets = [0, 256], sizes = [8, 128], strides = [1, 1]} : vector<8x384xf32> to vector<8x128xf32>
    %254 = arith.addf %253, %13 : vector<8x128xf32>
    %255 = arith.mulf %243, %254 : vector<8x128xf32>
    %256 = arith.addf %252, %255 : vector<8x128xf32>
    %257 = math.tanh %256 : vector<8x128xf32>
    %258 = arith.subf %233, %257 : vector<8x128xf32>
    %259 = arith.mulf %251, %258 : vector<8x128xf32>
    %260 = arith.addf %257, %259 : vector<8x128xf32>
    %261 = vector.shape_cast %227 : vector<8x1xi1> to vector<8x1xi1>
    %262 = vector.broadcast %261 : vector<8x1xi1> to vector<8x128xi1>
    %263 = arith.select %262, %260, %233 : vector<8x128xi1>, vector<8x128xf32>
    %c0_74 = arith.constant 0 : index
    %c0_75 = arith.constant 0 : index
    %c0_76 = arith.constant 0 : index
    %264 = vector.load %arg13[%c0_74, %c0_75, %c0_76] : memref<2x8x128xf32, #tpu.memory_space<vmem>>, vector<1x8x128xf32>
    %265 = vector.shape_cast %264 : vector<1x8x128xf32> to vector<8x128xf32>
    %266 = vector.shape_cast %263 : vector<8x128xf32> to vector<1x8x128xf32>
    tpu.vector_store %arg13[%c0_74, %c0_75, %c0_76], %266 {strides = array<i32>} : memref<2x8x128xf32, #tpu.memory_space<vmem>>, vector<1x8x128xf32>,
    %cst_77 = arith.constant 0.000000e+00 : f32
    %267 = vector.shape_cast %227 : vector<8x1xi1> to vector<8x1xi1>
    %268 = vector.broadcast %267 : vector<8x1xi1> to vector<8x128xi1>
    %269 = vector.broadcast %cst_77 : f32 to vector<8x128xf32>
    %270 = arith.select %268, %263, %269 : vector<8x128xi1>, vector<8x128xf32>
    %271 = arith.truncf %270 : vector<8x128xf32> to vector<8x128xbf16>
    %272 = arith.index_cast %229 : i32 to index
    %c0_78 = arith.constant 0 : index
    %273 = vector.load %arg12[%272, %c0_78] : memref<64x128xbf16, #tpu.memory_space<vmem>>, vector<8x128xbf16>
    tpu.vector_store %arg12[%272, %c0_78], %271 {strides = array<i32>} : memref<64x128xbf16, #tpu.memory_space<vmem>>, vector<8x128xbf16>,
    %c5_i32 = arith.constant 5 : i32
    %274 = arith.addi %7, %c5_i32 : i32
    %275 = arith.index_cast %274 : i32 to index
    %276 = memref.load %arg2[%275] : memref<8xi32, #tpu.memory_space<smem>>
    %277 = vector.broadcast %276 : i32 to vector<8x1xi32>
    %278 = arith.cmpi slt, %6, %277 : vector<8x1xi32>
    %c8_i32_79 = arith.constant 8 : i32
    %279 = arith.muli %c5_i32, %c8_i32_79 : i32
    %280 = tpu.assume_multiple %279, 8 : i32
    %281 = arith.index_cast %280 : i32 to index
    %c0_80 = arith.constant 0 : index
    %282 = vector.load %arg14[%281, %c0_80] : memref<64x384xf32, #tpu.memory_space<vmem>>, vector<8x384xf32>
    %c0_81 = arith.constant 0 : index
    %c0_82 = arith.constant 0 : index
    %c0_83 = arith.constant 0 : index
    %283 = vector.load %arg13[%c0_81, %c0_82, %c0_83] : memref<2x8x128xf32, #tpu.memory_space<vmem>>, vector<1x8x128xf32>
    %284 = vector.shape_cast %283 : vector<1x8x128xf32> to vector<8x128xf32>
    %285 = arith.truncf %284 : vector<8x128xf32> to vector<8x128xbf16>
    %cst_84 = arith.constant dense<0.000000e+00> : vector<8x384xf32>
    %286 = tpu.matmul %285, %9, %cst_84 {dimension_numbers = #tpu.dot_dimension_numbers<[1], [0], [0], [1], [0, 0, 1, 1], [], []>} : vector<8x128xbf16>, vector<128x384xbf16>, vector<8x384xf32> -> vector<8x384xf32>
    %287 = vector.extract_strided_slice %282 {offsets = [0, 0], sizes = [8, 128], strides = [1, 1]} : vector<8x384xf32> to vector<8x128xf32>
    %288 = vector.extract_strided_slice %286 {offsets = [0, 0], sizes = [8, 128], strides = [1, 1]} : vector<8x384xf32> to vector<8x128xf32>
    %289 = arith.addf %287, %288 : vector<8x128xf32>
    %290 = arith.negf %289 : vector<8x128xf32>
    %291 = math.exp %290 : vector<8x128xf32>
    %cst_85 = arith.constant 1.000000e+00 : f32
    %292 = vector.broadcast %cst_85 : f32 to vector<8x128xf32>
    %293 = arith.addf %292, %291 : vector<8x128xf32>
    %294 = arith.divf %292, %293 : vector<8x128xf32>
    %295 = vector.extract_strided_slice %282 {offsets = [0, 128], sizes = [8, 128], strides = [1, 1]} : vector<8x384xf32> to vector<8x128xf32>
    %296 = vector.extract_strided_slice %286 {offsets = [0, 128], sizes = [8, 128], strides = [1, 1]} : vector<8x384xf32> to vector<8x128xf32>
    %297 = arith.addf %295, %296 : vector<8x128xf32>
    %298 = arith.negf %297 : vector<8x128xf32>
    %299 = math.exp %298 : vector<8x128xf32>
    %cst_86 = arith.constant 1.000000e+00 : f32
    %300 = vector.broadcast %cst_86 : f32 to vector<8x128xf32>
    %301 = arith.addf %300, %299 : vector<8x128xf32>
    %302 = arith.divf %300, %301 : vector<8x128xf32>
    %303 = vector.extract_strided_slice %282 {offsets = [0, 256], sizes = [8, 128], strides = [1, 1]} : vector<8x384xf32> to vector<8x128xf32>
    %304 = vector.extract_strided_slice %286 {offsets = [0, 256], sizes = [8, 128], strides = [1, 1]} : vector<8x384xf32> to vector<8x128xf32>
    %305 = arith.addf %304, %13 : vector<8x128xf32>
    %306 = arith.mulf %294, %305 : vector<8x128xf32>
    %307 = arith.addf %303, %306 : vector<8x128xf32>
    %308 = math.tanh %307 : vector<8x128xf32>
    %309 = arith.subf %284, %308 : vector<8x128xf32>
    %310 = arith.mulf %302, %309 : vector<8x128xf32>
    %311 = arith.addf %308, %310 : vector<8x128xf32>
    %312 = vector.shape_cast %278 : vector<8x1xi1> to vector<8x1xi1>
    %313 = vector.broadcast %312 : vector<8x1xi1> to vector<8x128xi1>
    %314 = arith.select %313, %311, %284 : vector<8x128xi1>, vector<8x128xf32>
    %c0_87 = arith.constant 0 : index
    %c0_88 = arith.constant 0 : index
    %c0_89 = arith.constant 0 : index
    %315 = vector.load %arg13[%c0_87, %c0_88, %c0_89] : memref<2x8x128xf32, #tpu.memory_space<vmem>>, vector<1x8x128xf32>
    %316 = vector.shape_cast %315 : vector<1x8x128xf32> to vector<8x128xf32>
    %317 = vector.shape_cast %314 : vector<8x128xf32> to vector<1x8x128xf32>
    tpu.vector_store %arg13[%c0_87, %c0_88, %c0_89], %317 {strides = array<i32>} : memref<2x8x128xf32, #tpu.memory_space<vmem>>, vector<1x8x128xf32>,
    %cst_90 = arith.constant 0.000000e+00 : f32
    %318 = vector.shape_cast %278 : vector<8x1xi1> to vector<8x1xi1>
    %319 = vector.broadcast %318 : vector<8x1xi1> to vector<8x128xi1>
    %320 = vector.broadcast %cst_90 : f32 to vector<8x128xf32>
    %321 = arith.select %319, %314, %320 : vector<8x128xi1>, vector<8x128xf32>
    %322 = arith.truncf %321 : vector<8x128xf32> to vector<8x128xbf16>
    %323 = arith.index_cast %280 : i32 to index
    %c0_91 = arith.constant 0 : index
    %324 = vector.load %arg12[%323, %c0_91] : memref<64x128xbf16, #tpu.memory_space<vmem>>, vector<8x128xbf16>
    tpu.vector_store %arg12[%323, %c0_91], %322 {strides = array<i32>} : memref<64x128xbf16, #tpu.memory_space<vmem>>, vector<8x128xbf16>,
    %c6_i32 = arith.constant 6 : i32
    %325 = arith.addi %7, %c6_i32 : i32
    %326 = arith.index_cast %325 : i32 to index
    %327 = memref.load %arg2[%326] : memref<8xi32, #tpu.memory_space<smem>>
    %328 = vector.broadcast %327 : i32 to vector<8x1xi32>
    %329 = arith.cmpi slt, %6, %328 : vector<8x1xi32>
    %c8_i32_92 = arith.constant 8 : i32
    %330 = arith.muli %c6_i32, %c8_i32_92 : i32
    %331 = tpu.assume_multiple %330, 8 : i32
    %332 = arith.index_cast %331 : i32 to index
    %c0_93 = arith.constant 0 : index
    %333 = vector.load %arg14[%332, %c0_93] : memref<64x384xf32, #tpu.memory_space<vmem>>, vector<8x384xf32>
    %c0_94 = arith.constant 0 : index
    %c0_95 = arith.constant 0 : index
    %c0_96 = arith.constant 0 : index
    %334 = vector.load %arg13[%c0_94, %c0_95, %c0_96] : memref<2x8x128xf32, #tpu.memory_space<vmem>>, vector<1x8x128xf32>
    %335 = vector.shape_cast %334 : vector<1x8x128xf32> to vector<8x128xf32>
    %336 = arith.truncf %335 : vector<8x128xf32> to vector<8x128xbf16>
    %cst_97 = arith.constant dense<0.000000e+00> : vector<8x384xf32>
    %337 = tpu.matmul %336, %9, %cst_97 {dimension_numbers = #tpu.dot_dimension_numbers<[1], [0], [0], [1], [0, 0, 1, 1], [], []>} : vector<8x128xbf16>, vector<128x384xbf16>, vector<8x384xf32> -> vector<8x384xf32>
    %338 = vector.extract_strided_slice %333 {offsets = [0, 0], sizes = [8, 128], strides = [1, 1]} : vector<8x384xf32> to vector<8x128xf32>
    %339 = vector.extract_strided_slice %337 {offsets = [0, 0], sizes = [8, 128], strides = [1, 1]} : vector<8x384xf32> to vector<8x128xf32>
    %340 = arith.addf %338, %339 : vector<8x128xf32>
    %341 = arith.negf %340 : vector<8x128xf32>
    %342 = math.exp %341 : vector<8x128xf32>
    %cst_98 = arith.constant 1.000000e+00 : f32
    %343 = vector.broadcast %cst_98 : f32 to vector<8x128xf32>
    %344 = arith.addf %343, %342 : vector<8x128xf32>
    %345 = arith.divf %343, %344 : vector<8x128xf32>
    %346 = vector.extract_strided_slice %333 {offsets = [0, 128], sizes = [8, 128], strides = [1, 1]} : vector<8x384xf32> to vector<8x128xf32>
    %347 = vector.extract_strided_slice %337 {offsets = [0, 128], sizes = [8, 128], strides = [1, 1]} : vector<8x384xf32> to vector<8x128xf32>
    %348 = arith.addf %346, %347 : vector<8x128xf32>
    %349 = arith.negf %348 : vector<8x128xf32>
    %350 = math.exp %349 : vector<8x128xf32>
    %cst_99 = arith.constant 1.000000e+00 : f32
    %351 = vector.broadcast %cst_99 : f32 to vector<8x128xf32>
    %352 = arith.addf %351, %350 : vector<8x128xf32>
    %353 = arith.divf %351, %352 : vector<8x128xf32>
    %354 = vector.extract_strided_slice %333 {offsets = [0, 256], sizes = [8, 128], strides = [1, 1]} : vector<8x384xf32> to vector<8x128xf32>
    %355 = vector.extract_strided_slice %337 {offsets = [0, 256], sizes = [8, 128], strides = [1, 1]} : vector<8x384xf32> to vector<8x128xf32>
    %356 = arith.addf %355, %13 : vector<8x128xf32>
    %357 = arith.mulf %345, %356 : vector<8x128xf32>
    %358 = arith.addf %354, %357 : vector<8x128xf32>
    %359 = math.tanh %358 : vector<8x128xf32>
    %360 = arith.subf %335, %359 : vector<8x128xf32>
    %361 = arith.mulf %353, %360 : vector<8x128xf32>
    %362 = arith.addf %359, %361 : vector<8x128xf32>
    %363 = vector.shape_cast %329 : vector<8x1xi1> to vector<8x1xi1>
    %364 = vector.broadcast %363 : vector<8x1xi1> to vector<8x128xi1>
    %365 = arith.select %364, %362, %335 : vector<8x128xi1>, vector<8x128xf32>
    %c0_100 = arith.constant 0 : index
    %c0_101 = arith.constant 0 : index
    %c0_102 = arith.constant 0 : index
    %366 = vector.load %arg13[%c0_100, %c0_101, %c0_102] : memref<2x8x128xf32, #tpu.memory_space<vmem>>, vector<1x8x128xf32>
    %367 = vector.shape_cast %366 : vector<1x8x128xf32> to vector<8x128xf32>
    %368 = vector.shape_cast %365 : vector<8x128xf32> to vector<1x8x128xf32>
    tpu.vector_store %arg13[%c0_100, %c0_101, %c0_102], %368 {strides = array<i32>} : memref<2x8x128xf32, #tpu.memory_space<vmem>>, vector<1x8x128xf32>,
    %cst_103 = arith.constant 0.000000e+00 : f32
    %369 = vector.shape_cast %329 : vector<8x1xi1> to vector<8x1xi1>
    %370 = vector.broadcast %369 : vector<8x1xi1> to vector<8x128xi1>
    %371 = vector.broadcast %cst_103 : f32 to vector<8x128xf32>
    %372 = arith.select %370, %365, %371 : vector<8x128xi1>, vector<8x128xf32>
    %373 = arith.truncf %372 : vector<8x128xf32> to vector<8x128xbf16>
    %374 = arith.index_cast %331 : i32 to index
    %c0_104 = arith.constant 0 : index
    %375 = vector.load %arg12[%374, %c0_104] : memref<64x128xbf16, #tpu.memory_space<vmem>>, vector<8x128xbf16>
    tpu.vector_store %arg12[%374, %c0_104], %373 {strides = array<i32>} : memref<64x128xbf16, #tpu.memory_space<vmem>>, vector<8x128xbf16>,
    %c7_i32 = arith.constant 7 : i32
    %376 = arith.addi %7, %c7_i32 : i32
    %377 = arith.index_cast %376 : i32 to index
    %378 = memref.load %arg2[%377] : memref<8xi32, #tpu.memory_space<smem>>
    %379 = vector.broadcast %378 : i32 to vector<8x1xi32>
    %380 = arith.cmpi slt, %6, %379 : vector<8x1xi32>
    %c8_i32_105 = arith.constant 8 : i32
    %381 = arith.muli %c7_i32, %c8_i32_105 : i32
    %382 = tpu.assume_multiple %381, 8 : i32
    %383 = arith.index_cast %382 : i32 to index
    %c0_106 = arith.constant 0 : index
    %384 = vector.load %arg14[%383, %c0_106] : memref<64x384xf32, #tpu.memory_space<vmem>>, vector<8x384xf32>
    %c0_107 = arith.constant 0 : index
    %c0_108 = arith.constant 0 : index
    %c0_109 = arith.constant 0 : index
    %385 = vector.load %arg13[%c0_107, %c0_108, %c0_109] : memref<2x8x128xf32, #tpu.memory_space<vmem>>, vector<1x8x128xf32>
    %386 = vector.shape_cast %385 : vector<1x8x128xf32> to vector<8x128xf32>
    %387 = arith.truncf %386 : vector<8x128xf32> to vector<8x128xbf16>
    %cst_110 = arith.constant dense<0.000000e+00> : vector<8x384xf32>
    %388 = tpu.matmul %387, %9, %cst_110 {dimension_numbers = #tpu.dot_dimension_numbers<[1], [0], [0], [1], [0, 0, 1, 1], [], []>} : vector<8x128xbf16>, vector<128x384xbf16>, vector<8x384xf32> -> vector<8x384xf32>
    %389 = vector.extract_strided_slice %384 {offsets = [0, 0], sizes = [8, 128], strides = [1, 1]} : vector<8x384xf32> to vector<8x128xf32>
    %390 = vector.extract_strided_slice %388 {offsets = [0, 0], sizes = [8, 128], strides = [1, 1]} : vector<8x384xf32> to vector<8x128xf32>
    %391 = arith.addf %389, %390 : vector<8x128xf32>
    %392 = arith.negf %391 : vector<8x128xf32>
    %393 = math.exp %392 : vector<8x128xf32>
    %cst_111 = arith.constant 1.000000e+00 : f32
    %394 = vector.broadcast %cst_111 : f32 to vector<8x128xf32>
    %395 = arith.addf %394, %393 : vector<8x128xf32>
    %396 = arith.divf %394, %395 : vector<8x128xf32>
    %397 = vector.extract_strided_slice %384 {offsets = [0, 128], sizes = [8, 128], strides = [1, 1]} : vector<8x384xf32> to vector<8x128xf32>
    %398 = vector.extract_strided_slice %388 {offsets = [0, 128], sizes = [8, 128], strides = [1, 1]} : vector<8x384xf32> to vector<8x128xf32>
    %399 = arith.addf %397, %398 : vector<8x128xf32>
    %400 = arith.negf %399 : vector<8x128xf32>
    %401 = math.exp %400 : vector<8x128xf32>
    %cst_112 = arith.constant 1.000000e+00 : f32
    %402 = vector.broadcast %cst_112 : f32 to vector<8x128xf32>
    %403 = arith.addf %402, %401 : vector<8x128xf32>
    %404 = arith.divf %402, %403 : vector<8x128xf32>
    %405 = vector.extract_strided_slice %384 {offsets = [0, 256], sizes = [8, 128], strides = [1, 1]} : vector<8x384xf32> to vector<8x128xf32>
    %406 = vector.extract_strided_slice %388 {offsets = [0, 256], sizes = [8, 128], strides = [1, 1]} : vector<8x384xf32> to vector<8x128xf32>
    %407 = arith.addf %406, %13 : vector<8x128xf32>
    %408 = arith.mulf %396, %407 : vector<8x128xf32>
    %409 = arith.addf %405, %408 : vector<8x128xf32>
    %410 = math.tanh %409 : vector<8x128xf32>
    %411 = arith.subf %386, %410 : vector<8x128xf32>
    %412 = arith.mulf %404, %411 : vector<8x128xf32>
    %413 = arith.addf %410, %412 : vector<8x128xf32>
    %414 = vector.shape_cast %380 : vector<8x1xi1> to vector<8x1xi1>
    %415 = vector.broadcast %414 : vector<8x1xi1> to vector<8x128xi1>
    %416 = arith.select %415, %413, %386 : vector<8x128xi1>, vector<8x128xf32>
    %c0_113 = arith.constant 0 : index
    %c0_114 = arith.constant 0 : index
    %c0_115 = arith.constant 0 : index
    %417 = vector.load %arg13[%c0_113, %c0_114, %c0_115] : memref<2x8x128xf32, #tpu.memory_space<vmem>>, vector<1x8x128xf32>
    %418 = vector.shape_cast %417 : vector<1x8x128xf32> to vector<8x128xf32>
    %419 = vector.shape_cast %416 : vector<8x128xf32> to vector<1x8x128xf32>
    tpu.vector_store %arg13[%c0_113, %c0_114, %c0_115], %419 {strides = array<i32>} : memref<2x8x128xf32, #tpu.memory_space<vmem>>, vector<1x8x128xf32>,
    %cst_116 = arith.constant 0.000000e+00 : f32
    %420 = vector.shape_cast %380 : vector<8x1xi1> to vector<8x1xi1>
    %421 = vector.broadcast %420 : vector<8x1xi1> to vector<8x128xi1>
    %422 = vector.broadcast %cst_116 : f32 to vector<8x128xf32>
    %423 = arith.select %421, %416, %422 : vector<8x128xi1>, vector<8x128xf32>
    %424 = arith.truncf %423 : vector<8x128xf32> to vector<8x128xbf16>
    %425 = arith.index_cast %382 : i32 to index
    %c0_117 = arith.constant 0 : index
    %426 = vector.load %arg12[%425, %c0_117] : memref<64x128xbf16, #tpu.memory_space<vmem>>, vector<8x128xbf16>
    tpu.vector_store %arg12[%425, %c0_117], %424 {strides = array<i32>} : memref<64x128xbf16, #tpu.memory_space<vmem>>, vector<8x128xbf16>,
    %c8_i32_118 = arith.constant 8 : i32
    %c0_119 = arith.constant 0 : index
    %c0_120 = arith.constant 0 : index
    %427 = vector.load %arg8[%c0_119, %c0_120] : memref<128x384xbf16, #tpu.memory_space<vmem>>, vector<128x384xbf16>
    %c0_121 = arith.constant 0 : index
    %c0_122 = arith.constant 0 : index
    %428 = vector.load %arg9[%c0_121, %c0_122] : memref<128x384xbf16, #tpu.memory_space<vmem>>, vector<128x384xbf16>
    %c0_123 = arith.constant 0 : index
    %c0_124 = arith.constant 0 : index
    %429 = vector.load %arg10[%c0_123, %c0_124] : memref<1x384xf32, #tpu.memory_space<vmem>>, vector<1x384xf32>
    %c0_125 = arith.constant 0 : index
    %c0_126 = arith.constant 0 : index
    %430 = vector.load %arg11[%c0_125, %c0_126] : memref<1x128xf32, #tpu.memory_space<vmem>>, vector<1x128xf32>
    %431 = vector.shape_cast %430 : vector<1x128xf32> to vector<1x128xf32>
    %432 = vector.broadcast %431 : vector<1x128xf32> to vector<8x128xf32>
    %c0_127 = arith.constant 0 : index
    %c0_128 = arith.constant 0 : index
    %433 = vector.load %arg12[%c0_127, %c0_128] : memref<64x128xbf16, #tpu.memory_space<vmem>>, vector<64x128xbf16>
    %cst_129 = arith.constant dense<0.000000e+00> : vector<64x384xf32>
    %434 = tpu.matmul %433, %427, %cst_129 {dimension_numbers = #tpu.dot_dimension_numbers<[1], [0], [0], [1], [0, 0, 1, 1], [], []>} : vector<64x128xbf16>, vector<128x384xbf16>, vector<64x384xf32> -> vector<64x384xf32>
    %435 = vector.broadcast %429 : vector<1x384xf32> to vector<64x384xf32>
    %436 = arith.addf %434, %435 : vector<64x384xf32>
    %c0_130 = arith.constant 0 : index
    %c0_131 = arith.constant 0 : index
    %437 = vector.load %arg14[%c0_130, %c0_131] : memref<64x384xf32, #tpu.memory_space<vmem>>, vector<64x384xf32>
    tpu.vector_store %arg14[%c0_130, %c0_131], %436 {strides = array<i32>} : memref<64x384xf32, #tpu.memory_space<vmem>>, vector<64x384xf32>,
    %c0_i32_132 = arith.constant 0 : i32
    %438 = arith.addi %7, %c0_i32_132 : i32
    %439 = arith.index_cast %438 : i32 to index
    %440 = memref.load %arg2[%439] : memref<8xi32, #tpu.memory_space<smem>>
    %441 = vector.broadcast %440 : i32 to vector<8x1xi32>
    %442 = arith.cmpi slt, %6, %441 : vector<8x1xi32>
    %c8_i32_133 = arith.constant 8 : i32
    %443 = arith.muli %c0_i32_132, %c8_i32_133 : i32
    %444 = tpu.assume_multiple %443, 8 : i32
    %445 = arith.index_cast %444 : i32 to index
    %c0_134 = arith.constant 0 : index
    %446 = vector.load %arg14[%445, %c0_134] : memref<64x384xf32, #tpu.memory_space<vmem>>, vector<8x384xf32>
    %c1 = arith.constant 1 : index
    %c0_135 = arith.constant 0 : index
    %c0_136 = arith.constant 0 : index
    %447 = vector.load %arg13[%c1, %c0_135, %c0_136] : memref<2x8x128xf32, #tpu.memory_space<vmem>>, vector<1x8x128xf32>
    %448 = vector.shape_cast %447 : vector<1x8x128xf32> to vector<8x128xf32>
    %449 = arith.truncf %448 : vector<8x128xf32> to vector<8x128xbf16>
    %cst_137 = arith.constant dense<0.000000e+00> : vector<8x384xf32>
    %450 = tpu.matmul %449, %428, %cst_137 {dimension_numbers = #tpu.dot_dimension_numbers<[1], [0], [0], [1], [0, 0, 1, 1], [], []>} : vector<8x128xbf16>, vector<128x384xbf16>, vector<8x384xf32> -> vector<8x384xf32>
    %451 = vector.extract_strided_slice %446 {offsets = [0, 0], sizes = [8, 128], strides = [1, 1]} : vector<8x384xf32> to vector<8x128xf32>
    %452 = vector.extract_strided_slice %450 {offsets = [0, 0], sizes = [8, 128], strides = [1, 1]} : vector<8x384xf32> to vector<8x128xf32>
    %453 = arith.addf %451, %452 : vector<8x128xf32>
    %454 = arith.negf %453 : vector<8x128xf32>
    %455 = math.exp %454 : vector<8x128xf32>
    %cst_138 = arith.constant 1.000000e+00 : f32
    %456 = vector.broadcast %cst_138 : f32 to vector<8x128xf32>
    %457 = arith.addf %456, %455 : vector<8x128xf32>
    %458 = arith.divf %456, %457 : vector<8x128xf32>
    %459 = vector.extract_strided_slice %446 {offsets = [0, 128], sizes = [8, 128], strides = [1, 1]} : vector<8x384xf32> to vector<8x128xf32>
    %460 = vector.extract_strided_slice %450 {offsets = [0, 128], sizes = [8, 128], strides = [1, 1]} : vector<8x384xf32> to vector<8x128xf32>
    %461 = arith.addf %459, %460 : vector<8x128xf32>
    %462 = arith.negf %461 : vector<8x128xf32>
    %463 = math.exp %462 : vector<8x128xf32>
    %cst_139 = arith.constant 1.000000e+00 : f32
    %464 = vector.broadcast %cst_139 : f32 to vector<8x128xf32>
    %465 = arith.addf %464, %463 : vector<8x128xf32>
    %466 = arith.divf %464, %465 : vector<8x128xf32>
    %467 = vector.extract_strided_slice %446 {offsets = [0, 256], sizes = [8, 128], strides = [1, 1]} : vector<8x384xf32> to vector<8x128xf32>
    %468 = vector.extract_strided_slice %450 {offsets = [0, 256], sizes = [8, 128], strides = [1, 1]} : vector<8x384xf32> to vector<8x128xf32>
    %469 = arith.addf %468, %432 : vector<8x128xf32>
    %470 = arith.mulf %458, %469 : vector<8x128xf32>
    %471 = arith.addf %467, %470 : vector<8x128xf32>
    %472 = math.tanh %471 : vector<8x128xf32>
    %473 = arith.subf %448, %472 : vector<8x128xf32>
    %474 = arith.mulf %466, %473 : vector<8x128xf32>
    %475 = arith.addf %472, %474 : vector<8x128xf32>
    %476 = vector.shape_cast %442 : vector<8x1xi1> to vector<8x1xi1>
    %477 = vector.broadcast %476 : vector<8x1xi1> to vector<8x128xi1>
    %478 = arith.select %477, %475, %448 : vector<8x128xi1>, vector<8x128xf32>
    %c1_140 = arith.constant 1 : index
    %c0_141 = arith.constant 0 : index
    %c0_142 = arith.constant 0 : index
    %479 = vector.load %arg13[%c1_140, %c0_141, %c0_142] : memref<2x8x128xf32, #tpu.memory_space<vmem>>, vector<1x8x128xf32>
    %480 = vector.shape_cast %479 : vector<1x8x128xf32> to vector<8x128xf32>
    %481 = vector.shape_cast %478 : vector<8x128xf32> to vector<1x8x128xf32>
    tpu.vector_store %arg13[%c1_140, %c0_141, %c0_142], %481 {strides = array<i32>} : memref<2x8x128xf32, #tpu.memory_space<vmem>>, vector<1x8x128xf32>,
    %cst_143 = arith.constant 0.000000e+00 : f32
    %482 = vector.shape_cast %442 : vector<8x1xi1> to vector<8x1xi1>
    %483 = vector.broadcast %482 : vector<8x1xi1> to vector<8x128xi1>
    %484 = vector.broadcast %cst_143 : f32 to vector<8x128xf32>
    %485 = arith.select %483, %478, %484 : vector<8x128xi1>, vector<8x128xf32>
    %486 = arith.truncf %485 : vector<8x128xf32> to vector<8x128xbf16>
    %487 = arith.index_cast %444 : i32 to index
    %c0_144 = arith.constant 0 : index
    %488 = vector.load %arg12[%487, %c0_144] : memref<64x128xbf16, #tpu.memory_space<vmem>>, vector<8x128xbf16>
    tpu.vector_store %arg12[%487, %c0_144], %486 {strides = array<i32>} : memref<64x128xbf16, #tpu.memory_space<vmem>>, vector<8x128xbf16>,
    %c1_i32_145 = arith.constant 1 : i32
    %489 = arith.addi %7, %c1_i32_145 : i32
    %490 = arith.index_cast %489 : i32 to index
    %491 = memref.load %arg2[%490] : memref<8xi32, #tpu.memory_space<smem>>
    %492 = vector.broadcast %491 : i32 to vector<8x1xi32>
    %493 = arith.cmpi slt, %6, %492 : vector<8x1xi32>
    %c8_i32_146 = arith.constant 8 : i32
    %494 = arith.muli %c1_i32_145, %c8_i32_146 : i32
    %495 = tpu.assume_multiple %494, 8 : i32
    %496 = arith.index_cast %495 : i32 to index
    %c0_147 = arith.constant 0 : index
    %497 = vector.load %arg14[%496, %c0_147] : memref<64x384xf32, #tpu.memory_space<vmem>>, vector<8x384xf32>
    %c1_148 = arith.constant 1 : index
    %c0_149 = arith.constant 0 : index
    %c0_150 = arith.constant 0 : index
    %498 = vector.load %arg13[%c1_148, %c0_149, %c0_150] : memref<2x8x128xf32, #tpu.memory_space<vmem>>, vector<1x8x128xf32>
    %499 = vector.shape_cast %498 : vector<1x8x128xf32> to vector<8x128xf32>
    %500 = arith.truncf %499 : vector<8x128xf32> to vector<8x128xbf16>
    %cst_151 = arith.constant dense<0.000000e+00> : vector<8x384xf32>
    %501 = tpu.matmul %500, %428, %cst_151 {dimension_numbers = #tpu.dot_dimension_numbers<[1], [0], [0], [1], [0, 0, 1, 1], [], []>} : vector<8x128xbf16>, vector<128x384xbf16>, vector<8x384xf32> -> vector<8x384xf32>
    %502 = vector.extract_strided_slice %497 {offsets = [0, 0], sizes = [8, 128], strides = [1, 1]} : vector<8x384xf32> to vector<8x128xf32>
    %503 = vector.extract_strided_slice %501 {offsets = [0, 0], sizes = [8, 128], strides = [1, 1]} : vector<8x384xf32> to vector<8x128xf32>
    %504 = arith.addf %502, %503 : vector<8x128xf32>
    %505 = arith.negf %504 : vector<8x128xf32>
    %506 = math.exp %505 : vector<8x128xf32>
    %cst_152 = arith.constant 1.000000e+00 : f32
    %507 = vector.broadcast %cst_152 : f32 to vector<8x128xf32>
    %508 = arith.addf %507, %506 : vector<8x128xf32>
    %509 = arith.divf %507, %508 : vector<8x128xf32>
    %510 = vector.extract_strided_slice %497 {offsets = [0, 128], sizes = [8, 128], strides = [1, 1]} : vector<8x384xf32> to vector<8x128xf32>
    %511 = vector.extract_strided_slice %501 {offsets = [0, 128], sizes = [8, 128], strides = [1, 1]} : vector<8x384xf32> to vector<8x128xf32>
    %512 = arith.addf %510, %511 : vector<8x128xf32>
    %513 = arith.negf %512 : vector<8x128xf32>
    %514 = math.exp %513 : vector<8x128xf32>
    %cst_153 = arith.constant 1.000000e+00 : f32
    %515 = vector.broadcast %cst_153 : f32 to vector<8x128xf32>
    %516 = arith.addf %515, %514 : vector<8x128xf32>
    %517 = arith.divf %515, %516 : vector<8x128xf32>
    %518 = vector.extract_strided_slice %497 {offsets = [0, 256], sizes = [8, 128], strides = [1, 1]} : vector<8x384xf32> to vector<8x128xf32>
    %519 = vector.extract_strided_slice %501 {offsets = [0, 256], sizes = [8, 128], strides = [1, 1]} : vector<8x384xf32> to vector<8x128xf32>
    %520 = arith.addf %519, %432 : vector<8x128xf32>
    %521 = arith.mulf %509, %520 : vector<8x128xf32>
    %522 = arith.addf %518, %521 : vector<8x128xf32>
    %523 = math.tanh %522 : vector<8x128xf32>
    %524 = arith.subf %499, %523 : vector<8x128xf32>
    %525 = arith.mulf %517, %524 : vector<8x128xf32>
    %526 = arith.addf %523, %525 : vector<8x128xf32>
    %527 = vector.shape_cast %493 : vector<8x1xi1> to vector<8x1xi1>
    %528 = vector.broadcast %527 : vector<8x1xi1> to vector<8x128xi1>
    %529 = arith.select %528, %526, %499 : vector<8x128xi1>, vector<8x128xf32>
    %c1_154 = arith.constant 1 : index
    %c0_155 = arith.constant 0 : index
    %c0_156 = arith.constant 0 : index
    %530 = vector.load %arg13[%c1_154, %c0_155, %c0_156] : memref<2x8x128xf32, #tpu.memory_space<vmem>>, vector<1x8x128xf32>
    %531 = vector.shape_cast %530 : vector<1x8x128xf32> to vector<8x128xf32>
    %532 = vector.shape_cast %529 : vector<8x128xf32> to vector<1x8x128xf32>
    tpu.vector_store %arg13[%c1_154, %c0_155, %c0_156], %532 {strides = array<i32>} : memref<2x8x128xf32, #tpu.memory_space<vmem>>, vector<1x8x128xf32>,
    %cst_157 = arith.constant 0.000000e+00 : f32
    %533 = vector.shape_cast %493 : vector<8x1xi1> to vector<8x1xi1>
    %534 = vector.broadcast %533 : vector<8x1xi1> to vector<8x128xi1>
    %535 = vector.broadcast %cst_157 : f32 to vector<8x128xf32>
    %536 = arith.select %534, %529, %535 : vector<8x128xi1>, vector<8x128xf32>
    %537 = arith.truncf %536 : vector<8x128xf32> to vector<8x128xbf16>
    %538 = arith.index_cast %495 : i32 to index
    %c0_158 = arith.constant 0 : index
    %539 = vector.load %arg12[%538, %c0_158] : memref<64x128xbf16, #tpu.memory_space<vmem>>, vector<8x128xbf16>
    tpu.vector_store %arg12[%538, %c0_158], %537 {strides = array<i32>} : memref<64x128xbf16, #tpu.memory_space<vmem>>, vector<8x128xbf16>,
    %c2_i32_159 = arith.constant 2 : i32
    %540 = arith.addi %7, %c2_i32_159 : i32
    %541 = arith.index_cast %540 : i32 to index
    %542 = memref.load %arg2[%541] : memref<8xi32, #tpu.memory_space<smem>>
    %543 = vector.broadcast %542 : i32 to vector<8x1xi32>
    %544 = arith.cmpi slt, %6, %543 : vector<8x1xi32>
    %c8_i32_160 = arith.constant 8 : i32
    %545 = arith.muli %c2_i32_159, %c8_i32_160 : i32
    %546 = tpu.assume_multiple %545, 8 : i32
    %547 = arith.index_cast %546 : i32 to index
    %c0_161 = arith.constant 0 : index
    %548 = vector.load %arg14[%547, %c0_161] : memref<64x384xf32, #tpu.memory_space<vmem>>, vector<8x384xf32>
    %c1_162 = arith.constant 1 : index
    %c0_163 = arith.constant 0 : index
    %c0_164 = arith.constant 0 : index
    %549 = vector.load %arg13[%c1_162, %c0_163, %c0_164] : memref<2x8x128xf32, #tpu.memory_space<vmem>>, vector<1x8x128xf32>
    %550 = vector.shape_cast %549 : vector<1x8x128xf32> to vector<8x128xf32>
    %551 = arith.truncf %550 : vector<8x128xf32> to vector<8x128xbf16>
    %cst_165 = arith.constant dense<0.000000e+00> : vector<8x384xf32>
    %552 = tpu.matmul %551, %428, %cst_165 {dimension_numbers = #tpu.dot_dimension_numbers<[1], [0], [0], [1], [0, 0, 1, 1], [], []>} : vector<8x128xbf16>, vector<128x384xbf16>, vector<8x384xf32> -> vector<8x384xf32>
    %553 = vector.extract_strided_slice %548 {offsets = [0, 0], sizes = [8, 128], strides = [1, 1]} : vector<8x384xf32> to vector<8x128xf32>
    %554 = vector.extract_strided_slice %552 {offsets = [0, 0], sizes = [8, 128], strides = [1, 1]} : vector<8x384xf32> to vector<8x128xf32>
    %555 = arith.addf %553, %554 : vector<8x128xf32>
    %556 = arith.negf %555 : vector<8x128xf32>
    %557 = math.exp %556 : vector<8x128xf32>
    %cst_166 = arith.constant 1.000000e+00 : f32
    %558 = vector.broadcast %cst_166 : f32 to vector<8x128xf32>
    %559 = arith.addf %558, %557 : vector<8x128xf32>
    %560 = arith.divf %558, %559 : vector<8x128xf32>
    %561 = vector.extract_strided_slice %548 {offsets = [0, 128], sizes = [8, 128], strides = [1, 1]} : vector<8x384xf32> to vector<8x128xf32>
    %562 = vector.extract_strided_slice %552 {offsets = [0, 128], sizes = [8, 128], strides = [1, 1]} : vector<8x384xf32> to vector<8x128xf32>
    %563 = arith.addf %561, %562 : vector<8x128xf32>
    %564 = arith.negf %563 : vector<8x128xf32>
    %565 = math.exp %564 : vector<8x128xf32>
    %cst_167 = arith.constant 1.000000e+00 : f32
    %566 = vector.broadcast %cst_167 : f32 to vector<8x128xf32>
    %567 = arith.addf %566, %565 : vector<8x128xf32>
    %568 = arith.divf %566, %567 : vector<8x128xf32>
    %569 = vector.extract_strided_slice %548 {offsets = [0, 256], sizes = [8, 128], strides = [1, 1]} : vector<8x384xf32> to vector<8x128xf32>
    %570 = vector.extract_strided_slice %552 {offsets = [0, 256], sizes = [8, 128], strides = [1, 1]} : vector<8x384xf32> to vector<8x128xf32>
    %571 = arith.addf %570, %432 : vector<8x128xf32>
    %572 = arith.mulf %560, %571 : vector<8x128xf32>
    %573 = arith.addf %569, %572 : vector<8x128xf32>
    %574 = math.tanh %573 : vector<8x128xf32>
    %575 = arith.subf %550, %574 : vector<8x128xf32>
    %576 = arith.mulf %568, %575 : vector<8x128xf32>
    %577 = arith.addf %574, %576 : vector<8x128xf32>
    %578 = vector.shape_cast %544 : vector<8x1xi1> to vector<8x1xi1>
    %579 = vector.broadcast %578 : vector<8x1xi1> to vector<8x128xi1>
    %580 = arith.select %579, %577, %550 : vector<8x128xi1>, vector<8x128xf32>
    %c1_168 = arith.constant 1 : index
    %c0_169 = arith.constant 0 : index
    %c0_170 = arith.constant 0 : index
    %581 = vector.load %arg13[%c1_168, %c0_169, %c0_170] : memref<2x8x128xf32, #tpu.memory_space<vmem>>, vector<1x8x128xf32>
    %582 = vector.shape_cast %581 : vector<1x8x128xf32> to vector<8x128xf32>
    %583 = vector.shape_cast %580 : vector<8x128xf32> to vector<1x8x128xf32>
    tpu.vector_store %arg13[%c1_168, %c0_169, %c0_170], %583 {strides = array<i32>} : memref<2x8x128xf32, #tpu.memory_space<vmem>>, vector<1x8x128xf32>,
    %cst_171 = arith.constant 0.000000e+00 : f32
    %584 = vector.shape_cast %544 : vector<8x1xi1> to vector<8x1xi1>
    %585 = vector.broadcast %584 : vector<8x1xi1> to vector<8x128xi1>
    %586 = vector.broadcast %cst_171 : f32 to vector<8x128xf32>
    %587 = arith.select %585, %580, %586 : vector<8x128xi1>, vector<8x128xf32>
    %588 = arith.truncf %587 : vector<8x128xf32> to vector<8x128xbf16>
    %589 = arith.index_cast %546 : i32 to index
    %c0_172 = arith.constant 0 : index
    %590 = vector.load %arg12[%589, %c0_172] : memref<64x128xbf16, #tpu.memory_space<vmem>>, vector<8x128xbf16>
    tpu.vector_store %arg12[%589, %c0_172], %588 {strides = array<i32>} : memref<64x128xbf16, #tpu.memory_space<vmem>>, vector<8x128xbf16>,
    %c3_i32_173 = arith.constant 3 : i32
    %591 = arith.addi %7, %c3_i32_173 : i32
    %592 = arith.index_cast %591 : i32 to index
    %593 = memref.load %arg2[%592] : memref<8xi32, #tpu.memory_space<smem>>
    %594 = vector.broadcast %593 : i32 to vector<8x1xi32>
    %595 = arith.cmpi slt, %6, %594 : vector<8x1xi32>
    %c8_i32_174 = arith.constant 8 : i32
    %596 = arith.muli %c3_i32_173, %c8_i32_174 : i32
    %597 = tpu.assume_multiple %596, 8 : i32
    %598 = arith.index_cast %597 : i32 to index
    %c0_175 = arith.constant 0 : index
    %599 = vector.load %arg14[%598, %c0_175] : memref<64x384xf32, #tpu.memory_space<vmem>>, vector<8x384xf32>
    %c1_176 = arith.constant 1 : index
    %c0_177 = arith.constant 0 : index
    %c0_178 = arith.constant 0 : index
    %600 = vector.load %arg13[%c1_176, %c0_177, %c0_178] : memref<2x8x128xf32, #tpu.memory_space<vmem>>, vector<1x8x128xf32>
    %601 = vector.shape_cast %600 : vector<1x8x128xf32> to vector<8x128xf32>
    %602 = arith.truncf %601 : vector<8x128xf32> to vector<8x128xbf16>
    %cst_179 = arith.constant dense<0.000000e+00> : vector<8x384xf32>
    %603 = tpu.matmul %602, %428, %cst_179 {dimension_numbers = #tpu.dot_dimension_numbers<[1], [0], [0], [1], [0, 0, 1, 1], [], []>} : vector<8x128xbf16>, vector<128x384xbf16>, vector<8x384xf32> -> vector<8x384xf32>
    %604 = vector.extract_strided_slice %599 {offsets = [0, 0], sizes = [8, 128], strides = [1, 1]} : vector<8x384xf32> to vector<8x128xf32>
    %605 = vector.extract_strided_slice %603 {offsets = [0, 0], sizes = [8, 128], strides = [1, 1]} : vector<8x384xf32> to vector<8x128xf32>
    %606 = arith.addf %604, %605 : vector<8x128xf32>
    %607 = arith.negf %606 : vector<8x128xf32>
    %608 = math.exp %607 : vector<8x128xf32>
    %cst_180 = arith.constant 1.000000e+00 : f32
    %609 = vector.broadcast %cst_180 : f32 to vector<8x128xf32>
    %610 = arith.addf %609, %608 : vector<8x128xf32>
    %611 = arith.divf %609, %610 : vector<8x128xf32>
    %612 = vector.extract_strided_slice %599 {offsets = [0, 128], sizes = [8, 128], strides = [1, 1]} : vector<8x384xf32> to vector<8x128xf32>
    %613 = vector.extract_strided_slice %603 {offsets = [0, 128], sizes = [8, 128], strides = [1, 1]} : vector<8x384xf32> to vector<8x128xf32>
    %614 = arith.addf %612, %613 : vector<8x128xf32>
    %615 = arith.negf %614 : vector<8x128xf32>
    %616 = math.exp %615 : vector<8x128xf32>
    %cst_181 = arith.constant 1.000000e+00 : f32
    %617 = vector.broadcast %cst_181 : f32 to vector<8x128xf32>
    %618 = arith.addf %617, %616 : vector<8x128xf32>
    %619 = arith.divf %617, %618 : vector<8x128xf32>
    %620 = vector.extract_strided_slice %599 {offsets = [0, 256], sizes = [8, 128], strides = [1, 1]} : vector<8x384xf32> to vector<8x128xf32>
    %621 = vector.extract_strided_slice %603 {offsets = [0, 256], sizes = [8, 128], strides = [1, 1]} : vector<8x384xf32> to vector<8x128xf32>
    %622 = arith.addf %621, %432 : vector<8x128xf32>
    %623 = arith.mulf %611, %622 : vector<8x128xf32>
    %624 = arith.addf %620, %623 : vector<8x128xf32>
    %625 = math.tanh %624 : vector<8x128xf32>
    %626 = arith.subf %601, %625 : vector<8x128xf32>
    %627 = arith.mulf %619, %626 : vector<8x128xf32>
    %628 = arith.addf %625, %627 : vector<8x128xf32>
    %629 = vector.shape_cast %595 : vector<8x1xi1> to vector<8x1xi1>
    %630 = vector.broadcast %629 : vector<8x1xi1> to vector<8x128xi1>
    %631 = arith.select %630, %628, %601 : vector<8x128xi1>, vector<8x128xf32>
    %c1_182 = arith.constant 1 : index
    %c0_183 = arith.constant 0 : index
    %c0_184 = arith.constant 0 : index
    %632 = vector.load %arg13[%c1_182, %c0_183, %c0_184] : memref<2x8x128xf32, #tpu.memory_space<vmem>>, vector<1x8x128xf32>
    %633 = vector.shape_cast %632 : vector<1x8x128xf32> to vector<8x128xf32>
    %634 = vector.shape_cast %631 : vector<8x128xf32> to vector<1x8x128xf32>
    tpu.vector_store %arg13[%c1_182, %c0_183, %c0_184], %634 {strides = array<i32>} : memref<2x8x128xf32, #tpu.memory_space<vmem>>, vector<1x8x128xf32>,
    %cst_185 = arith.constant 0.000000e+00 : f32
    %635 = vector.shape_cast %595 : vector<8x1xi1> to vector<8x1xi1>
    %636 = vector.broadcast %635 : vector<8x1xi1> to vector<8x128xi1>
    %637 = vector.broadcast %cst_185 : f32 to vector<8x128xf32>
    %638 = arith.select %636, %631, %637 : vector<8x128xi1>, vector<8x128xf32>
    %639 = arith.truncf %638 : vector<8x128xf32> to vector<8x128xbf16>
    %640 = arith.index_cast %597 : i32 to index
    %c0_186 = arith.constant 0 : index
    %641 = vector.load %arg12[%640, %c0_186] : memref<64x128xbf16, #tpu.memory_space<vmem>>, vector<8x128xbf16>
    tpu.vector_store %arg12[%640, %c0_186], %639 {strides = array<i32>} : memref<64x128xbf16, #tpu.memory_space<vmem>>, vector<8x128xbf16>,
    %c4_i32_187 = arith.constant 4 : i32
    %642 = arith.addi %7, %c4_i32_187 : i32
    %643 = arith.index_cast %642 : i32 to index
    %644 = memref.load %arg2[%643] : memref<8xi32, #tpu.memory_space<smem>>
    %645 = vector.broadcast %644 : i32 to vector<8x1xi32>
    %646 = arith.cmpi slt, %6, %645 : vector<8x1xi32>
    %c8_i32_188 = arith.constant 8 : i32
    %647 = arith.muli %c4_i32_187, %c8_i32_188 : i32
    %648 = tpu.assume_multiple %647, 8 : i32
    %649 = arith.index_cast %648 : i32 to index
    %c0_189 = arith.constant 0 : index
    %650 = vector.load %arg14[%649, %c0_189] : memref<64x384xf32, #tpu.memory_space<vmem>>, vector<8x384xf32>
    %c1_190 = arith.constant 1 : index
    %c0_191 = arith.constant 0 : index
    %c0_192 = arith.constant 0 : index
    %651 = vector.load %arg13[%c1_190, %c0_191, %c0_192] : memref<2x8x128xf32, #tpu.memory_space<vmem>>, vector<1x8x128xf32>
    %652 = vector.shape_cast %651 : vector<1x8x128xf32> to vector<8x128xf32>
    %653 = arith.truncf %652 : vector<8x128xf32> to vector<8x128xbf16>
    %cst_193 = arith.constant dense<0.000000e+00> : vector<8x384xf32>
    %654 = tpu.matmul %653, %428, %cst_193 {dimension_numbers = #tpu.dot_dimension_numbers<[1], [0], [0], [1], [0, 0, 1, 1], [], []>} : vector<8x128xbf16>, vector<128x384xbf16>, vector<8x384xf32> -> vector<8x384xf32>
    %655 = vector.extract_strided_slice %650 {offsets = [0, 0], sizes = [8, 128], strides = [1, 1]} : vector<8x384xf32> to vector<8x128xf32>
    %656 = vector.extract_strided_slice %654 {offsets = [0, 0], sizes = [8, 128], strides = [1, 1]} : vector<8x384xf32> to vector<8x128xf32>
    %657 = arith.addf %655, %656 : vector<8x128xf32>
    %658 = arith.negf %657 : vector<8x128xf32>
    %659 = math.exp %658 : vector<8x128xf32>
    %cst_194 = arith.constant 1.000000e+00 : f32
    %660 = vector.broadcast %cst_194 : f32 to vector<8x128xf32>
    %661 = arith.addf %660, %659 : vector<8x128xf32>
    %662 = arith.divf %660, %661 : vector<8x128xf32>
    %663 = vector.extract_strided_slice %650 {offsets = [0, 128], sizes = [8, 128], strides = [1, 1]} : vector<8x384xf32> to vector<8x128xf32>
    %664 = vector.extract_strided_slice %654 {offsets = [0, 128], sizes = [8, 128], strides = [1, 1]} : vector<8x384xf32> to vector<8x128xf32>
    %665 = arith.addf %663, %664 : vector<8x128xf32>
    %666 = arith.negf %665 : vector<8x128xf32>
    %667 = math.exp %666 : vector<8x128xf32>
    %cst_195 = arith.constant 1.000000e+00 : f32
    %668 = vector.broadcast %cst_195 : f32 to vector<8x128xf32>
    %669 = arith.addf %668, %667 : vector<8x128xf32>
    %670 = arith.divf %668, %669 : vector<8x128xf32>
    %671 = vector.extract_strided_slice %650 {offsets = [0, 256], sizes = [8, 128], strides = [1, 1]} : vector<8x384xf32> to vector<8x128xf32>
    %672 = vector.extract_strided_slice %654 {offsets = [0, 256], sizes = [8, 128], strides = [1, 1]} : vector<8x384xf32> to vector<8x128xf32>
    %673 = arith.addf %672, %432 : vector<8x128xf32>
    %674 = arith.mulf %662, %673 : vector<8x128xf32>
    %675 = arith.addf %671, %674 : vector<8x128xf32>
    %676 = math.tanh %675 : vector<8x128xf32>
    %677 = arith.subf %652, %676 : vector<8x128xf32>
    %678 = arith.mulf %670, %677 : vector<8x128xf32>
    %679 = arith.addf %676, %678 : vector<8x128xf32>
    %680 = vector.shape_cast %646 : vector<8x1xi1> to vector<8x1xi1>
    %681 = vector.broadcast %680 : vector<8x1xi1> to vector<8x128xi1>
    %682 = arith.select %681, %679, %652 : vector<8x128xi1>, vector<8x128xf32>
    %c1_196 = arith.constant 1 : index
    %c0_197 = arith.constant 0 : index
    %c0_198 = arith.constant 0 : index
    %683 = vector.load %arg13[%c1_196, %c0_197, %c0_198] : memref<2x8x128xf32, #tpu.memory_space<vmem>>, vector<1x8x128xf32>
    %684 = vector.shape_cast %683 : vector<1x8x128xf32> to vector<8x128xf32>
    %685 = vector.shape_cast %682 : vector<8x128xf32> to vector<1x8x128xf32>
    tpu.vector_store %arg13[%c1_196, %c0_197, %c0_198], %685 {strides = array<i32>} : memref<2x8x128xf32, #tpu.memory_space<vmem>>, vector<1x8x128xf32>,
    %cst_199 = arith.constant 0.000000e+00 : f32
    %686 = vector.shape_cast %646 : vector<8x1xi1> to vector<8x1xi1>
    %687 = vector.broadcast %686 : vector<8x1xi1> to vector<8x128xi1>
    %688 = vector.broadcast %cst_199 : f32 to vector<8x128xf32>
    %689 = arith.select %687, %682, %688 : vector<8x128xi1>, vector<8x128xf32>
    %690 = arith.truncf %689 : vector<8x128xf32> to vector<8x128xbf16>
    %691 = arith.index_cast %648 : i32 to index
    %c0_200 = arith.constant 0 : index
    %692 = vector.load %arg12[%691, %c0_200] : memref<64x128xbf16, #tpu.memory_space<vmem>>, vector<8x128xbf16>
    tpu.vector_store %arg12[%691, %c0_200], %690 {strides = array<i32>} : memref<64x128xbf16, #tpu.memory_space<vmem>>, vector<8x128xbf16>,
    %c5_i32_201 = arith.constant 5 : i32
    %693 = arith.addi %7, %c5_i32_201 : i32
    %694 = arith.index_cast %693 : i32 to index
    %695 = memref.load %arg2[%694] : memref<8xi32, #tpu.memory_space<smem>>
    %696 = vector.broadcast %695 : i32 to vector<8x1xi32>
    %697 = arith.cmpi slt, %6, %696 : vector<8x1xi32>
    %c8_i32_202 = arith.constant 8 : i32
    %698 = arith.muli %c5_i32_201, %c8_i32_202 : i32
    %699 = tpu.assume_multiple %698, 8 : i32
    %700 = arith.index_cast %699 : i32 to index
    %c0_203 = arith.constant 0 : index
    %701 = vector.load %arg14[%700, %c0_203] : memref<64x384xf32, #tpu.memory_space<vmem>>, vector<8x384xf32>
    %c1_204 = arith.constant 1 : index
    %c0_205 = arith.constant 0 : index
    %c0_206 = arith.constant 0 : index
    %702 = vector.load %arg13[%c1_204, %c0_205, %c0_206] : memref<2x8x128xf32, #tpu.memory_space<vmem>>, vector<1x8x128xf32>
    %703 = vector.shape_cast %702 : vector<1x8x128xf32> to vector<8x128xf32>
    %704 = arith.truncf %703 : vector<8x128xf32> to vector<8x128xbf16>
    %cst_207 = arith.constant dense<0.000000e+00> : vector<8x384xf32>
    %705 = tpu.matmul %704, %428, %cst_207 {dimension_numbers = #tpu.dot_dimension_numbers<[1], [0], [0], [1], [0, 0, 1, 1], [], []>} : vector<8x128xbf16>, vector<128x384xbf16>, vector<8x384xf32> -> vector<8x384xf32>
    %706 = vector.extract_strided_slice %701 {offsets = [0, 0], sizes = [8, 128], strides = [1, 1]} : vector<8x384xf32> to vector<8x128xf32>
    %707 = vector.extract_strided_slice %705 {offsets = [0, 0], sizes = [8, 128], strides = [1, 1]} : vector<8x384xf32> to vector<8x128xf32>
    %708 = arith.addf %706, %707 : vector<8x128xf32>
    %709 = arith.negf %708 : vector<8x128xf32>
    %710 = math.exp %709 : vector<8x128xf32>
    %cst_208 = arith.constant 1.000000e+00 : f32
    %711 = vector.broadcast %cst_208 : f32 to vector<8x128xf32>
    %712 = arith.addf %711, %710 : vector<8x128xf32>
    %713 = arith.divf %711, %712 : vector<8x128xf32>
    %714 = vector.extract_strided_slice %701 {offsets = [0, 128], sizes = [8, 128], strides = [1, 1]} : vector<8x384xf32> to vector<8x128xf32>
    %715 = vector.extract_strided_slice %705 {offsets = [0, 128], sizes = [8, 128], strides = [1, 1]} : vector<8x384xf32> to vector<8x128xf32>
    %716 = arith.addf %714, %715 : vector<8x128xf32>
    %717 = arith.negf %716 : vector<8x128xf32>
    %718 = math.exp %717 : vector<8x128xf32>
    %cst_209 = arith.constant 1.000000e+00 : f32
    %719 = vector.broadcast %cst_209 : f32 to vector<8x128xf32>
    %720 = arith.addf %719, %718 : vector<8x128xf32>
    %721 = arith.divf %719, %720 : vector<8x128xf32>
    %722 = vector.extract_strided_slice %701 {offsets = [0, 256], sizes = [8, 128], strides = [1, 1]} : vector<8x384xf32> to vector<8x128xf32>
    %723 = vector.extract_strided_slice %705 {offsets = [0, 256], sizes = [8, 128], strides = [1, 1]} : vector<8x384xf32> to vector<8x128xf32>
    %724 = arith.addf %723, %432 : vector<8x128xf32>
    %725 = arith.mulf %713, %724 : vector<8x128xf32>
    %726 = arith.addf %722, %725 : vector<8x128xf32>
    %727 = math.tanh %726 : vector<8x128xf32>
    %728 = arith.subf %703, %727 : vector<8x128xf32>
    %729 = arith.mulf %721, %728 : vector<8x128xf32>
    %730 = arith.addf %727, %729 : vector<8x128xf32>
    %731 = vector.shape_cast %697 : vector<8x1xi1> to vector<8x1xi1>
    %732 = vector.broadcast %731 : vector<8x1xi1> to vector<8x128xi1>
    %733 = arith.select %732, %730, %703 : vector<8x128xi1>, vector<8x128xf32>
    %c1_210 = arith.constant 1 : index
    %c0_211 = arith.constant 0 : index
    %c0_212 = arith.constant 0 : index
    %734 = vector.load %arg13[%c1_210, %c0_211, %c0_212] : memref<2x8x128xf32, #tpu.memory_space<vmem>>, vector<1x8x128xf32>
    %735 = vector.shape_cast %734 : vector<1x8x128xf32> to vector<8x128xf32>
    %736 = vector.shape_cast %733 : vector<8x128xf32> to vector<1x8x128xf32>
    tpu.vector_store %arg13[%c1_210, %c0_211, %c0_212], %736 {strides = array<i32>} : memref<2x8x128xf32, #tpu.memory_space<vmem>>, vector<1x8x128xf32>,
    %cst_213 = arith.constant 0.000000e+00 : f32
    %737 = vector.shape_cast %697 : vector<8x1xi1> to vector<8x1xi1>
    %738 = vector.broadcast %737 : vector<8x1xi1> to vector<8x128xi1>
    %739 = vector.broadcast %cst_213 : f32 to vector<8x128xf32>
    %740 = arith.select %738, %733, %739 : vector<8x128xi1>, vector<8x128xf32>
    %741 = arith.truncf %740 : vector<8x128xf32> to vector<8x128xbf16>
    %742 = arith.index_cast %699 : i32 to index
    %c0_214 = arith.constant 0 : index
    %743 = vector.load %arg12[%742, %c0_214] : memref<64x128xbf16, #tpu.memory_space<vmem>>, vector<8x128xbf16>
    tpu.vector_store %arg12[%742, %c0_214], %741 {strides = array<i32>} : memref<64x128xbf16, #tpu.memory_space<vmem>>, vector<8x128xbf16>,
    %c6_i32_215 = arith.constant 6 : i32
    %744 = arith.addi %7, %c6_i32_215 : i32
    %745 = arith.index_cast %744 : i32 to index
    %746 = memref.load %arg2[%745] : memref<8xi32, #tpu.memory_space<smem>>
    %747 = vector.broadcast %746 : i32 to vector<8x1xi32>
    %748 = arith.cmpi slt, %6, %747 : vector<8x1xi32>
    %c8_i32_216 = arith.constant 8 : i32
    %749 = arith.muli %c6_i32_215, %c8_i32_216 : i32
    %750 = tpu.assume_multiple %749, 8 : i32
    %751 = arith.index_cast %750 : i32 to index
    %c0_217 = arith.constant 0 : index
    %752 = vector.load %arg14[%751, %c0_217] : memref<64x384xf32, #tpu.memory_space<vmem>>, vector<8x384xf32>
    %c1_218 = arith.constant 1 : index
    %c0_219 = arith.constant 0 : index
    %c0_220 = arith.constant 0 : index
    %753 = vector.load %arg13[%c1_218, %c0_219, %c0_220] : memref<2x8x128xf32, #tpu.memory_space<vmem>>, vector<1x8x128xf32>
    %754 = vector.shape_cast %753 : vector<1x8x128xf32> to vector<8x128xf32>
    %755 = arith.truncf %754 : vector<8x128xf32> to vector<8x128xbf16>
    %cst_221 = arith.constant dense<0.000000e+00> : vector<8x384xf32>
    %756 = tpu.matmul %755, %428, %cst_221 {dimension_numbers = #tpu.dot_dimension_numbers<[1], [0], [0], [1], [0, 0, 1, 1], [], []>} : vector<8x128xbf16>, vector<128x384xbf16>, vector<8x384xf32> -> vector<8x384xf32>
    %757 = vector.extract_strided_slice %752 {offsets = [0, 0], sizes = [8, 128], strides = [1, 1]} : vector<8x384xf32> to vector<8x128xf32>
    %758 = vector.extract_strided_slice %756 {offsets = [0, 0], sizes = [8, 128], strides = [1, 1]} : vector<8x384xf32> to vector<8x128xf32>
    %759 = arith.addf %757, %758 : vector<8x128xf32>
    %760 = arith.negf %759 : vector<8x128xf32>
    %761 = math.exp %760 : vector<8x128xf32>
    %cst_222 = arith.constant 1.000000e+00 : f32
    %762 = vector.broadcast %cst_222 : f32 to vector<8x128xf32>
    %763 = arith.addf %762, %761 : vector<8x128xf32>
    %764 = arith.divf %762, %763 : vector<8x128xf32>
    %765 = vector.extract_strided_slice %752 {offsets = [0, 128], sizes = [8, 128], strides = [1, 1]} : vector<8x384xf32> to vector<8x128xf32>
    %766 = vector.extract_strided_slice %756 {offsets = [0, 128], sizes = [8, 128], strides = [1, 1]} : vector<8x384xf32> to vector<8x128xf32>
    %767 = arith.addf %765, %766 : vector<8x128xf32>
    %768 = arith.negf %767 : vector<8x128xf32>
    %769 = math.exp %768 : vector<8x128xf32>
    %cst_223 = arith.constant 1.000000e+00 : f32
    %770 = vector.broadcast %cst_223 : f32 to vector<8x128xf32>
    %771 = arith.addf %770, %769 : vector<8x128xf32>
    %772 = arith.divf %770, %771 : vector<8x128xf32>
    %773 = vector.extract_strided_slice %752 {offsets = [0, 256], sizes = [8, 128], strides = [1, 1]} : vector<8x384xf32> to vector<8x128xf32>
    %774 = vector.extract_strided_slice %756 {offsets = [0, 256], sizes = [8, 128], strides = [1, 1]} : vector<8x384xf32> to vector<8x128xf32>
    %775 = arith.addf %774, %432 : vector<8x128xf32>
    %776 = arith.mulf %764, %775 : vector<8x128xf32>
    %777 = arith.addf %773, %776 : vector<8x128xf32>
    %778 = math.tanh %777 : vector<8x128xf32>
    %779 = arith.subf %754, %778 : vector<8x128xf32>
    %780 = arith.mulf %772, %779 : vector<8x128xf32>
    %781 = arith.addf %778, %780 : vector<8x128xf32>
    %782 = vector.shape_cast %748 : vector<8x1xi1> to vector<8x1xi1>
    %783 = vector.broadcast %782 : vector<8x1xi1> to vector<8x128xi1>
    %784 = arith.select %783, %781, %754 : vector<8x128xi1>, vector<8x128xf32>
    %c1_224 = arith.constant 1 : index
    %c0_225 = arith.constant 0 : index
    %c0_226 = arith.constant 0 : index
    %785 = vector.load %arg13[%c1_224, %c0_225, %c0_226] : memref<2x8x128xf32, #tpu.memory_space<vmem>>, vector<1x8x128xf32>
    %786 = vector.shape_cast %785 : vector<1x8x128xf32> to vector<8x128xf32>
    %787 = vector.shape_cast %784 : vector<8x128xf32> to vector<1x8x128xf32>
    tpu.vector_store %arg13[%c1_224, %c0_225, %c0_226], %787 {strides = array<i32>} : memref<2x8x128xf32, #tpu.memory_space<vmem>>, vector<1x8x128xf32>,
    %cst_227 = arith.constant 0.000000e+00 : f32
    %788 = vector.shape_cast %748 : vector<8x1xi1> to vector<8x1xi1>
    %789 = vector.broadcast %788 : vector<8x1xi1> to vector<8x128xi1>
    %790 = vector.broadcast %cst_227 : f32 to vector<8x128xf32>
    %791 = arith.select %789, %784, %790 : vector<8x128xi1>, vector<8x128xf32>
    %792 = arith.truncf %791 : vector<8x128xf32> to vector<8x128xbf16>
    %793 = arith.index_cast %750 : i32 to index
    %c0_228 = arith.constant 0 : index
    %794 = vector.load %arg12[%793, %c0_228] : memref<64x128xbf16, #tpu.memory_space<vmem>>, vector<8x128xbf16>
    tpu.vector_store %arg12[%793, %c0_228], %792 {strides = array<i32>} : memref<64x128xbf16, #tpu.memory_space<vmem>>, vector<8x128xbf16>,
    %c7_i32_229 = arith.constant 7 : i32
    %795 = arith.addi %7, %c7_i32_229 : i32
    %796 = arith.index_cast %795 : i32 to index
    %797 = memref.load %arg2[%796] : memref<8xi32, #tpu.memory_space<smem>>
    %798 = vector.broadcast %797 : i32 to vector<8x1xi32>
    %799 = arith.cmpi slt, %6, %798 : vector<8x1xi32>
    %c8_i32_230 = arith.constant 8 : i32
    %800 = arith.muli %c7_i32_229, %c8_i32_230 : i32
    %801 = tpu.assume_multiple %800, 8 : i32
    %802 = arith.index_cast %801 : i32 to index
    %c0_231 = arith.constant 0 : index
    %803 = vector.load %arg14[%802, %c0_231] : memref<64x384xf32, #tpu.memory_space<vmem>>, vector<8x384xf32>
    %c1_232 = arith.constant 1 : index
    %c0_233 = arith.constant 0 : index
    %c0_234 = arith.constant 0 : index
    %804 = vector.load %arg13[%c1_232, %c0_233, %c0_234] : memref<2x8x128xf32, #tpu.memory_space<vmem>>, vector<1x8x128xf32>
    %805 = vector.shape_cast %804 : vector<1x8x128xf32> to vector<8x128xf32>
    %806 = arith.truncf %805 : vector<8x128xf32> to vector<8x128xbf16>
    %cst_235 = arith.constant dense<0.000000e+00> : vector<8x384xf32>
    %807 = tpu.matmul %806, %428, %cst_235 {dimension_numbers = #tpu.dot_dimension_numbers<[1], [0], [0], [1], [0, 0, 1, 1], [], []>} : vector<8x128xbf16>, vector<128x384xbf16>, vector<8x384xf32> -> vector<8x384xf32>
    %808 = vector.extract_strided_slice %803 {offsets = [0, 0], sizes = [8, 128], strides = [1, 1]} : vector<8x384xf32> to vector<8x128xf32>
    %809 = vector.extract_strided_slice %807 {offsets = [0, 0], sizes = [8, 128], strides = [1, 1]} : vector<8x384xf32> to vector<8x128xf32>
    %810 = arith.addf %808, %809 : vector<8x128xf32>
    %811 = arith.negf %810 : vector<8x128xf32>
    %812 = math.exp %811 : vector<8x128xf32>
    %cst_236 = arith.constant 1.000000e+00 : f32
    %813 = vector.broadcast %cst_236 : f32 to vector<8x128xf32>
    %814 = arith.addf %813, %812 : vector<8x128xf32>
    %815 = arith.divf %813, %814 : vector<8x128xf32>
    %816 = vector.extract_strided_slice %803 {offsets = [0, 128], sizes = [8, 128], strides = [1, 1]} : vector<8x384xf32> to vector<8x128xf32>
    %817 = vector.extract_strided_slice %807 {offsets = [0, 128], sizes = [8, 128], strides = [1, 1]} : vector<8x384xf32> to vector<8x128xf32>
    %818 = arith.addf %816, %817 : vector<8x128xf32>
    %819 = arith.negf %818 : vector<8x128xf32>
    %820 = math.exp %819 : vector<8x128xf32>
    %cst_237 = arith.constant 1.000000e+00 : f32
    %821 = vector.broadcast %cst_237 : f32 to vector<8x128xf32>
    %822 = arith.addf %821, %820 : vector<8x128xf32>
    %823 = arith.divf %821, %822 : vector<8x128xf32>
    %824 = vector.extract_strided_slice %803 {offsets = [0, 256], sizes = [8, 128], strides = [1, 1]} : vector<8x384xf32> to vector<8x128xf32>
    %825 = vector.extract_strided_slice %807 {offsets = [0, 256], sizes = [8, 128], strides = [1, 1]} : vector<8x384xf32> to vector<8x128xf32>
    %826 = arith.addf %825, %432 : vector<8x128xf32>
    %827 = arith.mulf %815, %826 : vector<8x128xf32>
    %828 = arith.addf %824, %827 : vector<8x128xf32>
    %829 = math.tanh %828 : vector<8x128xf32>
    %830 = arith.subf %805, %829 : vector<8x128xf32>
    %831 = arith.mulf %823, %830 : vector<8x128xf32>
    %832 = arith.addf %829, %831 : vector<8x128xf32>
    %833 = vector.shape_cast %799 : vector<8x1xi1> to vector<8x1xi1>
    %834 = vector.broadcast %833 : vector<8x1xi1> to vector<8x128xi1>
    %835 = arith.select %834, %832, %805 : vector<8x128xi1>, vector<8x128xf32>
    %c1_238 = arith.constant 1 : index
    %c0_239 = arith.constant 0 : index
    %c0_240 = arith.constant 0 : index
    %836 = vector.load %arg13[%c1_238, %c0_239, %c0_240] : memref<2x8x128xf32, #tpu.memory_space<vmem>>, vector<1x8x128xf32>
    %837 = vector.shape_cast %836 : vector<1x8x128xf32> to vector<8x128xf32>
    %838 = vector.shape_cast %835 : vector<8x128xf32> to vector<1x8x128xf32>
    tpu.vector_store %arg13[%c1_238, %c0_239, %c0_240], %838 {strides = array<i32>} : memref<2x8x128xf32, #tpu.memory_space<vmem>>, vector<1x8x128xf32>,
    %cst_241 = arith.constant 0.000000e+00 : f32
    %839 = vector.shape_cast %799 : vector<8x1xi1> to vector<8x1xi1>
    %840 = vector.broadcast %839 : vector<8x1xi1> to vector<8x128xi1>
    %841 = vector.broadcast %cst_241 : f32 to vector<8x128xf32>
    %842 = arith.select %840, %835, %841 : vector<8x128xi1>, vector<8x128xf32>
    %843 = arith.truncf %842 : vector<8x128xf32> to vector<8x128xbf16>
    %844 = arith.index_cast %801 : i32 to index
    %c0_242 = arith.constant 0 : index
    %845 = vector.load %arg12[%844, %c0_242] : memref<64x128xbf16, #tpu.memory_space<vmem>>, vector<8x128xbf16>
    tpu.vector_store %arg12[%844, %c0_242], %843 {strides = array<i32>} : memref<64x128xbf16, #tpu.memory_space<vmem>>, vector<8x128xbf16>,
    %c8_i32_243 = arith.constant 8 : i32
    return
  }
  func.func @transform_0(%arg0: i32, %arg1: i32, %arg2: memref<8xi32, #tpu.memory_space<smem>>) -> (i32, i32) {
    %c1_i32 = arith.constant 1 : i32
    %0 = arith.muli %arg0, %c1_i32 : i32
    %1 = arith.addi %0, %arg1 : i32
    %c0_i32 = arith.constant 0 : i32
    %c0_i32_0 = arith.constant 0 : i32
    return %1, %c0_i32 : i32, i32
  }
  func.func @transform_1(%arg0: i32, %arg1: i32, %arg2: memref<8xi32, #tpu.memory_space<smem>>) -> (i32, i32) {
    %c0_i32 = arith.constant 0 : i32
    %c0_i32_0 = arith.constant 0 : i32
    %c0_i32_1 = arith.constant 0 : i32
    return %c0_i32, %c0_i32_0 : i32, i32
  }
  func.func @transform_2(%arg0: i32, %arg1: i32, %arg2: memref<8xi32, #tpu.memory_space<smem>>) -> (i32, i32) {
    %c0_i32 = arith.constant 0 : i32
    %c0_i32_0 = arith.constant 0 : i32
    %c0_i32_1 = arith.constant 0 : i32
    return %c0_i32, %c0_i32_0 : i32, i32
  }
  func.func @transform_3(%arg0: i32, %arg1: i32, %arg2: memref<8xi32, #tpu.memory_space<smem>>) -> (i32, i32) {
    %c0_i32 = arith.constant 0 : i32
    %c0_i32_0 = arith.constant 0 : i32
    %c0_i32_1 = arith.constant 0 : i32
    return %c0_i32, %c0_i32_0 : i32, i32
  }
  func.func @transform_4(%arg0: i32, %arg1: i32, %arg2: memref<8xi32, #tpu.memory_space<smem>>) -> (i32, i32) {
    %c0_i32 = arith.constant 0 : i32
    %c0_i32_0 = arith.constant 0 : i32
    %c0_i32_1 = arith.constant 0 : i32
    return %c0_i32, %c0_i32_0 : i32, i32
  }
  func.func @transform_5(%arg0: i32, %arg1: i32, %arg2: memref<8xi32, #tpu.memory_space<smem>>) -> (i32, i32) {
    %c0_i32 = arith.constant 0 : i32
    %c0_i32_0 = arith.constant 0 : i32
    %c0_i32_1 = arith.constant 0 : i32
    return %c0_i32, %c0_i32_0 : i32, i32
  }
  func.func @transform_6(%arg0: i32, %arg1: i32, %arg2: memref<8xi32, #tpu.memory_space<smem>>) -> (i32, i32) {
    %c0_i32 = arith.constant 0 : i32
    %c0_i32_0 = arith.constant 0 : i32
    %c0_i32_1 = arith.constant 0 : i32
    return %c0_i32, %c0_i32_0 : i32, i32
  }
  func.func @transform_7(%arg0: i32, %arg1: i32, %arg2: memref<8xi32, #tpu.memory_space<smem>>) -> (i32, i32) {
    %c0_i32 = arith.constant 0 : i32
    %c0_i32_0 = arith.constant 0 : i32
    %c0_i32_1 = arith.constant 0 : i32
    return %c0_i32, %c0_i32_0 : i32, i32
  }
  func.func @transform_8(%arg0: i32, %arg1: i32, %arg2: memref<8xi32, #tpu.memory_space<smem>>) -> (i32, i32) {
    %c0_i32 = arith.constant 0 : i32
    %c0_i32_0 = arith.constant 0 : i32
    %c0_i32_1 = arith.constant 0 : i32
    return %c0_i32, %c0_i32_0 : i32, i32
  }
  func.func @transform_9(%arg0: i32, %arg1: i32, %arg2: memref<8xi32, #tpu.memory_space<smem>>) -> (i32, i32) {
    %c1_i32 = arith.constant 1 : i32
    %0 = arith.muli %arg0, %c1_i32 : i32
    %1 = arith.addi %0, %arg1 : i32
    %c0_i32 = arith.constant 0 : i32
    %c0_i32_0 = arith.constant 0 : i32
    return %1, %c0_i32 : i32, i32
  }
}

</mosaic_0001>

<bundles_post_ra>
// kernel: tpu_custom_call.1
= control target key start
LH: loop header
LB: loop body
LE: loop exit
PB: predicated region body
PF: predicated region fallthrough
CT: control target
= control target key end

     0   :  { %s5317_s0 = inlined_call_operand.vmem [shape: s32[8], index: 0, kind: input, shape index: {}]   ;;  %s5318_s1 = inlined_call_operand.vmem [shape: bf16[64,16], index: 1, kind: input, shape index: {}]   ;;  %s5319_s2 = inlined_call_operand.vmem [shape: bf16[16,384], index: 2, kind: input, shape index: {}]   ;;  %s5320_s3 = inlined_call_operand.hbm [shape: bf16[128,384], index: 3, kind: input, shape index: {}]   ;;  %s5321_s4 = inlined_call_operand.vmem [shape: f32[1,384], index: 4, kind: input, shape index: {}]   ;;  %s5322_s5 = inlined_call_operand.vmem [shape: f32[1,128], index: 5, kind: input, shape index: {}]   ;;  %s5323_s6 = inlined_call_operand.hbm [shape: bf16[128,384], index: 6, kind: input, shape index: {}]   ;;  %s5324_s7 = inlined_call_operand.hbm [shape: bf16[128,384], index: 7, kind: input, shape index: {}]   ;;  %s5325_s8 = inlined_call_operand.vmem [shape: f32[1,384], index: 8, kind: input, shape index: {}]   ;;  %s5326_s9 = inlined_call_operand.vmem [shape: f32[1,128], index: 9, kind: input, shape index: {}]   ;;  %s5327_s10 = inlined_call_operand.hbm [shape: bf16[64,128], index: 10, kind: output, shape index: {}]  }
   0x1   :  { %s15_s15 = sshll.u32 %s5317_s0, 4  ;;  %s16_s15 = int_to_ptr.vmem [resolvable:$true] %s15_s15 }
   0x2   :  { %s4005_s16 = scalar_lea.vmem %s16_s15, 16  ;;  %p4010_p1 = scmp.lt.s32.totalorder %s16_s15, %s16_s15 }
   0x3   :  { %p4006_p0 = scmp.ne.s32.totalorder %s16_s15, %s4005_s16  ;;  %p4011_p2 = scmp.lt.s32.totalorder %s4005_s16, %s4005_s16 }
   0x5   :  { %p4012_p3 = por %p4011_p2, %p4010_p1 }
   0x7   :  { %p4013_p4 = pnand %p4012_p3, %p4006_p0 }
   0x9   :  { %4016 = shalt.err (!%p4013_p4)  }
   0xa   :  { %s4113_s17 = smov [#allocation5]  }
   0xb   :  { %18 = dma.vmem_to_smem %s16_s15, 16, %s4113_s17, [#allocation4] }
   0xc   :  { %4105 = dma.done.wait [#allocation4], 16 }
   0xd   :  { %4106 = vsyncadd [#allocation4], 4294967280 }
   0xe   :  { %20 = sfence }
   0xf   :  { %21 = vsyncpa [#allocation7], 0 }
  0x10   :  { %22 = vsyncpa [#allocation10], 0 }
  0x11   :  { %23 = vsyncpa [#allocation8], 0  ;;  %s4114_s18 = smov [#allocation9]   ;;  %s4115_s20 = smov [#allocation6]  }
  0x12   :  { %s57_s19 = sshll.u32 %s4114_s18, 4  ;;  %s41_s0 = sshll.u32 %s4115_s20, 4  ;;  %s58_s19 = int_to_ptr.vmem [resolvable:$true] %s57_s19  ;;  %s4184_s0 = int_to_ptr.vmem [resolvable:$true] %s41_s0 }
  0x13   :  { %s4017_s23 = scalar_lea.hbm %s5323_s6, 3072 }
  0x14   :  { %p4018_p5 = scmp.ne.s32.totalorder %s5323_s6, %s4017_s23  ;;  %p4021_p6 = scmp.lt.u32.totalorder %s4017_s23, %s5323_s6 }
  0x16   :  { %p4023_p7 = pnand %p4021_p6, %p4018_p5 }
  0x18   :  { %4026 = shalt.err (!%p4023_p7)
}
  0x19   :  { %s4027_s28 = scalar_lea.vmem %s58_s19, 3072  ;;  %p4032_p9 = scmp.lt.s32.totalorder %s58_s19, %s58_s19 }
  0x1a   :  { %p4028_p8 = scmp.ne.s32.totalorder %s58_s19, %s4027_s28  ;;  %p4033_p10 = scmp.lt.s32.totalorder %s4027_s28, %s4027_s28 }
  0x1c   :  { %p4034_p11 = por %p4033_p10, %p4032_p9 }
  0x1e   :  { %p4035_p12 = pnand %p4034_p11, %p4028_p8 }
  0x20   :  { %4038 = shalt.err (!%p4035_p12)
}
  0x21   :  { %s4116_s29 = smov 192   ;;  %s4117_s30 = smov 12  }
  0x22   :  { %63 = dma.hbm_to_vmem [thread:$0]  %s5323_s6, 3072, %s58_s19, [#allocation10], %s4116_s29, %s4116_s29, %s4117_s30  }
  0x23   :  { %s4039_s15 = scalar_lea.hbm %s5320_s3, 3072 }
  0x24   :  { %p4040_p13 = scmp.ne.s32.totalorder %s5320_s3, %s4039_s15  ;;  %p4043_p0 = scmp.lt.u32.totalorder %s4039_s15, %s5320_s3 }
  0x26   :  { %p4045_p1 = pnand %p4043_p0, %p4040_p13 }
  0x28   :  { %4048 = shalt.err (!%p4045_p1)
}
  0x29   :  { %s4049_s21 = scalar_lea.vmem %s4184_s0, 3072  ;;  %p4054_p3 = scmp.lt.s32.totalorder %s4184_s0, %s4184_s0 }
  0x2a   :  { %p4050_p2 = scmp.ne.s32.totalorder %s4184_s0, %s4049_s21  ;;  %p4055_p4 = scmp.lt.s32.totalorder %s4049_s21, %s4049_s21 }
  0x2c   :  { %p4056_p5 = por %p4055_p4, %p4054_p3 }
  0x2e   :  { %p4057_p6 = pnand %p4056_p5, %p4050_p2 }
  0x30   :  { %4060 = shalt.err (!%p4057_p6)
}
  0x31   :  { %47 = dma.hbm_to_vmem [thread:$0]  %s5320_s3, 3072, %s4184_s0, [#allocation7], %s4116_s29, %s4116_s29, %s4117_s30  }
  0x32   :  { %s4118_s22 = smov [#allocation11]   ;;  %s4061_s26 = scalar_lea.hbm %s5324_s7, 3072 }
  0x33   :  { %s69_s23 = sshll.u32 %s4118_s22, 4  ;;  %p4062_p7 = scmp.ne.s32.totalorder %s5324_s7, %s4061_s26  ;;  %s70_s23 = int_to_ptr.vmem [resolvable:$true] %s69_s23 }
  0x34   :  { %p4065_p8 = scmp.lt.u32.totalorder %s4061_s26, %s5324_s7 }
  0x36   :  { %p4067_p9 = pnand %p4065_p8, %p4062_p7 }
  0x38   :  { %4070 = shalt.err (!%p4067_p9)
}
  0x39   :  { %s4071_s13 = scalar_lea.vmem %s70_s23, 3072  ;;  %p4076_p11 = scmp.lt.s32.totalorder %s70_s23, %s70_s23 }
  0x3a   :  { %p4072_p10 = scmp.ne.s32.totalorder %s70_s23, %s4071_s13  ;;  %p4077_p12 = scmp.lt.s32.totalorder %s4071_s13, %s4071_s13 }
  0x3c   :  { %p4078_p13 = por %p4077_p12, %p4076_p11 }
  0x3e   :  { %p4079_p0 = pnand %p4078_p13, %p4072_p10 }
  0x40   :  { %4082 = shalt.err (!%p4079_p0)
}
  0x41   :  { %75 = dma.hbm_to_vmem [thread:$0]  %s5324_s7, 3072, %s70_s23, [#allocation10], %s4116_s29, %s4116_s29, %s4117_s30  }
  0x42   :  { %4107 = dma.done.wait [#allocation7], 3072  }
  0x43   :  { %4108 = vsyncadd [#allocation7], 4294964224 }
  0x44   :  { %4109 = dma.done.wait [#allocation10], 6144  }
  0x45   :  { %4110 = vsyncadd [#allocation10], 4294961152  ;;  %v5333_v0 = vmov 0   ;;  %v3688_v1 = vld [vmem:[%s5319_s2 + $0x4] ss:$12 sps:$4 sm:$0xff]   ;;  %vm222_vm0 = vcmask 130048   ;;  %v112_v34 = vlaneseq }
  0x46   :  { %267 = vmatprep.mubr.bf16.mxu0 %v5333_v0  ;;  %v3690_v2 = vld [vmem:[%s5319_s2] ss:$12 sps:$4 sm:$0xff]   ;;  %235 = vmatprep.subr.bf16.mxu0 %v3688_v1  ;;  %v4246_v4 = vld [vmem:[#allocation6 + $0x4] ss:$12 sps:$4 sm:$0xff]   ;;  %v4250_v6 = vld [vmem:[#allocation6 + $0x1c] ss:$12 sps:$4 sm:$0xff]  }
  0x47   :  { %v3691_v3 = vld [vmem:[%s5318_s1] sm:$0xff]   ;;  %236 = vmatpush1.bf16.msra.mxu0 %v3690_v2  ;;  %v3698_v9 = vld [vmem:[%s5318_s1 + $0x8] sm:$0xff]   ;;  %v4265_v10 = vld [vmem:[#allocation6 + $0x30] ss:$12 sps:$4 sm:$0xff]   ;;  %v5335_v16 = vmov 0.0   ;;  %vm4121_vm1 = vmmov 0  }
  0x48   :  { %v4248_v5 = vld [vmem:[#allocation6] ss:$12 sps:$4 sm:$0xff]   ;;  %3323 = vmatprep.mubr.msk.bf16.mxu1 %vm222_vm0, %v3691_v3  ;;  %536 = vmatprep.subr.bf16.mxu0 %v4246_v4  ;;  %v4256_v7 = vld [vmem:[#allocation6 + $0x18] ss:$12 sps:$4 sm:$0xff]   ;;  %v3709_v11 = vld [vmem:[%s5319_s2 + $0x8] ss:$12 sps:$4 sm:$0xff]  }
  0x49   :  { %v4260_v8 = vld [vmem:[#allocation6 + $0x34] ss:$12 sps:$4 sm:$0xff]   ;;  %v4272_v12 = vld [vmem:[#allocation6 + $0x4c] ss:$12 sps:$4 sm:$0xff]   ;;  %3321 = vmatprep.subr.bf16.mxu1 %v3709_v11  ;;  %v4282_v15 = vld [vmem:[#allocation6 + $0x64] ss:$12 sps:$4 sm:$0xff]  }
  0x4a   :  { %3017 = vmatmul.mubr.msk.bf16.vlgmr.msra.gmra.mrb[0].mxu0 %vm222_vm0, %v3691_v3  ;;  %v4275_v13 = vld [vmem:[#allocation6 + $0x48] ss:$12 sps:$4 sm:$0xff]   ;;  %3322 = vmatpush3.bf16.msra.mxu1 %v3709_v11  ;;  %v4290_v18 = vld [vmem:[#allocation6 + $0x20] ss:$12 sps:$4 sm:$0xff]   ;;  %v4300_v21 = vld [vmem:[#allocation6 + $0x78] ss:$12 sps:$4 sm:$0xff]  }
  0x4b   :  { %537 = vmatpush1.bf16.msra.mxu0 %v4248_v5  ;;  %277 = vmatprep.mubr.bf16.mxu0 %v5333_v0  ;;  %v3705_v14 = vld [vmem:[%s5318_s1 + $0x10] sm:$0xff]   ;;  %v4294_v19 = vld [vmem:[#allocation6 + $0x60] ss:$12 sps:$4 sm:$0xff]   ;;  %v4298_v20 = vld [vmem:[#allocation6 + $0x7c] ss:$12 sps:$4 sm:$0xff]   ;;  %v5331_v32 = vmov 0.0|0.0  }
  0x4c   :  { %538 = vmatprep.subr.bf16.mxu0 %v4250_v6  ;;  %3331 = vmatprep.subr.bf16.mxu1 %v5335_v16  ;;  %v4286_v17 = vld [vmem:[#allocation6 + $0x8] ss:$12 sps:$4 sm:$0xff]   ;;  %v4304_v22 = vld [vmem:[#allocation6 + $0x38] ss:$12 sps:$4 sm:$0xff]   ;;  %v4315_v25 = vld [vmem:[#allocation6 + $0x90] ss:$12 sps:$4 sm:$0xff]  }
  0x4d   :  { %3324 = vmatmul.mubr.msk.bf16.vlgmr.msra.gmra.mrb[0].mxu1 %vm222_vm0, %v3698_v9  ;;  %v3713_v23 = vld [vmem:[%s5318_s1 + $0x18] sm:$0xff]   ;;  %v4312_v24 = vld [vmem:[#allocation6 + $0x94] ss:$12 sps:$4 sm:$0xff]   ;;  %v4391_v35 = vshrl.u32 %v112_v34, 7  ;;  %s397_s25 = sld [smem:[#allocation5]]  ;;  %s3051_s26 = sld [smem:[#allocation5 + $0x1]] }
  0x4e   :  { %3332 = vmatpush3.bf16.msra.mxu1 %v4286_v17  ;;  %3327 = vmatprep.mubr.msk.bf16.mxu1 %vm222_vm0, %v3705_v14  ;;  %v4317_v26 = vld [vmem:[#allocation6 + $0x50] ss:$12 sps:$4 sm:$0xff]   ;;  %v4320_v27 = vld [vmem:[#allocation6 + $0xac] ss:$12 sps:$4 sm:$0xff]   ;;  %v4328_v28 = vld [vmem:[#allocation6 + $0x68] ss:$12 sps:$4 sm:$0xff]  }
  0x4f   :  { %539 = vmatpush1.bf16.msra.mxu0 %v4256_v7  ;;  %3333 = vmatprep.subr.bf16.mxu1 %v5335_v16  ;;  %v4330_v29 = vld [vmem:[#allocation6 + $0xa8] ss:$12 sps:$4 sm:$0xff]   ;;  %v4338_v30 = vld [vmem:[#allocation6 + $0x80] ss:$12 sps:$4 sm:$0xff]   ;;  %v4343_v31 = vld [vmem:[#allocation6 + $0x98] ss:$12 sps:$4 sm:$0xff]  }
  0x50   :  { %540 = vmatprep.subr.bf16.mxu0 %v4260_v8  ;;  %v4350_v33 = vld [vmem:[#allocation6 + $0xb0] ss:$12 sps:$4 sm:$0xff]   ;;  %v5330_v36 = vsub.s32 0, %v4391_v35  ;;  %v154_v37 = vld [vmem:[%s5321_s4] sm:$0x7]  ;;  %v5329_v38 = vsub.s32 1, %v4391_v35 }
  0x51   :  { %v5328_v47 = vsub.s32 2, %v4391_v35  ;;  %s3054_s27 = sld [smem:[#allocation5 + $0x2]]  ;;  %s3057_s28 = sld [smem:[#allocation5 + $0x3]] }
  0x52   :  { %3018 = vmatmul.mubr.msk.bf16.gmra.mrb[4].mxu0 %vm222_vm0, %v3698_v9  ;;  %3334 = vmatpush3.bf16.msra.mxu1 %v4290_v18  ;;  %v174_v40 = vrot.slane %v154_v37, %v5330_v36  ;;  %v178_v42 = vrot.slane %v154_v37, %v5329_v38  ;;  %s3060_s11 = sld [smem:[#allocation5 + $0x4]]  ;;  %s3063_s12 = sld [smem:[#allocation5 + $0x5]] }
  0x53   :  { %541 = vmatpush1.bf16.msra.mxu0 %v4265_v10  ;;  %287 = vmatprep.mubr.bf16.mxu0 %v5333_v0  ;;  %v182_v49 = vrot.slane %v154_v37, %v5328_v47  ;;  %s3066_s13 = sld [smem:[#allocation5 + $0x6]]  ;;  %s1909_s17 = sld [smem:[#allocation5]] }
  0x54   :  { %542 = vmatprep.subr.bf16.mxu0 %v4272_v12  ;;  %3335 = vmatprep.subr.bf16.mxu1 %v5335_v16  ;;  %s3130_s18 = sld [smem:[#allocation5 + $0x2]]  ;;  %s3133_s20 = sld [smem:[#allocation5 + $0x3]] }
  0x55   :  { %3328 = vmatmul.mubr.msk.bf16.gmra.mrb[4].mxu1 %vm222_vm0, %v3713_v23  ;;  %s3136_s7 = sld [smem:[#allocation5 + $0x4]]  ;;  %s3139_s29 = sld [smem:[#allocation5 + $0x5]] }
  0x56   :  { %3336 = vmatpush3.bf16.msra.mxu1 %v4304_v22  ;;  %3347 = vmatprep.mubr.msk.bf16.mxu1 %vm4121_vm1, %v5335_v16  ;;  %s3142_s30 = sld [smem:[#allocation5 + $0x6]]  ;;  %s3145_s21 = sld [smem:[#allocation5 + $0x7]] }
  0x57   :  { %543 = vmatpush1.bf16.msra.mxu0 %v4275_v13  ;;  %3337 = vmatprep.subr.bf16.mxu1 %v5335_v16  ;;  %s4123_s6 = smov [#allocation12]  }
  0x58   :  { %544 = vmatprep.subr.bf16.mxu0 %v4282_v15  ;;  %s2983_s19 = sshll.u32 %s4123_s6, 4  ;;  %s2984_s19 = int_to_ptr.vmem [resolvable:$true] %s2983_s19 }
  0x59   :  { %s4083_s2 = scalar_lea.vmem %s2984_s19, 512  ;;  %p4088_p2 = scmp.lt.s32.totalorder %s2984_s19, %s2984_s19 }
  0x5a   :  { %3019 = vmatmul.mubr.msk.bf16.gmra.mrb[8].mxu0 %vm222_vm0, %v3705_v14  ;;  %3338 = vmatpush3.bf16.msra.mxu1 %v4317_v26  ;;  %p4084_p1 = scmp.ne.s32.totalorder %s2984_s19, %s4083_s2  ;;  %p4089_p3 = scmp.lt.s32.totalorder %s4083_s2, %s4083_s2 }
  0x5b   :  { %545 = vmatpush1.bf16.msra.mxu0 %v4294_v19  ;;  %297 = vmatprep.mubr.bf16.mxu0 %v5333_v0 }
  0x5c   :  { %546 = vmatprep.subr.bf16.mxu0 %v4298_v20  ;;  %3339 = vmatprep.subr.bf16.mxu1 %v5335_v16  ;;  %p4090_p4 = por %p4089_p3, %p4088_p2 }
  0x5e   :  { %3340 = vmatpush3.bf16.msra.mxu1 %v4328_v28  ;;  %p4091_p5 = pnand %p4090_p4, %p4084_p1 }
  0x5f   :  { %547 = vmatpush1.bf16.msra.mxu0 %v4300_v21  ;;  %3341 = vmatprep.subr.bf16.mxu1 %v5335_v16 }
  0x60   :  { %548 = vmatprep.subr.bf16.mxu0 %v4312_v24 }
  0x62   :  { %3020 = vmatmul.mubr.msk.bf16.gmra.mrb[12].mxu0 %vm222_vm0, %v3713_v23  ;;  %3342 = vmatpush3.bf16.msra.mxu1 %v4338_v30 }
  0x63   :  { %549 = vmatpush1.bf16.msra.mxu0 %v4315_v25  ;;  %568 = vmatprep.mubr.bf16.mxu0 %v5333_v0 }
  0x64   :  { %550 = vmatprep.subr.bf16.mxu0 %v4320_v27  ;;  %3343 = vmatprep.subr.bf16.mxu1 %v5335_v16 }
  0x66   :  { %3344 = vmatpush3.bf16.msra.mxu1 %v4343_v31 }
  0x67   :  { %551 = vmatpush1.bf16.msra.mxu0 %v4330_v29  ;;  %3345 = vmatprep.subr.bf16.mxu1 %v5335_v16 }
  0x68   :  { %657 = vmatprep.subr.bf16.mxu0 %v4246_v4 }
  0x6a   :  { %569 = vmatmul.mubr.bf16.vlgmr.msra.gmra.mrb[16].mxu0 %v5331_v32  ;;  %3346 = vmatpush3.bf16.msra.mxu1 %v4350_v33 }
  0x6b   :  { %658 = vmatpush1.bf16.msra.mxu0 %v4248_v5  ;;  %689 = vmatprep.mubr.bf16.mxu0 %v5333_v0 }
  0x6c   :  { %659 = vmatprep.subr.bf16.mxu0 %v4250_v6  ;;  %3351 = vmatprep.subr.bf16.mxu1 %v5335_v16 }
  0x6d   :  { %3348 = vmatmul.mubr.bf16.vlgmr.msra.gmra.mrb[8].mxu1 %v5331_v32 }
  0x6e   :  { %3352 = vmatpush3.bf16.msra.mxu1 %v4286_v17  ;;  %3367 = vmatprep.mubr.msk.bf16.mxu1 %vm4121_vm1, %v5335_v16 }
  0x6f   :  { %660 = vmatpush1.bf16.msra.mxu0 %v4256_v7  ;;  %3353 = vmatprep.subr.bf16.mxu1 %v5335_v16 }
  0x70   :  { %661 = vmatprep.subr.bf16.mxu0 %v4260_v8 }
  0x72   :  { %3354 = vmatpush3.bf16.msra.mxu1 %v4290_v18 }
  0x73   :  { %662 = vmatpush1.bf16.msra.mxu0 %v4265_v10  ;;  %3355 = vmatprep.subr.bf16.mxu1 %v5335_v16 }
  0x74   :  { %663 = vmatprep.subr.bf16.mxu0 %v4272_v12 }
  0x76   :  { %3356 = vmatpush3.bf16.msra.mxu1 %v4304_v22 }
  0x77   :  { %664 = vmatpush1.bf16.msra.mxu0 %v4275_v13  ;;  %3357 = vmatprep.subr.bf16.mxu1 %v5335_v16 }
  0x78   :  { %665 = vmatprep.subr.bf16.mxu0 %v4282_v15 }
  0x7a   :  { %3358 = vmatpush3.bf16.msra.mxu1 %v4317_v26 }
  0x7b   :  { %666 = vmatpush1.bf16.msra.mxu0 %v4294_v19  ;;  %3359 = vmatprep.subr.bf16.mxu1 %v5335_v16 }
  0x7c   :  { %667 = vmatprep.subr.bf16.mxu0 %v4298_v20 }
  0x7e   :  { %3360 = vmatpush3.bf16.msra.mxu1 %v4328_v28 }
  0x7f   :  { %668 = vmatpush1.bf16.msra.mxu0 %v4300_v21  ;;  %3361 = vmatprep.subr.bf16.mxu1 %v5335_v16 }
  0x80   :  { %669 = vmatprep.subr.bf16.mxu0 %v4312_v24 }
  0x82   :  { %3362 = vmatpush3.bf16.msra.mxu1 %v4338_v30 }
  0x83   :  { %670 = vmatpush1.bf16.msra.mxu0 %v4315_v25  ;;  %3363 = vmatprep.subr.bf16.mxu1 %v5335_v16 }
  0x84   :  { %671 = vmatprep.subr.bf16.mxu0 %v4320_v27 }
  0x86   :  { %3364 = vmatpush3.bf16.msra.mxu1 %v4343_v31 }
  0x87   :  { %672 = vmatpush1.bf16.msra.mxu0 %v4330_v29  ;;  %3365 = vmatprep.subr.bf16.mxu1 %v5335_v16 }
  0x88   :  { %779 = vmatprep.subr.bf16.mxu0 %v4246_v4 }
  0x8a   :  { %3366 = vmatpush3.bf16.msra.mxu1 %v4350_v33 }
  0x8b   :  { %3371 = vmatprep.subr.bf16.mxu1 %v5335_v16 }
 0x11d   :  { %v269_v39 = vpop.f32.mrb[0].mxu0 }
 0x11e   :  { %v271_v41 = vpop.f32.mrb[1].mxu0 }
 0x11f   :  { %v273_v43 = vpop.f32.mrb[2].mxu0  ;;  %v272_v38 = vadd.f32 %v271_v41, %v178_v42 }
 0x120   :  { %v4402_v44 = vadd.f32 %v273_v43, %v174_v40  ;;  %v275_v45 = vpop.f32.mrb[3].mxu0  ;;  %v3325_v56 = vpop.f32.mrb[0].mxu1 }
 0x121   :  { %v4404_v46 = vadd.f32 %v275_v45, %v178_v42  ;;  %v4417_v58 = vadd.f32 %v3325_v56, %v182_v49  ;;  %v342_v59 = vpop.f32.mrb[1].mxu1 }
 0x122   :  { %v3326_v60 = vpop.f32.mrb[2].mxu1 }
 0x123   :  { %v4419_v61 = vadd.f32 %v3326_v60, %v182_v49  ;;  %v345_v62 = vpop.f32.mrb[3].mxu1 }
 0x124   :  { %v4421_v63 = vadd.f32 %v345_v62, %v182_v49 }
 0x125   :  { %v279_v48 = vpop.f32.mrb[4].mxu0 }
 0x126   :  { %v4409_v50 = vadd.f32 %v279_v48, %v174_v40  ;;  %v281_v51 = vpop.f32.mrb[5].mxu0 }
 0x127   :  { %v4411_v52 = vadd.f32 %v281_v51, %v178_v42  ;;  %v283_v53 = vpop.f32.mrb[6].mxu0 }
 0x128   :  { %v4413_v54 = vadd.f32 %v283_v53, %v174_v40  ;;  %v285_v55 = vpop.f32.mrb[7].mxu0  ;;  %v3329_v34 = vpop.f32.mrb[4].mxu1 }
 0x129   :  { %v4415_v57 = vadd.f32 %v285_v55, %v178_v42  ;;  %v4431_v43 = vadd.f32 %v3329_v34, %v182_v49  ;;  %v358_v45 = vpop.f32.mrb[5].mxu1 }
 0x12a   :  { %v4433_v48 = vadd.f32 %v358_v45, %v182_v49  ;;  %v3330_v51 = vpop.f32.mrb[6].mxu1  ;;  %v270_v45 = vadd.f32 %v269_v39, %v174_v40  ;;  %v4450_v39 = vld [vmem:[%s5322_s5] ss:$0 sm:$0xff] }
 0x12b   :  { %5337 = vst [vmem:[#allocation17_spill] sm:$0xff] %v4431_v43  ;;  %v4435_v53 = vadd.f32 %v3330_v51, %v182_v49  ;;  %v361_v55 = vpop.f32.mrb[7].mxu1 }
 0x12c   :  { %v4437_v56 = vadd.f32 %v361_v55, %v182_v49 }
 0x12d   :  { %v289_v1 = vpop.f32.mrb[8].mxu0  ;;  %5338 = vst [vmem:[#allocation18_spill] sm:$0xff] %v4435_v53 }
 0x12e   :  { %v4423_v2 = vadd.f32 %v289_v1, %v174_v40  ;;  %v291_v3 = vpop.f32.mrb[9].mxu0 }
 0x12f   :  { %v4425_v9 = vadd.f32 %v291_v3, %v178_v42  ;;  %v293_v11 = vpop.f32.mrb[10].mxu0 }
 0x130   :  { %v4427_v14 = vadd.f32 %v293_v11, %v174_v40  ;;  %v295_v23 = vpop.f32.mrb[11].mxu0 }
 0x131   :  { %v4429_v37 = vadd.f32 %v295_v23, %v178_v42 }
 0x135   :  { %v299_v60 = vpop.f32.mrb[12].mxu0 }
 0x136   :  { %v4439_v62 = vadd.f32 %v299_v60, %v174_v40  ;;  %v301_v1 = vpop.f32.mrb[13].mxu0 }
 0x137   :  { %v4441_v3 = vadd.f32 %v301_v1, %v178_v42  ;;  %v303_v11 = vpop.f32.mrb[14].mxu0 }
 0x138   :  { %5339 = vst [vmem:[#allocation19_spill] sm:$0xff] %v4439_v62  ;;  %v4443_v23 = vadd.f32 %v303_v11, %v174_v40  ;;  %v305_v34 = vpop.f32.mrb[15].mxu0  ;;  %v343_v40 = vadd.f32 %v342_v59, %v182_v49  ;;  %v5342_v59 = vmov 0.0  }
 0x139   :  { %5340 = vst [vmem:[#allocation20_spill] sm:$0xff] %v4441_v3  ;;  %v4445_v47 = vadd.f32 %v305_v34, %v178_v42 }
 0x13a   :  { %5341 = vst [vmem:[#allocation21_spill] sm:$0xff] %v4443_v23 }
 0x13d   :  { %v570_v36 = vpop.f32.mrb[16].mxu0 }
 0x13e   :  { %v617_v51 = vadd.f32 %v570_v36, %v270_v45  ;;  %v572_v32 = vpop.f32.mrb[17].mxu0 }
 0x13f   :  { %v624_v0 = vadd.f32 %v572_v32, %v272_v38  ;;  %v574_v55 = vpop.f32.mrb[18].mxu0 }
 0x140   :  { %v3049_v16 = vmul.f32 -1.442695, %v617_v51  ;;  %v575_v53 = vpop.f32.mrb[19].mxu0  ;;  %v611_v60 = vpop.f32.mrb[8].mxu1  ;;  %v5343_v51 = vmov 0  }
 0x141   :  { %v3349_v43 = vpop.f32.mrb[9].mxu1  ;;  %v3050_v1 = vmul.f32 -1.442695, %v624_v0  ;;  %v631_v32 = vadd.f32 %v4450_v39, %v611_v60 }
 0x142   :  { %3796 = vpow2.f32 %v3049_v16  ;;  %v614_v3 = vpop.f32.mrb[10].mxu1  ;;  %v398_v43 = vstv %s397_s25 }
 0x143   :  { %v3350_v62 = vpop.f32.mrb[11].mxu1  ;;  %3798 = vpow2.f32 %v3050_v1  ;;  %vm399_vm2 = vcmp.lt.s32.totalorder %v4391_v35, %v398_v43 }
 0x144   :  { %vm3148_vm3 = vmpackc.low %vm399_vm2, %vm399_vm2 }
 0x14c   :  { %v3797_v11 = vpop.eup %3796 }
 0x14d   :  { %v621_v23 = vadd.f32 1.0, %v3797_v11  ;;  %v3799_v36 = vpop.eup %3798 }
 0x14e   :  { %v628_v41 = vadd.f32 1.0, %v3799_v36 }
 0x14f   :  { %3800 = vrcp.f32 %v621_v23 }
 0x159   :  { %v3801_v38 = vpop.eup %3800 }
 0x15a   :  { %v632_v16 = vmul.f32 %v3801_v38, %v631_v32 }
 0x15c   :  { %v633_v42 = vadd.f32 %v632_v16, %v343_v40 }
 0x15e   :  { %3802 = vtanh.f32 %v633_v42 }
 0x15f   :  { %3804 = vrcp.f32 %v628_v41 }
 0x168   :  { %v3803_v0 = vpop.eup %3802 }
 0x169   :  { %v635_v53 = vsub.f32 0.0, %v3803_v0  ;;  %v3805_v62 = vpop.eup %3804 }
 0x16b   :  { %v636_v3 = vmul.f32 %v3805_v62, %v635_v53 }
 0x16d   :  { %v637_v23 = vadd.f32 %v3803_v0, %v636_v3 }
 0x16f   :  { %v4454_v34 = vsel %vm399_vm2, %v637_v23, 0.0  ;;  %v3149_v45 = vpack.c.bf16 %v637_v23, %v637_v23 }
 0x170   :  { %v643_v49 = vpack.c.bf16 %v4454_v34, %v4454_v34 }
 0x171   :  { %3150 = vmatmul.mubr.msk.bf16.vlgmr.msra.gmra.mrb[20].mxu0 %vm3148_vm3, %v3149_v45  ;;  %3368 = vmatmul.mubr.msk.bf16.vlgmr.msra.gmra.mrb[12].mxu1 %vm3148_vm3, %v3149_v45 }
 0x172   :  { %644 = vst [vmem:[#allocation12] sm:$0xf] %v643_v49  ;;  %780 = vmatpush1.bf16.msra.mxu0 %v4248_v5  ;;  %3372 = vmatpush3.bf16.msra.mxu1 %v4286_v17 }
 0x173   :  { %781 = vmatprep.subr.bf16.mxu0 %v4250_v6  ;;  %3373 = vmatprep.subr.bf16.mxu1 %v5342_v59 }
 0x174   :  { %811 = vmatprep.mubr.bf16.mxu0 %v5343_v51  ;;  %3387 = vmatprep.mubr.msk.bf16.mxu1 %vm4121_vm1, %v5342_v59 }
 0x176   :  { %782 = vmatpush1.bf16.msra.mxu0 %v4256_v7  ;;  %3374 = vmatpush3.bf16.msra.mxu1 %v4290_v18 }
 0x177   :  { %783 = vmatprep.subr.bf16.mxu0 %v4260_v8  ;;  %3375 = vmatprep.subr.bf16.mxu1 %v5342_v59 }
 0x17a   :  { %784 = vmatpush1.bf16.msra.mxu0 %v4265_v10  ;;  %3376 = vmatpush3.bf16.msra.mxu1 %v4304_v22 }
 0x17b   :  { %785 = vmatprep.subr.bf16.mxu0 %v4272_v12  ;;  %3377 = vmatprep.subr.bf16.mxu1 %v5342_v59 }
 0x17e   :  { %786 = vmatpush1.bf16.msra.mxu0 %v4275_v13  ;;  %3378 = vmatpush3.bf16.msra.mxu1 %v4317_v26 }
 0x17f   :  { %787 = vmatprep.subr.bf16.mxu0 %v4282_v15  ;;  %3379 = vmatprep.subr.bf16.mxu1 %v5342_v59 }
 0x182   :  { %788 = vmatpush1.bf16.msra.mxu0 %v4294_v19  ;;  %3380 = vmatpush3.bf16.msra.mxu1 %v4328_v28 }
 0x183   :  { %789 = vmatprep.subr.bf16.mxu0 %v4298_v20  ;;  %3381 = vmatprep.subr.bf16.mxu1 %v5342_v59 }
 0x186   :  { %790 = vmatpush1.bf16.msra.mxu0 %v4300_v21  ;;  %3382 = vmatpush3.bf16.msra.mxu1 %v4338_v30 }
 0x187   :  { %791 = vmatprep.subr.bf16.mxu0 %v4312_v24  ;;  %3383 = vmatprep.subr.bf16.mxu1 %v5342_v59 }
 0x18a   :  { %792 = vmatpush1.bf16.msra.mxu0 %v4315_v25  ;;  %3384 = vmatpush3.bf16.msra.mxu1 %v4343_v31 }
 0x18b   :  { %793 = vmatprep.subr.bf16.mxu0 %v4320_v27  ;;  %3385 = vmatprep.subr.bf16.mxu1 %v5342_v59 }
 0x18e   :  { %794 = vmatpush1.bf16.msra.mxu0 %v4330_v29  ;;  %3386 = vmatpush3.bf16.msra.mxu1 %v4350_v33 }
 0x18f   :  { %901 = vmatprep.subr.bf16.mxu0 %v4246_v4  ;;  %3391 = vmatprep.subr.bf16.mxu1 %v5342_v59 }
 0x244   :  { %v691_v55 = vpop.f32.mrb[20].mxu0  ;;  %v732_v60 = vpop.f32.mrb[12].mxu1 }
 0x245   :  { %v738_v1 = vadd.f32 %v691_v55, %v4402_v44  ;;  %v693_v11 = vpop.f32.mrb[21].mxu0  ;;  %v3369_v32 = vpop.f32.mrb[13].mxu1  ;;  %v752_v3 = vadd.f32 %v4450_v39, %v732_v60 }
 0x246   :  { %v745_v36 = vadd.f32 %v693_v11, %v4404_v46  ;;  %v695_v38 = vpop.f32.mrb[22].mxu0  ;;  %v735_v40 = vpop.f32.mrb[14].mxu1 }
 0x247   :  { %v3052_v16 = vmul.f32 -1.442695, %v738_v1  ;;  %v696_v41 = vpop.f32.mrb[23].mxu0  ;;  %v3370_v42 = vpop.f32.mrb[15].mxu1  ;;  %v647_v1 = vstv %s3051_s26 }
 0x248   :  { %v3053_v0 = vmul.f32 -1.442695, %v745_v36  ;;  %vm648_vm4 = vcmp.lt.s32.totalorder %v4391_v35, %v647_v1 }
 0x249   :  { %3806 = vpow2.f32 %v3052_v16 }
 0x24a   :  { %3808 = vpow2.f32 %v3053_v0 }
 0x253   :  { %v3807_v43 = vpop.eup %3806 }
 0x254   :  { %v742_v53 = vadd.f32 1.0, %v3807_v43  ;;  %v3809_v62 = vpop.eup %3808 }
 0x255   :  { %v749_v49 = vadd.f32 1.0, %v3809_v62 }
 0x256   :  { %3810 = vrcp.f32 %v742_v53 }
 0x260   :  { %v3811_v23 = vpop.eup %3810 }
 0x261   :  { %v753_v44 = vmul.f32 %v3811_v23, %v752_v3 }
 0x263   :  { %v754_v45 = vadd.f32 %v753_v44, %v4421_v63 }
 0x265   :  { %3812 = vtanh.f32 %v754_v45 }
 0x266   :  { %3814 = vrcp.f32 %v749_v49 }
 0x26f   :  { %v3813_v46 = vpop.eup %3812 }
 0x270   :  { %v756_v55 = vsub.f32 %v4454_v34, %v3813_v46  ;;  %v3815_v11 = vpop.eup %3814 }
 0x272   :  { %v757_v32 = vmul.f32 %v3815_v11, %v756_v55 }
 0x274   :  { %v758_v36 = vadd.f32 %v3813_v46, %v757_v32 }
 0x276   :  { %v4500_v38 = vsel %vm648_vm4, %v758_v36, %v4454_v34  ;;  %v763_v60 = vsel %vm648_vm4, %v758_v36, 0.0 }
 0x277   :  { %v764_v40 = vpack.c.bf16 %v763_v60, %v763_v60  ;;  %v778_v63 = vpack.c.bf16 %v4500_v38, %v4500_v38 }
 0x279   :  { %766 = vst [vmem:[#allocation12 + $0x4] sm:$0xf] %v764_v40  ;;  %812 = vmatmul.mubr.bf16.vlgmr.msra.gmra.mrb[24].mxu0 %v778_v63  ;;  %3388 = vmatmul.mubr.bf16.vlgmr.msra.gmra.mrb[16].mxu1 %v778_v63  ;;  %v769_v40 = vstv %s3054_s27 }
 0x27a   :  { %902 = vmatpush1.bf16.msra.mxu0 %v4248_v5  ;;  %3392 = vmatpush3.bf16.msra.mxu1 %v4286_v17  ;;  %vm770_vm5 = vcmp.lt.s32.totalorder %v4391_v35, %v769_v40  ;;  %v4596_v40 = vld [vmem:[#allocation6] ss:$12 sps:$4 sm:$0xff]  }
 0x27b   :  { %903 = vmatprep.subr.bf16.mxu0 %v4250_v6  ;;  %3393 = vmatprep.subr.bf16.mxu1 %v5342_v59 }
 0x27c   :  { %933 = vmatprep.mubr.bf16.mxu0 %v5343_v51  ;;  %3407 = vmatprep.mubr.msk.bf16.mxu1 %vm4121_vm1, %v5342_v59 }
 0x27e   :  { %904 = vmatpush1.bf16.msra.mxu0 %v4256_v7  ;;  %3394 = vmatpush3.bf16.msra.mxu1 %v4290_v18 }
 0x27f   :  { %905 = vmatprep.subr.bf16.mxu0 %v4260_v8  ;;  %3395 = vmatprep.subr.bf16.mxu1 %v5342_v59 }
 0x282   :  { %906 = vmatpush1.bf16.msra.mxu0 %v4265_v10  ;;  %3396 = vmatpush3.bf16.msra.mxu1 %v4304_v22 }
 0x283   :  { %907 = vmatprep.subr.bf16.mxu0 %v4272_v12  ;;  %3397 = vmatprep.subr.bf16.mxu1 %v5342_v59 }
 0x286   :  { %908 = vmatpush1.bf16.msra.mxu0 %v4275_v13  ;;  %3398 = vmatpush3.bf16.msra.mxu1 %v4317_v26 }
 0x287   :  { %909 = vmatprep.subr.bf16.mxu0 %v4282_v15  ;;  %3399 = vmatprep.subr.bf16.mxu1 %v5342_v59 }
 0x28a   :  { %910 = vmatpush1.bf16.msra.mxu0 %v4294_v19  ;;  %3400 = vmatpush3.bf16.msra.mxu1 %v4328_v28 }
 0x28b   :  { %911 = vmatprep.subr.bf16.mxu0 %v4298_v20  ;;  %3401 = vmatprep.subr.bf16.mxu1 %v5342_v59 }
 0x28e   :  { %912 = vmatpush1.bf16.msra.mxu0 %v4300_v21  ;;  %3402 = vmatpush3.bf16.msra.mxu1 %v4338_v30 }
 0x28f   :  { %913 = vmatprep.subr.bf16.mxu0 %v4312_v24  ;;  %3403 = vmatprep.subr.bf16.mxu1 %v5342_v59 }
 0x292   :  { %914 = vmatpush1.bf16.msra.mxu0 %v4315_v25  ;;  %3404 = vmatpush3.bf16.msra.mxu1 %v4343_v31 }
 0x293   :  { %915 = vmatprep.subr.bf16.mxu0 %v4320_v27  ;;  %3405 = vmatprep.subr.bf16.mxu1 %v5342_v59 }
 0x296   :  { %916 = vmatpush1.bf16.msra.mxu0 %v4330_v29  ;;  %3406 = vmatpush3.bf16.msra.mxu1 %v4350_v33 }
 0x297   :  { %1023 = vmatprep.subr.bf16.mxu0 %v4246_v4  ;;  %3411 = vmatprep.subr.bf16.mxu1 %v5342_v59 }
 0x34c   :  { %v813_v34 = vpop.f32.mrb[24].mxu0  ;;  %v854_v16 = vpop.f32.mrb[16].mxu1 }
 0x34d   :  { %v860_v41 = vadd.f32 %v813_v34, %v4409_v50  ;;  %v815_v42 = vpop.f32.mrb[25].mxu0  ;;  %v3389_v0 = vpop.f32.mrb[17].mxu1  ;;  %v874_v1 = vadd.f32 %v4450_v39, %v854_v16 }
 0x34e   :  { %v867_v43 = vadd.f32 %v815_v42, %v4411_v52  ;;  %v817_v53 = vpop.f32.mrb[26].mxu0  ;;  %v857_v62 = vpop.f32.mrb[18].mxu1 }
 0x34f   :  { %v3055_v3 = vmul.f32 -1.442695, %v860_v41  ;;  %v818_v23 = vpop.f32.mrb[27].mxu0  ;;  %v3390_v44 = vpop.f32.mrb[19].mxu1 }
 0x350   :  { %v3056_v45 = vmul.f32 -1.442695, %v867_v43 }
 0x351   :  { %3816 = vpow2.f32 %v3055_v3 }
 0x352   :  { %3818 = vpow2.f32 %v3056_v45 }
 0x35b   :  { %v3817_v49 = vpop.eup %3816 }
 0x35c   :  { %v864_v46 = vadd.f32 1.0, %v3817_v49  ;;  %v3819_v55 = vpop.eup %3818 }
 0x35d   :  { %v871_v36 = vadd.f32 1.0, %v3819_v55 }
 0x35e   :  { %3820 = vrcp.f32 %v864_v46 }
 0x368   :  { %v3821_v11 = vpop.eup %3820 }
 0x369   :  { %v875_v50 = vmul.f32 %v3821_v11, %v874_v1  ;;  %v891_v1 = vstv %s3057_s28 }
 0x36a   :  { %vm892_vm6 = vcmp.lt.s32.totalorder %v4391_v35, %v891_v1  ;;  %v4697_v1 = vld [vmem:[#allocation6 + $0x78] ss:$12 sps:$4 sm:$0xff]  }
 0x36b   :  { %v876_v32 = vadd.f32 %v875_v50, %v4417_v58 }
 0x36d   :  { %3822 = vtanh.f32 %v876_v32 }
 0x36e   :  { %3824 = vrcp.f32 %v871_v36 }
 0x377   :  { %v3823_v52 = vpop.eup %3822 }
 0x378   :  { %v878_v60 = vsub.f32 %v4500_v38, %v3823_v52  ;;  %v3825_v63 = vpop.eup %3824 }
 0x37a   :  { %v879_v34 = vmul.f32 %v3825_v63, %v878_v60  ;;  %v4600_v63 = vld [vmem:[#allocation6 + $0x1c] ss:$12 sps:$4 sm:$0xff]  }
 0x37c   :  { %v880_v41 = vadd.f32 %v3823_v52, %v879_v34  ;;  %v4607_v34 = vld [vmem:[#allocation6 + $0x18] ss:$12 sps:$4 sm:$0xff]  }
 0x37e   :  { %v4546_v42 = vsel %vm770_vm5, %v880_v41, %v4500_v38  ;;  %v885_v16 = vsel %vm770_vm5, %v880_v41, 0.0  ;;  %v4611_v41 = vld [vmem:[#allocation6 + $0x34] ss:$12 sps:$4 sm:$0xff]  }
 0x37f   :  { %v886_v0 = vpack.c.bf16 %v885_v16, %v885_v16  ;;  %v900_v58 = vpack.c.bf16 %v4546_v42, %v4546_v42  ;;  %v4623_v16 = vld [vmem:[#allocation6 + $0x48] ss:$12 sps:$4 sm:$0xff]  }
 0x381   :  { %888 = vst [vmem:[#allocation12 + $0x8] sm:$0xf] %v886_v0  ;;  %934 = vmatmul.mubr.bf16.vlgmr.msra.gmra.mrb[28].mxu0 %v900_v58  ;;  %3408 = vmatmul.mubr.bf16.vlgmr.msra.gmra.mrb[20].mxu1 %v900_v58 }
 0x382   :  { %1024 = vmatpush1.bf16.msra.mxu0 %v4248_v5  ;;  %3412 = vmatpush3.bf16.msra.mxu1 %v4286_v17 }
 0x383   :  { %1025 = vmatprep.subr.bf16.mxu0 %v4250_v6  ;;  %3413 = vmatprep.subr.bf16.mxu1 %v5342_v59 }
 0x384   :  { %1055 = vmatprep.mubr.bf16.mxu0 %v5343_v51  ;;  %3427 = vmatprep.mubr.msk.bf16.mxu1 %vm4121_vm1, %v5342_v59 }
 0x386   :  { %1026 = vmatpush1.bf16.msra.mxu0 %v4256_v7  ;;  %3414 = vmatpush3.bf16.msra.mxu1 %v4290_v18 }
 0x387   :  { %1027 = vmatprep.subr.bf16.mxu0 %v4260_v8  ;;  %3415 = vmatprep.subr.bf16.mxu1 %v5342_v59 }
 0x38a   :  { %1028 = vmatpush1.bf16.msra.mxu0 %v4265_v10  ;;  %3416 = vmatpush3.bf16.msra.mxu1 %v4304_v22 }
 0x38b   :  { %1029 = vmatprep.subr.bf16.mxu0 %v4272_v12  ;;  %3417 = vmatprep.subr.bf16.mxu1 %v5342_v59 }
 0x38e   :  { %1030 = vmatpush1.bf16.msra.mxu0 %v4275_v13  ;;  %3418 = vmatpush3.bf16.msra.mxu1 %v4317_v26 }
 0x38f   :  { %1031 = vmatprep.subr.bf16.mxu0 %v4282_v15  ;;  %3419 = vmatprep.subr.bf16.mxu1 %v5342_v59 }
 0x392   :  { %1032 = vmatpush1.bf16.msra.mxu0 %v4294_v19  ;;  %3420 = vmatpush3.bf16.msra.mxu1 %v4328_v28 }
 0x393   :  { %1033 = vmatprep.subr.bf16.mxu0 %v4298_v20  ;;  %3421 = vmatprep.subr.bf16.mxu1 %v5342_v59 }
 0x396   :  { %1034 = vmatpush1.bf16.msra.mxu0 %v4300_v21  ;;  %3422 = vmatpush3.bf16.msra.mxu1 %v4338_v30 }
 0x397   :  { %1035 = vmatprep.subr.bf16.mxu0 %v4312_v24  ;;  %3423 = vmatprep.subr.bf16.mxu1 %v5342_v59 }
 0x39a   :  { %1036 = vmatpush1.bf16.msra.mxu0 %v4315_v25  ;;  %3424 = vmatpush3.bf16.msra.mxu1 %v4343_v31 }
 0x39b   :  { %1037 = vmatprep.subr.bf16.mxu0 %v4320_v27  ;;  %3425 = vmatprep.subr.bf16.mxu1 %v5342_v59 }
 0x39e   :  { %1038 = vmatpush1.bf16.msra.mxu0 %v4330_v29  ;;  %3426 = vmatpush3.bf16.msra.mxu1 %v4350_v33 }
 0x39f   :  { %1145 = vmatprep.subr.bf16.mxu0 %v4246_v4  ;;  %3431 = vmatprep.subr.bf16.mxu1 %v5342_v59 }
 0x454   :  { %v935_v5 = vpop.f32.mrb[28].mxu0  ;;  %v976_v6 = vpop.f32.mrb[20].mxu1 }
 0x455   :  { %v982_v7 = vadd.f32 %v935_v5, %v4413_v54  ;;  %v937_v8 = vpop.f32.mrb[29].mxu0  ;;  %v3409_v10 = vpop.f32.mrb[21].mxu1  ;;  %v996_v44 = vadd.f32 %v4450_v39, %v976_v6 }
 0x456   :  { %v989_v12 = vadd.f32 %v937_v8, %v4415_v57  ;;  %v939_v13 = vpop.f32.mrb[30].mxu0  ;;  %v979_v15 = vpop.f32.mrb[22].mxu1 }
 0x457   :  { %v3058_v38 = vmul.f32 -1.442695, %v982_v7  ;;  %v940_v43 = vpop.f32.mrb[31].mxu0  ;;  %v3410_v53 = vpop.f32.mrb[23].mxu1 }
 0x458   :  { %v3059_v62 = vmul.f32 -1.442695, %v989_v12 }
 0x459   :  { %3826 = vpow2.f32 %v3058_v38  ;;  %v1013_v38 = vstv %s3060_s11 }
 0x45a   :  { %3828 = vpow2.f32 %v3059_v62  ;;  %vm1014_vm7 = vcmp.lt.s32.totalorder %v4391_v35, %v1013_v38 }
 0x463   :  { %v3827_v3 = vpop.eup %3826 }
 0x464   :  { %v986_v23 = vadd.f32 1.0, %v3827_v3  ;;  %v3829_v4 = vpop.eup %3828 }
 0x465   :  { %v993_v46 = vadd.f32 1.0, %v3829_v4 }
 0x466   :  { %3830 = vrcp.f32 %v986_v23 }
 0x470   :  { %v3831_v45 = vpop.eup %3830 }
 0x471   :  { %v997_v54 = vmul.f32 %v3831_v45, %v996_v44  ;;  %v4661_v44 = vld [vmem:[#allocation6 + $0x8] ss:$12 sps:$4 sm:$0xff]   ;;  %v4670_v45 = vld [vmem:[#allocation6 + $0x20] ss:$12 sps:$4 sm:$0xff]  }
 0x473   :  { %v998_v49 = vadd.f32 %v997_v54, %v4419_v61  ;;  %v4676_v54 = vld [vmem:[#allocation6 + $0x38] ss:$12 sps:$4 sm:$0xff]  }
 0x475   :  { %3832 = vtanh.f32 %v998_v49  ;;  %v4682_v49 = vld [vmem:[#allocation6 + $0x50] ss:$12 sps:$4 sm:$0xff]  }
 0x476   :  { %3834 = vrcp.f32 %v993_v46  ;;  %v4687_v46 = vld [vmem:[#allocation6 + $0x60] ss:$12 sps:$4 sm:$0xff]  }
 0x47f   :  { %v3833_v57 = vpop.eup %3832 }
 0x480   :  { %v1000_v55 = vsub.f32 %v4546_v42, %v3833_v57  ;;  %v3835_v11 = vpop.eup %3834 }
 0x482   :  { %v1001_v50 = vmul.f32 %v3835_v11, %v1000_v55  ;;  %v4693_v55 = vld [vmem:[#allocation6 + $0x7c] ss:$12 sps:$4 sm:$0xff]   ;;  %v4700_v11 = vld [vmem:[#allocation6 + $0x80] ss:$12 sps:$4 sm:$0xff]  }
 0x484   :  { %v1002_v32 = vadd.f32 %v3833_v57, %v1001_v50  ;;  %v4690_v57 = vld [vmem:[#allocation6 + $0x68] ss:$12 sps:$4 sm:$0xff]  }
 0x485   :  { %v4703_v50 = vld [vmem:[#allocation6 + $0x94] ss:$12 sps:$4 sm:$0xff]  }
 0x486   :  { %v4592_v36 = vsel %vm892_vm6, %v1002_v32, %v4546_v42  ;;  %v1007_v52 = vsel %vm892_vm6, %v1002_v32, 0.0  ;;  %v4619_v42 = vld [vmem:[#allocation6 + $0x4c] ss:$12 sps:$4 sm:$0xff]   ;;  %v4707_v32 = vld [vmem:[#allocation6 + $0x90] ss:$12 sps:$4 sm:$0xff]  }
 0x487   :  { %v1008_v60 = vpack.c.bf16 %v1007_v52, %v1007_v52  ;;  %v1022_v61 = vpack.c.bf16 %v4592_v36, %v4592_v36  ;;  %v4715_v52 = vld [vmem:[#allocation6 + $0xa8] ss:$12 sps:$4 sm:$0xff]  }
 0x489   :  { %1010 = vst [vmem:[#allocation12 + $0xc] sm:$0xf] %v1008_v60  ;;  %1056 = vmatmul.mubr.bf16.vlgmr.msra.gmra.mrb[32].mxu0 %v1022_v61  ;;  %3428 = vmatmul.mubr.bf16.vlgmr.msra.gmra.mrb[24].mxu1 %v1022_v61 }
 0x48a   :  { %1146 = vmatpush1.bf16.msra.mxu0 %v4596_v40  ;;  %3432 = vmatpush3.bf16.msra.mxu1 %v4286_v17  ;;  %v4615_v17 = vld [vmem:[#allocation6 + $0x30] ss:$12 sps:$4 sm:$0xff]  }
 0x48b   :  { %1147 = vmatprep.subr.bf16.mxu0 %v4600_v63  ;;  %3433 = vmatprep.subr.bf16.mxu1 %v5342_v59 }
 0x48c   :  { %1177 = vmatprep.mubr.bf16.mxu0 %v5343_v51  ;;  %3447 = vmatprep.mubr.msk.bf16.mxu1 %vm4121_vm1, %v5342_v59 }
 0x48e   :  { %1148 = vmatpush1.bf16.msra.mxu0 %v4607_v34  ;;  %3434 = vmatpush3.bf16.msra.mxu1 %v4290_v18  ;;  %v4627_v18 = vld [vmem:[#allocation6 + $0x64] ss:$12 sps:$4 sm:$0xff]  }
 0x48f   :  { %1149 = vmatprep.subr.bf16.mxu0 %v4611_v41  ;;  %3435 = vmatprep.subr.bf16.mxu1 %v5342_v59 }
 0x492   :  { %1150 = vmatpush1.bf16.msra.mxu0 %v4615_v17  ;;  %3436 = vmatpush3.bf16.msra.mxu1 %v4304_v22 }
 0x493   :  { %1151 = vmatprep.subr.bf16.mxu0 %v4619_v42  ;;  %3437 = vmatprep.subr.bf16.mxu1 %v5342_v59 }
 0x496   :  { %1152 = vmatpush1.bf16.msra.mxu0 %v4623_v16  ;;  %3438 = vmatpush3.bf16.msra.mxu1 %v4317_v26 }
 0x497   :  { %1153 = vmatprep.subr.bf16.mxu0 %v4627_v18  ;;  %3439 = vmatprep.subr.bf16.mxu1 %v5342_v59 }
 0x49a   :  { %1154 = vmatpush1.bf16.msra.mxu0 %v4294_v19  ;;  %3440 = vmatpush3.bf16.msra.mxu1 %v4328_v28  ;;  %v4645_v19 = vld [vmem:[#allocation6 + $0x4] ss:$12 sps:$4 sm:$0xff]  }
 0x49b   :  { %1155 = vmatprep.subr.bf16.mxu0 %v4298_v20  ;;  %3441 = vmatprep.subr.bf16.mxu1 %v5342_v59 }
 0x49e   :  { %1156 = vmatpush1.bf16.msra.mxu0 %v4300_v21  ;;  %3442 = vmatpush3.bf16.msra.mxu1 %v4338_v30 }
 0x49f   :  { %1157 = vmatprep.subr.bf16.mxu0 %v4312_v24  ;;  %3443 = vmatprep.subr.bf16.mxu1 %v5342_v59 }
 0x4a2   :  { %1158 = vmatpush1.bf16.msra.mxu0 %v4315_v25  ;;  %3444 = vmatpush3.bf16.msra.mxu1 %v4343_v31 }
 0x4a3   :  { %1159 = vmatprep.subr.bf16.mxu0 %v4320_v27  ;;  %3445 = vmatprep.subr.bf16.mxu1 %v5342_v59 }
 0x4a6   :  { %1160 = vmatpush1.bf16.msra.mxu0 %v4330_v29  ;;  %3446 = vmatpush3.bf16.msra.mxu1 %v4350_v33 }
 0x4a7   :  { %1267 = vmatprep.subr.bf16.mxu0 %v4645_v19  ;;  %3451 = vmatprep.subr.bf16.mxu1 %v5342_v59 }
 0x55c   :  { %v1057_v20 = vpop.f32.mrb[32].mxu0  ;;  %v1098_v21 = vpop.f32.mrb[24].mxu1 }
 0x55d   :  { %v1104_v22 = vadd.f32 %v1057_v20, %v4423_v2  ;;  %v1059_v24 = vpop.f32.mrb[33].mxu0  ;;  %v3429_v25 = vpop.f32.mrb[25].mxu1  ;;  %v1118_v8 = vadd.f32 %v4450_v39, %v1098_v21 }
 0x55e   :  { %v1111_v26 = vadd.f32 %v1059_v24, %v4425_v9  ;;  %v1061_v27 = vpop.f32.mrb[34].mxu0  ;;  %v1101_v28 = vpop.f32.mrb[26].mxu1 }
 0x55f   :  { %v3061_v30 = vmul.f32 -1.442695, %v1104_v22  ;;  %v1062_v29 = vpop.f32.mrb[35].mxu0  ;;  %v3430_v0 = vpop.f32.mrb[27].mxu1 }
 0x560   :  { %v3062_v58 = vmul.f32 -1.442695, %v1111_v26 }
 0x561   :  { %3836 = vpow2.f32 %v3061_v30 }
 0x562   :  { %3838 = vpow2.f32 %v3062_v58 }
 0x56b   :  { %v3837_v5 = vpop.eup %3836 }
 0x56c   :  { %v1108_v6 = vadd.f32 1.0, %v3837_v5  ;;  %v3839_v7 = vpop.eup %3838 }
 0x56d   :  { %v1115_v13 = vadd.f32 1.0, %v3839_v7 }
 0x56e   :  { %3840 = vrcp.f32 %v1108_v6 }
 0x578   :  { %v3841_v10 = vpop.eup %3840 }
 0x579   :  { %v1119_v2 = vmul.f32 %v3841_v10, %v1118_v8  ;;  %v1135_v8 = vstv %s3063_s12 }
 0x57a   :  { %vm1136_vm8 = vcmp.lt.s32.totalorder %v4391_v35, %v1135_v8  ;;  %v3752_v8 = vld [vmem:[#allocation9 + $0x80] ss:$12 sps:$4 sm:$0xff]  }
 0x57b   :  { %v1120_v12 = vadd.f32 %v1119_v2, %v4433_v48 }
 0x57d   :  { %3842 = vtanh.f32 %v1120_v12 }
 0x57e   :  { %3844 = vrcp.f32 %v1115_v13 }
 0x587   :  { %v3843_v9 = vpop.eup %3842 }
 0x588   :  { %v1122_v15 = vsub.f32 %v4592_v36, %v3843_v9  ;;  %v3845_v43 = vpop.eup %3844 }
 0x58a   :  { %v1123_v53 = vmul.f32 %v3845_v43, %v1122_v15 }
 0x58c   :  { %v1124_v62 = vadd.f32 %v3843_v9, %v1123_v53  ;;  %v5345_v53 = vld [vmem:[#allocation20_spill] sm:$0xff] }
 0x58e   :  { %v4656_v3 = vsel %vm1014_vm7, %v1124_v62, %v4592_v36  ;;  %v1129_v23 = vsel %vm1014_vm7, %v1124_v62, 0.0  ;;  %v4711_v36 = vld [vmem:[#allocation6 + $0xac] ss:$12 sps:$4 sm:$0xff]  }
 0x58f   :  { %v1130_v4 = vpack.c.bf16 %v1129_v23, %v1129_v23  ;;  %v1144_v48 = vpack.c.bf16 %v4656_v3, %v4656_v3 }
 0x591   :  { %1132 = vst [vmem:[#allocation12 + $0x10] sm:$0xf] %v1130_v4  ;;  %1178 = vmatmul.mubr.bf16.vlgmr.msra.gmra.mrb[36].mxu0 %v1144_v48  ;;  %3448 = vmatmul.mubr.bf16.vlgmr.msra.gmra.mrb[28].mxu1 %v1144_v48 }
 0x592   :  { %1268 = vmatpush1.bf16.msra.mxu0 %v4596_v40  ;;  %3452 = vmatpush3.bf16.msra.mxu1 %v4661_v44 }
 0x593   :  { %1269 = vmatprep.subr.bf16.mxu0 %v4600_v63  ;;  %3453 = vmatprep.subr.bf16.mxu1 %v5342_v59 }
 0x594   :  { %1299 = vmatprep.mubr.bf16.mxu0 %v5343_v51  ;;  %3467 = vmatprep.mubr.msk.bf16.mxu1 %vm4121_vm1, %v5342_v59 }
 0x596   :  { %1270 = vmatpush1.bf16.msra.mxu0 %v4607_v34  ;;  %3454 = vmatpush3.bf16.msra.mxu1 %v4670_v45 }
 0x597   :  { %1271 = vmatprep.subr.bf16.mxu0 %v4611_v41  ;;  %3455 = vmatprep.subr.bf16.mxu1 %v5342_v59 }
 0x59a   :  { %1272 = vmatpush1.bf16.msra.mxu0 %v4615_v17  ;;  %3456 = vmatpush3.bf16.msra.mxu1 %v4676_v54 }
 0x59b   :  { %1273 = vmatprep.subr.bf16.mxu0 %v4619_v42  ;;  %3457 = vmatprep.subr.bf16.mxu1 %v5342_v59 }
 0x59e   :  { %1274 = vmatpush1.bf16.msra.mxu0 %v4623_v16  ;;  %3458 = vmatpush3.bf16.msra.mxu1 %v4682_v49 }
 0x59f   :  { %1275 = vmatprep.subr.bf16.mxu0 %v4627_v18  ;;  %3459 = vmatprep.subr.bf16.mxu1 %v5342_v59 }
 0x5a2   :  { %1276 = vmatpush1.bf16.msra.mxu0 %v4687_v46  ;;  %3460 = vmatpush3.bf16.msra.mxu1 %v4690_v57 }
 0x5a3   :  { %1277 = vmatprep.subr.bf16.mxu0 %v4693_v55  ;;  %3461 = vmatprep.subr.bf16.mxu1 %v5342_v59 }
 0x5a6   :  { %1278 = vmatpush1.bf16.msra.mxu0 %v4697_v1  ;;  %3462 = vmatpush3.bf16.msra.mxu1 %v4700_v11 }
 0x5a7   :  { %1279 = vmatprep.subr.bf16.mxu0 %v4703_v50  ;;  %3463 = vmatprep.subr.bf16.mxu1 %v5342_v59 }
 0x5aa   :  { %1280 = vmatpush1.bf16.msra.mxu0 %v4707_v32  ;;  %3464 = vmatpush3.bf16.msra.mxu1 %v4343_v31 }
 0x5ab   :  { %1281 = vmatprep.subr.bf16.mxu0 %v4711_v36  ;;  %3465 = vmatprep.subr.bf16.mxu1 %v5342_v59 }
 0x5ae   :  { %1282 = vmatpush1.bf16.msra.mxu0 %v4715_v52  ;;  %3466 = vmatpush3.bf16.msra.mxu1 %v4350_v33 }
 0x5af   :  { %1389 = vmatprep.subr.bf16.mxu0 %v4645_v19  ;;  %3471 = vmatprep.subr.bf16.mxu1 %v5342_v59 }
 0x664   :  { %v1179_v60 = vpop.f32.mrb[36].mxu0  ;;  %v1220_v61 = vpop.f32.mrb[28].mxu1 }
 0x665   :  { %v1226_v31 = vadd.f32 %v1179_v60, %v4427_v14  ;;  %v1181_v20 = vpop.f32.mrb[37].mxu0  ;;  %v3449_v21 = vpop.f32.mrb[29].mxu1  ;;  %v1240_v0 = vadd.f32 %v4450_v39, %v1220_v61  ;;  %v1257_v60 = vstv %s3066_s13 }
 0x666   :  { %v1233_v22 = vadd.f32 %v1181_v20, %v4429_v37  ;;  %v1183_v24 = vpop.f32.mrb[38].mxu0  ;;  %v1223_v25 = vpop.f32.mrb[30].mxu1  ;;  %vm1258_vm9 = vcmp.lt.s32.totalorder %v4391_v35, %v1257_v60  ;;  %v3728_v21 = vld [vmem:[#allocation9] ss:$12 sps:$4 sm:$0xff]  }
 0x667   :  { %v3064_v26 = vmul.f32 -1.442695, %v1226_v31  ;;  %v1184_v27 = vpop.f32.mrb[39].mxu0  ;;  %v3450_v28 = vpop.f32.mrb[31].mxu1 }
 0x668   :  { %v3065_v30 = vmul.f32 -1.442695, %v1233_v22  ;;  %v3736_v27 = vld [vmem:[#allocation9 + $0x20] ss:$12 sps:$4 sm:$0xff]  }
 0x669   :  { %3846 = vpow2.f32 %v3064_v26  ;;  %v3735_v26 = vld [vmem:[#allocation9 + $0x1c] ss:$12 sps:$4 sm:$0xff]   ;;  %v3732_v28 = vld [vmem:[#allocation12] sm:$0xff]  }
 0x66a   :  { %3848 = vpow2.f32 %v3065_v30  ;;  %v3733_v30 = vld [vmem:[#allocation9 + $0x18] ss:$12 sps:$4 sm:$0xff]  }
 0x673   :  { %v3847_v33 = vpop.eup %3846 }
 0x674   :  { %v1230_v29 = vadd.f32 1.0, %v3847_v33  ;;  %v3849_v19 = vpop.eup %3848  ;;  %v3739_v33 = vld [vmem:[#allocation9 + $0x34] ss:$12 sps:$4 sm:$0xff]  }
 0x675   :  { %v1237_v6 = vadd.f32 1.0, %v3849_v19  ;;  %v3737_v19 = vld [vmem:[#allocation9 + $0x30] ss:$12 sps:$4 sm:$0xff]  }
 0x676   :  { %3850 = vrcp.f32 %v1230_v29  ;;  %v3740_v29 = vld [vmem:[#allocation9 + $0x38] ss:$12 sps:$4 sm:$0xff]  }
 0x680   :  { %v3851_v58 = vpop.eup %3850 }
 0x681   :  { %v1241_v14 = vmul.f32 %v3851_v58, %v1240_v0  ;;  %v3743_v0 = vld [vmem:[#allocation9 + $0x4c] ss:$12 sps:$4 sm:$0xff]   ;;  %v3744_v58 = vld [vmem:[#allocation9 + $0x50] ss:$12 sps:$4 sm:$0xff]  }
 0x683   :  { %v1242_v5 = vadd.f32 %v1241_v14, %v4437_v56  ;;  %v3741_v14 = vld [vmem:[#allocation9 + $0x48] ss:$12 sps:$4 sm:$0xff]  }
 0x685   :  { %3852 = vtanh.f32 %v1242_v5  ;;  %v3747_v5 = vld [vmem:[#allocation9 + $0x64] ss:$12 sps:$4 sm:$0xff]  }
 0x686   :  { %3854 = vrcp.f32 %v1237_v6  ;;  %v3748_v6 = vld [vmem:[#allocation9 + $0x68] ss:$12 sps:$4 sm:$0xff]  }
 0x68f   :  { %v3853_v37 = vpop.eup %3852 }
 0x690   :  { %v1244_v7 = vsub.f32 %v4656_v3, %v3853_v37  ;;  %v3855_v10 = vpop.eup %3854 }
 0x692   :  { %v1245_v2 = vmul.f32 %v3855_v10, %v1244_v7  ;;  %v3751_v7 = vld [vmem:[#allocation9 + $0x7c] ss:$12 sps:$4 sm:$0xff]   ;;  %v3749_v10 = vld [vmem:[#allocation9 + $0x78] ss:$12 sps:$4 sm:$0xff]  }
 0x694   :  { %v1246_v12 = vadd.f32 %v3853_v37, %v1245_v2  ;;  %v3745_v37 = vld [vmem:[#allocation9 + $0x60] ss:$12 sps:$4 sm:$0xff]  }
 0x695   :  { %v3755_v2 = vld [vmem:[#allocation9 + $0x94] ss:$12 sps:$4 sm:$0xff]  }
 0x696   :  { %v4728_v13 = vsel %vm1136_vm8, %v1246_v12, %v4656_v3  ;;  %v1251_v9 = vsel %vm1136_vm8, %v1246_v12, 0.0  ;;  %v3756_v12 = vld [vmem:[#allocation9 + $0x98] ss:$12 sps:$4 sm:$0xff]  }
 0x697   :  { %v1252_v15 = vpack.c.bf16 %v1251_v9, %v1251_v9  ;;  %v1266_v56 = vpack.c.bf16 %v4728_v13, %v4728_v13  ;;  %v3759_v9 = vld [vmem:[#allocation9 + $0xac] ss:$12 sps:$4 sm:$0xff]  }
 0x699   :  { %1254 = vst [vmem:[#allocation12 + $0x14] sm:$0xf] %v1252_v15  ;;  %1300 = vmatmul.mubr.bf16.vlgmr.msra.gmra.mrb[40].mxu0 %v1266_v56  ;;  %3468 = vmatmul.mubr.bf16.vlgmr.msra.gmra.mrb[32].mxu1 %v1266_v56  ;;  %v3760_v15 = vld [vmem:[#allocation9 + $0xb0] ss:$12 sps:$4 sm:$0xff]   ;;  %v3757_v56 = vld [vmem:[#allocation9 + $0xa8] ss:$12 sps:$4 sm:$0xff]  }
 0x69a   :  { %1390 = vmatpush1.bf16.msra.mxu0 %v4596_v40  ;;  %3472 = vmatpush3.bf16.msra.mxu1 %v4661_v44  ;;  %v3978_v40 = vld [vmem:[#allocation6 + $0x98] ss:$12 sps:$4 sm:$0xff]  }
 0x69b   :  { %1391 = vmatprep.subr.bf16.mxu0 %v4600_v63  ;;  %3473 = vmatprep.subr.bf16.mxu1 %v5342_v59  ;;  %v3979_v63 = vld [vmem:[#allocation6 + $0xb0] ss:$12 sps:$4 sm:$0xff]  }
 0x69c   :  { %1421 = vmatprep.mubr.bf16.mxu0 %v5343_v51  ;;  %3487 = vmatprep.mubr.msk.bf16.mxu1 %vm4121_vm1, %v5342_v59 }
 0x69e   :  { %1392 = vmatpush1.bf16.msra.mxu0 %v4607_v34  ;;  %3474 = vmatpush3.bf16.msra.mxu1 %v4670_v45  ;;  %v3730_v34 = vld [vmem:[#allocation9 + $0x4] ss:$12 sps:$4 sm:$0xff]  }
 0x69f   :  { %1393 = vmatprep.subr.bf16.mxu0 %v4611_v41  ;;  %3475 = vmatprep.subr.bf16.mxu1 %v5342_v59  ;;  %v3731_v41 = vld [vmem:[#allocation9 + $0x8] ss:$12 sps:$4 sm:$0xff]  }
 0x6a2   :  { %1394 = vmatpush1.bf16.msra.mxu0 %v4615_v17  ;;  %3476 = vmatpush3.bf16.msra.mxu1 %v4676_v54 }
 0x6a3   :  { %1395 = vmatprep.subr.bf16.mxu0 %v4619_v42  ;;  %3477 = vmatprep.subr.bf16.mxu1 %v5342_v59 }
 0x6a6   :  { %1396 = vmatpush1.bf16.msra.mxu0 %v4623_v16  ;;  %3478 = vmatpush3.bf16.msra.mxu1 %v4682_v49  ;;  %v5344_v16 = vld [vmem:[#allocation19_spill] sm:$0xff] }
 0x6a7   :  { %1397 = vmatprep.subr.bf16.mxu0 %v4627_v18  ;;  %3479 = vmatprep.subr.bf16.mxu1 %v5342_v59 }
 0x6aa   :  { %1398 = vmatpush1.bf16.msra.mxu0 %v4687_v46  ;;  %3480 = vmatpush3.bf16.msra.mxu1 %v4690_v57 }
 0x6ab   :  { %1399 = vmatprep.subr.bf16.mxu0 %v4693_v55  ;;  %3481 = vmatprep.subr.bf16.mxu1 %v5342_v59 }
 0x6ae   :  { %1400 = vmatpush1.bf16.msra.mxu0 %v4697_v1  ;;  %3482 = vmatpush3.bf16.msra.mxu1 %v4700_v11  ;;  %v5346_v11 = vld [vmem:[#allocation17_spill] sm:$0xff] }
 0x6af   :  { %1401 = vmatprep.subr.bf16.mxu0 %v4703_v50  ;;  %3483 = vmatprep.subr.bf16.mxu1 %v5342_v59 }
 0x6b2   :  { %1402 = vmatpush1.bf16.msra.mxu0 %v4707_v32  ;;  %3484 = vmatpush3.bf16.msra.mxu1 %v3978_v40  ;;  %v3761_v40 = vld [vmem:[#allocation12 + $0x8] sm:$0xff]  }
 0x6b3   :  { %1403 = vmatprep.subr.bf16.mxu0 %v4711_v36  ;;  %3485 = vmatprep.subr.bf16.mxu1 %v5342_v59 }
 0x6b6   :  { %1404 = vmatpush1.bf16.msra.mxu0 %v4715_v52  ;;  %3486 = vmatpush3.bf16.msra.mxu1 %v3979_v63  ;;  %v3762_v63 = vld [vmem:[#allocation12 + $0x10] sm:$0xff]  }
 0x6b7   :  { %1747 = vmatprep.subr.bf16.mxu0 %v3730_v34  ;;  %3491 = vmatprep.subr.bf16.mxu1 %v3731_v41  ;;  %v4779_v34 = vld [vmem:[#allocation11 + $0x4] ss:$12 sps:$4 sm:$0xff]  }
 0x76c   :  { %v1301_v17 = vpop.f32.mrb[40].mxu0  ;;  %v1342_v42 = vpop.f32.mrb[32].mxu1 }
 0x76d   :  { %v1348_v18 = vadd.f32 %v1301_v17, %v5344_v16  ;;  %v1303_v38 = vpop.f32.mrb[41].mxu0  ;;  %v3469_v43 = vpop.f32.mrb[33].mxu1  ;;  %v1362_v57 = vadd.f32 %v4450_v39, %v1342_v42  ;;  %v4785_v17 = vld [vmem:[#allocation11 + $0x1c] ss:$12 sps:$4 sm:$0xff]   ;;  %v4787_v42 = vld [vmem:[#allocation11 + $0x18] ss:$12 sps:$4 sm:$0xff]  }
 0x76e   :  { %v1355_v62 = vadd.f32 %v1303_v38, %v5345_v53  ;;  %v1305_v3 = vpop.f32.mrb[42].mxu0  ;;  %v1345_v23 = vpop.f32.mrb[34].mxu1  ;;  %v4791_v16 = vld [vmem:[#allocation11 + $0x34] ss:$12 sps:$4 sm:$0xff]   ;;  %v4797_v38 = vld [vmem:[#allocation11 + $0x4c] ss:$12 sps:$4 sm:$0xff]  }
 0x76f   :  { %v3067_v4 = vmul.f32 -1.442695, %v1348_v18  ;;  %v1306_v48 = vpop.f32.mrb[43].mxu0  ;;  %v3470_v44 = vpop.f32.mrb[35].mxu1  ;;  %v4793_v18 = vld [vmem:[#allocation11 + $0x30] ss:$12 sps:$4 sm:$0xff]  }
 0x770   :  { %v3068_v45 = vmul.f32 -1.442695, %v1355_v62  ;;  %v4799_v43 = vld [vmem:[#allocation11 + $0x48] ss:$12 sps:$4 sm:$0xff]   ;;  %v4803_v53 = vld [vmem:[#allocation11 + $0x64] ss:$12 sps:$4 sm:$0xff]  }
 0x771   :  { %3856 = vpow2.f32 %v3067_v4  ;;  %v4805_v62 = vld [vmem:[#allocation11 + $0x60] ss:$12 sps:$4 sm:$0xff]   ;;  %v4807_v3 = vld [vmem:[#allocation11 + $0x7c] ss:$12 sps:$4 sm:$0xff]   ;;  %v4811_v23 = vld [vmem:[#allocation11 + $0x78] ss:$12 sps:$4 sm:$0xff]  }
 0x772   :  { %3858 = vpow2.f32 %v3068_v45  ;;  %v4815_v4 = vld [vmem:[#allocation11 + $0x94] ss:$12 sps:$4 sm:$0xff]   ;;  %v4819_v44 = vld [vmem:[#allocation11 + $0x90] ss:$12 sps:$4 sm:$0xff]   ;;  %v4821_v45 = vld [vmem:[#allocation11 + $0xac] ss:$12 sps:$4 sm:$0xff]  }
 0x773   :  { %v4817_v48 = vld [vmem:[#allocation11 + $0x8] ss:$12 sps:$4 sm:$0xff]  }
 0x77b   :  { %v3857_v54 = vpop.eup %3856 }
 0x77c   :  { %v1352_v49 = vadd.f32 1.0, %v3857_v54  ;;  %v3859_v46 = vpop.eup %3858  ;;  %v4825_v54 = vld [vmem:[#allocation11 + $0x20] ss:$12 sps:$4 sm:$0xff]  }
 0x77d   :  { %v1359_v32 = vadd.f32 1.0, %v3859_v46  ;;  %v4835_v46 = vld [vmem:[#allocation11 + $0x38] ss:$12 sps:$4 sm:$0xff]  }
 0x77e   :  { %3860 = vrcp.f32 %v1352_v49  ;;  %v4829_v49 = vld [vmem:[#allocation11 + $0xa8] ss:$12 sps:$4 sm:$0xff]  }
 0x788   :  { %v3861_v55 = vpop.eup %3860 }
 0x789   :  { %v1363_v1 = vmul.f32 %v3861_v55, %v1362_v57  ;;  %v4839_v57 = vld [vmem:[#allocation11 + $0x50] ss:$12 sps:$4 sm:$0xff]   ;;  %v4843_v55 = vld [vmem:[#allocation11 + $0x68] ss:$12 sps:$4 sm:$0xff]  }
 0x78b   :  { %v1364_v50 = vadd.f32 %v1363_v1, %v5346_v11  ;;  %v4847_v1 = vld [vmem:[#allocation11 + $0x80] ss:$12 sps:$4 sm:$0xff]   ;;  %v4851_v11 = vld [vmem:[#allocation11 + $0x98] ss:$12 sps:$4 sm:$0xff]  }
 0x78d   :  { %3862 = vtanh.f32 %v1364_v50  ;;  %v4855_v50 = vld [vmem:[#allocation11 + $0xb0] ss:$12 sps:$4 sm:$0xff]  }
 0x78e   :  { %3864 = vrcp.f32 %v1359_v32 }
 0x797   :  { %v3863_v36 = vpop.eup %3862 }
 0x798   :  { %v1366_v52 = vsub.f32 %v4728_v13, %v3863_v36  ;;  %v3865_v61 = vpop.eup %3864 }
 0x79a   :  { %v1367_v31 = vmul.f32 %v3865_v61, %v1366_v52  ;;  %v5347_v52 = vld [vmem:[#allocation21_spill] sm:$0xff] }
 0x79c   :  { %v1368_v20 = vadd.f32 %v3863_v36, %v1367_v31 }
 0x79e   :  { %v4770_v39 = vsel %vm1258_vm9, %v1368_v20, %v4728_v13  ;;  %v1373_v22 = vsel %vm1258_vm9, %v1368_v20, 0.0  ;;  %v3753_v13 = vld [vmem:[#allocation9 + $0x90] ss:$12 sps:$4 sm:$0xff]  }
 0x79f   :  { %v1374_v24 = vpack.c.bf16 %v1373_v22, %v1373_v22  ;;  %v1388_v25 = vpack.c.bf16 %v4770_v39, %v4770_v39 }
 0x7a1   :  { %1376 = vst [vmem:[#allocation12 + $0x18] sm:$0xf] %v1374_v24  ;;  %1422 = vmatmul.mubr.bf16.vlgmr.msra.gmra.mrb[44].mxu0 %v1388_v25  ;;  %3488 = vmatmul.mubr.bf16.vlgmr.msra.gmra.mrb[36].mxu1 %v1388_v25 }
 0x7a2   :  { %1748 = vmatpush1.bf16.msra.mxu0 %v3728_v21  ;;  %3492 = vmatpush3.bf16.msra.mxu1 %v3731_v41  ;;  %v4781_v41 = vld [vmem:[#allocation11] ss:$12 sps:$4 sm:$0xff]  }
 0x7a3   :  { %3507 = vmatprep.mubr.bf16.mxu1 %v3732_v28  ;;  %1749 = vmatprep.subr.bf16.mxu0 %v3735_v26 }
 0x7a4   :  { %3493 = vmatprep.subr.bf16.mxu1 %v3736_v27  ;;  %1779 = vmatprep.mubr.bf16.mxu0 %v5343_v51 }
 0x7a6   :  { %1750 = vmatpush1.bf16.msra.mxu0 %v3733_v30  ;;  %3494 = vmatpush3.bf16.msra.mxu1 %v3736_v27 }
 0x7a7   :  { %1751 = vmatprep.subr.bf16.mxu0 %v3739_v33  ;;  %3495 = vmatprep.subr.bf16.mxu1 %v3740_v29 }
 0x7aa   :  { %1752 = vmatpush1.bf16.msra.mxu0 %v3737_v19  ;;  %3496 = vmatpush3.bf16.msra.mxu1 %v3740_v29  ;;  %v3980_v29 = vld [vmem:[%s5322_s5] ss:$0 sm:$0xff]  ;;  %s3069_s5 = sld [smem:[#allocation5 + $0x7]] }
 0x7ab   :  { %1753 = vmatprep.subr.bf16.mxu0 %v3743_v0  ;;  %3497 = vmatprep.subr.bf16.mxu1 %v3744_v58 }
 0x7ae   :  { %1754 = vmatpush1.bf16.msra.mxu0 %v3741_v14  ;;  %3498 = vmatpush3.bf16.msra.mxu1 %v3744_v58 }
 0x7af   :  { %1755 = vmatprep.subr.bf16.mxu0 %v3747_v5  ;;  %3499 = vmatprep.subr.bf16.mxu1 %v3748_v6 }
 0x7b2   :  { %1756 = vmatpush1.bf16.msra.mxu0 %v3745_v37  ;;  %3500 = vmatpush3.bf16.msra.mxu1 %v3748_v6 }
 0x7b3   :  { %1757 = vmatprep.subr.bf16.mxu0 %v3751_v7  ;;  %3501 = vmatprep.subr.bf16.mxu1 %v3752_v8 }
 0x7b6   :  { %1758 = vmatpush1.bf16.msra.mxu0 %v3749_v10  ;;  %3502 = vmatpush3.bf16.msra.mxu1 %v3752_v8 }
 0x7b7   :  { %1759 = vmatprep.subr.bf16.mxu0 %v3755_v2  ;;  %3503 = vmatprep.subr.bf16.mxu1 %v3756_v12 }
 0x7ba   :  { %1760 = vmatpush1.bf16.msra.mxu0 %v3753_v13  ;;  %3504 = vmatpush3.bf16.msra.mxu1 %v3756_v12 }
 0x7bb   :  { %1761 = vmatprep.subr.bf16.mxu0 %v3759_v9  ;;  %3505 = vmatprep.subr.bf16.mxu1 %v3760_v15 }
 0x7be   :  { %1762 = vmatpush1.bf16.msra.mxu0 %v3757_v56  ;;  %3506 = vmatpush3.bf16.msra.mxu1 %v3760_v15 }
 0x7bf   :  { %3515 = vmatprep.subr.bf16.mxu1 %v5342_v59  ;;  %2046 = vmatprep.subr.bf16.mxu0 %v4779_v34 }
 0x7c1   :  { %1780 = vmatmul.mubr.bf16.vlgmr.msra.gmra.mrb[48].mxu0 %v3732_v28  ;;  %3508 = vmatmul.mubr.bf16.vlgmr.msra.gmra.mrb[40].mxu1 %v3761_v40 }
 0x7c2   :  { %3511 = vmatprep.mubr.bf16.mxu1 %v3762_v63  ;;  %1789 = vmatprep.mubr.bf16.mxu0 %v5343_v51 }
 0x7c3   :  { %2047 = vmatpush1.bf16.msra.mxu0 %v4781_v41  ;;  %3516 = vmatpush3.bf16.msra.mxu1 %v4817_v48 }
 0x7c4   :  { %2048 = vmatprep.subr.bf16.mxu0 %v4785_v17  ;;  %3517 = vmatprep.subr.bf16.mxu1 %v5342_v59 }
 0x7c7   :  { %2049 = vmatpush1.bf16.msra.mxu0 %v4787_v42  ;;  %3518 = vmatpush3.bf16.msra.mxu1 %v4825_v54 }
 0x7c8   :  { %2050 = vmatprep.subr.bf16.mxu0 %v4791_v16  ;;  %3519 = vmatprep.subr.bf16.mxu1 %v5342_v59 }
 0x7c9   :  { %1790 = vmatmul.mubr.bf16.gmra.mrb[52].mxu0 %v3761_v40 }
 0x7ca   :  { %1799 = vmatprep.mubr.bf16.mxu0 %v5343_v51 }
 0x7cb   :  { %2051 = vmatpush1.bf16.msra.mxu0 %v4793_v18  ;;  %3520 = vmatpush3.bf16.msra.mxu1 %v4835_v46 }
 0x7cc   :  { %2052 = vmatprep.subr.bf16.mxu0 %v4797_v38  ;;  %3521 = vmatprep.subr.bf16.mxu1 %v5342_v59 }
 0x7cf   :  { %2053 = vmatpush1.bf16.msra.mxu0 %v4799_v43  ;;  %3522 = vmatpush3.bf16.msra.mxu1 %v4839_v57 }
 0x7d0   :  { %2054 = vmatprep.subr.bf16.mxu0 %v4803_v53  ;;  %3523 = vmatprep.subr.bf16.mxu1 %v5342_v59 }
 0x7d1   :  { %1800 = vmatmul.mubr.bf16.gmra.mrb[56].mxu0 %v3762_v63 }
 0x7d2   :  { %1809 = vmatprep.mubr.bf16.mxu0 %v5343_v51 }
 0x7d3   :  { %2055 = vmatpush1.bf16.msra.mxu0 %v4805_v62  ;;  %3524 = vmatpush3.bf16.msra.mxu1 %v4843_v55 }
 0x7d4   :  { %2056 = vmatprep.subr.bf16.mxu0 %v4807_v3  ;;  %3525 = vmatprep.subr.bf16.mxu1 %v5342_v59 }
 0x7d7   :  { %2057 = vmatpush1.bf16.msra.mxu0 %v4811_v23  ;;  %3526 = vmatpush3.bf16.msra.mxu1 %v4847_v1 }
 0x7d8   :  { %2058 = vmatprep.subr.bf16.mxu0 %v4815_v4  ;;  %3527 = vmatprep.subr.bf16.mxu1 %v5342_v59 }
 0x7db   :  { %2059 = vmatpush1.bf16.msra.mxu0 %v4819_v44  ;;  %3528 = vmatpush3.bf16.msra.mxu1 %v4851_v11 }
 0x7dc   :  { %2060 = vmatprep.subr.bf16.mxu0 %v4821_v45  ;;  %3529 = vmatprep.subr.bf16.mxu1 %v5342_v59 }
 0x7df   :  { %2061 = vmatpush1.bf16.msra.mxu0 %v4829_v49  ;;  %3530 = vmatpush3.bf16.msra.mxu1 %v4855_v50 }
 0x7e0   :  { %2163 = vmatprep.subr.bf16.mxu0 %v4779_v34  ;;  %3535 = vmatprep.subr.bf16.mxu1 %v5342_v59 }
 0x874   :  { %v1423_v32 = vpop.f32.mrb[44].mxu0  ;;  %v1464_v36 = vpop.f32.mrb[36].mxu1 }
 0x875   :  { %v1470_v60 = vadd.f32 %v1423_v32, %v5347_v52  ;;  %v1425_v61 = vpop.f32.mrb[45].mxu0  ;;  %v3489_v31 = vpop.f32.mrb[37].mxu1  ;;  %v1484_v19 = vadd.f32 %v3980_v29, %v1464_v36  ;;  %v1379_v36 = vstv %s3069_s5 }
 0x876   :  { %v1477_v20 = vadd.f32 %v1425_v61, %v4445_v47  ;;  %v1427_v21 = vpop.f32.mrb[46].mxu0  ;;  %v1467_v22 = vpop.f32.mrb[38].mxu1  ;;  %v5348_v47 = vld [vmem:[#allocation18_spill] sm:$0xff]  ;;  %vm1380_vm10 = vcmp.lt.s32.totalorder %v4391_v35, %v1379_v36 }
 0x877   :  { %v3070_v24 = vmul.f32 -1.442695, %v1470_v60  ;;  %v1428_v25 = vpop.f32.mrb[47].mxu0  ;;  %v3490_v26 = vpop.f32.mrb[39].mxu1 }
 0x878   :  { %v3071_v27 = vmul.f32 -1.442695, %v1477_v20 }
 0x879   :  { %3866 = vpow2.f32 %v3070_v24 }
 0x87a   :  { %3868 = vpow2.f32 %v3071_v27  ;;  %v1563_v27 = vld [vmem:[%s5325_s8] sm:$0x7] }
 0x883   :  { %v3867_v28 = vpop.eup %3866 }
 0x884   :  { %v1474_v30 = vadd.f32 1.0, %v3867_v28  ;;  %v3869_v33 = vpop.eup %3868 }
 0x885   :  { %v1481_v5 = vadd.f32 1.0, %v3869_v33 }
 0x886   :  { %3870 = vrcp.f32 %v1474_v30 }
 0x890   :  { %v3871_v0 = vpop.eup %3870 }
 0x891   :  { %v1485_v58 = vmul.f32 %v3871_v0, %v1484_v19 }
 0x893   :  { %v1486_v14 = vadd.f32 %v1485_v58, %v5348_v47  ;;  %v5355_v58 = vsub.s32 0, %v4391_v35 }
 0x894   :  { %v4866_v6 = vpop.f32.mrb[48].mxu0  ;;  %v4868_v37 = vpop.f32.mrb[40].mxu1 }
 0x895   :  { %3872 = vtanh.f32 %v1486_v14  ;;  %v4870_v7 = vpop.f32.mrb[49].mxu0  ;;  %v4872_v8 = vpop.f32.mrb[41].mxu1  ;;  %v4957_v47 = vrot.slane %v1563_v27, %v5355_v58 }
 0x896   :  { %v4874_v10 = vpop.f32.mrb[50].mxu0  ;;  %v4876_v2 = vpop.f32.mrb[42].mxu1  ;;  %3874 = vrcp.f32 %v1481_v5 }
 0x897   :  { %v4878_v12 = vpop.f32.mrb[51].mxu0  ;;  %v4880_v13 = vpop.f32.mrb[43].mxu1  ;;  %v1782_v36 = vadd.f32 %v4866_v6, %v4957_v47  ;;  %v4974_v6 = vld [vmem:[%s5326_s9] ss:$0 sm:$0xff]  ;;  %s3127_s9 = sld [smem:[#allocation5 + $0x1]] }
 0x89c   :  { %v4882_v9 = vpop.f32.mrb[52].mxu0 }
 0x89d   :  { %v4884_v15 = vpop.f32.mrb[53].mxu0 }
 0x89e   :  { %v4886_v56 = vpop.f32.mrb[54].mxu0 }
 0x89f   :  { %v3873_v40 = vpop.eup %3872  ;;  %v4888_v63 = vpop.f32.mrb[55].mxu0 }
 0x8a0   :  { %v1488_v32 = vsub.f32 %v4770_v39, %v3873_v40  ;;  %v3875_v52 = vpop.eup %3874  ;;  %v5349_v39 = vmov 0.0|0.0  }
 0x8a2   :  { %v1489_v60 = vmul.f32 %v3875_v52, %v1488_v32 }
 0x8a4   :  { %v1490_v61 = vadd.f32 %v3873_v40, %v1489_v60  ;;  %v4892_v31 = vpop.f32.mrb[56].mxu0  ;;  %v5357_v40 = vsub.s32 1, %v4391_v35 }
 0x8a5   :  { %v4894_v20 = vpop.f32.mrb[57].mxu0 }
 0x8a6   :  { %v1495_v21 = vsel %vm1380_vm10, %v1490_v61, 0.0  ;;  %v4896_v22 = vpop.f32.mrb[58].mxu0  ;;  %v4965_v32 = vrot.slane %v1563_v27, %v5357_v40 }
 0x8a7   :  { %v1496_v24 = vpack.c.bf16 %v1495_v21, %v1495_v21  ;;  %v4898_v25 = vpop.f32.mrb[59].mxu0 }
 0x8a8   :  { %v1784_v52 = vadd.f32 %v4870_v7, %v4965_v32  ;;  %v5358_v7 = vsub.s32 2, %v4391_v35 }
 0x8a9   :  { %1498 = vst [vmem:[#allocation12 + $0x1c] sm:$0xf] %v1496_v24 }
 0x8b0   :  { %v3781_v26 = vld [vmem:[#allocation12 + $0x18] sm:$0xff]  }
 0x8b1   :  { %1810 = vmatmul.mubr.bf16.gmra.mrb[60].mxu0 %v3781_v26  ;;  %3512 = vmatmul.mubr.bf16.gmra.mrb[44].mxu1 %v3781_v26 }
 0x8b2   :  { %2078 = vmatprep.mubr.bf16.mxu0 %v5343_v51  ;;  %3531 = vmatprep.mubr.msk.bf16.mxu1 %vm4121_vm1, %v5342_v59 }
 0x8b9   :  { %2079 = vmatmul.mubr.bf16.vlgmr.msra.gmra.mrb[64].mxu0 %v5349_v39  ;;  %3532 = vmatmul.mubr.bf16.vlgmr.msra.gmra.mrb[48].mxu1 %v5349_v39 }
 0x8ba   :  { %2164 = vmatpush1.bf16.msra.mxu0 %v4781_v41  ;;  %3536 = vmatpush3.bf16.msra.mxu1 %v4817_v48 }
 0x8bb   :  { %2165 = vmatprep.subr.bf16.mxu0 %v4785_v17  ;;  %3537 = vmatprep.subr.bf16.mxu1 %v5342_v59 }
 0x8bc   :  { %2195 = vmatprep.mubr.bf16.mxu0 %v5343_v51  ;;  %3551 = vmatprep.mubr.msk.bf16.mxu1 %vm4121_vm1, %v5342_v59 }
 0x8be   :  { %2166 = vmatpush1.bf16.msra.mxu0 %v4787_v42  ;;  %3538 = vmatpush3.bf16.msra.mxu1 %v4825_v54 }
 0x8bf   :  { %2167 = vmatprep.subr.bf16.mxu0 %v4791_v16  ;;  %3539 = vmatprep.subr.bf16.mxu1 %v5342_v59 }
 0x8c2   :  { %2168 = vmatpush1.bf16.msra.mxu0 %v4793_v18  ;;  %3540 = vmatpush3.bf16.msra.mxu1 %v4835_v46 }
 0x8c3   :  { %2169 = vmatprep.subr.bf16.mxu0 %v4797_v38  ;;  %3541 = vmatprep.subr.bf16.mxu1 %v5342_v59 }
 0x8c6   :  { %2170 = vmatpush1.bf16.msra.mxu0 %v4799_v43  ;;  %3542 = vmatpush3.bf16.msra.mxu1 %v4839_v57 }
 0x8c7   :  { %2171 = vmatprep.subr.bf16.mxu0 %v4803_v53  ;;  %3543 = vmatprep.subr.bf16.mxu1 %v5342_v59 }
 0x8ca   :  { %2172 = vmatpush1.bf16.msra.mxu0 %v4805_v62  ;;  %3544 = vmatpush3.bf16.msra.mxu1 %v4843_v55 }
 0x8cb   :  { %2173 = vmatprep.subr.bf16.mxu0 %v4807_v3  ;;  %3545 = vmatprep.subr.bf16.mxu1 %v5342_v59 }
 0x8ce   :  { %2174 = vmatpush1.bf16.msra.mxu0 %v4811_v23  ;;  %3546 = vmatpush3.bf16.msra.mxu1 %v4847_v1 }
 0x8cf   :  { %2175 = vmatprep.subr.bf16.mxu0 %v4815_v4  ;;  %3547 = vmatprep.subr.bf16.mxu1 %v5342_v59 }
 0x8d2   :  { %2176 = vmatpush1.bf16.msra.mxu0 %v4819_v44  ;;  %3548 = vmatpush3.bf16.msra.mxu1 %v4851_v11 }
 0x8d3   :  { %2177 = vmatprep.subr.bf16.mxu0 %v4821_v45  ;;  %3549 = vmatprep.subr.bf16.mxu1 %v5342_v59 }
 0x8d6   :  { %2178 = vmatpush1.bf16.msra.mxu0 %v4829_v49  ;;  %3550 = vmatpush3.bf16.msra.mxu1 %v4855_v50 }
 0x8d7   :  { %2280 = vmatprep.subr.bf16.mxu0 %v4779_v34  ;;  %3555 = vmatprep.subr.bf16.mxu1 %v5342_v59 }
 0x984   :  { %v4943_v28 = vpop.f32.mrb[60].mxu0  ;;  %v4945_v30 = vpop.f32.mrb[44].mxu1 }
 0x985   :  { %5350 = vst [vmem:[#allocation19_spill] sm:$0xff] %v4943_v28  ;;  %5351 = vst [vmem:[#allocation20_spill] sm:$0xff] %v4945_v30  ;;  %v4947_v33 = vpop.f32.mrb[61].mxu0  ;;  %v4949_v29 = vpop.f32.mrb[45].mxu1 }
 0x986   :  { %5352 = vst [vmem:[#allocation17_spill] sm:$0xff] %v4947_v33  ;;  %v4951_v19 = vpop.f32.mrb[62].mxu0  ;;  %v4953_v0 = vpop.f32.mrb[46].mxu1 }
 0x987   :  { %5353 = vst [vmem:[#allocation21_spill] sm:$0xff] %v4951_v19  ;;  %5354 = vst [vmem:[#allocation18_spill] sm:$0xff] %v4953_v0  ;;  %v4959_v14 = vpop.f32.mrb[63].mxu0  ;;  %v4961_v5 = vpop.f32.mrb[47].mxu1 }
 0x988   :  { %5356 = vst [vmem:[#allocation22_spill] sm:$0xff] %v4959_v14 }
 0x98c   :  { %v2080_v60 = vpop.f32.mrb[64].mxu0  ;;  %v2121_v61 = vpop.f32.mrb[48].mxu1 }
 0x98d   :  { %v2127_v21 = vadd.f32 %v2080_v60, %v1782_v36  ;;  %v2082_v24 = vpop.f32.mrb[65].mxu0  ;;  %v3533_v26 = vpop.f32.mrb[49].mxu1  ;;  %v4978_v36 = vrot.slane %v1563_v27, %v5358_v7  ;;  %v1788_v7 = vadd.f32 %v4878_v12, %v4965_v32 }
 0x98e   :  { %v2134_v39 = vadd.f32 %v2082_v24, %v1784_v52  ;;  %v2084_v58 = vpop.f32.mrb[66].mxu0  ;;  %v2124_v0 = vpop.f32.mrb[50].mxu1 }
 0x98f   :  { %v3125_v14 = vmul.f32 -1.442695, %v2127_v21  ;;  %v2085_v19 = vpop.f32.mrb[67].mxu0  ;;  %v3534_v30 = vpop.f32.mrb[51].mxu1  ;;  %v2141_v0 = vadd.f32 %v4974_v6, %v2121_v61  ;;  %v1910_v21 = vstv %s1909_s17 }
 0x990   :  { %v3126_v40 = vmul.f32 -1.442695, %v2134_v39  ;;  %v1855_v30 = vadd.f32 %v4872_v8, %v4978_v36  ;;  %vm1911_vm11 = vcmp.lt.s32.totalorder %v4391_v35, %v1910_v21 }
 0x991   :  { %3876 = vpow2.f32 %v3125_v14  ;;  %vm3154_vm12 = vmpackc.low %vm1911_vm11, %vm1911_vm11 }
 0x992   :  { %3878 = vpow2.f32 %v3126_v40  ;;  %v1786_v40 = vadd.f32 %v4874_v10, %v4957_v47 }
 0x99b   :  { %v3877_v33 = vpop.eup %3876 }
 0x99c   :  { %v2131_v28 = vadd.f32 1.0, %v3877_v33  ;;  %v3879_v52 = vpop.eup %3878 }
 0x99d   :  { %v2138_v33 = vadd.f32 1.0, %v3879_v52 }
 0x99e   :  { %3880 = vrcp.f32 %v2131_v28 }
 0x9a8   :  { %v3881_v19 = vpop.eup %3880 }
 0x9a9   :  { %v2142_v14 = vmul.f32 %v3881_v19, %v2141_v0 }
 0x9ab   :  { %v2143_v60 = vadd.f32 %v2142_v14, %v1855_v30 }
 0x9ad   :  { %3882 = vtanh.f32 %v2143_v60 }
 0x9ae   :  { %3884 = vrcp.f32 %v2138_v33 }
 0x9b7   :  { %v3883_v28 = vpop.eup %3882 }
 0x9b8   :  { %v2145_v24 = vsub.f32 0.0, %v3883_v28  ;;  %v3885_v26 = vpop.eup %3884 }
 0x9ba   :  { %v2146_v27 = vmul.f32 %v3885_v26, %v2145_v24 }
 0x9bc   :  { %v2147_v39 = vadd.f32 %v3883_v28, %v2146_v27 }
 0x9be   :  { %v4984_v61 = vsel %vm1911_vm11, %v2147_v39, 0.0  ;;  %v3155_v58 = vpack.c.bf16 %v2147_v39, %v2147_v39 }
 0x9bf   :  { %v2153_v8 = vpack.c.bf16 %v4984_v61, %v4984_v61 }
 0x9c0   :  { %3156 = vmatmul.mubr.msk.bf16.vlgmr.msra.gmra.mrb[68].mxu0 %vm3154_vm12, %v3155_v58  ;;  %3552 = vmatmul.mubr.msk.bf16.vlgmr.msra.gmra.mrb[52].mxu1 %vm3154_vm12, %v3155_v58 }
 0x9c1   :  { %2154 = vst [vmem:[#allocation12] sm:$0xf] %v2153_v8  ;;  %2281 = vmatpush1.bf16.msra.mxu0 %v4781_v41  ;;  %3556 = vmatpush3.bf16.msra.mxu1 %v4817_v48 }
 0x9c2   :  { %2282 = vmatprep.subr.bf16.mxu0 %v4785_v17  ;;  %3557 = vmatprep.subr.bf16.mxu1 %v5342_v59 }
 0x9c3   :  { %2312 = vmatprep.mubr.bf16.mxu0 %v5343_v51  ;;  %3571 = vmatprep.mubr.msk.bf16.mxu1 %vm4121_vm1, %v5342_v59 }
 0x9c5   :  { %2283 = vmatpush1.bf16.msra.mxu0 %v4787_v42  ;;  %3558 = vmatpush3.bf16.msra.mxu1 %v4825_v54 }
 0x9c6   :  { %2284 = vmatprep.subr.bf16.mxu0 %v4791_v16  ;;  %3559 = vmatprep.subr.bf16.mxu1 %v5342_v59 }
 0x9c9   :  { %2285 = vmatpush1.bf16.msra.mxu0 %v4793_v18  ;;  %3560 = vmatpush3.bf16.msra.mxu1 %v4835_v46 }
 0x9ca   :  { %2286 = vmatprep.subr.bf16.mxu0 %v4797_v38  ;;  %3561 = vmatprep.subr.bf16.mxu1 %v5342_v59 }
 0x9cd   :  { %2287 = vmatpush1.bf16.msra.mxu0 %v4799_v43  ;;  %3562 = vmatpush3.bf16.msra.mxu1 %v4839_v57 }
 0x9ce   :  { %2288 = vmatprep.subr.bf16.mxu0 %v4803_v53  ;;  %3563 = vmatprep.subr.bf16.mxu1 %v5342_v59 }
 0x9d1   :  { %2289 = vmatpush1.bf16.msra.mxu0 %v4805_v62  ;;  %3564 = vmatpush3.bf16.msra.mxu1 %v4843_v55 }
 0x9d2   :  { %2290 = vmatprep.subr.bf16.mxu0 %v4807_v3  ;;  %3565 = vmatprep.subr.bf16.mxu1 %v5342_v59 }
 0x9d5   :  { %2291 = vmatpush1.bf16.msra.mxu0 %v4811_v23  ;;  %3566 = vmatpush3.bf16.msra.mxu1 %v4847_v1 }
 0x9d6   :  { %2292 = vmatprep.subr.bf16.mxu0 %v4815_v4  ;;  %3567 = vmatprep.subr.bf16.mxu1 %v5342_v59 }
 0x9d9   :  { %2293 = vmatpush1.bf16.msra.mxu0 %v4819_v44  ;;  %3568 = vmatpush3.bf16.msra.mxu1 %v4851_v11 }
 0x9da   :  { %2294 = vmatprep.subr.bf16.mxu0 %v4821_v45  ;;  %3569 = vmatprep.subr.bf16.mxu1 %v5342_v59 }
 0x9dd   :  { %2295 = vmatpush1.bf16.msra.mxu0 %v4829_v49  ;;  %3570 = vmatpush3.bf16.msra.mxu1 %v4855_v50 }
 0x9de   :  { %2397 = vmatprep.subr.bf16.mxu0 %v4779_v34  ;;  %3575 = vmatprep.subr.bf16.mxu1 %v5342_v59 }
 0xa93   :  { %v2197_v0 = vpop.f32.mrb[68].mxu0  ;;  %v2238_v52 = vpop.f32.mrb[52].mxu1 }
 0xa94   :  { %v2244_v19 = vadd.f32 %v2197_v0, %v1786_v40  ;;  %v2199_v30 = vpop.f32.mrb[69].mxu0  ;;  %v3553_v14 = vpop.f32.mrb[53].mxu1  ;;  %v2258_v12 = vadd.f32 %v4974_v6, %v2238_v52  ;;  %v1858_v40 = vadd.f32 %v4880_v13, %v4978_v36 }
 0xa95   :  { %v2251_v33 = vadd.f32 %v2199_v30, %v1788_v7  ;;  %v2201_v60 = vpop.f32.mrb[70].mxu0  ;;  %v2241_v28 = vpop.f32.mrb[54].mxu1 }
 0xa96   :  { %v3128_v21 = vmul.f32 -1.442695, %v2244_v19  ;;  %v2202_v24 = vpop.f32.mrb[71].mxu0  ;;  %v3554_v26 = vpop.f32.mrb[55].mxu1 }
 0xa97   :  { %v3129_v27 = vmul.f32 -1.442695, %v2251_v33  ;;  %v2156_v33 = vstv %s3127_s9 }
 0xa98   :  { %3886 = vpow2.f32 %v3128_v21  ;;  %vm2157_vm13 = vcmp.lt.s32.totalorder %v4391_v35, %v2156_v33 }
 0xa99   :  { %3888 = vpow2.f32 %v3129_v27  ;;  %v1794_v27 = vadd.f32 %v4884_v15, %v4965_v32 }
 0xaa2   :  { %v3887_v39 = vpop.eup %3886 }
 0xaa3   :  { %v2248_v58 = vadd.f32 1.0, %v3887_v39  ;;  %v3889_v10 = vpop.eup %3888 }
 0xaa4   :  { %v2255_v30 = vadd.f32 1.0, %v3889_v10 }
 0xaa5   :  { %3890 = vrcp.f32 %v2248_v58 }
 0xaaf   :  { %v3891_v8 = vpop.eup %3890 }
 0xab0   :  { %v2259_v0 = vmul.f32 %v3891_v8, %v2258_v12 }
 0xab2   :  { %v2260_v7 = vadd.f32 %v2259_v0, %v1858_v40 }
 0xab4   :  { %3892 = vtanh.f32 %v2260_v7 }
 0xab5   :  { %3894 = vrcp.f32 %v2255_v30 }
 0xabe   :  { %v3893_v19 = vpop.eup %3892 }
 0xabf   :  { %v2262_v14 = vsub.f32 %v4984_v61, %v3893_v19  ;;  %v3895_v60 = vpop.eup %3894 }
 0xac1   :  { %v2263_v28 = vmul.f32 %v3895_v60, %v2262_v14 }
 0xac3   :  { %v2264_v21 = vadd.f32 %v3893_v19, %v2263_v28 }
 0xac5   :  { %v5033_v52 = vsel %vm2157_vm13, %v2264_v21, %v4984_v61  ;;  %v2269_v24 = vsel %vm2157_vm13, %v2264_v21, 0.0  ;;  %v1792_v61 = vadd.f32 %v4882_v9, %v4957_v47 }
 0xac6   :  { %v2270_v13 = vpack.c.bf16 %v2269_v24, %v2269_v24  ;;  %v2279_v26 = vpack.c.bf16 %v5033_v52, %v5033_v52  ;;  %v1863_v24 = vadd.f32 %v4868_v37, %v4978_v36 }
 0xac8   :  { %2271 = vst [vmem:[#allocation12 + $0x4] sm:$0xf] %v2270_v13  ;;  %2313 = vmatmul.mubr.bf16.vlgmr.msra.gmra.mrb[72].mxu0 %v2279_v26  ;;  %3572 = vmatmul.mubr.bf16.vlgmr.msra.gmra.mrb[56].mxu1 %v2279_v26 }
 0xac9   :  { %2398 = vmatpush1.bf16.msra.mxu0 %v4781_v41  ;;  %3576 = vmatpush3.bf16.msra.mxu1 %v4817_v48 }
 0xaca   :  { %2399 = vmatprep.subr.bf16.mxu0 %v4785_v17  ;;  %3577 = vmatprep.subr.bf16.mxu1 %v5342_v59 }
 0xacb   :  { %2429 = vmatprep.mubr.bf16.mxu0 %v5343_v51  ;;  %3591 = vmatprep.mubr.msk.bf16.mxu1 %vm4121_vm1, %v5342_v59 }
 0xacd   :  { %2400 = vmatpush1.bf16.msra.mxu0 %v4787_v42  ;;  %3578 = vmatpush3.bf16.msra.mxu1 %v4825_v54 }
 0xace   :  { %2401 = vmatprep.subr.bf16.mxu0 %v4791_v16  ;;  %3579 = vmatprep.subr.bf16.mxu1 %v5342_v59 }
 0xad1   :  { %2402 = vmatpush1.bf16.msra.mxu0 %v4793_v18  ;;  %3580 = vmatpush3.bf16.msra.mxu1 %v4835_v46 }
 0xad2   :  { %2403 = vmatprep.subr.bf16.mxu0 %v4797_v38  ;;  %3581 = vmatprep.subr.bf16.mxu1 %v5342_v59 }
 0xad5   :  { %2404 = vmatpush1.bf16.msra.mxu0 %v4799_v43  ;;  %3582 = vmatpush3.bf16.msra.mxu1 %v4839_v57 }
 0xad6   :  { %2405 = vmatprep.subr.bf16.mxu0 %v4803_v53  ;;  %3583 = vmatprep.subr.bf16.mxu1 %v5342_v59 }
 0xad9   :  { %2406 = vmatpush1.bf16.msra.mxu0 %v4805_v62  ;;  %3584 = vmatpush3.bf16.msra.mxu1 %v4843_v55 }
 0xada   :  { %2407 = vmatprep.subr.bf16.mxu0 %v4807_v3  ;;  %3585 = vmatprep.subr.bf16.mxu1 %v5342_v59 }
 0xadd   :  { %2408 = vmatpush1.bf16.msra.mxu0 %v4811_v23  ;;  %3586 = vmatpush3.bf16.msra.mxu1 %v4847_v1 }
 0xade   :  { %2409 = vmatprep.subr.bf16.mxu0 %v4815_v4  ;;  %3587 = vmatprep.subr.bf16.mxu1 %v5342_v59 }
 0xae1   :  { %2410 = vmatpush1.bf16.msra.mxu0 %v4819_v44  ;;  %3588 = vmatpush3.bf16.msra.mxu1 %v4851_v11 }
 0xae2   :  { %2411 = vmatprep.subr.bf16.mxu0 %v4821_v45  ;;  %3589 = vmatprep.subr.bf16.mxu1 %v5342_v59 }
 0xae5   :  { %2412 = vmatpush1.bf16.msra.mxu0 %v4829_v49  ;;  %3590 = vmatpush3.bf16.msra.mxu1 %v4855_v50 }
 0xae6   :  { %2514 = vmatprep.subr.bf16.mxu0 %v4779_v34  ;;  %3595 = vmatprep.subr.bf16.mxu1 %v5342_v59 }
 0xb9b   :  { %v2314_v39 = vpop.f32.mrb[72].mxu0  ;;  %v2355_v58 = vpop.f32.mrb[56].mxu1 }
 0xb9c   :  { %v2361_v10 = vadd.f32 %v2314_v39, %v1792_v61  ;;  %v2316_v12 = vpop.f32.mrb[73].mxu0  ;;  %v3573_v8 = vpop.f32.mrb[57].mxu1  ;;  %v2375_v15 = vadd.f32 %v4974_v6, %v2355_v58 }
 0xb9d   :  { %v2368_v40 = vadd.f32 %v2316_v12, %v1794_v27  ;;  %v2318_v0 = vpop.f32.mrb[74].mxu0  ;;  %v2358_v7 = vpop.f32.mrb[58].mxu1 }
 0xb9e   :  { %v3131_v30 = vmul.f32 -1.442695, %v2361_v10  ;;  %v2319_v19 = vpop.f32.mrb[75].mxu0  ;;  %v3574_v14 = vpop.f32.mrb[59].mxu1  ;;  %v2273_v10 = vstv %s3130_s18 }
 0xb9f   :  { %v3132_v33 = vmul.f32 -1.442695, %v2368_v40  ;;  %vm2274_vm14 = vcmp.lt.s32.totalorder %v4391_v35, %v2273_v10 }
 0xba0   :  { %3896 = vpow2.f32 %v3131_v30  ;;  %v1798_v30 = vadd.f32 %v4888_v63, %v4965_v32 }
 0xba1   :  { %3898 = vpow2.f32 %v3132_v33 }
 0xbaa   :  { %v3897_v60 = vpop.eup %3896 }
 0xbab   :  { %v2365_v28 = vadd.f32 1.0, %v3897_v60  ;;  %v3899_v9 = vpop.eup %3898 }
 0xbac   :  { %v2372_v61 = vadd.f32 1.0, %v3899_v9 }
 0xbad   :  { %3900 = vrcp.f32 %v2365_v28 }
 0xbb7   :  { %v3901_v21 = vpop.eup %3900 }
 0xbb8   :  { %v2376_v13 = vmul.f32 %v3901_v21, %v2375_v15 }
 0xbba   :  { %v2377_v26 = vadd.f32 %v2376_v13, %v1863_v24 }
 0xbbc   :  { %3902 = vtanh.f32 %v2377_v26 }
 0xbbd   :  { %3904 = vrcp.f32 %v2372_v61 }
 0xbc6   :  { %v3903_v27 = vpop.eup %3902 }
 0xbc7   :  { %v2379_v39 = vsub.f32 %v5033_v52, %v3903_v27  ;;  %v3905_v12 = vpop.eup %3904 }
 0xbc9   :  { %v2380_v8 = vmul.f32 %v3905_v12, %v2379_v39  ;;  %v1866_v12 = vadd.f32 %v4876_v2, %v4978_v36 }
 0xbcb   :  { %v2381_v40 = vadd.f32 %v3903_v27, %v2380_v8 }
 0xbcd   :  { %v5082_v58 = vsel %vm2274_vm14, %v2381_v40, %v5033_v52  ;;  %v2386_v0 = vsel %vm2274_vm14, %v2381_v40, 0.0  ;;  %v1796_v52 = vadd.f32 %v4886_v56, %v4957_v47 }
 0xbce   :  { %v2387_v37 = vpack.c.bf16 %v2386_v0, %v2386_v0  ;;  %v2396_v7 = vpack.c.bf16 %v5082_v58, %v5082_v58 }
 0xbd0   :  { %2388 = vst [vmem:[#allocation12 + $0x8] sm:$0xf] %v2387_v37  ;;  %2430 = vmatmul.mubr.bf16.vlgmr.msra.gmra.mrb[76].mxu0 %v2396_v7  ;;  %3592 = vmatmul.mubr.bf16.vlgmr.msra.gmra.mrb[60].mxu1 %v2396_v7 }
 0xbd1   :  { %2515 = vmatpush1.bf16.msra.mxu0 %v4781_v41  ;;  %3596 = vmatpush3.bf16.msra.mxu1 %v4817_v48 }
 0xbd2   :  { %2516 = vmatprep.subr.bf16.mxu0 %v4785_v17  ;;  %3597 = vmatprep.subr.bf16.mxu1 %v5342_v59 }
 0xbd3   :  { %2546 = vmatprep.mubr.bf16.mxu0 %v5343_v51  ;;  %3611 = vmatprep.mubr.msk.bf16.mxu1 %vm4121_vm1, %v5342_v59 }
 0xbd5   :  { %2517 = vmatpush1.bf16.msra.mxu0 %v4787_v42  ;;  %3598 = vmatpush3.bf16.msra.mxu1 %v4825_v54 }
 0xbd6   :  { %2518 = vmatprep.subr.bf16.mxu0 %v4791_v16  ;;  %3599 = vmatprep.subr.bf16.mxu1 %v5342_v59 }
 0xbd9   :  { %2519 = vmatpush1.bf16.msra.mxu0 %v4793_v18  ;;  %3600 = vmatpush3.bf16.msra.mxu1 %v4835_v46 }
 0xbda   :  { %2520 = vmatprep.subr.bf16.mxu0 %v4797_v38  ;;  %3601 = vmatprep.subr.bf16.mxu1 %v5342_v59 }
 0xbdd   :  { %2521 = vmatpush1.bf16.msra.mxu0 %v4799_v43  ;;  %3602 = vmatpush3.bf16.msra.mxu1 %v4839_v57 }
 0xbde   :  { %2522 = vmatprep.subr.bf16.mxu0 %v4803_v53  ;;  %3603 = vmatprep.subr.bf16.mxu1 %v5342_v59 }
 0xbe1   :  { %2523 = vmatpush1.bf16.msra.mxu0 %v4805_v62  ;;  %3604 = vmatpush3.bf16.msra.mxu1 %v4843_v55 }
 0xbe2   :  { %2524 = vmatprep.subr.bf16.mxu0 %v4807_v3  ;;  %3605 = vmatprep.subr.bf16.mxu1 %v5342_v59 }
 0xbe5   :  { %2525 = vmatpush1.bf16.msra.mxu0 %v4811_v23  ;;  %3606 = vmatpush3.bf16.msra.mxu1 %v4847_v1 }
 0xbe6   :  { %2526 = vmatprep.subr.bf16.mxu0 %v4815_v4  ;;  %3607 = vmatprep.subr.bf16.mxu1 %v5342_v59 }
 0xbe9   :  { %2527 = vmatpush1.bf16.msra.mxu0 %v4819_v44  ;;  %3608 = vmatpush3.bf16.msra.mxu1 %v4851_v11 }
 0xbea   :  { %2528 = vmatprep.subr.bf16.mxu0 %v4821_v45  ;;  %3609 = vmatprep.subr.bf16.mxu1 %v5342_v59 }
 0xbed   :  { %2529 = vmatpush1.bf16.msra.mxu0 %v4829_v49  ;;  %3610 = vmatpush3.bf16.msra.mxu1 %v4855_v50 }
 0xbee   :  { %2631 = vmatprep.subr.bf16.mxu0 %v4779_v34  ;;  %3615 = vmatprep.subr.bf16.mxu1 %v5342_v59 }
 0xca3   :  { %v2431_v19 = vpop.f32.mrb[76].mxu0  ;;  %v2472_v14 = vpop.f32.mrb[60].mxu1 }
 0xca4   :  { %v2478_v33 = vadd.f32 %v2431_v19, %v1796_v52  ;;  %v2433_v60 = vpop.f32.mrb[77].mxu0  ;;  %v3593_v28 = vpop.f32.mrb[61].mxu1  ;;  %v2492_v63 = vadd.f32 %v4974_v6, %v2472_v14  ;;  %v2390_v52 = vstv %s3133_s20 }
 0xca5   :  { %v2485_v9 = vadd.f32 %v2433_v60, %v1798_v30  ;;  %v2435_v15 = vpop.f32.mrb[78].mxu0  ;;  %v2475_v21 = vpop.f32.mrb[62].mxu1  ;;  %vm2391_vm15 = vcmp.lt.s32.totalorder %v4391_v35, %v2390_v52  ;;  %v5211_v52 = vld [vmem:[#allocation11 + $0x48] ss:$12 sps:$4 sm:$0xff]  }
 0xca6   :  { %v3134_v24 = vmul.f32 -1.442695, %v2478_v33  ;;  %v2436_v13 = vpop.f32.mrb[79].mxu0  ;;  %v3594_v26 = vpop.f32.mrb[63].mxu1 }
 0xca7   :  { %v3135_v61 = vmul.f32 -1.442695, %v2485_v9  ;;  %v1871_v9 = vadd.f32 %v4949_v29, %v4978_v36 }
 0xca8   :  { %3906 = vpow2.f32 %v3134_v24 }
 0xca9   :  { %3908 = vpow2.f32 %v3135_v61  ;;  %v2507_v61 = vstv %s3136_s7 }
 0xcaa   :  { %vm2508_vm0 = vcmp.lt.s32.totalorder %v4391_v35, %v2507_v61  ;;  %v3997_v61 = vld [vmem:[#allocation11 + $0x8] ss:$12 sps:$4 sm:$0xff]  }
 0xcb2   :  { %v3907_v27 = vpop.eup %3906 }
 0xcb3   :  { %v2482_v39 = vadd.f32 1.0, %v3907_v27  ;;  %v3909_v56 = vpop.eup %3908 }
 0xcb4   :  { %v2489_v0 = vadd.f32 1.0, %v3909_v56 }
 0xcb5   :  { %3910 = vrcp.f32 %v2482_v39 }
 0xcbf   :  { %v3911_v10 = vpop.eup %3910 }
 0xcc0   :  { %v2493_v8 = vmul.f32 %v3911_v10, %v2492_v63 }
 0xcc2   :  { %v2494_v40 = vadd.f32 %v2493_v8, %v1866_v12  ;;  %v5184_v8 = vld [vmem:[#allocation11] ss:$12 sps:$4 sm:$0xff]  }
 0xcc4   :  { %3912 = vtanh.f32 %v2494_v40  ;;  %v5188_v40 = vld [vmem:[#allocation11 + $0x1c] ss:$12 sps:$4 sm:$0xff]  }
 0xcc5   :  { %3914 = vrcp.f32 %v2489_v0  ;;  %v5195_v0 = vld [vmem:[#allocation11 + $0x18] ss:$12 sps:$4 sm:$0xff]  }
 0xcce   :  { %v3913_v37 = vpop.eup %3912 }
 0xccf   :  { %v2496_v7 = vsub.f32 %v5082_v58, %v3913_v37  ;;  %v3915_v30 = vpop.eup %3914 }
 0xcd1   :  { %v2497_v19 = vmul.f32 %v3915_v30, %v2496_v7  ;;  %v5207_v7 = vld [vmem:[#allocation11 + $0x4c] ss:$12 sps:$4 sm:$0xff]  }
 0xcd2   :  { %v5219_v30 = vld [vmem:[#allocation11 + $0x60] ss:$12 sps:$4 sm:$0xff]  }
 0xcd3   :  { %v2498_v33 = vadd.f32 %v3913_v37, %v2497_v19  ;;  %v5199_v37 = vld [vmem:[#allocation11 + $0x34] ss:$12 sps:$4 sm:$0xff]   ;;  %v5227_v19 = vld [vmem:[#allocation11 + $0x78] ss:$12 sps:$4 sm:$0xff]  }
 0xcd5   :  { %v5131_v14 = vsel %vm2391_vm15, %v2498_v33, %v5082_v58  ;;  %v2503_v60 = vsel %vm2391_vm15, %v2498_v33, 0.0  ;;  %v5235_v33 = vld [vmem:[#allocation11 + $0x90] ss:$12 sps:$4 sm:$0xff]  }
 0xcd6   :  { %v2504_v2 = vpack.c.bf16 %v2503_v60, %v2503_v60  ;;  %v2513_v28 = vpack.c.bf16 %v5131_v14, %v5131_v14  ;;  %v1806_v60 = vadd.f32 %v4896_v22, %v4957_v47 }
 0xcd8   :  { %2505 = vst [vmem:[#allocation12 + $0xc] sm:$0xf] %v2504_v2  ;;  %2547 = vmatmul.mubr.bf16.vlgmr.msra.gmra.mrb[80].mxu0 %v2513_v28  ;;  %3612 = vmatmul.mubr.bf16.vlgmr.msra.gmra.mrb[64].mxu1 %v2513_v28 }
 0xcd9   :  { %2632 = vmatpush1.bf16.msra.mxu0 %v4781_v41  ;;  %3616 = vmatpush3.bf16.msra.mxu1 %v4817_v48  ;;  %v1802_v41 = vadd.f32 %v4892_v31, %v4957_v47 }
 0xcda   :  { %2633 = vmatprep.subr.bf16.mxu0 %v4785_v17  ;;  %3617 = vmatprep.subr.bf16.mxu1 %v5342_v59  ;;  %v1804_v17 = vadd.f32 %v4894_v20, %v4965_v32 }
 0xcdb   :  { %2663 = vmatprep.mubr.bf16.mxu0 %v5343_v51  ;;  %3631 = vmatprep.mubr.msk.bf16.mxu1 %vm4121_vm1, %v5342_v59 }
 0xcdd   :  { %2634 = vmatpush1.bf16.msra.mxu0 %v4787_v42  ;;  %3618 = vmatpush3.bf16.msra.mxu1 %v4825_v54 }
 0xcde   :  { %2635 = vmatprep.subr.bf16.mxu0 %v4791_v16  ;;  %3619 = vmatprep.subr.bf16.mxu1 %v5342_v59 }
 0xce1   :  { %2636 = vmatpush1.bf16.msra.mxu0 %v4793_v18  ;;  %3620 = vmatpush3.bf16.msra.mxu1 %v4835_v46 }
 0xce2   :  { %2637 = vmatprep.subr.bf16.mxu0 %v4797_v38  ;;  %3621 = vmatprep.subr.bf16.mxu1 %v5342_v59 }
 0xce5   :  { %2638 = vmatpush1.bf16.msra.mxu0 %v4799_v43  ;;  %3622 = vmatpush3.bf16.msra.mxu1 %v4839_v57 }
 0xce6   :  { %2639 = vmatprep.subr.bf16.mxu0 %v4803_v53  ;;  %3623 = vmatprep.subr.bf16.mxu1 %v5342_v59 }
 0xce9   :  { %2640 = vmatpush1.bf16.msra.mxu0 %v4805_v62  ;;  %3624 = vmatpush3.bf16.msra.mxu1 %v4843_v55 }
 0xcea   :  { %2641 = vmatprep.subr.bf16.mxu0 %v4807_v3  ;;  %3625 = vmatprep.subr.bf16.mxu1 %v5342_v59 }
 0xced   :  { %2642 = vmatpush1.bf16.msra.mxu0 %v4811_v23  ;;  %3626 = vmatpush3.bf16.msra.mxu1 %v4847_v1 }
 0xcee   :  { %2643 = vmatprep.subr.bf16.mxu0 %v4815_v4  ;;  %3627 = vmatprep.subr.bf16.mxu1 %v5342_v59 }
 0xcf1   :  { %2644 = vmatpush1.bf16.msra.mxu0 %v4819_v44  ;;  %3628 = vmatpush3.bf16.msra.mxu1 %v4851_v11 }
 0xcf2   :  { %2645 = vmatprep.subr.bf16.mxu0 %v4821_v45  ;;  %3629 = vmatprep.subr.bf16.mxu1 %v5342_v59 }
 0xcf5   :  { %2646 = vmatpush1.bf16.msra.mxu0 %v4829_v49  ;;  %3630 = vmatpush3.bf16.msra.mxu1 %v4855_v50 }
 0xcf6   :  { %2748 = vmatprep.subr.bf16.mxu0 %v4779_v34  ;;  %3635 = vmatprep.subr.bf16.mxu1 %v5342_v59 }
 0xdab   :  { %v2548_v42 = vpop.f32.mrb[80].mxu0  ;;  %v2589_v16 = vpop.f32.mrb[64].mxu1 }
 0xdac   :  { %v2595_v18 = vadd.f32 %v2548_v42, %v1802_v41  ;;  %v2550_v38 = vpop.f32.mrb[81].mxu0  ;;  %v3613_v43 = vpop.f32.mrb[65].mxu1  ;;  %v2609_v20 = vadd.f32 %v4974_v6, %v2589_v16 }
 0xdad   :  { %v2602_v53 = vadd.f32 %v2550_v38, %v1804_v17  ;;  %v2552_v62 = vpop.f32.mrb[82].mxu0  ;;  %v2592_v3 = vpop.f32.mrb[66].mxu1 }
 0xdae   :  { %v3137_v23 = vmul.f32 -1.442695, %v2595_v18  ;;  %v2553_v4 = vpop.f32.mrb[83].mxu0  ;;  %v3614_v44 = vpop.f32.mrb[67].mxu1 }
 0xdaf   :  { %v3138_v34 = vmul.f32 -1.442695, %v2602_v53  ;;  %v1874_v44 = vadd.f32 %v4961_v5, %v4978_v36 }
 0xdb0   :  { %3916 = vpow2.f32 %v3137_v23 }
 0xdb1   :  { %3918 = vpow2.f32 %v3138_v34 }
 0xdba   :  { %v3917_v45 = vpop.eup %3916 }
 0xdbb   :  { %v2599_v49 = vadd.f32 1.0, %v3917_v45  ;;  %v3919_v31 = vpop.eup %3918 }
 0xdbc   :  { %v2606_v24 = vadd.f32 1.0, %v3919_v31 }
 0xdbd   :  { %3920 = vrcp.f32 %v2599_v49 }
 0xdc7   :  { %v3921_v58 = vpop.eup %3920 }
 0xdc8   :  { %v2610_v15 = vmul.f32 %v3921_v58, %v2609_v20  ;;  %v2624_v58 = vstv %s3139_s29 }
 0xdc9   :  { %vm2625_vm2 = vcmp.lt.s32.totalorder %v4391_v35, %v2624_v58 }
 0xdca   :  { %v2611_v21 = vadd.f32 %v2610_v15, %v1871_v9 }
 0xdcc   :  { %3922 = vtanh.f32 %v2611_v21 }
 0xdcd   :  { %3924 = vrcp.f32 %v2606_v24 }
 0xdd6   :  { %v3923_v13 = vpop.eup %3922 }
 0xdd7   :  { %v2613_v26 = vsub.f32 %v5131_v14, %v3923_v13  ;;  %v3925_v27 = vpop.eup %3924 }
 0xdd9   :  { %v2614_v39 = vmul.f32 %v3925_v27, %v2613_v26  ;;  %v3998_v27 = vld [vmem:[#allocation11 + $0x20] ss:$12 sps:$4 sm:$0xff]  }
 0xddb   :  { %v2615_v56 = vadd.f32 %v3923_v13, %v2614_v39  ;;  %v3999_v39 = vld [vmem:[#allocation11 + $0x38] ss:$12 sps:$4 sm:$0xff]  }
 0xddd   :  { %v5180_v63 = vsel %vm2508_vm0, %v2615_v56, %v5131_v14  ;;  %v2620_v10 = vsel %vm2508_vm0, %v2615_v56, 0.0  ;;  %v5243_v14 = vld [vmem:[#allocation11 + $0xa8] ss:$12 sps:$4 sm:$0xff]  }
 0xdde   :  { %v2621_v29 = vpack.c.bf16 %v2620_v10, %v2620_v10  ;;  %v2630_v12 = vpack.c.bf16 %v5180_v63, %v5180_v63  ;;  %v4001_v56 = vld [vmem:[#allocation11 + $0x68] ss:$12 sps:$4 sm:$0xff]   ;;  %v4003_v10 = vld [vmem:[#allocation11 + $0x98] ss:$12 sps:$4 sm:$0xff]  }
 0xde0   :  { %2622 = vst [vmem:[#allocation12 + $0x10] sm:$0xf] %v2621_v29  ;;  %2664 = vmatmul.mubr.bf16.vlgmr.msra.gmra.mrb[84].mxu0 %v2630_v12  ;;  %3632 = vmatmul.mubr.bf16.vlgmr.msra.gmra.mrb[68].mxu1 %v2630_v12  ;;  %v4004_v29 = vld [vmem:[#allocation11 + $0xb0] ss:$12 sps:$4 sm:$0xff]  }
 0xde1   :  { %2749 = vmatpush1.bf16.msra.mxu0 %v5184_v8  ;;  %3636 = vmatpush3.bf16.msra.mxu1 %v4817_v48  ;;  %v5203_v48 = vld [vmem:[#allocation11 + $0x30] ss:$12 sps:$4 sm:$0xff]  }
 0xde2   :  { %2750 = vmatprep.subr.bf16.mxu0 %v5188_v40  ;;  %3637 = vmatprep.subr.bf16.mxu1 %v5342_v59  ;;  %v5359_v12 = vld [vmem:[#allocation19_spill] sm:$0xff] }
 0xde3   :  { %2780 = vmatprep.mubr.bf16.mxu0 %v5343_v51  ;;  %3651 = vmatprep.mubr.msk.bf16.mxu1 %vm4121_vm1, %v5342_v59 }
 0xde5   :  { %2751 = vmatpush1.bf16.msra.mxu0 %v5195_v0  ;;  %3638 = vmatpush3.bf16.msra.mxu1 %v4825_v54  ;;  %v5215_v54 = vld [vmem:[#allocation11 + $0x64] ss:$12 sps:$4 sm:$0xff]  }
 0xde6   :  { %2752 = vmatprep.subr.bf16.mxu0 %v5199_v37  ;;  %3639 = vmatprep.subr.bf16.mxu1 %v5342_v59 }
 0xde9   :  { %2753 = vmatpush1.bf16.msra.mxu0 %v5203_v48  ;;  %3640 = vmatpush3.bf16.msra.mxu1 %v4835_v46  ;;  %v5223_v46 = vld [vmem:[#allocation11 + $0x7c] ss:$12 sps:$4 sm:$0xff]  }
 0xdea   :  { %2754 = vmatprep.subr.bf16.mxu0 %v5207_v7  ;;  %3641 = vmatprep.subr.bf16.mxu1 %v5342_v59 }
 0xded   :  { %2755 = vmatpush1.bf16.msra.mxu0 %v5211_v52  ;;  %3642 = vmatpush3.bf16.msra.mxu1 %v4839_v57  ;;  %v5231_v57 = vld [vmem:[#allocation11 + $0x94] ss:$12 sps:$4 sm:$0xff]  }
 0xdee   :  { %2756 = vmatprep.subr.bf16.mxu0 %v5215_v54  ;;  %3643 = vmatprep.subr.bf16.mxu1 %v5342_v59 }
 0xdf1   :  { %2757 = vmatpush1.bf16.msra.mxu0 %v5219_v30  ;;  %3644 = vmatpush3.bf16.msra.mxu1 %v4843_v55  ;;  %v5239_v55 = vld [vmem:[#allocation11 + $0xac] ss:$12 sps:$4 sm:$0xff]  }
 0xdf2   :  { %2758 = vmatprep.subr.bf16.mxu0 %v5223_v46  ;;  %3645 = vmatprep.subr.bf16.mxu1 %v5342_v59 }
 0xdf5   :  { %2759 = vmatpush1.bf16.msra.mxu0 %v5227_v19  ;;  %3646 = vmatpush3.bf16.msra.mxu1 %v4847_v1  ;;  %v3996_v1 = vld [vmem:[#allocation11 + $0x4] ss:$12 sps:$4 sm:$0xff]  }
 0xdf6   :  { %2760 = vmatprep.subr.bf16.mxu0 %v5231_v57  ;;  %3647 = vmatprep.subr.bf16.mxu1 %v5342_v59 }
 0xdf9   :  { %2761 = vmatpush1.bf16.msra.mxu0 %v5235_v33  ;;  %3648 = vmatpush3.bf16.msra.mxu1 %v4851_v11  ;;  %v1808_v11 = vadd.f32 %v4898_v25, %v4965_v32 }
 0xdfa   :  { %2762 = vmatprep.subr.bf16.mxu0 %v5239_v55  ;;  %3649 = vmatprep.subr.bf16.mxu1 %v5342_v59 }
 0xdfd   :  { %2763 = vmatpush1.bf16.msra.mxu0 %v5243_v14  ;;  %3650 = vmatpush3.bf16.msra.mxu1 %v4855_v50 }
 0xdfe   :  { %2865 = vmatprep.subr.bf16.mxu0 %v3996_v1  ;;  %3655 = vmatprep.subr.bf16.mxu1 %v5342_v59 }
 0xeb3   :  { %v2665_v2 = vpop.f32.mrb[84].mxu0  ;;  %v2706_v28 = vpop.f32.mrb[68].mxu1 }
 0xeb4   :  { %v2712_v41 = vadd.f32 %v2665_v2, %v1806_v60  ;;  %v2667_v17 = vpop.f32.mrb[85].mxu0  ;;  %v3633_v42 = vpop.f32.mrb[69].mxu1  ;;  %v2726_v25 = vadd.f32 %v4974_v6, %v2706_v28  ;;  %v5361_v28 = vld [vmem:[#allocation20_spill] sm:$0xff] }
 0xeb5   :  { %v2719_v16 = vadd.f32 %v2667_v17, %v1808_v11  ;;  %v2669_v18 = vpop.f32.mrb[86].mxu0  ;;  %v2709_v38 = vpop.f32.mrb[70].mxu1 }
 0xeb6   :  { %v3140_v43 = vmul.f32 -1.442695, %v2712_v41  ;;  %v2670_v50 = vpop.f32.mrb[87].mxu0  ;;  %v3634_v53 = vpop.f32.mrb[71].mxu1  ;;  %v1879_v41 = vadd.f32 %v5361_v28, %v4978_v36 }
 0xeb7   :  { %v3141_v62 = vmul.f32 -1.442695, %v2719_v16 }
 0xeb8   :  { %3926 = vpow2.f32 %v3140_v43  ;;  %v2741_v43 = vstv %s3142_s30 }
 0xeb9   :  { %3928 = vpow2.f32 %v3141_v62 }
 0xec2   :  { %v3927_v3 = vpop.eup %3926 }
 0xec3   :  { %v2716_v23 = vadd.f32 1.0, %v3927_v3  ;;  %v3929_v22 = vpop.eup %3928 }
 0xec4   :  { %v2723_v49 = vadd.f32 1.0, %v3929_v22 }
 0xec5   :  { %3930 = vrcp.f32 %v2716_v23 }
 0xecf   :  { %v3931_v4 = vpop.eup %3930 }
 0xed0   :  { %v2727_v34 = vmul.f32 %v3931_v4, %v2726_v25  ;;  %v5362_v4 = vld [vmem:[#allocation21_spill] sm:$0xff] }
 0xed2   :  { %v2728_v45 = vadd.f32 %v2727_v34, %v1874_v44  ;;  %v1816_v44 = vadd.f32 %v5362_v4, %v4957_v47  ;;  %v5363_v34 = vld [vmem:[#allocation22_spill] sm:$0xff] }
 0xed4   :  { %3932 = vtanh.f32 %v2728_v45  ;;  %v1818_v45 = vadd.f32 %v5363_v34, %v4965_v32 }
 0xed5   :  { %3934 = vrcp.f32 %v2723_v49 }
 0xede   :  { %v3933_v31 = vpop.eup %3932 }
 0xedf   :  { %v2730_v20 = vsub.f32 %v5180_v63, %v3933_v31  ;;  %v3935_v9 = vpop.eup %3934 }
 0xee1   :  { %v2731_v15 = vmul.f32 %v3935_v9, %v2730_v20 }
 0xee3   :  { %v2732_v21 = vadd.f32 %v3933_v31, %v2731_v15 }
 0xee5   :  { %v5258_v24 = vsel %vm2625_vm2, %v2732_v21, %v5180_v63  ;;  %v2737_v13 = vsel %vm2625_vm2, %v2732_v21, 0.0  ;;  %v4002_v63 = vld [vmem:[#allocation11 + $0x80] ss:$12 sps:$4 sm:$0xff]  }
 0xee6   :  { %v2738_v5 = vpack.c.bf16 %v2737_v13, %v2737_v13  ;;  %v2747_v26 = vpack.c.bf16 %v5258_v24, %v5258_v24 }
 0xee8   :  { %2739 = vst [vmem:[#allocation12 + $0x14] sm:$0xf] %v2738_v5  ;;  %2781 = vmatmul.mubr.bf16.vlgmr.msra.gmra.mrb[88].mxu0 %v2747_v26  ;;  %3652 = vmatmul.mubr.bf16.vlgmr.msra.gmra.mrb[72].mxu1 %v2747_v26 }
 0xee9   :  { %2866 = vmatpush1.bf16.msra.mxu0 %v5184_v8  ;;  %3656 = vmatpush3.bf16.msra.mxu1 %v3997_v61  ;;  %v1812_v8 = vadd.f32 %v5359_v12, %v4957_v47 }
 0xeea   :  { %2867 = vmatprep.subr.bf16.mxu0 %v5188_v40  ;;  %3657 = vmatprep.subr.bf16.mxu1 %v5342_v59  ;;  %v5360_v40 = vld [vmem:[#allocation17_spill] sm:$0xff] }
 0xeeb   :  { %2897 = vmatprep.mubr.bf16.mxu0 %v5343_v51  ;;  %3671 = vmatprep.mubr.msk.bf16.mxu1 %vm4121_vm1, %v5342_v59  ;;  %v4000_v51 = vld [vmem:[#allocation11 + $0x50] ss:$12 sps:$4 sm:$0xff]   ;;  %vm2742_vm1 = vcmp.lt.s32.totalorder %v4391_v35, %v2741_v43 }
 0xeed   :  { %2868 = vmatpush1.bf16.msra.mxu0 %v5195_v0  ;;  %3658 = vmatpush3.bf16.msra.mxu1 %v3998_v27  ;;  %v1814_v0 = vadd.f32 %v5360_v40, %v4965_v32 }
 0xeee   :  { %2869 = vmatprep.subr.bf16.mxu0 %v5199_v37  ;;  %3659 = vmatprep.subr.bf16.mxu1 %v5342_v59 }
 0xef1   :  { %2870 = vmatpush1.bf16.msra.mxu0 %v5203_v48  ;;  %3660 = vmatpush3.bf16.msra.mxu1 %v3999_v39 }
 0xef2   :  { %2871 = vmatprep.subr.bf16.mxu0 %v5207_v7  ;;  %3661 = vmatprep.subr.bf16.mxu1 %v5342_v59 }
 0xef5   :  { %2872 = vmatpush1.bf16.msra.mxu0 %v5211_v52  ;;  %3662 = vmatpush3.bf16.msra.mxu1 %v4000_v51 }
 0xef6   :  { %2873 = vmatprep.subr.bf16.mxu0 %v5215_v54  ;;  %3663 = vmatprep.subr.bf16.mxu1 %v5342_v59 }
 0xef9   :  { %2874 = vmatpush1.bf16.msra.mxu0 %v5219_v30  ;;  %3664 = vmatpush3.bf16.msra.mxu1 %v4001_v56  ;;  %v5364_v56 = vld [vmem:[#allocation18_spill] sm:$0xff] }
 0xefa   :  { %2875 = vmatprep.subr.bf16.mxu0 %v5223_v46  ;;  %3665 = vmatprep.subr.bf16.mxu1 %v5342_v59 }
 0xefd   :  { %2876 = vmatpush1.bf16.msra.mxu0 %v5227_v19  ;;  %3666 = vmatpush3.bf16.msra.mxu1 %v4002_v63  ;;  %v1882_v63 = vadd.f32 %v5364_v56, %v4978_v36 }
 0xefe   :  { %2877 = vmatprep.subr.bf16.mxu0 %v5231_v57  ;;  %3667 = vmatprep.subr.bf16.mxu1 %v5342_v59 }
 0xf01   :  { %2878 = vmatpush1.bf16.msra.mxu0 %v5235_v33  ;;  %3668 = vmatpush3.bf16.msra.mxu1 %v4003_v10 }
 0xf02   :  { %2879 = vmatprep.subr.bf16.mxu0 %v5239_v55  ;;  %3669 = vmatprep.subr.bf16.mxu1 %v5342_v59 }
 0xf05   :  { %2880 = vmatpush1.bf16.msra.mxu0 %v5243_v14  ;;  %3670 = vmatpush3.bf16.msra.mxu1 %v4004_v29 }
 0xfbb   :  { %v2782_v37 = vpop.f32.mrb[88].mxu0  ;;  %v2823_v48 = vpop.f32.mrb[72].mxu1 }
 0xfbc   :  { %v2829_v7 = vadd.f32 %v2782_v37, %v1812_v8  ;;  %v2784_v52 = vpop.f32.mrb[89].mxu0  ;;  %v3653_v54 = vpop.f32.mrb[73].mxu1  ;;  %v2843_v11 = vadd.f32 %v4974_v6, %v2823_v48 }
 0xfbd   :  { %v2836_v30 = vadd.f32 %v2784_v52, %v1814_v0  ;;  %v2786_v46 = vpop.f32.mrb[90].mxu0  ;;  %v2826_v19 = vpop.f32.mrb[74].mxu1  ;;  %v2858_v0 = vstv %s3145_s21 }
 0xfbe   :  { %v3143_v57 = vmul.f32 -1.442695, %v2829_v7  ;;  %v2787_v59 = vpop.f32.mrb[91].mxu0  ;;  %v3654_v33 = vpop.f32.mrb[75].mxu1  ;;  %vm2859_vm3 = vcmp.lt.s32.totalorder %v4391_v35, %v2858_v0 }
 0xfbf   :  { %v3144_v55 = vmul.f32 -1.442695, %v2836_v30 }
 0xfc0   :  { %3936 = vpow2.f32 %v3143_v57 }
 0xfc1   :  { %3938 = vpow2.f32 %v3144_v55 }
 0xfca   :  { %v3937_v14 = vpop.eup %3936 }
 0xfcb   :  { %v2833_v1 = vadd.f32 1.0, %v3937_v14  ;;  %v3939_v60 = vpop.eup %3938 }
 0xfcc   :  { %v2840_v16 = vadd.f32 1.0, %v3939_v60 }
 0xfcd   :  { %3940 = vrcp.f32 %v2833_v1 }
 0xfd7   :  { %v3941_v2 = vpop.eup %3940 }
 0xfd8   :  { %v2844_v17 = vmul.f32 %v3941_v2, %v2843_v11 }
 0xfda   :  { %v2845_v42 = vadd.f32 %v2844_v17, %v1879_v41 }
 0xfdc   :  { %3942 = vtanh.f32 %v2845_v42 }
 0xfdd   :  { %3944 = vrcp.f32 %v2840_v16 }
 0xfe6   :  { %v3943_v18 = vpop.eup %3942 }
 0xfe7   :  { %v2847_v38 = vsub.f32 %v5258_v24, %v3943_v18  ;;  %v3945_v50 = vpop.eup %3944 }
 0xfe9   :  { %v2848_v53 = vmul.f32 %v3945_v50, %v2847_v38 }
 0xfeb   :  { %v2849_v62 = vadd.f32 %v3943_v18, %v2848_v53 }
 0xfed   :  { %v2852_v3 = vsel %vm2742_vm1, %v2849_v62, %v5258_v24  ;;  %v2854_v23 = vsel %vm2742_vm1, %v2849_v62, 0.0 }
 0xfee   :  { %v2855_v22 = vpack.c.bf16 %v2854_v23, %v2854_v23  ;;  %v2864_v25 = vpack.c.bf16 %v2852_v3, %v2852_v3 }
 0xff0   :  { %2856 = vst [vmem:[#allocation12 + $0x18] sm:$0xf] %v2855_v22  ;;  %2898 = vmatmul.mubr.bf16.vlgmr.msra.gmra.mrb[92].mxu0 %v2864_v25  ;;  %3672 = vmatmul.mubr.bf16.vlgmr.msra.gmra.mrb[76].mxu1 %v2864_v25 }
0x10c3   :  { %v2899_v49 = vpop.f32.mrb[92].mxu0  ;;  %v2940_v31 = vpop.f32.mrb[76].mxu1 }
0x10c4   :  { %v2946_v20 = vadd.f32 %v2899_v49, %v1816_v44  ;;  %v2901_v58 = vpop.f32.mrb[93].mxu0  ;;  %v3673_v9 = vpop.f32.mrb[77].mxu1  ;;  %v2960_v32 = vadd.f32 %v4974_v6, %v2940_v31 }
0x10c5   :  { %v2953_v15 = vadd.f32 %v2901_v58, %v1818_v45  ;;  %v2903_v21 = vpop.f32.mrb[94].mxu0  ;;  %v2943_v24 = vpop.f32.mrb[78].mxu1 }
0x10c6   :  { %v3146_v13 = vmul.f32 -1.442695, %v2946_v20  ;;  %v2904_v5 = vpop.f32.mrb[95].mxu0  ;;  %v3674_v26 = vpop.f32.mrb[79].mxu1 }
0x10c7   :  { %v3147_v61 = vmul.f32 -1.442695, %v2953_v15 }
0x10c8   :  { %3946 = vpow2.f32 %v3146_v13 }
0x10c9   :  { %3948 = vpow2.f32 %v3147_v61 }
0x10d2   :  { %v3947_v27 = vpop.eup %3946 }
0x10d3   :  { %v2950_v39 = vadd.f32 1.0, %v3947_v27  ;;  %v3949_v47 = vpop.eup %3948 }
0x10d4   :  { %v2957_v12 = vadd.f32 1.0, %v3949_v47 }
0x10d5   :  { %3950 = vrcp.f32 %v2950_v39 }
0x10df   :  { %v3951_v51 = vpop.eup %3950 }
0x10e0   :  { %v2961_v10 = vmul.f32 %v3951_v51, %v2960_v32 }
0x10e2   :  { %v2962_v29 = vadd.f32 %v2961_v10, %v1882_v63 }
0x10e4   :  { %3952 = vtanh.f32 %v2962_v29 }
0x10e5   :  { %3954 = vrcp.f32 %v2957_v12 }
0x10ee   :  { %v3953_v8 = vpop.eup %3952 }
0x10ef   :  { %v2964_v40 = vsub.f32 %v2852_v3, %v3953_v8  ;;  %v3955_v37 = vpop.eup %3954 }
0x10f1   :  { %v2965_v48 = vmul.f32 %v3955_v37, %v2964_v40 }
0x10f3   :  { %v2966_v7 = vadd.f32 %v3953_v8, %v2965_v48 }
0x10f5   :  { %v2971_v6 = vsel %vm2859_vm3, %v2966_v7, 0.0 }
0x10f6   :  { %v2972_v52 = vpack.c.bf16 %v2971_v6, %v2971_v6 }
0x10f8   :  { %2973 = vst [vmem:[#allocation12 + $0x1c] sm:$0xf] %v2972_v52 }
0x10f9   :  { %4094 = shalt.err (!%p4091_p5)
}
0x10fa   :  { %s4095_s23 = scalar_lea.hbm %s5327_s10, 512 }
0x10fb   :  { %p4096_p6 = scmp.ne.s32.totalorder %s5327_s10, %s4095_s23  ;;  %p4099_p7 = scmp.lt.u32.totalorder %s4095_s23, %s5327_s10 }
0x10fd   :  { %p4101_p8 = pnand %p4099_p7, %p4096_p6 }
0x10ff   :  { %4104 = shalt.err (!%p4101_p8)
}
0x1100   :  { %s4124_s27 = smov 64   ;;  %s4125_s28 = smov 4  }
0x1101   :  { %2989 = dma.vmem_to_hbm [thread:$0]  %s2984_s19, 512, %s5327_s10, [#allocation8], %s4124_s27, %s4124_s27, %s4125_s28  }
0x1102   :  { %4111 = dma.done.wait [#allocation8], 512  }
0x1103   :  { %4112 = vsyncadd [#allocation8], 4294966784 }
0x1104   :  { %2993 = vsyncpa [#allocation7], 1 }
0x1105   :  { %2994 = vsyncpa [#allocation10], 1 }
0x1106   :  { %2995 = vsyncpa [#allocation8], 1 }

// kernel: tpu_custom_call.1
= control target key start
LH: loop header
LB: loop body
LE: loop exit
PB: predicated region body
PF: predicated region fallthrough
CT: control target
= control target key end

     0   :  { %s5317_s0 = inlined_call_operand.vmem [shape: s32[8], index: 0, kind: input, shape index: {}]   ;;  %s5318_s1 = inlined_call_operand.vmem [shape: bf16[64,16], index: 1, kind: input, shape index: {}]   ;;  %s5319_s2 = inlined_call_operand.vmem [shape: bf16[16,384], index: 2, kind: input, shape index: {}]   ;;  %s5320_s3 = inlined_call_operand.hbm [shape: bf16[128,384], index: 3, kind: input, shape index: {}]   ;;  %s5321_s4 = inlined_call_operand.vmem [shape: f32[1,384], index: 4, kind: input, shape index: {}]   ;;  %s5322_s5 = inlined_call_operand.vmem [shape: f32[1,128], index: 5, kind: input, shape index: {}]   ;;  %s5323_s6 = inlined_call_operand.hbm [shape: bf16[128,384], index: 6, kind: input, shape index: {}]   ;;  %s5324_s7 = inlined_call_operand.hbm [shape: bf16[128,384], index: 7, kind: input, shape index: {}]   ;;  %s5325_s8 = inlined_call_operand.vmem [shape: f32[1,384], index: 8, kind: input, shape index: {}]   ;;  %s5326_s9 = inlined_call_operand.vmem [shape: f32[1,128], index: 9, kind: input, shape index: {}]   ;;  %s5327_s10 = inlined_call_operand.hbm [shape: bf16[64,128], index: 10, kind: output, shape index: {}]  }
   0x1   :  { %s15_s15 = sshll.u32 %s5317_s0, 4  ;;  %s16_s15 = int_to_ptr.vmem [resolvable:$true] %s15_s15 }
   0x2   :  { %s4005_s16 = scalar_lea.vmem %s16_s15, 16  ;;  %p4010_p1 = scmp.lt.s32.totalorder %s16_s15, %s16_s15 }
   0x3   :  { %p4006_p0 = scmp.ne.s32.totalorder %s16_s15, %s4005_s16  ;;  %p4011_p2 = scmp.lt.s32.totalorder %s4005_s16, %s4005_s16 }
   0x5   :  { %p4012_p3 = por %p4011_p2, %p4010_p1 }
   0x7   :  { %p4013_p4 = pnand %p4012_p3, %p4006_p0 }
   0x9   :  { %4016 = shalt.err (!%p4013_p4)  }
   0xa   :  { %s4113_s17 = smov [#allocation5]  }
   0xb   :  { %18 = dma.vmem_to_smem %s16_s15, 16, %s4113_s17, [#allocation4] }
   0xc   :  { %4105 = dma.done.wait [#allocation4], 16 }
   0xd   :  { %4106 = vsyncadd [#allocation4], 4294967280 }
   0xe   :  { %20 = sfence }
   0xf   :  { %21 = vsyncpa [#allocation7], 0 }
  0x10   :  { %22 = vsyncpa [#allocation10], 0 }
  0x11   :  { %23 = vsyncpa [#allocation8], 0  ;;  %s4114_s18 = smov [#allocation9]   ;;  %s4115_s20 = smov [#allocation6]  }
  0x12   :  { %s57_s19 = sshll.u32 %s4114_s18, 4  ;;  %s41_s0 = sshll.u32 %s4115_s20, 4  ;;  %s58_s19 = int_to_ptr.vmem [resolvable:$true] %s57_s19  ;;  %s4184_s0 = int_to_ptr.vmem [resolvable:$true] %s41_s0 }
  0x13   :  { %s4017_s23 = scalar_lea.hbm %s5323_s6, 3072 }
  0x14   :  { %p4018_p5 = scmp.ne.s32.totalorder %s5323_s6, %s4017_s23  ;;  %p4021_p6 = scmp.lt.u32.totalorder %s4017_s23, %s5323_s6 }
  0x16   :  { %p4023_p7 = pnand %p4021_p6, %p4018_p5 }
  0x18   :  { %4026 = shalt.err (!%p4023_p7)
}
  0x19   :  { %s4027_s28 = scalar_lea.vmem %s58_s19, 3072  ;;  %p4032_p9 = scmp.lt.s32.totalorder %s58_s19, %s58_s19 }
  0x1a   :  { %p4028_p8 = scmp.ne.s32.totalorder %s58_s19, %s4027_s28  ;;  %p4033_p10 = scmp.lt.s32.totalorder %s4027_s28, %s4027_s28 }
  0x1c   :  { %p4034_p11 = por %p4033_p10, %p4032_p9 }
  0x1e   :  { %p4035_p12 = pnand %p4034_p11, %p4028_p8 }
  0x20   :  { %4038 = shalt.err (!%p4035_p12)
}
  0x21   :  { %s4116_s29 = smov 192   ;;  %s4117_s30 = smov 12  }
  0x22   :  { %63 = dma.hbm_to_vmem [thread:$0]  %s5323_s6, 3072, %s58_s19, [#allocation10], %s4116_s29, %s4116_s29, %s4117_s30  }
  0x23   :  { %s4039_s15 = scalar_lea.hbm %s5320_s3, 3072 }
  0x24   :  { %p4040_p13 = scmp.ne.s32.totalorder %s5320_s3, %s4039_s15  ;;  %p4043_p0 = scmp.lt.u32.totalorder %s4039_s15, %s5320_s3 }
  0x26   :  { %p4045_p1 = pnand %p4043_p0, %p4040_p13 }
  0x28   :  { %4048 = shalt.err (!%p4045_p1)
}
  0x29   :  { %s4049_s21 = scalar_lea.vmem %s4184_s0, 3072  ;;  %p4054_p3 = scmp.lt.s32.totalorder %s4184_s0, %s4184_s0 }
  0x2a   :  { %p4050_p2 = scmp.ne.s32.totalorder %s4184_s0, %s4049_s21  ;;  %p4055_p4 = scmp.lt.s32.totalorder %s4049_s21, %s4049_s21 }
  0x2c   :  { %p4056_p5 = por %p4055_p4, %p4054_p3 }
  0x2e   :  { %p4057_p6 = pnand %p4056_p5, %p4050_p2 }
  0x30   :  { %4060 = shalt.err (!%p4057_p6)
}
  0x31   :  { %47 = dma.hbm_to_vmem [thread:$0]  %s5320_s3, 3072, %s4184_s0, [#allocation7], %s4116_s29, %s4116_s29, %s4117_s30  }
  0x32   :  { %s4118_s22 = smov [#allocation11]   ;;  %s4061_s26 = scalar_lea.hbm %s5324_s7, 3072 }
  0x33   :  { %s69_s23 = sshll.u32 %s4118_s22, 4  ;;  %p4062_p7 = scmp.ne.s32.totalorder %s5324_s7, %s4061_s26  ;;  %s70_s23 = int_to_ptr.vmem [resolvable:$true] %s69_s23 }
  0x34   :  { %p4065_p8 = scmp.lt.u32.totalorder %s4061_s26, %s5324_s7 }
  0x36   :  { %p4067_p9 = pnand %p4065_p8, %p4062_p7 }
  0x38   :  { %4070 = shalt.err (!%p4067_p9)
}
  0x39   :  { %s4071_s13 = scalar_lea.vmem %s70_s23, 3072  ;;  %p4076_p11 = scmp.lt.s32.totalorder %s70_s23, %s70_s23 }
  0x3a   :  { %p4072_p10 = scmp.ne.s32.totalorder %s70_s23, %s4071_s13  ;;  %p4077_p12 = scmp.lt.s32.totalorder %s4071_s13, %s4071_s13 }
  0x3c   :  { %p4078_p13 = por %p4077_p12, %p4076_p11 }
  0x3e   :  { %p4079_p0 = pnand %p4078_p13, %p4072_p10 }
  0x40   :  { %4082 = shalt.err (!%p4079_p0)
}
  0x41   :  { %75 = dma.hbm_to_vmem [thread:$0]  %s5324_s7, 3072, %s70_s23, [#allocation10], %s4116_s29, %s4116_s29, %s4117_s30  }
  0x42   :  { %4107 = dma.done.wait [#allocation7], 3072  }
  0x43   :  { %4108 = vsyncadd [#allocation7], 4294964224 }
  0x44   :  { %4109 = dma.done.wait [#allocation10], 6144  }
  0x45   :  { %4110 = vsyncadd [#allocation10], 4294961152  ;;  %v5333_v0 = vmov 0   ;;  %v3688_v1 = vld [vmem:[%s5319_s2 + $0x4] ss:$12 sps:$4 sm:$0xff]   ;;  %vm222_vm0 = vcmask 130048   ;;  %v112_v34 = vlaneseq }
  0x46   :  { %267 = vmatprep.mubr.bf16.mxu0 %v5333_v0  ;;  %v3690_v2 = vld [vmem:[%s5319_s2] ss:$12 sps:$4 sm:$0xff]   ;;  %235 = vmatprep.subr.bf16.mxu0 %v3688_v1  ;;  %v4246_v4 = vld [vmem:[#allocation6 + $0x4] ss:$12 sps:$4 sm:$0xff]   ;;  %v4250_v6 = vld [vmem:[#allocation6 + $0x1c] ss:$12 sps:$4 sm:$0xff]  }
  0x47   :  { %v3691_v3 = vld [vmem:[%s5318_s1] sm:$0xff]   ;;  %236 = vmatpush1.bf16.msra.mxu0 %v3690_v2  ;;  %v3698_v9 = vld [vmem:[%s5318_s1 + $0x8] sm:$0xff]   ;;  %v4265_v10 = vld [vmem:[#allocation6 + $0x30] ss:$12 sps:$4 sm:$0xff]   ;;  %v5335_v16 = vmov 0.0   ;;  %vm4121_vm1 = vmmov 0  }
  0x48   :  { %v4248_v5 = vld [vmem:[#allocation6] ss:$12 sps:$4 sm:$0xff]   ;;  %3323 = vmatprep.mubr.msk.bf16.mxu1 %vm222_vm0, %v3691_v3  ;;  %536 = vmatprep.subr.bf16.mxu0 %v4246_v4  ;;  %v4256_v7 = vld [vmem:[#allocation6 + $0x18] ss:$12 sps:$4 sm:$0xff]   ;;  %v3709_v11 = vld [vmem:[%s5319_s2 + $0x8] ss:$12 sps:$4 sm:$0xff]  }
  0x49   :  { %v4260_v8 = vld [vmem:[#allocation6 + $0x34] ss:$12 sps:$4 sm:$0xff]   ;;  %v4272_v12 = vld [vmem:[#allocation6 + $0x4c] ss:$12 sps:$4 sm:$0xff]   ;;  %3321 = vmatprep.subr.bf16.mxu1 %v3709_v11  ;;  %v4282_v15 = vld [vmem:[#allocation6 + $0x64] ss:$12 sps:$4 sm:$0xff]  }
  0x4a   :  { %3017 = vmatmul.mubr.msk.bf16.vlgmr.msra.gmra.mrb[0].mxu0 %vm222_vm0, %v3691_v3  ;;  %v4275_v13 = vld [vmem:[#allocation6 + $0x48] ss:$12 sps:$4 sm:$0xff]   ;;  %3322 = vmatpush3.bf16.msra.mxu1 %v3709_v11  ;;  %v4290_v18 = vld [vmem:[#allocation6 + $0x20] ss:$12 sps:$4 sm:$0xff]   ;;  %v4300_v21 = vld [vmem:[#allocation6 + $0x78] ss:$12 sps:$4 sm:$0xff]  }
  0x4b   :  { %537 = vmatpush1.bf16.msra.mxu0 %v4248_v5  ;;  %277 = vmatprep.mubr.bf16.mxu0 %v5333_v0  ;;  %v3705_v14 = vld [vmem:[%s5318_s1 + $0x10] sm:$0xff]   ;;  %v4294_v19 = vld [vmem:[#allocation6 + $0x60] ss:$12 sps:$4 sm:$0xff]   ;;  %v4298_v20 = vld [vmem:[#allocation6 + $0x7c] ss:$12 sps:$4 sm:$0xff]   ;;  %v5331_v32 = vmov 0.0|0.0  }
  0x4c   :  { %538 = vmatprep.subr.bf16.mxu0 %v4250_v6  ;;  %3331 = vmatprep.subr.bf16.mxu1 %v5335_v16  ;;  %v4286_v17 = vld [vmem:[#allocation6 + $0x8] ss:$12 sps:$4 sm:$0xff]   ;;  %v4304_v22 = vld [vmem:[#allocation6 + $0x38] ss:$12 sps:$4 sm:$0xff]   ;;  %v4315_v25 = vld [vmem:[#allocation6 + $0x90] ss:$12 sps:$4 sm:$0xff]  }
  0x4d   :  { %3324 = vmatmul.mubr.msk.bf16.vlgmr.msra.gmra.mrb[0].mxu1 %vm222_vm0, %v3698_v9  ;;  %v3713_v23 = vld [vmem:[%s5318_s1 + $0x18] sm:$0xff]   ;;  %v4312_v24 = vld [vmem:[#allocation6 + $0x94] ss:$12 sps:$4 sm:$0xff]   ;;  %v4391_v35 = vshrl.u32 %v112_v34, 7  ;;  %s397_s25 = sld [smem:[#allocation5]]  ;;  %s3051_s26 = sld [smem:[#allocation5 + $0x1]] }
  0x4e   :  { %3332 = vmatpush3.bf16.msra.mxu1 %v4286_v17  ;;  %3327 = vmatprep.mubr.msk.bf16.mxu1 %vm222_vm0, %v3705_v14  ;;  %v4317_v26 = vld [vmem:[#allocation6 + $0x50] ss:$12 sps:$4 sm:$0xff]   ;;  %v4320_v27 = vld [vmem:[#allocation6 + $0xac] ss:$12 sps:$4 sm:$0xff]   ;;  %v4328_v28 = vld [vmem:[#allocation6 + $0x68] ss:$12 sps:$4 sm:$0xff]  }
  0x4f   :  { %539 = vmatpush1.bf16.msra.mxu0 %v4256_v7  ;;  %3333 = vmatprep.subr.bf16.mxu1 %v5335_v16  ;;  %v4330_v29 = vld [vmem:[#allocation6 + $0xa8] ss:$12 sps:$4 sm:$0xff]   ;;  %v4338_v30 = vld [vmem:[#allocation6 + $0x80] ss:$12 sps:$4 sm:$0xff]   ;;  %v4343_v31 = vld [vmem:[#allocation6 + $0x98] ss:$12 sps:$4 sm:$0xff]  }
  0x50   :  { %540 = vmatprep.subr.bf16.mxu0 %v4260_v8  ;;  %v4350_v33 = vld [vmem:[#allocation6 + $0xb0] ss:$12 sps:$4 sm:$0xff]   ;;  %v5330_v36 = vsub.s32 0, %v4391_v35  ;;  %v154_v37 = vld [vmem:[%s5321_s4] sm:$0x7]  ;;  %v5329_v38 = vsub.s32 1, %v4391_v35 }
  0x51   :  { %v5328_v47 = vsub.s32 2, %v4391_v35  ;;  %s3054_s27 = sld [smem:[#allocation5 + $0x2]]  ;;  %s3057_s28 = sld [smem:[#allocation5 + $0x3]] }
  0x52   :  { %3018 = vmatmul.mubr.msk.bf16.gmra.mrb[4].mxu0 %vm222_vm0, %v3698_v9  ;;  %3334 = vmatpush3.bf16.msra.mxu1 %v4290_v18  ;;  %v174_v40 = vrot.slane %v154_v37, %v5330_v36  ;;  %v178_v42 = vrot.slane %v154_v37, %v5329_v38  ;;  %s3060_s11 = sld [smem:[#allocation5 + $0x4]]  ;;  %s3063_s12 = sld [smem:[#allocation5 + $0x5]] }
  0x53   :  { %541 = vmatpush1.bf16.msra.mxu0 %v4265_v10  ;;  %287 = vmatprep.mubr.bf16.mxu0 %v5333_v0  ;;  %v182_v49 = vrot.slane %v154_v37, %v5328_v47  ;;  %s3066_s13 = sld [smem:[#allocation5 + $0x6]]  ;;  %s1909_s17 = sld [smem:[#allocation5]] }
  0x54   :  { %542 = vmatprep.subr.bf16.mxu0 %v4272_v12  ;;  %3335 = vmatprep.subr.bf16.mxu1 %v5335_v16  ;;  %s3130_s18 = sld [smem:[#allocation5 + $0x2]]  ;;  %s3133_s20 = sld [smem:[#allocation5 + $0x3]] }
  0x55   :  { %3328 = vmatmul.mubr.msk.bf16.gmra.mrb[4].mxu1 %vm222_vm0, %v3713_v23  ;;  %s3136_s7 = sld [smem:[#allocation5 + $0x4]]  ;;  %s3139_s29 = sld [smem:[#allocation5 + $0x5]] }
  0x56   :  { %3336 = vmatpush3.bf16.msra.mxu1 %v4304_v22  ;;  %3347 = vmatprep.mubr.msk.bf16.mxu1 %vm4121_vm1, %v5335_v16  ;;  %s3142_s30 = sld [smem:[#allocation5 + $0x6]]  ;;  %s3145_s21 = sld [smem:[#allocation5 + $0x7]] }
  0x57   :  { %543 = vmatpush1.bf16.msra.mxu0 %v4275_v13  ;;  %3337 = vmatprep.subr.bf16.mxu1 %v5335_v16  ;;  %s4123_s6 = smov [#allocation12]  }
  0x58   :  { %544 = vmatprep.subr.bf16.mxu0 %v4282_v15  ;;  %s2983_s19 = sshll.u32 %s4123_s6, 4  ;;  %s2984_s19 = int_to_ptr.vmem [resolvable:$true] %s2983_s19 }
  0x59   :  { %s4083_s2 = scalar_lea.vmem %s2984_s19, 512  ;;  %p4088_p2 = scmp.lt.s32.totalorder %s2984_s19, %s2984_s19 }
  0x5a   :  { %3019 = vmatmul.mubr.msk.bf16.gmra.mrb[8].mxu0 %vm222_vm0, %v3705_v14  ;;  %3338 = vmatpush3.bf16.msra.mxu1 %v4317_v26  ;;  %p4084_p1 = scmp.ne.s32.totalorder %s2984_s19, %s4083_s2  ;;  %p4089_p3 = scmp.lt.s32.totalorder %s4083_s2, %s4083_s2 }
  0x5b   :  { %545 = vmatpush1.bf16.msra.mxu0 %v4294_v19  ;;  %297 = vmatprep.mubr.bf16.mxu0 %v5333_v0 }
  0x5c   :  { %546 = vmatprep.subr.bf16.mxu0 %v4298_v20  ;;  %3339 = vmatprep.subr.bf16.mxu1 %v5335_v16  ;;  %p4090_p4 = por %p4089_p3, %p4088_p2 }
  0x5e   :  { %3340 = vmatpush3.bf16.msra.mxu1 %v4328_v28  ;;  %p4091_p5 = pnand %p4090_p4, %p4084_p1 }
  0x5f   :  { %547 = vmatpush1.bf16.msra.mxu0 %v4300_v21  ;;  %3341 = vmatprep.subr.bf16.mxu1 %v5335_v16 }
  0x60   :  { %548 = vmatprep.subr.bf16.mxu0 %v4312_v24 }
  0x62   :  { %3020 = vmatmul.mubr.msk.bf16.gmra.mrb[12].mxu0 %vm222_vm0, %v3713_v23  ;;  %3342 = vmatpush3.bf16.msra.mxu1 %v4338_v30 }
  0x63   :  { %549 = vmatpush1.bf16.msra.mxu0 %v4315_v25  ;;  %568 = vmatprep.mubr.bf16.mxu0 %v5333_v0 }
  0x64   :  { %550 = vmatprep.subr.bf16.mxu0 %v4320_v27  ;;  %3343 = vmatprep.subr.bf16.mxu1 %v5335_v16 }
  0x66   :  { %3344 = vmatpush3.bf16.msra.mxu1 %v4343_v31 }
  0x67   :  { %551 = vmatpush1.bf16.msra.mxu0 %v4330_v29  ;;  %3345 = vmatprep.subr.bf16.mxu1 %v5335_v16 }
  0x68   :  { %657 = vmatprep.subr.bf16.mxu0 %v4246_v4 }
  0x6a   :  { %569 = vmatmul.mubr.bf16.vlgmr.msra.gmra.mrb[16].mxu0 %v5331_v32  ;;  %3346 = vmatpush3.bf16.msra.mxu1 %v4350_v33 }
  0x6b   :  { %658 = vmatpush1.bf16.msra.mxu0 %v4248_v5  ;;  %689 = vmatprep.mubr.bf16.mxu0 %v5333_v0 }
  0x6c   :  { %659 = vmatprep.subr.bf16.mxu0 %v4250_v6  ;;  %3351 = vmatprep.subr.bf16.mxu1 %v5335_v16 }
  0x6d   :  { %3348 = vmatmul.mubr.bf16.vlgmr.msra.gmra.mrb[8].mxu1 %v5331_v32 }
  0x6e   :  { %3352 = vmatpush3.bf16.msra.mxu1 %v4286_v17  ;;  %3367 = vmatprep.mubr.msk.bf16.mxu1 %vm4121_vm1, %v5335_v16 }
  0x6f   :  { %660 = vmatpush1.bf16.msra.mxu0 %v4256_v7  ;;  %3353 = vmatprep.subr.bf16.mxu1 %v5335_v16 }
  0x70   :  { %661 = vmatprep.subr.bf16.mxu0 %v4260_v8 }
  0x72   :  { %3354 = vmatpush3.bf16.msra.mxu1 %v4290_v18 }
  0x73   :  { %662 = vmatpush1.bf16.msra.mxu0 %v4265_v10  ;;  %3355 = vmatprep.subr.bf16.mxu1 %v5335_v16 }
  0x74   :  { %663 = vmatprep.subr.bf16.mxu0 %v4272_v12 }
  0x76   :  { %3356 = vmatpush3.bf16.msra.mxu1 %v4304_v22 }
  0x77   :  { %664 = vmatpush1.bf16.msra.mxu0 %v4275_v13  ;;  %3357 = vmatprep.subr.bf16.mxu1 %v5335_v16 }
  0x78   :  { %665 = vmatprep.subr.bf16.mxu0 %v4282_v15 }
  0x7a   :  { %3358 = vmatpush3.bf16.msra.mxu1 %v4317_v26 }
  0x7b   :  { %666 = vmatpush1.bf16.msra.mxu0 %v4294_v19  ;;  %3359 = vmatprep.subr.bf16.mxu1 %v5335_v16 }
  0x7c   :  { %667 = vmatprep.subr.bf16.mxu0 %v4298_v20 }
  0x7e   :  { %3360 = vmatpush3.bf16.msra.mxu1 %v4328_v28 }
  0x7f   :  { %668 = vmatpush1.bf16.msra.mxu0 %v4300_v21  ;;  %3361 = vmatprep.subr.bf16.mxu1 %v5335_v16 }
  0x80   :  { %669 = vmatprep.subr.bf16.mxu0 %v4312_v24 }
  0x82   :  { %3362 = vmatpush3.bf16.msra.mxu1 %v4338_v30 }
  0x83   :  { %670 = vmatpush1.bf16.msra.mxu0 %v4315_v25  ;;  %3363 = vmatprep.subr.bf16.mxu1 %v5335_v16 }
  0x84   :  { %671 = vmatprep.subr.bf16.mxu0 %v4320_v27 }
  0x86   :  { %3364 = vmatpush3.bf16.msra.mxu1 %v4343_v31 }
  0x87   :  { %672 = vmatpush1.bf16.msra.mxu0 %v4330_v29  ;;  %3365 = vmatprep.subr.bf16.mxu1 %v5335_v16 }
  0x88   :  { %779 = vmatprep.subr.bf16.mxu0 %v4246_v4 }
  0x8a   :  { %3366 = vmatpush3.bf16.msra.mxu1 %v4350_v33 }
  0x8b   :  { %3371 = vmatprep.subr.bf16.mxu1 %v5335_v16 }
 0x11d   :  { %v269_v39 = vpop.f32.mrb[0].mxu0 }
 0x11e   :  { %v271_v41 = vpop.f32.mrb[1].mxu0 }
 0x11f   :  { %v273_v43 = vpop.f32.mrb[2].mxu0  ;;  %v272_v38 = vadd.f32 %v271_v41, %v178_v42 }
 0x120   :  { %v4402_v44 = vadd.f32 %v273_v43, %v174_v40  ;;  %v275_v45 = vpop.f32.mrb[3].mxu0  ;;  %v3325_v56 = vpop.f32.mrb[0].mxu1 }
 0x121   :  { %v4404_v46 = vadd.f32 %v275_v45, %v178_v42  ;;  %v4417_v58 = vadd.f32 %v3325_v56, %v182_v49  ;;  %v342_v59 = vpop.f32.mrb[1].mxu1 }
 0x122   :  { %v3326_v60 = vpop.f32.mrb[2].mxu1 }
 0x123   :  { %v4419_v61 = vadd.f32 %v3326_v60, %v182_v49  ;;  %v345_v62 = vpop.f32.mrb[3].mxu1 }
 0x124   :  { %v4421_v63 = vadd.f32 %v345_v62, %v182_v49 }
 0x125   :  { %v279_v48 = vpop.f32.mrb[4].mxu0 }
 0x126   :  { %v4409_v50 = vadd.f32 %v279_v48, %v174_v40  ;;  %v281_v51 = vpop.f32.mrb[5].mxu0 }
 0x127   :  { %v4411_v52 = vadd.f32 %v281_v51, %v178_v42  ;;  %v283_v53 = vpop.f32.mrb[6].mxu0 }
 0x128   :  { %v4413_v54 = vadd.f32 %v283_v53, %v174_v40  ;;  %v285_v55 = vpop.f32.mrb[7].mxu0  ;;  %v3329_v34 = vpop.f32.mrb[4].mxu1 }
 0x129   :  { %v4415_v57 = vadd.f32 %v285_v55, %v178_v42  ;;  %v4431_v43 = vadd.f32 %v3329_v34, %v182_v49  ;;  %v358_v45 = vpop.f32.mrb[5].mxu1 }
 0x12a   :  { %v4433_v48 = vadd.f32 %v358_v45, %v182_v49  ;;  %v3330_v51 = vpop.f32.mrb[6].mxu1  ;;  %v270_v45 = vadd.f32 %v269_v39, %v174_v40  ;;  %v4450_v39 = vld [vmem:[%s5322_s5] ss:$0 sm:$0xff] }
 0x12b   :  { %5337 = vst [vmem:[#allocation17_spill] sm:$0xff] %v4431_v43  ;;  %v4435_v53 = vadd.f32 %v3330_v51, %v182_v49  ;;  %v361_v55 = vpop.f32.mrb[7].mxu1 }
 0x12c   :  { %v4437_v56 = vadd.f32 %v361_v55, %v182_v49 }
 0x12d   :  { %v289_v1 = vpop.f32.mrb[8].mxu0  ;;  %5338 = vst [vmem:[#allocation18_spill] sm:$0xff] %v4435_v53 }
 0x12e   :  { %v4423_v2 = vadd.f32 %v289_v1, %v174_v40  ;;  %v291_v3 = vpop.f32.mrb[9].mxu0 }
 0x12f   :  { %v4425_v9 = vadd.f32 %v291_v3, %v178_v42  ;;  %v293_v11 = vpop.f32.mrb[10].mxu0 }
 0x130   :  { %v4427_v14 = vadd.f32 %v293_v11, %v174_v40  ;;  %v295_v23 = vpop.f32.mrb[11].mxu0 }
 0x131   :  { %v4429_v37 = vadd.f32 %v295_v23, %v178_v42 }
 0x135   :  { %v299_v60 = vpop.f32.mrb[12].mxu0 }
 0x136   :  { %v4439_v62 = vadd.f32 %v299_v60, %v174_v40  ;;  %v301_v1 = vpop.f32.mrb[13].mxu0 }
 0x137   :  { %v4441_v3 = vadd.f32 %v301_v1, %v178_v42  ;;  %v303_v11 = vpop.f32.mrb[14].mxu0 }
 0x138   :  { %5339 = vst [vmem:[#allocation19_spill] sm:$0xff] %v4439_v62  ;;  %v4443_v23 = vadd.f32 %v303_v11, %v174_v40  ;;  %v305_v34 = vpop.f32.mrb[15].mxu0  ;;  %v343_v40 = vadd.f32 %v342_v59, %v182_v49  ;;  %v5342_v59 = vmov 0.0  }
 0x139   :  { %5340 = vst [vmem:[#allocation20_spill] sm:$0xff] %v4441_v3  ;;  %v4445_v47 = vadd.f32 %v305_v34, %v178_v42 }
 0x13a   :  { %5341 = vst [vmem:[#allocation21_spill] sm:$0xff] %v4443_v23 }
 0x13d   :  { %v570_v36 = vpop.f32.mrb[16].mxu0 }
 0x13e   :  { %v617_v51 = vadd.f32 %v570_v36, %v270_v45  ;;  %v572_v32 = vpop.f32.mrb[17].mxu0 }
 0x13f   :  { %v624_v0 = vadd.f32 %v572_v32, %v272_v38  ;;  %v574_v55 = vpop.f32.mrb[18].mxu0 }
 0x140   :  { %v3049_v16 = vmul.f32 -1.442695, %v617_v51  ;;  %v575_v53 = vpop.f32.mrb[19].mxu0  ;;  %v611_v60 = vpop.f32.mrb[8].mxu1  ;;  %v5343_v51 = vmov 0  }
 0x141   :  { %v3349_v43 = vpop.f32.mrb[9].mxu1  ;;  %v3050_v1 = vmul.f32 -1.442695, %v624_v0  ;;  %v631_v32 = vadd.f32 %v4450_v39, %v611_v60 }
 0x142   :  { %3796 = vpow2.f32 %v3049_v16  ;;  %v614_v3 = vpop.f32.mrb[10].mxu1  ;;  %v398_v43 = vstv %s397_s25 }
 0x143   :  { %v3350_v62 = vpop.f32.mrb[11].mxu1  ;;  %3798 = vpow2.f32 %v3050_v1  ;;  %vm399_vm2 = vcmp.lt.s32.totalorder %v4391_v35, %v398_v43 }
 0x144   :  { %vm3148_vm3 = vmpackc.low %vm399_vm2, %vm399_vm2 }
 0x14c   :  { %v3797_v11 = vpop.eup %3796 }
 0x14d   :  { %v621_v23 = vadd.f32 1.0, %v3797_v11  ;;  %v3799_v36 = vpop.eup %3798 }
 0x14e   :  { %v628_v41 = vadd.f32 1.0, %v3799_v36 }
 0x14f   :  { %3800 = vrcp.f32 %v621_v23 }
 0x159   :  { %v3801_v38 = vpop.eup %3800 }
 0x15a   :  { %v632_v16 = vmul.f32 %v3801_v38, %v631_v32 }
 0x15c   :  { %v633_v42 = vadd.f32 %v632_v16, %v343_v40 }
 0x15e   :  { %3802 = vtanh.f32 %v633_v42 }
 0x15f   :  { %3804 = vrcp.f32 %v628_v41 }
 0x168   :  { %v3803_v0 = vpop.eup %3802 }
 0x169   :  { %v635_v53 = vsub.f32 0.0, %v3803_v0  ;;  %v3805_v62 = vpop.eup %3804 }
 0x16b   :  { %v636_v3 = vmul.f32 %v3805_v62, %v635_v53 }
 0x16d   :  { %v637_v23 = vadd.f32 %v3803_v0, %v636_v3 }
 0x16f   :  { %v4454_v34 = vsel %vm399_vm2, %v637_v23, 0.0  ;;  %v3149_v45 = vpack.c.bf16 %v637_v23, %v637_v23 }
 0x170   :  { %v643_v49 = vpack.c.bf16 %v4454_v34, %v4454_v34 }
 0x171   :  { %3150 = vmatmul.mubr.msk.bf16.vlgmr.msra.gmra.mrb[20].mxu0 %vm3148_vm3, %v3149_v45  ;;  %3368 = vmatmul.mubr.msk.bf16.vlgmr.msra.gmra.mrb[12].mxu1 %vm3148_vm3, %v3149_v45 }
 0x172   :  { %644 = vst [vmem:[#allocation12] sm:$0xf] %v643_v49  ;;  %780 = vmatpush1.bf16.msra.mxu0 %v4248_v5  ;;  %3372 = vmatpush3.bf16.msra.mxu1 %v4286_v17 }
 0x173   :  { %781 = vmatprep.subr.bf16.mxu0 %v4250_v6  ;;  %3373 = vmatprep.subr.bf16.mxu1 %v5342_v59 }
 0x174   :  { %811 = vmatprep.mubr.bf16.mxu0 %v5343_v51  ;;  %3387 = vmatprep.mubr.msk.bf16.mxu1 %vm4121_vm1, %v5342_v59 }
 0x176   :  { %782 = vmatpush1.bf16.msra.mxu0 %v4256_v7  ;;  %3374 = vmatpush3.bf16.msra.mxu1 %v4290_v18 }
 0x177   :  { %783 = vmatprep.subr.bf16.mxu0 %v4260_v8  ;;  %3375 = vmatprep.subr.bf16.mxu1 %v5342_v59 }
 0x17a   :  { %784 = vmatpush1.bf16.msra.mxu0 %v4265_v10  ;;  %3376 = vmatpush3.bf16.msra.mxu1 %v4304_v22 }
 0x17b   :  { %785 = vmatprep.subr.bf16.mxu0 %v4272_v12  ;;  %3377 = vmatprep.subr.bf16.mxu1 %v5342_v59 }
 0x17e   :  { %786 = vmatpush1.bf16.msra.mxu0 %v4275_v13  ;;  %3378 = vmatpush3.bf16.msra.mxu1 %v4317_v26 }
 0x17f   :  { %787 = vmatprep.subr.bf16.mxu0 %v4282_v15  ;;  %3379 = vmatprep.subr.bf16.mxu1 %v5342_v59 }
 0x182   :  { %788 = vmatpush1.bf16.msra.mxu0 %v4294_v19  ;;  %3380 = vmatpush3.bf16.msra.mxu1 %v4328_v28 }
 0x183   :  { %789 = vmatprep.subr.bf16.mxu0 %v4298_v20  ;;  %3381 = vmatprep.subr.bf16.mxu1 %v5342_v59 }
 0x186   :  { %790 = vmatpush1.bf16.msra.mxu0 %v4300_v21  ;;  %3382 = vmatpush3.bf16.msra.mxu1 %v4338_v30 }
 0x187   :  { %791 = vmatprep.subr.bf16.mxu0 %v4312_v24  ;;  %3383 = vmatprep.subr.bf16.mxu1 %v5342_v59 }
 0x18a   :  { %792 = vmatpush1.bf16.msra.mxu0 %v4315_v25  ;;  %3384 = vmatpush3.bf16.msra.mxu1 %v4343_v31 }
 0x18b   :  { %793 = vmatprep.subr.bf16.mxu0 %v4320_v27  ;;  %3385 = vmatprep.subr.bf16.mxu1 %v5342_v59 }
 0x18e   :  { %794 = vmatpush1.bf16.msra.mxu0 %v4330_v29  ;;  %3386 = vmatpush3.bf16.msra.mxu1 %v4350_v33 }
 0x18f   :  { %901 = vmatprep.subr.bf16.mxu0 %v4246_v4  ;;  %3391 = vmatprep.subr.bf16.mxu1 %v5342_v59 }
 0x244   :  { %v691_v55 = vpop.f32.mrb[20].mxu0  ;;  %v732_v60 = vpop.f32.mrb[12].mxu1 }
 0x245   :  { %v738_v1 = vadd.f32 %v691_v55, %v4402_v44  ;;  %v693_v11 = vpop.f32.mrb[21].mxu0  ;;  %v3369_v32 = vpop.f32.mrb[13].mxu1  ;;  %v752_v3 = vadd.f32 %v4450_v39, %v732_v60 }
 0x246   :  { %v745_v36 = vadd.f32 %v693_v11, %v4404_v46  ;;  %v695_v38 = vpop.f32.mrb[22].mxu0  ;;  %v735_v40 = vpop.f32.mrb[14].mxu1 }
 0x247   :  { %v3052_v16 = vmul.f32 -1.442695, %v738_v1  ;;  %v696_v41 = vpop.f32.mrb[23].mxu0  ;;  %v3370_v42 = vpop.f32.mrb[15].mxu1  ;;  %v647_v1 = vstv %s3051_s26 }
 0x248   :  { %v3053_v0 = vmul.f32 -1.442695, %v745_v36  ;;  %vm648_vm4 = vcmp.lt.s32.totalorder %v4391_v35, %v647_v1 }
 0x249   :  { %3806 = vpow2.f32 %v3052_v16 }
 0x24a   :  { %3808 = vpow2.f32 %v3053_v0 }
 0x253   :  { %v3807_v43 = vpop.eup %3806 }
 0x254   :  { %v742_v53 = vadd.f32 1.0, %v3807_v43  ;;  %v3809_v62 = vpop.eup %3808 }
 0x255   :  { %v749_v49 = vadd.f32 1.0, %v3809_v62 }
 0x256   :  { %3810 = vrcp.f32 %v742_v53 }
 0x260   :  { %v3811_v23 = vpop.eup %3810 }
 0x261   :  { %v753_v44 = vmul.f32 %v3811_v23, %v752_v3 }
 0x263   :  { %v754_v45 = vadd.f32 %v753_v44, %v4421_v63 }
 0x265   :  { %3812 = vtanh.f32 %v754_v45 }
 0x266   :  { %3814 = vrcp.f32 %v749_v49 }
 0x26f   :  { %v3813_v46 = vpop.eup %3812 }
 0x270   :  { %v756_v55 = vsub.f32 %v4454_v34, %v3813_v46  ;;  %v3815_v11 = vpop.eup %3814 }
 0x272   :  { %v757_v32 = vmul.f32 %v3815_v11, %v756_v55 }
 0x274   :  { %v758_v36 = vadd.f32 %v3813_v46, %v757_v32 }
 0x276   :  { %v4500_v38 = vsel %vm648_vm4, %v758_v36, %v4454_v34  ;;  %v763_v60 = vsel %vm648_vm4, %v758_v36, 0.0 }
 0x277   :  { %v764_v40 = vpack.c.bf16 %v763_v60, %v763_v60  ;;  %v778_v63 = vpack.c.bf16 %v4500_v38, %v4500_v38 }
 0x279   :  { %766 = vst [vmem:[#allocation12 + $0x4] sm:$0xf] %v764_v40  ;;  %812 = vmatmul.mubr.bf16.vlgmr.msra.gmra.mrb[24].mxu0 %v778_v63  ;;  %3388 = vmatmul.mubr.bf16.vlgmr.msra.gmra.mrb[16].mxu1 %v778_v63  ;;  %v769_v40 = vstv %s3054_s27 }
 0x27a   :  { %902 = vmatpush1.bf16.msra.mxu0 %v4248_v5  ;;  %3392 = vmatpush3.bf16.msra.mxu1 %v4286_v17  ;;  %vm770_vm5 = vcmp.lt.s32.totalorder %v4391_v35, %v769_v40  ;;  %v4596_v40 = vld [vmem:[#allocation6] ss:$12 sps:$4 sm:$0xff]  }
 0x27b   :  { %903 = vmatprep.subr.bf16.mxu0 %v4250_v6  ;;  %3393 = vmatprep.subr.bf16.mxu1 %v5342_v59 }
 0x27c   :  { %933 = vmatprep.mubr.bf16.mxu0 %v5343_v51  ;;  %3407 = vmatprep.mubr.msk.bf16.mxu1 %vm4121_vm1, %v5342_v59 }
 0x27e   :  { %904 = vmatpush1.bf16.msra.mxu0 %v4256_v7  ;;  %3394 = vmatpush3.bf16.msra.mxu1 %v4290_v18 }
 0x27f   :  { %905 = vmatprep.subr.bf16.mxu0 %v4260_v8  ;;  %3395 = vmatprep.subr.bf16.mxu1 %v5342_v59 }
 0x282   :  { %906 = vmatpush1.bf16.msra.mxu0 %v4265_v10  ;;  %3396 = vmatpush3.bf16.msra.mxu1 %v4304_v22 }
 0x283   :  { %907 = vmatprep.subr.bf16.mxu0 %v4272_v12  ;;  %3397 = vmatprep.subr.bf16.mxu1 %v5342_v59 }
 0x286   :  { %908 = vmatpush1.bf16.msra.mxu0 %v4275_v13  ;;  %3398 = vmatpush3.bf16.msra.mxu1 %v4317_v26 }
 0x287   :  { %909 = vmatprep.subr.bf16.mxu0 %v4282_v15  ;;  %3399 = vmatprep.subr.bf16.mxu1 %v5342_v59 }
 0x28a   :  { %910 = vmatpush1.bf16.msra.mxu0 %v4294_v19  ;;  %3400 = vmatpush3.bf16.msra.mxu1 %v4328_v28 }
 0x28b   :  { %911 = vmatprep.subr.bf16.mxu0 %v4298_v20  ;;  %3401 = vmatprep.subr.bf16.mxu1 %v5342_v59 }
 0x28e   :  { %912 = vmatpush1.bf16.msra.mxu0 %v4300_v21  ;;  %3402 = vmatpush3.bf16.msra.mxu1 %v4338_v30 }
 0x28f   :  { %913 = vmatprep.subr.bf16.mxu0 %v4312_v24  ;;  %3403 = vmatprep.subr.bf16.mxu1 %v5342_v59 }
 0x292   :  { %914 = vmatpush1.bf16.msra.mxu0 %v4315_v25  ;;  %3404 = vmatpush3.bf16.msra.mxu1 %v4343_v31 }
 0x293   :  { %915 = vmatprep.subr.bf16.mxu0 %v4320_v27  ;;  %3405 = vmatprep.subr.bf16.mxu1 %v5342_v59 }
 0x296   :  { %916 = vmatpush1.bf16.msra.mxu0 %v4330_v29  ;;  %3406 = vmatpush3.bf16.msra.mxu1 %v4350_v33 }
 0x297   :  { %1023 = vmatprep.subr.bf16.mxu0 %v4246_v4  ;;  %3411 = vmatprep.subr.bf16.mxu1 %v5342_v59 }
 0x34c   :  { %v813_v34 = vpop.f32.mrb[24].mxu0  ;;  %v854_v16 = vpop.f32.mrb[16].mxu1 }
 0x34d   :  { %v860_v41 = vadd.f32 %v813_v34, %v4409_v50  ;;  %v815_v42 = vpop.f32.mrb[25].mxu0  ;;  %v3389_v0 = vpop.f32.mrb[17].mxu1  ;;  %v874_v1 = vadd.f32 %v4450_v39, %v854_v16 }
 0x34e   :  { %v867_v43 = vadd.f32 %v815_v42, %v4411_v52  ;;  %v817_v53 = vpop.f32.mrb[26].mxu0  ;;  %v857_v62 = vpop.f32.mrb[18].mxu1 }
 0x34f   :  { %v3055_v3 = vmul.f32 -1.442695, %v860_v41  ;;  %v818_v23 = vpop.f32.mrb[27].mxu0  ;;  %v3390_v44 = vpop.f32.mrb[19].mxu1 }
 0x350   :  { %v3056_v45 = vmul.f32 -1.442695, %v867_v43 }
 0x351   :  { %3816 = vpow2.f32 %v3055_v3 }
 0x352   :  { %3818 = vpow2.f32 %v3056_v45 }
 0x35b   :  { %v3817_v49 = vpop.eup %3816 }
 0x35c   :  { %v864_v46 = vadd.f32 1.0, %v3817_v49  ;;  %v3819_v55 = vpop.eup %3818 }
 0x35d   :  { %v871_v36 = vadd.f32 1.0, %v3819_v55 }
 0x35e   :  { %3820 = vrcp.f32 %v864_v46 }
 0x368   :  { %v3821_v11 = vpop.eup %3820 }
 0x369   :  { %v875_v50 = vmul.f32 %v3821_v11, %v874_v1  ;;  %v891_v1 = vstv %s3057_s28 }
 0x36a   :  { %vm892_vm6 = vcmp.lt.s32.totalorder %v4391_v35, %v891_v1  ;;  %v4697_v1 = vld [vmem:[#allocation6 + $0x78] ss:$12 sps:$4 sm:$0xff]  }
 0x36b   :  { %v876_v32 = vadd.f32 %v875_v50, %v4417_v58 }
 0x36d   :  { %3822 = vtanh.f32 %v876_v32 }
 0x36e   :  { %3824 = vrcp.f32 %v871_v36 }
 0x377   :  { %v3823_v52 = vpop.eup %3822 }
 0x378   :  { %v878_v60 = vsub.f32 %v4500_v38, %v3823_v52  ;;  %v3825_v63 = vpop.eup %3824 }
 0x37a   :  { %v879_v34 = vmul.f32 %v3825_v63, %v878_v60  ;;  %v4600_v63 = vld [vmem:[#allocation6 + $0x1c] ss:$12 sps:$4 sm:$0xff]  }
 0x37c   :  { %v880_v41 = vadd.f32 %v3823_v52, %v879_v34  ;;  %v4607_v34 = vld [vmem:[#allocation6 + $0x18] ss:$12 sps:$4 sm:$0xff]  }
 0x37e   :  { %v4546_v42 = vsel %vm770_vm5, %v880_v41, %v4500_v38  ;;  %v885_v16 = vsel %vm770_vm5, %v880_v41, 0.0  ;;  %v4611_v41 = vld [vmem:[#allocation6 + $0x34] ss:$12 sps:$4 sm:$0xff]  }
 0x37f   :  { %v886_v0 = vpack.c.bf16 %v885_v16, %v885_v16  ;;  %v900_v58 = vpack.c.bf16 %v4546_v42, %v4546_v42  ;;  %v4623_v16 = vld [vmem:[#allocation6 + $0x48] ss:$12 sps:$4 sm:$0xff]  }
 0x381   :  { %888 = vst [vmem:[#allocation12 + $0x8] sm:$0xf] %v886_v0  ;;  %934 = vmatmul.mubr.bf16.vlgmr.msra.gmra.mrb[28].mxu0 %v900_v58  ;;  %3408 = vmatmul.mubr.bf16.vlgmr.msra.gmra.mrb[20].mxu1 %v900_v58 }
 0x382   :  { %1024 = vmatpush1.bf16.msra.mxu0 %v4248_v5  ;;  %3412 = vmatpush3.bf16.msra.mxu1 %v4286_v17 }
 0x383   :  { %1025 = vmatprep.subr.bf16.mxu0 %v4250_v6  ;;  %3413 = vmatprep.subr.bf16.mxu1 %v5342_v59 }
 0x384   :  { %1055 = vmatprep.mubr.bf16.mxu0 %v5343_v51  ;;  %3427 = vmatprep.mubr.msk.bf16.mxu1 %vm4121_vm1, %v5342_v59 }
 0x386   :  { %1026 = vmatpush1.bf16.msra.mxu0 %v4256_v7  ;;  %3414 = vmatpush3.bf16.msra.mxu1 %v4290_v18 }
 0x387   :  { %1027 = vmatprep.subr.bf16.mxu0 %v4260_v8  ;;  %3415 = vmatprep.subr.bf16.mxu1 %v5342_v59 }
 0x38a   :  { %1028 = vmatpush1.bf16.msra.mxu0 %v4265_v10  ;;  %3416 = vmatpush3.bf16.msra.mxu1 %v4304_v22 }
 0x38b   :  { %1029 = vmatprep.subr.bf16.mxu0 %v4272_v12  ;;  %3417 = vmatprep.subr.bf16.mxu1 %v5342_v59 }
 0x38e   :  { %1030 = vmatpush1.bf16.msra.mxu0 %v4275_v13  ;;  %3418 = vmatpush3.bf16.msra.mxu1 %v4317_v26 }
 0x38f   :  { %1031 = vmatprep.subr.bf16.mxu0 %v4282_v15  ;;  %3419 = vmatprep.subr.bf16.mxu1 %v5342_v59 }
 0x392   :  { %1032 = vmatpush1.bf16.msra.mxu0 %v4294_v19  ;;  %3420 = vmatpush3.bf16.msra.mxu1 %v4328_v28 }
 0x393   :  { %1033 = vmatprep.subr.bf16.mxu0 %v4298_v20  ;;  %3421 = vmatprep.subr.bf16.mxu1 %v5342_v59 }
 0x396   :  { %1034 = vmatpush1.bf16.msra.mxu0 %v4300_v21  ;;  %3422 = vmatpush3.bf16.msra.mxu1 %v4338_v30 }
 0x397   :  { %1035 = vmatprep.subr.bf16.mxu0 %v4312_v24  ;;  %3423 = vmatprep.subr.bf16.mxu1 %v5342_v59 }
 0x39a   :  { %1036 = vmatpush1.bf16.msra.mxu0 %v4315_v25  ;;  %3424 = vmatpush3.bf16.msra.mxu1 %v4343_v31 }
 0x39b   :  { %1037 = vmatprep.subr.bf16.mxu0 %v4320_v27  ;;  %3425 = vmatprep.subr.bf16.mxu1 %v5342_v59 }
 0x39e   :  { %1038 = vmatpush1.bf16.msra.mxu0 %v4330_v29  ;;  %3426 = vmatpush3.bf16.msra.mxu1 %v4350_v33 }
 0x39f   :  { %1145 = vmatprep.subr.bf16.mxu0 %v4246_v4  ;;  %3431 = vmatprep.subr.bf16.mxu1 %v5342_v59 }
 0x454   :  { %v935_v5 = vpop.f32.mrb[28].mxu0  ;;  %v976_v6 = vpop.f32.mrb[20].mxu1 }
 0x455   :  { %v982_v7 = vadd.f32 %v935_v5, %v4413_v54  ;;  %v937_v8 = vpop.f32.mrb[29].mxu0  ;;  %v3409_v10 = vpop.f32.mrb[21].mxu1  ;;  %v996_v44 = vadd.f32 %v4450_v39, %v976_v6 }
 0x456   :  { %v989_v12 = vadd.f32 %v937_v8, %v4415_v57  ;;  %v939_v13 = vpop.f32.mrb[30].mxu0  ;;  %v979_v15 = vpop.f32.mrb[22].mxu1 }
 0x457   :  { %v3058_v38 = vmul.f32 -1.442695, %v982_v7  ;;  %v940_v43 = vpop.f32.mrb[31].mxu0  ;;  %v3410_v53 = vpop.f32.mrb[23].mxu1 }
 0x458   :  { %v3059_v62 = vmul.f32 -1.442695, %v989_v12 }
 0x459   :  { %3826 = vpow2.f32 %v3058_v38  ;;  %v1013_v38 = vstv %s3060_s11 }
 0x45a   :  { %3828 = vpow2.f32 %v3059_v62  ;;  %vm1014_vm7 = vcmp.lt.s32.totalorder %v4391_v35, %v1013_v38 }
 0x463   :  { %v3827_v3 = vpop.eup %3826 }
 0x464   :  { %v986_v23 = vadd.f32 1.0, %v3827_v3  ;;  %v3829_v4 = vpop.eup %3828 }
 0x465   :  { %v993_v46 = vadd.f32 1.0, %v3829_v4 }
 0x466   :  { %3830 = vrcp.f32 %v986_v23 }
 0x470   :  { %v3831_v45 = vpop.eup %3830 }
 0x471   :  { %v997_v54 = vmul.f32 %v3831_v45, %v996_v44  ;;  %v4661_v44 = vld [vmem:[#allocation6 + $0x8] ss:$12 sps:$4 sm:$0xff]   ;;  %v4670_v45 = vld [vmem:[#allocation6 + $0x20] ss:$12 sps:$4 sm:$0xff]  }
 0x473   :  { %v998_v49 = vadd.f32 %v997_v54, %v4419_v61  ;;  %v4676_v54 = vld [vmem:[#allocation6 + $0x38] ss:$12 sps:$4 sm:$0xff]  }
 0x475   :  { %3832 = vtanh.f32 %v998_v49  ;;  %v4682_v49 = vld [vmem:[#allocation6 + $0x50] ss:$12 sps:$4 sm:$0xff]  }
 0x476   :  { %3834 = vrcp.f32 %v993_v46  ;;  %v4687_v46 = vld [vmem:[#allocation6 + $0x60] ss:$12 sps:$4 sm:$0xff]  }
 0x47f   :  { %v3833_v57 = vpop.eup %3832 }
 0x480   :  { %v1000_v55 = vsub.f32 %v4546_v42, %v3833_v57  ;;  %v3835_v11 = vpop.eup %3834 }
 0x482   :  { %v1001_v50 = vmul.f32 %v3835_v11, %v1000_v55  ;;  %v4693_v55 = vld [vmem:[#allocation6 + $0x7c] ss:$12 sps:$4 sm:$0xff]   ;;  %v4700_v11 = vld [vmem:[#allocation6 + $0x80] ss:$12 sps:$4 sm:$0xff]  }
 0x484   :  { %v1002_v32 = vadd.f32 %v3833_v57, %v1001_v50  ;;  %v4690_v57 = vld [vmem:[#allocation6 + $0x68] ss:$12 sps:$4 sm:$0xff]  }
 0x485   :  { %v4703_v50 = vld [vmem:[#allocation6 + $0x94] ss:$12 sps:$4 sm:$0xff]  }
 0x486   :  { %v4592_v36 = vsel %vm892_vm6, %v1002_v32, %v4546_v42  ;;  %v1007_v52 = vsel %vm892_vm6, %v1002_v32, 0.0  ;;  %v4619_v42 = vld [vmem:[#allocation6 + $0x4c] ss:$12 sps:$4 sm:$0xff]   ;;  %v4707_v32 = vld [vmem:[#allocation6 + $0x90] ss:$12 sps:$4 sm:$0xff]  }
 0x487   :  { %v1008_v60 = vpack.c.bf16 %v1007_v52, %v1007_v52  ;;  %v1022_v61 = vpack.c.bf16 %v4592_v36, %v4592_v36  ;;  %v4715_v52 = vld [vmem:[#allocation6 + $0xa8] ss:$12 sps:$4 sm:$0xff]  }
 0x489   :  { %1010 = vst [vmem:[#allocation12 + $0xc] sm:$0xf] %v1008_v60  ;;  %1056 = vmatmul.mubr.bf16.vlgmr.msra.gmra.mrb[32].mxu0 %v1022_v61  ;;  %3428 = vmatmul.mubr.bf16.vlgmr.msra.gmra.mrb[24].mxu1 %v1022_v61 }
 0x48a   :  { %1146 = vmatpush1.bf16.msra.mxu0 %v4596_v40  ;;  %3432 = vmatpush3.bf16.msra.mxu1 %v4286_v17  ;;  %v4615_v17 = vld [vmem:[#allocation6 + $0x30] ss:$12 sps:$4 sm:$0xff]  }
 0x48b   :  { %1147 = vmatprep.subr.bf16.mxu0 %v4600_v63  ;;  %3433 = vmatprep.subr.bf16.mxu1 %v5342_v59 }
 0x48c   :  { %1177 = vmatprep.mubr.bf16.mxu0 %v5343_v51  ;;  %3447 = vmatprep.mubr.msk.bf16.mxu1 %vm4121_vm1, %v5342_v59 }
 0x48e   :  { %1148 = vmatpush1.bf16.msra.mxu0 %v4607_v34  ;;  %3434 = vmatpush3.bf16.msra.mxu1 %v4290_v18  ;;  %v4627_v18 = vld [vmem:[#allocation6 + $0x64] ss:$12 sps:$4 sm:$0xff]  }
 0x48f   :  { %1149 = vmatprep.subr.bf16.mxu0 %v4611_v41  ;;  %3435 = vmatprep.subr.bf16.mxu1 %v5342_v59 }
 0x492   :  { %1150 = vmatpush1.bf16.msra.mxu0 %v4615_v17  ;;  %3436 = vmatpush3.bf16.msra.mxu1 %v4304_v22 }
 0x493   :  { %1151 = vmatprep.subr.bf16.mxu0 %v4619_v42  ;;  %3437 = vmatprep.subr.bf16.mxu1 %v5342_v59 }
 0x496   :  { %1152 = vmatpush1.bf16.msra.mxu0 %v4623_v16  ;;  %3438 = vmatpush3.bf16.msra.mxu1 %v4317_v26 }
 0x497   :  { %1153 = vmatprep.subr.bf16.mxu0 %v4627_v18  ;;  %3439 = vmatprep.subr.bf16.mxu1 %v5342_v59 }
 0x49a   :  { %1154 = vmatpush1.bf16.msra.mxu0 %v4294_v19  ;;  %3440 = vmatpush3.bf16.msra.mxu1 %v4328_v28  ;;  %v4645_v19 = vld [vmem:[#allocation6 + $0x4] ss:$12 sps:$4 sm:$0xff]  }
 0x49b   :  { %1155 = vmatprep.subr.bf16.mxu0 %v4298_v20  ;;  %3441 = vmatprep.subr.bf16.mxu1 %v5342_v59 }
 0x49e   :  { %1156 = vmatpush1.bf16.msra.mxu0 %v4300_v21  ;;  %3442 = vmatpush3.bf16.msra.mxu1 %v4338_v30 }
 0x49f   :  { %1157 = vmatprep.subr.bf16.mxu0 %v4312_v24  ;;  %3443 = vmatprep.subr.bf16.mxu1 %v5342_v59 }
 0x4a2   :  { %1158 = vmatpush1.bf16.msra.mxu0 %v4315_v25  ;;  %3444 = vmatpush3.bf16.msra.mxu1 %v4343_v31 }
 0x4a3   :  { %1159 = vmatprep.subr.bf16.mxu0 %v4320_v27  ;;  %3445 = vmatprep.subr.bf16.mxu1 %v5342_v59 }
 0x4a6   :  { %1160 = vmatpush1.bf16.msra.mxu0 %v4330_v29  ;;  %3446 = vmatpush3.bf16.msra.mxu1 %v4350_v33 }
 0x4a7   :  { %1267 = vmatprep.subr.bf16.mxu0 %v4645_v19  ;;  %3451 = vmatprep.subr.bf16.mxu1 %v5342_v59 }
 0x55c   :  { %v1057_v20 = vpop.f32.mrb[32].mxu0  ;;  %v1098_v21 = vpop.f32.mrb[24].mxu1 }
 0x55d   :  { %v1104_v22 = vadd.f32 %v1057_v20, %v4423_v2  ;;  %v1059_v24 = vpop.f32.mrb[33].mxu0  ;;  %v3429_v25 = vpop.f32.mrb[25].mxu1  ;;  %v1118_v8 = vadd.f32 %v4450_v39, %v1098_v21 }
 0x55e   :  { %v1111_v26 = vadd.f32 %v1059_v24, %v4425_v9  ;;  %v1061_v27 = vpop.f32.mrb[34].mxu0  ;;  %v1101_v28 = vpop.f32.mrb[26].mxu1 }
 0x55f   :  { %v3061_v30 = vmul.f32 -1.442695, %v1104_v22  ;;  %v1062_v29 = vpop.f32.mrb[35].mxu0  ;;  %v3430_v0 = vpop.f32.mrb[27].mxu1 }
 0x560   :  { %v3062_v58 = vmul.f32 -1.442695, %v1111_v26 }
 0x561   :  { %3836 = vpow2.f32 %v3061_v30 }
 0x562   :  { %3838 = vpow2.f32 %v3062_v58 }
 0x56b   :  { %v3837_v5 = vpop.eup %3836 }
 0x56c   :  { %v1108_v6 = vadd.f32 1.0, %v3837_v5  ;;  %v3839_v7 = vpop.eup %3838 }
 0x56d   :  { %v1115_v13 = vadd.f32 1.0, %v3839_v7 }
 0x56e   :  { %3840 = vrcp.f32 %v1108_v6 }
 0x578   :  { %v3841_v10 = vpop.eup %3840 }
 0x579   :  { %v1119_v2 = vmul.f32 %v3841_v10, %v1118_v8  ;;  %v1135_v8 = vstv %s3063_s12 }
 0x57a   :  { %vm1136_vm8 = vcmp.lt.s32.totalorder %v4391_v35, %v1135_v8  ;;  %v3752_v8 = vld [vmem:[#allocation9 + $0x80] ss:$12 sps:$4 sm:$0xff]  }
 0x57b   :  { %v1120_v12 = vadd.f32 %v1119_v2, %v4433_v48 }
 0x57d   :  { %3842 = vtanh.f32 %v1120_v12 }
 0x57e   :  { %3844 = vrcp.f32 %v1115_v13 }
 0x587   :  { %v3843_v9 = vpop.eup %3842 }
 0x588   :  { %v1122_v15 = vsub.f32 %v4592_v36, %v3843_v9  ;;  %v3845_v43 = vpop.eup %3844 }
 0x58a   :  { %v1123_v53 = vmul.f32 %v3845_v43, %v1122_v15 }
 0x58c   :  { %v1124_v62 = vadd.f32 %v3843_v9, %v1123_v53  ;;  %v5345_v53 = vld [vmem:[#allocation20_spill] sm:$0xff] }
 0x58e   :  { %v4656_v3 = vsel %vm1014_vm7, %v1124_v62, %v4592_v36  ;;  %v1129_v23 = vsel %vm1014_vm7, %v1124_v62, 0.0  ;;  %v4711_v36 = vld [vmem:[#allocation6 + $0xac] ss:$12 sps:$4 sm:$0xff]  }
 0x58f   :  { %v1130_v4 = vpack.c.bf16 %v1129_v23, %v1129_v23  ;;  %v1144_v48 = vpack.c.bf16 %v4656_v3, %v4656_v3 }
 0x591   :  { %1132 = vst [vmem:[#allocation12 + $0x10] sm:$0xf] %v1130_v4  ;;  %1178 = vmatmul.mubr.bf16.vlgmr.msra.gmra.mrb[36].mxu0 %v1144_v48  ;;  %3448 = vmatmul.mubr.bf16.vlgmr.msra.gmra.mrb[28].mxu1 %v1144_v48 }
 0x592   :  { %1268 = vmatpush1.bf16.msra.mxu0 %v4596_v40  ;;  %3452 = vmatpush3.bf16.msra.mxu1 %v4661_v44 }
 0x593   :  { %1269 = vmatprep.subr.bf16.mxu0 %v4600_v63  ;;  %3453 = vmatprep.subr.bf16.mxu1 %v5342_v59 }
 0x594   :  { %1299 = vmatprep.mubr.bf16.mxu0 %v5343_v51  ;;  %3467 = vmatprep.mubr.msk.bf16.mxu1 %vm4121_vm1, %v5342_v59 }
 0x596   :  { %1270 = vmatpush1.bf16.msra.mxu0 %v4607_v34  ;;  %3454 = vmatpush3.bf16.msra.mxu1 %v4670_v45 }
 0x597   :  { %1271 = vmatprep.subr.bf16.mxu0 %v4611_v41  ;;  %3455 = vmatprep.subr.bf16.mxu1 %v5342_v59 }
 0x59a   :  { %1272 = vmatpush1.bf16.msra.mxu0 %v4615_v17  ;;  %3456 = vmatpush3.bf16.msra.mxu1 %v4676_v54 }
 0x59b   :  { %1273 = vmatprep.subr.bf16.mxu0 %v4619_v42  ;;  %3457 = vmatprep.subr.bf16.mxu1 %v5342_v59 }
 0x59e   :  { %1274 = vmatpush1.bf16.msra.mxu0 %v4623_v16  ;;  %3458 = vmatpush3.bf16.msra.mxu1 %v4682_v49 }
 0x59f   :  { %1275 = vmatprep.subr.bf16.mxu0 %v4627_v18  ;;  %3459 = vmatprep.subr.bf16.mxu1 %v5342_v59 }
 0x5a2   :  { %1276 = vmatpush1.bf16.msra.mxu0 %v4687_v46  ;;  %3460 = vmatpush3.bf16.msra.mxu1 %v4690_v57 }
 0x5a3   :  { %1277 = vmatprep.subr.bf16.mxu0 %v4693_v55  ;;  %3461 = vmatprep.subr.bf16.mxu1 %v5342_v59 }
 0x5a6   :  { %1278 = vmatpush1.bf16.msra.mxu0 %v4697_v1  ;;  %3462 = vmatpush3.bf16.msra.mxu1 %v4700_v11 }
 0x5a7   :  { %1279 = vmatprep.subr.bf16.mxu0 %v4703_v50  ;;  %3463 = vmatprep.subr.bf16.mxu1 %v5342_v59 }
 0x5aa   :  { %1280 = vmatpush1.bf16.msra.mxu0 %v4707_v32  ;;  %3464 = vmatpush3.bf16.msra.mxu1 %v4343_v31 }
 0x5ab   :  { %1281 = vmatprep.subr.bf16.mxu0 %v4711_v36  ;;  %3465 = vmatprep.subr.bf16.mxu1 %v5342_v59 }
 0x5ae   :  { %1282 = vmatpush1.bf16.msra.mxu0 %v4715_v52  ;;  %3466 = vmatpush3.bf16.msra.mxu1 %v4350_v33 }
 0x5af   :  { %1389 = vmatprep.subr.bf16.mxu0 %v4645_v19  ;;  %3471 = vmatprep.subr.bf16.mxu1 %v5342_v59 }
 0x664   :  { %v1179_v60 = vpop.f32.mrb[36].mxu0  ;;  %v1220_v61 = vpop.f32.mrb[28].mxu1 }
 0x665   :  { %v1226_v31 = vadd.f32 %v1179_v60, %v4427_v14  ;;  %v1181_v20 = vpop.f32.mrb[37].mxu0  ;;  %v3449_v21 = vpop.f32.mrb[29].mxu1  ;;  %v1240_v0 = vadd.f32 %v4450_v39, %v1220_v61  ;;  %v1257_v60 = vstv %s3066_s13 }
 0x666   :  { %v1233_v22 = vadd.f32 %v1181_v20, %v4429_v37  ;;  %v1183_v24 = vpop.f32.mrb[38].mxu0  ;;  %v1223_v25 = vpop.f32.mrb[30].mxu1  ;;  %vm1258_vm9 = vcmp.lt.s32.totalorder %v4391_v35, %v1257_v60  ;;  %v3728_v21 = vld [vmem:[#allocation9] ss:$12 sps:$4 sm:$0xff]  }
 0x667   :  { %v3064_v26 = vmul.f32 -1.442695, %v1226_v31  ;;  %v1184_v27 = vpop.f32.mrb[39].mxu0  ;;  %v3450_v28 = vpop.f32.mrb[31].mxu1 }
 0x668   :  { %v3065_v30 = vmul.f32 -1.442695, %v1233_v22  ;;  %v3736_v27 = vld [vmem:[#allocation9 + $0x20] ss:$12 sps:$4 sm:$0xff]  }
 0x669   :  { %3846 = vpow2.f32 %v3064_v26  ;;  %v3735_v26 = vld [vmem:[#allocation9 + $0x1c] ss:$12 sps:$4 sm:$0xff]   ;;  %v3732_v28 = vld [vmem:[#allocation12] sm:$0xff]  }
 0x66a   :  { %3848 = vpow2.f32 %v3065_v30  ;;  %v3733_v30 = vld [vmem:[#allocation9 + $0x18] ss:$12 sps:$4 sm:$0xff]  }
 0x673   :  { %v3847_v33 = vpop.eup %3846 }
 0x674   :  { %v1230_v29 = vadd.f32 1.0, %v3847_v33  ;;  %v3849_v19 = vpop.eup %3848  ;;  %v3739_v33 = vld [vmem:[#allocation9 + $0x34] ss:$12 sps:$4 sm:$0xff]  }
 0x675   :  { %v1237_v6 = vadd.f32 1.0, %v3849_v19  ;;  %v3737_v19 = vld [vmem:[#allocation9 + $0x30] ss:$12 sps:$4 sm:$0xff]  }
 0x676   :  { %3850 = vrcp.f32 %v1230_v29  ;;  %v3740_v29 = vld [vmem:[#allocation9 + $0x38] ss:$12 sps:$4 sm:$0xff]  }
 0x680   :  { %v3851_v58 = vpop.eup %3850 }
 0x681   :  { %v1241_v14 = vmul.f32 %v3851_v58, %v1240_v0  ;;  %v3743_v0 = vld [vmem:[#allocation9 + $0x4c] ss:$12 sps:$4 sm:$0xff]   ;;  %v3744_v58 = vld [vmem:[#allocation9 + $0x50] ss:$12 sps:$4 sm:$0xff]  }
 0x683   :  { %v1242_v5 = vadd.f32 %v1241_v14, %v4437_v56  ;;  %v3741_v14 = vld [vmem:[#allocation9 + $0x48] ss:$12 sps:$4 sm:$0xff]  }
 0x685   :  { %3852 = vtanh.f32 %v1242_v5  ;;  %v3747_v5 = vld [vmem:[#allocation9 + $0x64] ss:$12 sps:$4 sm:$0xff]  }
 0x686   :  { %3854 = vrcp.f32 %v1237_v6  ;;  %v3748_v6 = vld [vmem:[#allocation9 + $0x68] ss:$12 sps:$4 sm:$0xff]  }
 0x68f   :  { %v3853_v37 = vpop.eup %3852 }
 0x690   :  { %v1244_v7 = vsub.f32 %v4656_v3, %v3853_v37  ;;  %v3855_v10 = vpop.eup %3854 }
 0x692   :  { %v1245_v2 = vmul.f32 %v3855_v10, %v1244_v7  ;;  %v3751_v7 = vld [vmem:[#allocation9 + $0x7c] ss:$12 sps:$4 sm:$0xff]   ;;  %v3749_v10 = vld [vmem:[#allocation9 + $0x78] ss:$12 sps:$4 sm:$0xff]  }
 0x694   :  { %v1246_v12 = vadd.f32 %v3853_v37, %v1245_v2  ;;  %v3745_v37 = vld [vmem:[#allocation9 + $0x60] ss:$12 sps:$4 sm:$0xff]  }
 0x695   :  { %v3755_v2 = vld [vmem:[#allocation9 + $0x94] ss:$12 sps:$4 sm:$0xff]  }
 0x696   :  { %v4728_v13 = vsel %vm1136_vm8, %v1246_v12, %v4656_v3  ;;  %v1251_v9 = vsel %vm1136_vm8, %v1246_v12, 0.0  ;;  %v3756_v12 = vld [vmem:[#allocation9 + $0x98] ss:$12 sps:$4 sm:$0xff]  }
 0x697   :  { %v1252_v15 = vpack.c.bf16 %v1251_v9, %v1251_v9  ;;  %v1266_v56 = vpack.c.bf16 %v4728_v13, %v4728_v13  ;;  %v3759_v9 = vld [vmem:[#allocation9 + $0xac] ss:$12 sps:$4 sm:$0xff]  }
 0x699   :  { %1254 = vst [vmem:[#allocation12 + $0x14] sm:$0xf] %v1252_v15  ;;  %1300 = vmatmul.mubr.bf16.vlgmr.msra.gmra.mrb[40].mxu0 %v1266_v56  ;;  %3468 = vmatmul.mubr.bf16.vlgmr.msra.gmra.mrb[32].mxu1 %v1266_v56  ;;  %v3760_v15 = vld [vmem:[#allocation9 + $0xb0] ss:$12 sps:$4 sm:$0xff]   ;;  %v3757_v56 = vld [vmem:[#allocation9 + $0xa8] ss:$12 sps:$4 sm:$0xff]  }
 0x69a   :  { %1390 = vmatpush1.bf16.msra.mxu0 %v4596_v40  ;;  %3472 = vmatpush3.bf16.msra.mxu1 %v4661_v44  ;;  %v3978_v40 = vld [vmem:[#allocation6 + $0x98] ss:$12 sps:$4 sm:$0xff]  }
 0x69b   :  { %1391 = vmatprep.subr.bf16.mxu0 %v4600_v63  ;;  %3473 = vmatprep.subr.bf16.mxu1 %v5342_v59  ;;  %v3979_v63 = vld [vmem:[#allocation6 + $0xb0] ss:$12 sps:$4 sm:$0xff]  }
 0x69c   :  { %1421 = vmatprep.mubr.bf16.mxu0 %v5343_v51  ;;  %3487 = vmatprep.mubr.msk.bf16.mxu1 %vm4121_vm1, %v5342_v59 }
 0x69e   :  { %1392 = vmatpush1.bf16.msra.mxu0 %v4607_v34  ;;  %3474 = vmatpush3.bf16.msra.mxu1 %v4670_v45  ;;  %v3730_v34 = vld [vmem:[#allocation9 + $0x4] ss:$12 sps:$4 sm:$0xff]  }
 0x69f   :  { %1393 = vmatprep.subr.bf16.mxu0 %v4611_v41  ;;  %3475 = vmatprep.subr.bf16.mxu1 %v5342_v59  ;;  %v3731_v41 = vld [vmem:[#allocation9 + $0x8] ss:$12 sps:$4 sm:$0xff]  }
 0x6a2   :  { %1394 = vmatpush1.bf16.msra.mxu0 %v4615_v17  ;;  %3476 = vmatpush3.bf16.msra.mxu1 %v4676_v54 }
 0x6a3   :  { %1395 = vmatprep.subr.bf16.mxu0 %v4619_v42  ;;  %3477 = vmatprep.subr.bf16.mxu1 %v5342_v59 }
 0x6a6   :  { %1396 = vmatpush1.bf16.msra.mxu0 %v4623_v16  ;;  %3478 = vmatpush3.bf16.msra.mxu1 %v4682_v49  ;;  %v5344_v16 = vld [vmem:[#allocation19_spill] sm:$0xff] }
 0x6a7   :  { %1397 = vmatprep.subr.bf16.mxu0 %v4627_v18  ;;  %3479 = vmatprep.subr.bf16.mxu1 %v5342_v59 }
 0x6aa   :  { %1398 = vmatpush1.bf16.msra.mxu0 %v4687_v46  ;;  %3480 = vmatpush3.bf16.msra.mxu1 %v4690_v57 }
 0x6ab   :  { %1399 = vmatprep.subr.bf16.mxu0 %v4693_v55  ;;  %3481 = vmatprep.subr.bf16.mxu1 %v5342_v59 }
 0x6ae   :  { %1400 = vmatpush1.bf16.msra.mxu0 %v4697_v1  ;;  %3482 = vmatpush3.bf16.msra.mxu1 %v4700_v11  ;;  %v5346_v11 = vld [vmem:[#allocation17_spill] sm:$0xff] }
 0x6af   :  { %1401 = vmatprep.subr.bf16.mxu0 %v4703_v50  ;;  %3483 = vmatprep.subr.bf16.mxu1 %v5342_v59 }
 0x6b2   :  { %1402 = vmatpush1.bf16.msra.mxu0 %v4707_v32  ;;  %3484 = vmatpush3.bf16.msra.mxu1 %v3978_v40  ;;  %v3761_v40 = vld [vmem:[#allocation12 + $0x8] sm:$0xff]  }
 0x6b3   :  { %1403 = vmatprep.subr.bf16.mxu0 %v4711_v36  ;;  %3485 = vmatprep.subr.bf16.mxu1 %v5342_v59 }
 0x6b6   :  { %1404 = vmatpush1.bf16.msra.mxu0 %v4715_v52  ;;  %3486 = vmatpush3.bf16.msra.mxu1 %v3979_v63  ;;  %v3762_v63 = vld [vmem:[#allocation12 + $0x10] sm:$0xff]  }
 0x6b7   :  { %1747 = vmatprep.subr.bf16.mxu0 %v3730_v34  ;;  %3491 = vmatprep.subr.bf16.mxu1 %v3731_v41  ;;  %v4779_v34 = vld [vmem:[#allocation11 + $0x4] ss:$12 sps:$4 sm:$0xff]  }
 0x76c   :  { %v1301_v17 = vpop.f32.mrb[40].mxu0  ;;  %v1342_v42 = vpop.f32.mrb[32].mxu1 }
 0x76d   :  { %v1348_v18 = vadd.f32 %v1301_v17, %v5344_v16  ;;  %v1303_v38 = vpop.f32.mrb[41].mxu0  ;;  %v3469_v43 = vpop.f32.mrb[33].mxu1  ;;  %v1362_v57 = vadd.f32 %v4450_v39, %v1342_v42  ;;  %v4785_v17 = vld [vmem:[#allocation11 + $0x1c] ss:$12 sps:$4 sm:$0xff]   ;;  %v4787_v42 = vld [vmem:[#allocation11 + $0x18] ss:$12 sps:$4 sm:$0xff]  }
 0x76e   :  { %v1355_v62 = vadd.f32 %v1303_v38, %v5345_v53  ;;  %v1305_v3 = vpop.f32.mrb[42].mxu0  ;;  %v1345_v23 = vpop.f32.mrb[34].mxu1  ;;  %v4791_v16 = vld [vmem:[#allocation11 + $0x34] ss:$12 sps:$4 sm:$0xff]   ;;  %v4797_v38 = vld [vmem:[#allocation11 + $0x4c] ss:$12 sps:$4 sm:$0xff]  }
 0x76f   :  { %v3067_v4 = vmul.f32 -1.442695, %v1348_v18  ;;  %v1306_v48 = vpop.f32.mrb[43].mxu0  ;;  %v3470_v44 = vpop.f32.mrb[35].mxu1  ;;  %v4793_v18 = vld [vmem:[#allocation11 + $0x30] ss:$12 sps:$4 sm:$0xff]  }
 0x770   :  { %v3068_v45 = vmul.f32 -1.442695, %v1355_v62  ;;  %v4799_v43 = vld [vmem:[#allocation11 + $0x48] ss:$12 sps:$4 sm:$0xff]   ;;  %v4803_v53 = vld [vmem:[#allocation11 + $0x64] ss:$12 sps:$4 sm:$0xff]  }
 0x771   :  { %3856 = vpow2.f32 %v3067_v4  ;;  %v4805_v62 = vld [vmem:[#allocation11 + $0x60] ss:$12 sps:$4 sm:$0xff]   ;;  %v4807_v3 = vld [vmem:[#allocation11 + $0x7c] ss:$12 sps:$4 sm:$0xff]   ;;  %v4811_v23 = vld [vmem:[#allocation11 + $0x78] ss:$12 sps:$4 sm:$0xff]  }
 0x772   :  { %3858 = vpow2.f32 %v3068_v45  ;;  %v4815_v4 = vld [vmem:[#allocation11 + $0x94] ss:$12 sps:$4 sm:$0xff]   ;;  %v4819_v44 = vld [vmem:[#allocation11 + $0x90] ss:$12 sps:$4 sm:$0xff]   ;;  %v4821_v45 = vld [vmem:[#allocation11 + $0xac] ss:$12 sps:$4 sm:$0xff]  }
 0x773   :  { %v4817_v48 = vld [vmem:[#allocation11 + $0x8] ss:$12 sps:$4 sm:$0xff]  }
 0x77b   :  { %v3857_v54 = vpop.eup %3856 }
 0x77c   :  { %v1352_v49 = vadd.f32 1.0, %v3857_v54  ;;  %v3859_v46 = vpop.eup %3858  ;;  %v4825_v54 = vld [vmem:[#allocation11 + $0x20] ss:$12 sps:$4 sm:$0xff]  }
 0x77d   :  { %v1359_v32 = vadd.f32 1.0, %v3859_v46  ;;  %v4835_v46 = vld [vmem:[#allocation11 + $0x38] ss:$12 sps:$4 sm:$0xff]  }
 0x77e   :  { %3860 = vrcp.f32 %v1352_v49  ;;  %v4829_v49 = vld [vmem:[#allocation11 + $0xa8] ss:$12 sps:$4 sm:$0xff]  }
 0x788   :  { %v3861_v55 = vpop.eup %3860 }
 0x789   :  { %v1363_v1 = vmul.f32 %v3861_v55, %v1362_v57  ;;  %v4839_v57 = vld [vmem:[#allocation11 + $0x50] ss:$12 sps:$4 sm:$0xff]   ;;  %v4843_v55 = vld [vmem:[#allocation11 + $0x68] ss:$12 sps:$4 sm:$0xff]  }
 0x78b   :  { %v1364_v50 = vadd.f32 %v1363_v1, %v5346_v11  ;;  %v4847_v1 = vld [vmem:[#allocation11 + $0x80] ss:$12 sps:$4 sm:$0xff]   ;;  %v4851_v11 = vld [vmem:[#allocation11 + $0x98] ss:$12 sps:$4 sm:$0xff]  }
 0x78d   :  { %3862 = vtanh.f32 %v1364_v50  ;;  %v4855_v50 = vld [vmem:[#allocation11 + $0xb0] ss:$12 sps:$4 sm:$0xff]  }
 0x78e   :  { %3864 = vrcp.f32 %v1359_v32 }
 0x797   :  { %v3863_v36 = vpop.eup %3862 }
 0x798   :  { %v1366_v52 = vsub.f32 %v4728_v13, %v3863_v36  ;;  %v3865_v61 = vpop.eup %3864 }
 0x79a   :  { %v1367_v31 = vmul.f32 %v3865_v61, %v1366_v52  ;;  %v5347_v52 = vld [vmem:[#allocation21_spill] sm:$0xff] }
 0x79c   :  { %v1368_v20 = vadd.f32 %v3863_v36, %v1367_v31 }
 0x79e   :  { %v4770_v39 = vsel %vm1258_vm9, %v1368_v20, %v4728_v13  ;;  %v1373_v22 = vsel %vm1258_vm9, %v1368_v20, 0.0  ;;  %v3753_v13 = vld [vmem:[#allocation9 + $0x90] ss:$12 sps:$4 sm:$0xff]  }
 0x79f   :  { %v1374_v24 = vpack.c.bf16 %v1373_v22, %v1373_v22  ;;  %v1388_v25 = vpack.c.bf16 %v4770_v39, %v4770_v39 }
 0x7a1   :  { %1376 = vst [vmem:[#allocation12 + $0x18] sm:$0xf] %v1374_v24  ;;  %1422 = vmatmul.mubr.bf16.vlgmr.msra.gmra.mrb[44].mxu0 %v1388_v25  ;;  %3488 = vmatmul.mubr.bf16.vlgmr.msra.gmra.mrb[36].mxu1 %v1388_v25 }
 0x7a2   :  { %1748 = vmatpush1.bf16.msra.mxu0 %v3728_v21  ;;  %3492 = vmatpush3.bf16.msra.mxu1 %v3731_v41  ;;  %v4781_v41 = vld [vmem:[#allocation11] ss:$12 sps:$4 sm:$0xff]  }
 0x7a3   :  { %3507 = vmatprep.mubr.bf16.mxu1 %v3732_v28  ;;  %1749 = vmatprep.subr.bf16.mxu0 %v3735_v26 }
 0x7a4   :  { %3493 = vmatprep.subr.bf16.mxu1 %v3736_v27  ;;  %1779 = vmatprep.mubr.bf16.mxu0 %v5343_v51 }
 0x7a6   :  { %1750 = vmatpush1.bf16.msra.mxu0 %v3733_v30  ;;  %3494 = vmatpush3.bf16.msra.mxu1 %v3736_v27 }
 0x7a7   :  { %1751 = vmatprep.subr.bf16.mxu0 %v3739_v33  ;;  %3495 = vmatprep.subr.bf16.mxu1 %v3740_v29 }
 0x7aa   :  { %1752 = vmatpush1.bf16.msra.mxu0 %v3737_v19  ;;  %3496 = vmatpush3.bf16.msra.mxu1 %v3740_v29  ;;  %v3980_v29 = vld [vmem:[%s5322_s5] ss:$0 sm:$0xff]  ;;  %s3069_s5 = sld [smem:[#allocation5 + $0x7]] }
 0x7ab   :  { %1753 = vmatprep.subr.bf16.mxu0 %v3743_v0  ;;  %3497 = vmatprep.subr.bf16.mxu1 %v3744_v58 }
 0x7ae   :  { %1754 = vmatpush1.bf16.msra.mxu0 %v3741_v14  ;;  %3498 = vmatpush3.bf16.msra.mxu1 %v3744_v58 }
 0x7af   :  { %1755 = vmatprep.subr.bf16.mxu0 %v3747_v5  ;;  %3499 = vmatprep.subr.bf16.mxu1 %v3748_v6 }
 0x7b2   :  { %1756 = vmatpush1.bf16.msra.mxu0 %v3745_v37  ;;  %3500 = vmatpush3.bf16.msra.mxu1 %v3748_v6 }
 0x7b3   :  { %1757 = vmatprep.subr.bf16.mxu0 %v3751_v7  ;;  %3501 = vmatprep.subr.bf16.mxu1 %v3752_v8 }
 0x7b6   :  { %1758 = vmatpush1.bf16.msra.mxu0 %v3749_v10  ;;  %3502 = vmatpush3.bf16.msra.mxu1 %v3752_v8 }
 0x7b7   :  { %1759 = vmatprep.subr.bf16.mxu0 %v3755_v2  ;;  %3503 = vmatprep.subr.bf16.mxu1 %v3756_v12 }
 0x7ba   :  { %1760 = vmatpush1.bf16.msra.mxu0 %v3753_v13  ;;  %3504 = vmatpush3.bf16.msra.mxu1 %v3756_v12 }
 0x7bb   :  { %1761 = vmatprep.subr.bf16.mxu0 %v3759_v9  ;;  %3505 = vmatprep.subr.bf16.mxu1 %v3760_v15 }
 0x7be   :  { %1762 = vmatpush1.bf16.msra.mxu0 %v3757_v56  ;;  %3506 = vmatpush3.bf16.msra.mxu1 %v3760_v15 }
 0x7bf   :  { %3515 = vmatprep.subr.bf16.mxu1 %v5342_v59  ;;  %2046 = vmatprep.subr.bf16.mxu0 %v4779_v34 }
 0x7c1   :  { %1780 = vmatmul.mubr.bf16.vlgmr.msra.gmra.mrb[48].mxu0 %v3732_v28  ;;  %3508 = vmatmul.mubr.bf16.vlgmr.msra.gmra.mrb[40].mxu1 %v3761_v40 }
 0x7c2   :  { %3511 = vmatprep.mubr.bf16.mxu1 %v3762_v63  ;;  %1789 = vmatprep.mubr.bf16.mxu0 %v5343_v51 }
 0x7c3   :  { %2047 = vmatpush1.bf16.msra.mxu0 %v4781_v41  ;;  %3516 = vmatpush3.bf16.msra.mxu1 %v4817_v48 }
 0x7c4   :  { %2048 = vmatprep.subr.bf16.mxu0 %v4785_v17  ;;  %3517 = vmatprep.subr.bf16.mxu1 %v5342_v59 }
 0x7c7   :  { %2049 = vmatpush1.bf16.msra.mxu0 %v4787_v42  ;;  %3518 = vmatpush3.bf16.msra.mxu1 %v4825_v54 }
 0x7c8   :  { %2050 = vmatprep.subr.bf16.mxu0 %v4791_v16  ;;  %3519 = vmatprep.subr.bf16.mxu1 %v5342_v59 }
 0x7c9   :  { %1790 = vmatmul.mubr.bf16.gmra.mrb[52].mxu0 %v3761_v40 }
 0x7ca   :  { %1799 = vmatprep.mubr.bf16.mxu0 %v5343_v51 }
 0x7cb   :  { %2051 = vmatpush1.bf16.msra.mxu0 %v4793_v18  ;;  %3520 = vmatpush3.bf16.msra.mxu1 %v4835_v46 }
 0x7cc   :  { %2052 = vmatprep.subr.bf16.mxu0 %v4797_v38  ;;  %3521 = vmatprep.subr.bf16.mxu1 %v5342_v59 }
 0x7cf   :  { %2053 = vmatpush1.bf16.msra.mxu0 %v4799_v43  ;;  %3522 = vmatpush3.bf16.msra.mxu1 %v4839_v57 }
 0x7d0   :  { %2054 = vmatprep.subr.bf16.mxu0 %v4803_v53  ;;  %3523 = vmatprep.subr.bf16.mxu1 %v5342_v59 }
 0x7d1   :  { %1800 = vmatmul.mubr.bf16.gmra.mrb[56].mxu0 %v3762_v63 }
 0x7d2   :  { %1809 = vmatprep.mubr.bf16.mxu0 %v5343_v51 }
 0x7d3   :  { %2055 = vmatpush1.bf16.msra.mxu0 %v4805_v62  ;;  %3524 = vmatpush3.bf16.msra.mxu1 %v4843_v55 }
 0x7d4   :  { %2056 = vmatprep.subr.bf16.mxu0 %v4807_v3  ;;  %3525 = vmatprep.subr.bf16.mxu1 %v5342_v59 }
 0x7d7   :  { %2057 = vmatpush1.bf16.msra.mxu0 %v4811_v23  ;;  %3526 = vmatpush3.bf16.msra.mxu1 %v4847_v1 }
 0x7d8   :  { %2058 = vmatprep.subr.bf16.mxu0 %v4815_v4  ;;  %3527 = vmatprep.subr.bf16.mxu1 %v5342_v59 }
 0x7db   :  { %2059 = vmatpush1.bf16.msra.mxu0 %v4819_v44  ;;  %3528 = vmatpush3.bf16.msra.mxu1 %v4851_v11 }
 0x7dc   :  { %2060 = vmatprep.subr.bf16.mxu0 %v4821_v45  ;;  %3529 = vmatprep.subr.bf16.mxu1 %v5342_v59 }
 0x7df   :  { %2061 = vmatpush1.bf16.msra.mxu0 %v4829_v49  ;;  %3530 = vmatpush3.bf16.msra.mxu1 %v4855_v50 }
 0x7e0   :  { %2163 = vmatprep.subr.bf16.mxu0 %v4779_v34  ;;  %3535 = vmatprep.subr.bf16.mxu1 %v5342_v59 }
 0x874   :  { %v1423_v32 = vpop.f32.mrb[44].mxu0  ;;  %v1464_v36 = vpop.f32.mrb[36].mxu1 }
 0x875   :  { %v1470_v60 = vadd.f32 %v1423_v32, %v5347_v52  ;;  %v1425_v61 = vpop.f32.mrb[45].mxu0  ;;  %v3489_v31 = vpop.f32.mrb[37].mxu1  ;;  %v1484_v19 = vadd.f32 %v3980_v29, %v1464_v36  ;;  %v1379_v36 = vstv %s3069_s5 }
 0x876   :  { %v1477_v20 = vadd.f32 %v1425_v61, %v4445_v47  ;;  %v1427_v21 = vpop.f32.mrb[46].mxu0  ;;  %v1467_v22 = vpop.f32.mrb[38].mxu1  ;;  %v5348_v47 = vld [vmem:[#allocation18_spill] sm:$0xff]  ;;  %vm1380_vm10 = vcmp.lt.s32.totalorder %v4391_v35, %v1379_v36 }
 0x877   :  { %v3070_v24 = vmul.f32 -1.442695, %v1470_v60  ;;  %v1428_v25 = vpop.f32.mrb[47].mxu0  ;;  %v3490_v26 = vpop.f32.mrb[39].mxu1 }
 0x878   :  { %v3071_v27 = vmul.f32 -1.442695, %v1477_v20 }
 0x879   :  { %3866 = vpow2.f32 %v3070_v24 }
 0x87a   :  { %3868 = vpow2.f32 %v3071_v27  ;;  %v1563_v27 = vld [vmem:[%s5325_s8] sm:$0x7] }
 0x883   :  { %v3867_v28 = vpop.eup %3866 }
 0x884   :  { %v1474_v30 = vadd.f32 1.0, %v3867_v28  ;;  %v3869_v33 = vpop.eup %3868 }
 0x885   :  { %v1481_v5 = vadd.f32 1.0, %v3869_v33 }
 0x886   :  { %3870 = vrcp.f32 %v1474_v30 }
 0x890   :  { %v3871_v0 = vpop.eup %3870 }
 0x891   :  { %v1485_v58 = vmul.f32 %v3871_v0, %v1484_v19 }
 0x893   :  { %v1486_v14 = vadd.f32 %v1485_v58, %v5348_v47  ;;  %v5355_v58 = vsub.s32 0, %v4391_v35 }
 0x894   :  { %v4866_v6 = vpop.f32.mrb[48].mxu0  ;;  %v4868_v37 = vpop.f32.mrb[40].mxu1 }
 0x895   :  { %3872 = vtanh.f32 %v1486_v14  ;;  %v4870_v7 = vpop.f32.mrb[49].mxu0  ;;  %v4872_v8 = vpop.f32.mrb[41].mxu1  ;;  %v4957_v47 = vrot.slane %v1563_v27, %v5355_v58 }
 0x896   :  { %v4874_v10 = vpop.f32.mrb[50].mxu0  ;;  %v4876_v2 = vpop.f32.mrb[42].mxu1  ;;  %3874 = vrcp.f32 %v1481_v5 }
 0x897   :  { %v4878_v12 = vpop.f32.mrb[51].mxu0  ;;  %v4880_v13 = vpop.f32.mrb[43].mxu1  ;;  %v1782_v36 = vadd.f32 %v4866_v6, %v4957_v47  ;;  %v4974_v6 = vld [vmem:[%s5326_s9] ss:$0 sm:$0xff]  ;;  %s3127_s9 = sld [smem:[#allocation5 + $0x1]] }
 0x89c   :  { %v4882_v9 = vpop.f32.mrb[52].mxu0 }
 0x89d   :  { %v4884_v15 = vpop.f32.mrb[53].mxu0 }
 0x89e   :  { %v4886_v56 = vpop.f32.mrb[54].mxu0 }
 0x89f   :  { %v3873_v40 = vpop.eup %3872  ;;  %v4888_v63 = vpop.f32.mrb[55].mxu0 }
 0x8a0   :  { %v1488_v32 = vsub.f32 %v4770_v39, %v3873_v40  ;;  %v3875_v52 = vpop.eup %3874  ;;  %v5349_v39 = vmov 0.0|0.0  }
 0x8a2   :  { %v1489_v60 = vmul.f32 %v3875_v52, %v1488_v32 }
 0x8a4   :  { %v1490_v61 = vadd.f32 %v3873_v40, %v1489_v60  ;;  %v4892_v31 = vpop.f32.mrb[56].mxu0  ;;  %v5357_v40 = vsub.s32 1, %v4391_v35 }
 0x8a5   :  { %v4894_v20 = vpop.f32.mrb[57].mxu0 }
 0x8a6   :  { %v1495_v21 = vsel %vm1380_vm10, %v1490_v61, 0.0  ;;  %v4896_v22 = vpop.f32.mrb[58].mxu0  ;;  %v4965_v32 = vrot.slane %v1563_v27, %v5357_v40 }
 0x8a7   :  { %v1496_v24 = vpack.c.bf16 %v1495_v21, %v1495_v21  ;;  %v4898_v25 = vpop.f32.mrb[59].mxu0 }
 0x8a8   :  { %v1784_v52 = vadd.f32 %v4870_v7, %v4965_v32  ;;  %v5358_v7 = vsub.s32 2, %v4391_v35 }
 0x8a9   :  { %1498 = vst [vmem:[#allocation12 + $0x1c] sm:$0xf] %v1496_v24 }
 0x8b0   :  { %v3781_v26 = vld [vmem:[#allocation12 + $0x18] sm:$0xff]  }
 0x8b1   :  { %1810 = vmatmul.mubr.bf16.gmra.mrb[60].mxu0 %v3781_v26  ;;  %3512 = vmatmul.mubr.bf16.gmra.mrb[44].mxu1 %v3781_v26 }
 0x8b2   :  { %2078 = vmatprep.mubr.bf16.mxu0 %v5343_v51  ;;  %3531 = vmatprep.mubr.msk.bf16.mxu1 %vm4121_vm1, %v5342_v59 }
 0x8b9   :  { %2079 = vmatmul.mubr.bf16.vlgmr.msra.gmra.mrb[64].mxu0 %v5349_v39  ;;  %3532 = vmatmul.mubr.bf16.vlgmr.msra.gmra.mrb[48].mxu1 %v5349_v39 }
 0x8ba   :  { %2164 = vmatpush1.bf16.msra.mxu0 %v4781_v41  ;;  %3536 = vmatpush3.bf16.msra.mxu1 %v4817_v48 }
 0x8bb   :  { %2165 = vmatprep.subr.bf16.mxu0 %v4785_v17  ;;  %3537 = vmatprep.subr.bf16.mxu1 %v5342_v59 }
 0x8bc   :  { %2195 = vmatprep.mubr.bf16.mxu0 %v5343_v51  ;;  %3551 = vmatprep.mubr.msk.bf16.mxu1 %vm4121_vm1, %v5342_v59 }
 0x8be   :  { %2166 = vmatpush1.bf16.msra.mxu0 %v4787_v42  ;;  %3538 = vmatpush3.bf16.msra.mxu1 %v4825_v54 }
 0x8bf   :  { %2167 = vmatprep.subr.bf16.mxu0 %v4791_v16  ;;  %3539 = vmatprep.subr.bf16.mxu1 %v5342_v59 }
 0x8c2   :  { %2168 = vmatpush1.bf16.msra.mxu0 %v4793_v18  ;;  %3540 = vmatpush3.bf16.msra.mxu1 %v4835_v46 }
 0x8c3   :  { %2169 = vmatprep.subr.bf16.mxu0 %v4797_v38  ;;  %3541 = vmatprep.subr.bf16.mxu1 %v5342_v59 }
 0x8c6   :  { %2170 = vmatpush1.bf16.msra.mxu0 %v4799_v43  ;;  %3542 = vmatpush3.bf16.msra.mxu1 %v4839_v57 }
 0x8c7   :  { %2171 = vmatprep.subr.bf16.mxu0 %v4803_v53  ;;  %3543 = vmatprep.subr.bf16.mxu1 %v5342_v59 }
 0x8ca   :  { %2172 = vmatpush1.bf16.msra.mxu0 %v4805_v62  ;;  %3544 = vmatpush3.bf16.msra.mxu1 %v4843_v55 }
 0x8cb   :  { %2173 = vmatprep.subr.bf16.mxu0 %v4807_v3  ;;  %3545 = vmatprep.subr.bf16.mxu1 %v5342_v59 }
 0x8ce   :  { %2174 = vmatpush1.bf16.msra.mxu0 %v4811_v23  ;;  %3546 = vmatpush3.bf16.msra.mxu1 %v4847_v1 }
 0x8cf   :  { %2175 = vmatprep.subr.bf16.mxu0 %v4815_v4  ;;  %3547 = vmatprep.subr.bf16.mxu1 %v5342_v59 }
 0x8d2   :  { %2176 = vmatpush1.bf16.msra.mxu0 %v4819_v44  ;;  %3548 = vmatpush3.bf16.msra.mxu1 %v4851_v11 }
 0x8d3   :  { %2177 = vmatprep.subr.bf16.mxu0 %v4821_v45  ;;  %3549 = vmatprep.subr.bf16.mxu1 %v5342_v59 }
 0x8d6   :  { %2178 = vmatpush1.bf16.msra.mxu0 %v4829_v49  ;;  %3550 = vmatpush3.bf16.msra.mxu1 %v4855_v50 }
 0x8d7   :  { %2280 = vmatprep.subr.bf16.mxu0 %v4779_v34  ;;  %3555 = vmatprep.subr.bf16.mxu1 %v5342_v59 }
 0x984   :  { %v4943_v28 = vpop.f32.mrb[60].mxu0  ;;  %v4945_v30 = vpop.f32.mrb[44].mxu1 }
 0x985   :  { %5350 = vst [vmem:[#allocation19_spill] sm:$0xff] %v4943_v28  ;;  %5351 = vst [vmem:[#allocation20_spill] sm:$0xff] %v4945_v30  ;;  %v4947_v33 = vpop.f32.mrb[61].mxu0  ;;  %v4949_v29 = vpop.f32.mrb[45].mxu1 }
 0x986   :  { %5352 = vst [vmem:[#allocation17_spill] sm:$0xff] %v4947_v33  ;;  %v4951_v19 = vpop.f32.mrb[62].mxu0  ;;  %v4953_v0 = vpop.f32.mrb[46].mxu1 }
 0x987   :  { %5353 = vst [vmem:[#allocation21_spill] sm:$0xff] %v4951_v19  ;;  %5354 = vst [vmem:[#allocation18_spill] sm:$0xff] %v4953_v0  ;;  %v4959_v14 = vpop.f32.mrb[63].mxu0  ;;  %v4961_v5 = vpop.f32.mrb[47].mxu1 }
 0x988   :  { %5356 = vst [vmem:[#allocation22_spill] sm:$0xff] %v4959_v14 }
 0x98c   :  { %v2080_v60 = vpop.f32.mrb[64].mxu0  ;;  %v2121_v61 = vpop.f32.mrb[48].mxu1 }
 0x98d   :  { %v2127_v21 = vadd.f32 %v2080_v60, %v1782_v36  ;;  %v2082_v24 = vpop.f32.mrb[65].mxu0  ;;  %v3533_v26 = vpop.f32.mrb[49].mxu1  ;;  %v4978_v36 = vrot.slane %v1563_v27, %v5358_v7  ;;  %v1788_v7 = vadd.f32 %v4878_v12, %v4965_v32 }
 0x98e   :  { %v2134_v39 = vadd.f32 %v2082_v24, %v1784_v52  ;;  %v2084_v58 = vpop.f32.mrb[66].mxu0  ;;  %v2124_v0 = vpop.f32.mrb[50].mxu1 }
 0x98f   :  { %v3125_v14 = vmul.f32 -1.442695, %v2127_v21  ;;  %v2085_v19 = vpop.f32.mrb[67].mxu0  ;;  %v3534_v30 = vpop.f32.mrb[51].mxu1  ;;  %v2141_v0 = vadd.f32 %v4974_v6, %v2121_v61  ;;  %v1910_v21 = vstv %s1909_s17 }
 0x990   :  { %v3126_v40 = vmul.f32 -1.442695, %v2134_v39  ;;  %v1855_v30 = vadd.f32 %v4872_v8, %v4978_v36  ;;  %vm1911_vm11 = vcmp.lt.s32.totalorder %v4391_v35, %v1910_v21 }
 0x991   :  { %3876 = vpow2.f32 %v3125_v14  ;;  %vm3154_vm12 = vmpackc.low %vm1911_vm11, %vm1911_vm11 }
 0x992   :  { %3878 = vpow2.f32 %v3126_v40  ;;  %v1786_v40 = vadd.f32 %v4874_v10, %v4957_v47 }
 0x99b   :  { %v3877_v33 = vpop.eup %3876 }
 0x99c   :  { %v2131_v28 = vadd.f32 1.0, %v3877_v33  ;;  %v3879_v52 = vpop.eup %3878 }
 0x99d   :  { %v2138_v33 = vadd.f32 1.0, %v3879_v52 }
 0x99e   :  { %3880 = vrcp.f32 %v2131_v28 }
 0x9a8   :  { %v3881_v19 = vpop.eup %3880 }
 0x9a9   :  { %v2142_v14 = vmul.f32 %v3881_v19, %v2141_v0 }
 0x9ab   :  { %v2143_v60 = vadd.f32 %v2142_v14, %v1855_v30 }
 0x9ad   :  { %3882 = vtanh.f32 %v2143_v60 }
 0x9ae   :  { %3884 = vrcp.f32 %v2138_v33 }
 0x9b7   :  { %v3883_v28 = vpop.eup %3882 }
 0x9b8   :  { %v2145_v24 = vsub.f32 0.0, %v3883_v28  ;;  %v3885_v26 = vpop.eup %3884 }
 0x9ba   :  { %v2146_v27 = vmul.f32 %v3885_v26, %v2145_v24 }
 0x9bc   :  { %v2147_v39 = vadd.f32 %v3883_v28, %v2146_v27 }
 0x9be   :  { %v4984_v61 = vsel %vm1911_vm11, %v2147_v39, 0.0  ;;  %v3155_v58 = vpack.c.bf16 %v2147_v39, %v2147_v39 }
 0x9bf   :  { %v2153_v8 = vpack.c.bf16 %v4984_v61, %v4984_v61 }
 0x9c0   :  { %3156 = vmatmul.mubr.msk.bf16.vlgmr.msra.gmra.mrb[68].mxu0 %vm3154_vm12, %v3155_v58  ;;  %3552 = vmatmul.mubr.msk.bf16.vlgmr.msra.gmra.mrb[52].mxu1 %vm3154_vm12, %v3155_v58 }
 0x9c1   :  { %2154 = vst [vmem:[#allocation12] sm:$0xf] %v2153_v8  ;;  %2281 = vmatpush1.bf16.msra.mxu0 %v4781_v41  ;;  %3556 = vmatpush3.bf16.msra.mxu1 %v4817_v48 }
 0x9c2   :  { %2282 = vmatprep.subr.bf16.mxu0 %v4785_v17  ;;  %3557 = vmatprep.subr.bf16.mxu1 %v5342_v59 }
 0x9c3   :  { %2312 = vmatprep.mubr.bf16.mxu0 %v5343_v51  ;;  %3571 = vmatprep.mubr.msk.bf16.mxu1 %vm4121_vm1, %v5342_v59 }
 0x9c5   :  { %2283 = vmatpush1.bf16.msra.mxu0 %v4787_v42  ;;  %3558 = vmatpush3.bf16.msra.mxu1 %v4825_v54 }
 0x9c6   :  { %2284 = vmatprep.subr.bf16.mxu0 %v4791_v16  ;;  %3559 = vmatprep.subr.bf16.mxu1 %v5342_v59 }
 0x9c9   :  { %2285 = vmatpush1.bf16.msra.mxu0 %v4793_v18  ;;  %3560 = vmatpush3.bf16.msra.mxu1 %v4835_v46 }
 0x9ca   :  { %2286 = vmatprep.subr.bf16.mxu0 %v4797_v38  ;;  %3561 = vmatprep.subr.bf16.mxu1 %v5342_v59 }
 0x9cd   :  { %2287 = vmatpush1.bf16.msra.mxu0 %v4799_v43  ;;  %3562 = vmatpush3.bf16.msra.mxu1 %v4839_v57 }
 0x9ce   :  { %2288 = vmatprep.subr.bf16.mxu0 %v4803_v53  ;;  %3563 = vmatprep.subr.bf16.mxu1 %v5342_v59 }
 0x9d1   :  { %2289 = vmatpush1.bf16.msra.mxu0 %v4805_v62  ;;  %3564 = vmatpush3.bf16.msra.mxu1 %v4843_v55 }
 0x9d2   :  { %2290 = vmatprep.subr.bf16.mxu0 %v4807_v3  ;;  %3565 = vmatprep.subr.bf16.mxu1 %v5342_v59 }
 0x9d5   :  { %2291 = vmatpush1.bf16.msra.mxu0 %v4811_v23  ;;  %3566 = vmatpush3.bf16.msra.mxu1 %v4847_v1 }
 0x9d6   :  { %2292 = vmatprep.subr.bf16.mxu0 %v4815_v4  ;;  %3567 = vmatprep.subr.bf16.mxu1 %v5342_v59 }
 0x9d9   :  { %2293 = vmatpush1.bf16.msra.mxu0 %v4819_v44  ;;  %3568 = vmatpush3.bf16.msra.mxu1 %v4851_v11 }
 0x9da   :  { %2294 = vmatprep.subr.bf16.mxu0 %v4821_v45  ;;  %3569 = vmatprep.subr.bf16.mxu1 %v5342_v59 }
 0x9dd   :  { %2295 = vmatpush1.bf16.msra.mxu0 %v4829_v49  ;;  %3570 = vmatpush3.bf16.msra.mxu1 %v4855_v50 }
 0x9de   :  { %2397 = vmatprep.subr.bf16.mxu0 %v4779_v34  ;;  %3575 = vmatprep.subr.bf16.mxu1 %v5342_v59 }
 0xa93   :  { %v2197_v0 = vpop.f32.mrb[68].mxu0  ;;  %v2238_v52 = vpop.f32.mrb[52].mxu1 }
 0xa94   :  { %v2244_v19 = vadd.f32 %v2197_v0, %v1786_v40  ;;  %v2199_v30 = vpop.f32.mrb[69].mxu0  ;;  %v3553_v14 = vpop.f32.mrb[53].mxu1  ;;  %v2258_v12 = vadd.f32 %v4974_v6, %v2238_v52  ;;  %v1858_v40 = vadd.f32 %v4880_v13, %v4978_v36 }
 0xa95   :  { %v2251_v33 = vadd.f32 %v2199_v30, %v1788_v7  ;;  %v2201_v60 = vpop.f32.mrb[70].mxu0  ;;  %v2241_v28 = vpop.f32.mrb[54].mxu1 }
 0xa96   :  { %v3128_v21 = vmul.f32 -1.442695, %v2244_v19  ;;  %v2202_v24 = vpop.f32.mrb[71].mxu0  ;;  %v3554_v26 = vpop.f32.mrb[55].mxu1 }
 0xa97   :  { %v3129_v27 = vmul.f32 -1.442695, %v2251_v33  ;;  %v2156_v33 = vstv %s3127_s9 }
 0xa98   :  { %3886 = vpow2.f32 %v3128_v21  ;;  %vm2157_vm13 = vcmp.lt.s32.totalorder %v4391_v35, %v2156_v33 }
 0xa99   :  { %3888 = vpow2.f32 %v3129_v27  ;;  %v1794_v27 = vadd.f32 %v4884_v15, %v4965_v32 }
 0xaa2   :  { %v3887_v39 = vpop.eup %3886 }
 0xaa3   :  { %v2248_v58 = vadd.f32 1.0, %v3887_v39  ;;  %v3889_v10 = vpop.eup %3888 }
 0xaa4   :  { %v2255_v30 = vadd.f32 1.0, %v3889_v10 }
 0xaa5   :  { %3890 = vrcp.f32 %v2248_v58 }
 0xaaf   :  { %v3891_v8 = vpop.eup %3890 }
 0xab0   :  { %v2259_v0 = vmul.f32 %v3891_v8, %v2258_v12 }
 0xab2   :  { %v2260_v7 = vadd.f32 %v2259_v0, %v1858_v40 }
 0xab4   :  { %3892 = vtanh.f32 %v2260_v7 }
 0xab5   :  { %3894 = vrcp.f32 %v2255_v30 }
 0xabe   :  { %v3893_v19 = vpop.eup %3892 }
 0xabf   :  { %v2262_v14 = vsub.f32 %v4984_v61, %v3893_v19  ;;  %v3895_v60 = vpop.eup %3894 }
 0xac1   :  { %v2263_v28 = vmul.f32 %v3895_v60, %v2262_v14 }
 0xac3   :  { %v2264_v21 = vadd.f32 %v3893_v19, %v2263_v28 }
 0xac5   :  { %v5033_v52 = vsel %vm2157_vm13, %v2264_v21, %v4984_v61  ;;  %v2269_v24 = vsel %vm2157_vm13, %v2264_v21, 0.0  ;;  %v1792_v61 = vadd.f32 %v4882_v9, %v4957_v47 }
 0xac6   :  { %v2270_v13 = vpack.c.bf16 %v2269_v24, %v2269_v24  ;;  %v2279_v26 = vpack.c.bf16 %v5033_v52, %v5033_v52  ;;  %v1863_v24 = vadd.f32 %v4868_v37, %v4978_v36 }
 0xac8   :  { %2271 = vst [vmem:[#allocation12 + $0x4] sm:$0xf] %v2270_v13  ;;  %2313 = vmatmul.mubr.bf16.vlgmr.msra.gmra.mrb[72].mxu0 %v2279_v26  ;;  %3572 = vmatmul.mubr.bf16.vlgmr.msra.gmra.mrb[56].mxu1 %v2279_v26 }
 0xac9   :  { %2398 = vmatpush1.bf16.msra.mxu0 %v4781_v41  ;;  %3576 = vmatpush3.bf16.msra.mxu1 %v4817_v48 }
 0xaca   :  { %2399 = vmatprep.subr.bf16.mxu0 %v4785_v17  ;;  %3577 = vmatprep.subr.bf16.mxu1 %v5342_v59 }
 0xacb   :  { %2429 = vmatprep.mubr.bf16.mxu0 %v5343_v51  ;;  %3591 = vmatprep.mubr.msk.bf16.mxu1 %vm4121_vm1, %v5342_v59 }
 0xacd   :  { %2400 = vmatpush1.bf16.msra.mxu0 %v4787_v42  ;;  %3578 = vmatpush3.bf16.msra.mxu1 %v4825_v54 }
 0xace   :  { %2401 = vmatprep.subr.bf16.mxu0 %v4791_v16  ;;  %3579 = vmatprep.subr.bf16.mxu1 %v5342_v59 }
 0xad1   :  { %2402 = vmatpush1.bf16.msra.mxu0 %v4793_v18  ;;  %3580 = vmatpush3.bf16.msra.mxu1 %v4835_v46 }
 0xad2   :  { %2403 = vmatprep.subr.bf16.mxu0 %v4797_v38  ;;  %3581 = vmatprep.subr.bf16.mxu1 %v5342_v59 }
 0xad5   :  { %2404 = vmatpush1.bf16.msra.mxu0 %v4799_v43  ;;  %3582 = vmatpush3.bf16.msra.mxu1 %v4839_v57 }
 0xad6   :  { %2405 = vmatprep.subr.bf16.mxu0 %v4803_v53  ;;  %3583 = vmatprep.subr.bf16.mxu1 %v5342_v59 }
 0xad9   :  { %2406 = vmatpush1.bf16.msra.mxu0 %v4805_v62  ;;  %3584 = vmatpush3.bf16.msra.mxu1 %v4843_v55 }
 0xada   :  { %2407 = vmatprep.subr.bf16.mxu0 %v4807_v3  ;;  %3585 = vmatprep.subr.bf16.mxu1 %v5342_v59 }
 0xadd   :  { %2408 = vmatpush1.bf16.msra.mxu0 %v4811_v23  ;;  %3586 = vmatpush3.bf16.msra.mxu1 %v4847_v1 }
 0xade   :  { %2409 = vmatprep.subr.bf16.mxu0 %v4815_v4  ;;  %3587 = vmatprep.subr.bf16.mxu1 %v5342_v59 }
 0xae1   :  { %2410 = vmatpush1.bf16.msra.mxu0 %v4819_v44  ;;  %3588 = vmatpush3.bf16.msra.mxu1 %v4851_v11 }
 0xae2   :  { %2411 = vmatprep.subr.bf16.mxu0 %v4821_v45  ;;  %3589 = vmatprep.subr.bf16.mxu1 %v5342_v59 }
 0xae5   :  { %2412 = vmatpush1.bf16.msra.mxu0 %v4829_v49  ;;  %3590 = vmatpush3.bf16.msra.mxu1 %v4855_v50 }
 0xae6   :  { %2514 = vmatprep.subr.bf16.mxu0 %v4779_v34  ;;  %3595 = vmatprep.subr.bf16.mxu1 %v5342_v59 }
 0xb9b   :  { %v2314_v39 = vpop.f32.mrb[72].mxu0  ;;  %v2355_v58 = vpop.f32.mrb[56].mxu1 }
 0xb9c   :  { %v2361_v10 = vadd.f32 %v2314_v39, %v1792_v61  ;;  %v2316_v12 = vpop.f32.mrb[73].mxu0  ;;  %v3573_v8 = vpop.f32.mrb[57].mxu1  ;;  %v2375_v15 = vadd.f32 %v4974_v6, %v2355_v58 }
 0xb9d   :  { %v2368_v40 = vadd.f32 %v2316_v12, %v1794_v27  ;;  %v2318_v0 = vpop.f32.mrb[74].mxu0  ;;  %v2358_v7 = vpop.f32.mrb[58].mxu1 }
 0xb9e   :  { %v3131_v30 = vmul.f32 -1.442695, %v2361_v10  ;;  %v2319_v19 = vpop.f32.mrb[75].mxu0  ;;  %v3574_v14 = vpop.f32.mrb[59].mxu1  ;;  %v2273_v10 = vstv %s3130_s18 }
 0xb9f   :  { %v3132_v33 = vmul.f32 -1.442695, %v2368_v40  ;;  %vm2274_vm14 = vcmp.lt.s32.totalorder %v4391_v35, %v2273_v10 }
 0xba0   :  { %3896 = vpow2.f32 %v3131_v30  ;;  %v1798_v30 = vadd.f32 %v4888_v63, %v4965_v32 }
 0xba1   :  { %3898 = vpow2.f32 %v3132_v33 }
 0xbaa   :  { %v3897_v60 = vpop.eup %3896 }
 0xbab   :  { %v2365_v28 = vadd.f32 1.0, %v3897_v60  ;;  %v3899_v9 = vpop.eup %3898 }
 0xbac   :  { %v2372_v61 = vadd.f32 1.0, %v3899_v9 }
 0xbad   :  { %3900 = vrcp.f32 %v2365_v28 }
 0xbb7   :  { %v3901_v21 = vpop.eup %3900 }
 0xbb8   :  { %v2376_v13 = vmul.f32 %v3901_v21, %v2375_v15 }
 0xbba   :  { %v2377_v26 = vadd.f32 %v2376_v13, %v1863_v24 }
 0xbbc   :  { %3902 = vtanh.f32 %v2377_v26 }
 0xbbd   :  { %3904 = vrcp.f32 %v2372_v61 }
 0xbc6   :  { %v3903_v27 = vpop.eup %3902 }
 0xbc7   :  { %v2379_v39 = vsub.f32 %v5033_v52, %v3903_v27  ;;  %v3905_v12 = vpop.eup %3904 }
 0xbc9   :  { %v2380_v8 = vmul.f32 %v3905_v12, %v2379_v39  ;;  %v1866_v12 = vadd.f32 %v4876_v2, %v4978_v36 }
 0xbcb   :  { %v2381_v40 = vadd.f32 %v3903_v27, %v2380_v8 }
 0xbcd   :  { %v5082_v58 = vsel %vm2274_vm14, %v2381_v40, %v5033_v52  ;;  %v2386_v0 = vsel %vm2274_vm14, %v2381_v40, 0.0  ;;  %v1796_v52 = vadd.f32 %v4886_v56, %v4957_v47 }
 0xbce   :  { %v2387_v37 = vpack.c.bf16 %v2386_v0, %v2386_v0  ;;  %v2396_v7 = vpack.c.bf16 %v5082_v58, %v5082_v58 }
 0xbd0   :  { %2388 = vst [vmem:[#allocation12 + $0x8] sm:$0xf] %v2387_v37  ;;  %2430 = vmatmul.mubr.bf16.vlgmr.msra.gmra.mrb[76].mxu0 %v2396_v7  ;;  %3592 = vmatmul.mubr.bf16.vlgmr.msra.gmra.mrb[60].mxu1 %v2396_v7 }
 0xbd1   :  { %2515 = vmatpush1.bf16.msra.mxu0 %v4781_v41  ;;  %3596 = vmatpush3.bf16.msra.mxu1 %v4817_v48 }
 0xbd2   :  { %2516 = vmatprep.subr.bf16.mxu0 %v4785_v17  ;;  %3597 = vmatprep.subr.bf16.mxu1 %v5342_v59 }
 0xbd3   :  { %2546 = vmatprep.mubr.bf16.mxu0 %v5343_v51  ;;  %3611 = vmatprep.mubr.msk.bf16.mxu1 %vm4121_vm1, %v5342_v59 }
 0xbd5   :  { %2517 = vmatpush1.bf16.msra.mxu0 %v4787_v42  ;;  %3598 = vmatpush3.bf16.msra.mxu1 %v4825_v54 }
 0xbd6   :  { %2518 = vmatprep.subr.bf16.mxu0 %v4791_v16  ;;  %3599 = vmatprep.subr.bf16.mxu1 %v5342_v59 }
 0xbd9   :  { %2519 = vmatpush1.bf16.msra.mxu0 %v4793_v18  ;;  %3600 = vmatpush3.bf16.msra.mxu1 %v4835_v46 }
 0xbda   :  { %2520 = vmatprep.subr.bf16.mxu0 %v4797_v38  ;;  %3601 = vmatprep.subr.bf16.mxu1 %v5342_v59 }
 0xbdd   :  { %2521 = vmatpush1.bf16.msra.mxu0 %v4799_v43  ;;  %3602 = vmatpush3.bf16.msra.mxu1 %v4839_v57 }
 0xbde   :  { %2522 = vmatprep.subr.bf16.mxu0 %v4803_v53  ;;  %3603 = vmatprep.subr.bf16.mxu1 %v5342_v59 }
 0xbe1   :  { %2523 = vmatpush1.bf16.msra.mxu0 %v4805_v62  ;;  %3604 = vmatpush3.bf16.msra.mxu1 %v4843_v55 }
 0xbe2   :  { %2524 = vmatprep.subr.bf16.mxu0 %v4807_v3  ;;  %3605 = vmatprep.subr.bf16.mxu1 %v5342_v59 }
 0xbe5   :  { %2525 = vmatpush1.bf16.msra.mxu0 %v4811_v23  ;;  %3606 = vmatpush3.bf16.msra.mxu1 %v4847_v1 }
 0xbe6   :  { %2526 = vmatprep.subr.bf16.mxu0 %v4815_v4  ;;  %3607 = vmatprep.subr.bf16.mxu1 %v5342_v59 }
 0xbe9   :  { %2527 = vmatpush1.bf16.msra.mxu0 %v4819_v44  ;;  %3608 = vmatpush3.bf16.msra.mxu1 %v4851_v11 }
 0xbea   :  { %2528 = vmatprep.subr.bf16.mxu0 %v4821_v45  ;;  %3609 = vmatprep.subr.bf16.mxu1 %v5342_v59 }
 0xbed   :  { %2529 = vmatpush1.bf16.msra.mxu0 %v4829_v49  ;;  %3610 = vmatpush3.bf16.msra.mxu1 %v4855_v50 }
 0xbee   :  { %2631 = vmatprep.subr.bf16.mxu0 %v4779_v34  ;;  %3615 = vmatprep.subr.bf16.mxu1 %v5342_v59 }
 0xca3   :  { %v2431_v19 = vpop.f32.mrb[76].mxu0  ;;  %v2472_v14 = vpop.f32.mrb[60].mxu1 }
 0xca4   :  { %v2478_v33 = vadd.f32 %v2431_v19, %v1796_v52  ;;  %v2433_v60 = vpop.f32.mrb[77].mxu0  ;;  %v3593_v28 = vpop.f32.mrb[61].mxu1  ;;  %v2492_v63 = vadd.f32 %v4974_v6, %v2472_v14  ;;  %v2390_v52 = vstv %s3133_s20 }
 0xca5   :  { %v2485_v9 = vadd.f32 %v2433_v60, %v1798_v30  ;;  %v2435_v15 = vpop.f32.mrb[78].mxu0  ;;  %v2475_v21 = vpop.f32.mrb[62].mxu1  ;;  %vm2391_vm15 = vcmp.lt.s32.totalorder %v4391_v35, %v2390_v52  ;;  %v5211_v52 = vld [vmem:[#allocation11 + $0x48] ss:$12 sps:$4 sm:$0xff]  }
 0xca6   :  { %v3134_v24 = vmul.f32 -1.442695, %v2478_v33  ;;  %v2436_v13 = vpop.f32.mrb[79].mxu0  ;;  %v3594_v26 = vpop.f32.mrb[63].mxu1 }
 0xca7   :  { %v3135_v61 = vmul.f32 -1.442695, %v2485_v9  ;;  %v1871_v9 = vadd.f32 %v4949_v29, %v4978_v36 }
 0xca8   :  { %3906 = vpow2.f32 %v3134_v24 }
 0xca9   :  { %3908 = vpow2.f32 %v3135_v61  ;;  %v2507_v61 = vstv %s3136_s7 }
 0xcaa   :  { %vm2508_vm0 = vcmp.lt.s32.totalorder %v4391_v35, %v2507_v61  ;;  %v3997_v61 = vld [vmem:[#allocation11 + $0x8] ss:$12 sps:$4 sm:$0xff]  }
 0xcb2   :  { %v3907_v27 = vpop.eup %3906 }
 0xcb3   :  { %v2482_v39 = vadd.f32 1.0, %v3907_v27  ;;  %v3909_v56 = vpop.eup %3908 }
 0xcb4   :  { %v2489_v0 = vadd.f32 1.0, %v3909_v56 }
 0xcb5   :  { %3910 = vrcp.f32 %v2482_v39 }
 0xcbf   :  { %v3911_v10 = vpop.eup %3910 }
 0xcc0   :  { %v2493_v8 = vmul.f32 %v3911_v10, %v2492_v63 }
 0xcc2   :  { %v2494_v40 = vadd.f32 %v2493_v8, %v1866_v12  ;;  %v5184_v8 = vld [vmem:[#allocation11] ss:$12 sps:$4 sm:$0xff]  }
 0xcc4   :  { %3912 = vtanh.f32 %v2494_v40  ;;  %v5188_v40 = vld [vmem:[#allocation11 + $0x1c] ss:$12 sps:$4 sm:$0xff]  }
 0xcc5   :  { %3914 = vrcp.f32 %v2489_v0  ;;  %v5195_v0 = vld [vmem:[#allocation11 + $0x18] ss:$12 sps:$4 sm:$0xff]  }
 0xcce   :  { %v3913_v37 = vpop.eup %3912 }
 0xccf   :  { %v2496_v7 = vsub.f32 %v5082_v58, %v3913_v37  ;;  %v3915_v30 = vpop.eup %3914 }
 0xcd1   :  { %v2497_v19 = vmul.f32 %v3915_v30, %v2496_v7  ;;  %v5207_v7 = vld [vmem:[#allocation11 + $0x4c] ss:$12 sps:$4 sm:$0xff]  }
 0xcd2   :  { %v5219_v30 = vld [vmem:[#allocation11 + $0x60] ss:$12 sps:$4 sm:$0xff]  }
 0xcd3   :  { %v2498_v33 = vadd.f32 %v3913_v37, %v2497_v19  ;;  %v5199_v37 = vld [vmem:[#allocation11 + $0x34] ss:$12 sps:$4 sm:$0xff]   ;;  %v5227_v19 = vld [vmem:[#allocation11 + $0x78] ss:$12 sps:$4 sm:$0xff]  }
 0xcd5   :  { %v5131_v14 = vsel %vm2391_vm15, %v2498_v33, %v5082_v58  ;;  %v2503_v60 = vsel %vm2391_vm15, %v2498_v33, 0.0  ;;  %v5235_v33 = vld [vmem:[#allocation11 + $0x90] ss:$12 sps:$4 sm:$0xff]  }
 0xcd6   :  { %v2504_v2 = vpack.c.bf16 %v2503_v60, %v2503_v60  ;;  %v2513_v28 = vpack.c.bf16 %v5131_v14, %v5131_v14  ;;  %v1806_v60 = vadd.f32 %v4896_v22, %v4957_v47 }
 0xcd8   :  { %2505 = vst [vmem:[#allocation12 + $0xc] sm:$0xf] %v2504_v2  ;;  %2547 = vmatmul.mubr.bf16.vlgmr.msra.gmra.mrb[80].mxu0 %v2513_v28  ;;  %3612 = vmatmul.mubr.bf16.vlgmr.msra.gmra.mrb[64].mxu1 %v2513_v28 }
 0xcd9   :  { %2632 = vmatpush1.bf16.msra.mxu0 %v4781_v41  ;;  %3616 = vmatpush3.bf16.msra.mxu1 %v4817_v48  ;;  %v1802_v41 = vadd.f32 %v4892_v31, %v4957_v47 }
 0xcda   :  { %2633 = vmatprep.subr.bf16.mxu0 %v4785_v17  ;;  %3617 = vmatprep.subr.bf16.mxu1 %v5342_v59  ;;  %v1804_v17 = vadd.f32 %v4894_v20, %v4965_v32 }
 0xcdb   :  { %2663 = vmatprep.mubr.bf16.mxu0 %v5343_v51  ;;  %3631 = vmatprep.mubr.msk.bf16.mxu1 %vm4121_vm1, %v5342_v59 }
 0xcdd   :  { %2634 = vmatpush1.bf16.msra.mxu0 %v4787_v42  ;;  %3618 = vmatpush3.bf16.msra.mxu1 %v4825_v54 }
 0xcde   :  { %2635 = vmatprep.subr.bf16.mxu0 %v4791_v16  ;;  %3619 = vmatprep.subr.bf16.mxu1 %v5342_v59 }
 0xce1   :  { %2636 = vmatpush1.bf16.msra.mxu0 %v4793_v18  ;;  %3620 = vmatpush3.bf16.msra.mxu1 %v4835_v46 }
 0xce2   :  { %2637 = vmatprep.subr.bf16.mxu0 %v4797_v38  ;;  %3621 = vmatprep.subr.bf16.mxu1 %v5342_v59 }
 0xce5   :  { %2638 = vmatpush1.bf16.msra.mxu0 %v4799_v43  ;;  %3622 = vmatpush3.bf16.msra.mxu1 %v4839_v57 }
 0xce6   :  { %2639 = vmatprep.subr.bf16.mxu0 %v4803_v53  ;;  %3623 = vmatprep.subr.bf16.mxu1 %v5342_v59 }
 0xce9   :  { %2640 = vmatpush1.bf16.msra.mxu0 %v4805_v62  ;;  %3624 = vmatpush3.bf16.msra.mxu1 %v4843_v55 }
 0xcea   :  { %2641 = vmatprep.subr.bf16.mxu0 %v4807_v3  ;;  %3625 = vmatprep.subr.bf16.mxu1 %v5342_v59 }
 0xced   :  { %2642 = vmatpush1.bf16.msra.mxu0 %v4811_v23  ;;  %3626 = vmatpush3.bf16.msra.mxu1 %v4847_v1 }
 0xcee   :  { %2643 = vmatprep.subr.bf16.mxu0 %v4815_v4  ;;  %3627 = vmatprep.subr.bf16.mxu1 %v5342_v59 }
 0xcf1   :  { %2644 = vmatpush1.bf16.msra.mxu0 %v4819_v44  ;;  %3628 = vmatpush3.bf16.msra.mxu1 %v4851_v11 }
 0xcf2   :  { %2645 = vmatprep.subr.bf16.mxu0 %v4821_v45  ;;  %3629 = vmatprep.subr.bf16.mxu1 %v5342_v59 }
 0xcf5   :  { %2646 = vmatpush1.bf16.msra.mxu0 %v4829_v49  ;;  %3630 = vmatpush3.bf16.msra.mxu1 %v4855_v50 }
 0xcf6   :  { %2748 = vmatprep.subr.bf16.mxu0 %v4779_v34  ;;  %3635 = vmatprep.subr.bf16.mxu1 %v5342_v59 }
 0xdab   :  { %v2548_v42 = vpop.f32.mrb[80].mxu0  ;;  %v2589_v16 = vpop.f32.mrb[64].mxu1 }
 0xdac   :  { %v2595_v18 = vadd.f32 %v2548_v42, %v1802_v41  ;;  %v2550_v38 = vpop.f32.mrb[81].mxu0  ;;  %v3613_v43 = vpop.f32.mrb[65].mxu1  ;;  %v2609_v20 = vadd.f32 %v4974_v6, %v2589_v16 }
 0xdad   :  { %v2602_v53 = vadd.f32 %v2550_v38, %v1804_v17  ;;  %v2552_v62 = vpop.f32.mrb[82].mxu0  ;;  %v2592_v3 = vpop.f32.mrb[66].mxu1 }
 0xdae   :  { %v3137_v23 = vmul.f32 -1.442695, %v2595_v18  ;;  %v2553_v4 = vpop.f32.mrb[83].mxu0  ;;  %v3614_v44 = vpop.f32.mrb[67].mxu1 }
 0xdaf   :  { %v3138_v34 = vmul.f32 -1.442695, %v2602_v53  ;;  %v1874_v44 = vadd.f32 %v4961_v5, %v4978_v36 }
 0xdb0   :  { %3916 = vpow2.f32 %v3137_v23 }
 0xdb1   :  { %3918 = vpow2.f32 %v3138_v34 }
 0xdba   :  { %v3917_v45 = vpop.eup %3916 }
 0xdbb   :  { %v2599_v49 = vadd.f32 1.0, %v3917_v45  ;;  %v3919_v31 = vpop.eup %3918 }
 0xdbc   :  { %v2606_v24 = vadd.f32 1.0, %v3919_v31 }
 0xdbd   :  { %3920 = vrcp.f32 %v2599_v49 }
 0xdc7   :  { %v3921_v58 = vpop.eup %3920 }
 0xdc8   :  { %v2610_v15 = vmul.f32 %v3921_v58, %v2609_v20  ;;  %v2624_v58 = vstv %s3139_s29 }
 0xdc9   :  { %vm2625_vm2 = vcmp.lt.s32.totalorder %v4391_v35, %v2624_v58 }
 0xdca   :  { %v2611_v21 = vadd.f32 %v2610_v15, %v1871_v9 }
 0xdcc   :  { %3922 = vtanh.f32 %v2611_v21 }
 0xdcd   :  { %3924 = vrcp.f32 %v2606_v24 }
 0xdd6   :  { %v3923_v13 = vpop.eup %3922 }
 0xdd7   :  { %v2613_v26 = vsub.f32 %v5131_v14, %v3923_v13  ;;  %v3925_v27 = vpop.eup %3924 }
 0xdd9   :  { %v2614_v39 = vmul.f32 %v3925_v27, %v2613_v26  ;;  %v3998_v27 = vld [vmem:[#allocation11 + $0x20] ss:$12 sps:$4 sm:$0xff]  }
 0xddb   :  { %v2615_v56 = vadd.f32 %v3923_v13, %v2614_v39  ;;  %v3999_v39 = vld [vmem:[#allocation11 + $0x38] ss:$12 sps:$4 sm:$0xff]  }
 0xddd   :  { %v5180_v63 = vsel %vm2508_vm0, %v2615_v56, %v5131_v14  ;;  %v2620_v10 = vsel %vm2508_vm0, %v2615_v56, 0.0  ;;  %v5243_v14 = vld [vmem:[#allocation11 + $0xa8] ss:$12 sps:$4 sm:$0xff]  }
 0xdde   :  { %v2621_v29 = vpack.c.bf16 %v2620_v10, %v2620_v10  ;;  %v2630_v12 = vpack.c.bf16 %v5180_v63, %v5180_v63  ;;  %v4001_v56 = vld [vmem:[#allocation11 + $0x68] ss:$12 sps:$4 sm:$0xff]   ;;  %v4003_v10 = vld [vmem:[#allocation11 + $0x98] ss:$12 sps:$4 sm:$0xff]  }
 0xde0   :  { %2622 = vst [vmem:[#allocation12 + $0x10] sm:$0xf] %v2621_v29  ;;  %2664 = vmatmul.mubr.bf16.vlgmr.msra.gmra.mrb[84].mxu0 %v2630_v12  ;;  %3632 = vmatmul.mubr.bf16.vlgmr.msra.gmra.mrb[68].mxu1 %v2630_v12  ;;  %v4004_v29 = vld [vmem:[#allocation11 + $0xb0] ss:$12 sps:$4 sm:$0xff]  }
 0xde1   :  { %2749 = vmatpush1.bf16.msra.mxu0 %v5184_v8  ;;  %3636 = vmatpush3.bf16.msra.mxu1 %v4817_v48  ;;  %v5203_v48 = vld [vmem:[#allocation11 + $0x30] ss:$12 sps:$4 sm:$0xff]  }
 0xde2   :  { %2750 = vmatprep.subr.bf16.mxu0 %v5188_v40  ;;  %3637 = vmatprep.subr.bf16.mxu1 %v5342_v59  ;;  %v5359_v12 = vld [vmem:[#allocation19_spill] sm:$0xff] }
 0xde3   :  { %2780 = vmatprep.mubr.bf16.mxu0 %v5343_v51  ;;  %3651 = vmatprep.mubr.msk.bf16.mxu1 %vm4121_vm1, %v5342_v59 }
 0xde5   :  { %2751 = vmatpush1.bf16.msra.mxu0 %v5195_v0  ;;  %3638 = vmatpush3.bf16.msra.mxu1 %v4825_v54  ;;  %v5215_v54 = vld [vmem:[#allocation11 + $0x64] ss:$12 sps:$4 sm:$0xff]  }
 0xde6   :  { %2752 = vmatprep.subr.bf16.mxu0 %v5199_v37  ;;  %3639 = vmatprep.subr.bf16.mxu1 %v5342_v59 }
 0xde9   :  { %2753 = vmatpush1.bf16.msra.mxu0 %v5203_v48  ;;  %3640 = vmatpush3.bf16.msra.mxu1 %v4835_v46  ;;  %v5223_v46 = vld [vmem:[#allocation11 + $0x7c] ss:$12 sps:$4 sm:$0xff]  }
 0xdea   :  { %2754 = vmatprep.subr.bf16.mxu0 %v5207_v7  ;;  %3641 = vmatprep.subr.bf16.mxu1 %v5342_v59 }
 0xded   :  { %2755 = vmatpush1.bf16.msra.mxu0 %v5211_v52  ;;  %3642 = vmatpush3.bf16.msra.mxu1 %v4839_v57  ;;  %v5231_v57 = vld [vmem:[#allocation11 + $0x94] ss:$12 sps:$4 sm:$0xff]  }
 0xdee   :  { %2756 = vmatprep.subr.bf16.mxu0 %v5215_v54  ;;  %3643 = vmatprep.subr.bf16.mxu1 %v5342_v59 }
 0xdf1   :  { %2757 = vmatpush1.bf16.msra.mxu0 %v5219_v30  ;;  %3644 = vmatpush3.bf16.msra.mxu1 %v4843_v55  ;;  %v5239_v55 = vld [vmem:[#allocation11 + $0xac] ss:$12 sps:$4 sm:$0xff]  }
 0xdf2   :  { %2758 = vmatprep.subr.bf16.mxu0 %v5223_v46  ;;  %3645 = vmatprep.subr.bf16.mxu1 %v5342_v59 }
 0xdf5   :  { %2759 = vmatpush1.bf16.msra.mxu0 %v5227_v19  ;;  %3646 = vmatpush3.bf16.msra.mxu1 %v4847_v1  ;;  %v3996_v1 = vld [vmem:[#allocation11 + $0x4] ss:$12 sps:$4 sm:$0xff]  }
 0xdf6   :  { %2760 = vmatprep.subr.bf16.mxu0 %v5231_v57  ;;  %3647 = vmatprep.subr.bf16.mxu1 %v5342_v59 }
 0xdf9   :  { %2761 = vmatpush1.bf16.msra.mxu0 %v5235_v33  ;;  %3648 = vmatpush3.bf16.msra.mxu1 %v4851_v11  ;;  %v1808_v11 = vadd.f32 %v4898_v25, %v4965_v32 }
 0xdfa   :  { %2762 = vmatprep.subr.bf16.mxu0 %v5239_v55  ;;  %3649 = vmatprep.subr.bf16.mxu1 %v5342_v59 }
 0xdfd   :  { %2763 = vmatpush1.bf16.msra.mxu0 %v5243_v14  ;;  %3650 = vmatpush3.bf16.msra.mxu1 %v4855_v50 }
 0xdfe   :  { %2865 = vmatprep.subr.bf16.mxu0 %v3996_v1  ;;  %3655 = vmatprep.subr.bf16.mxu1 %v5342_v59 }
 0xeb3   :  { %v2665_v2 = vpop.f32.mrb[84].mxu0  ;;  %v2706_v28 = vpop.f32.mrb[68].mxu1 }
 0xeb4   :  { %v2712_v41 = vadd.f32 %v2665_v2, %v1806_v60  ;;  %v2667_v17 = vpop.f32.mrb[85].mxu0  ;;  %v3633_v42 = vpop.f32.mrb[69].mxu1  ;;  %v2726_v25 = vadd.f32 %v4974_v6, %v2706_v28  ;;  %v5361_v28 = vld [vmem:[#allocation20_spill] sm:$0xff] }
 0xeb5   :  { %v2719_v16 = vadd.f32 %v2667_v17, %v1808_v11  ;;  %v2669_v18 = vpop.f32.mrb[86].mxu0  ;;  %v2709_v38 = vpop.f32.mrb[70].mxu1 }
 0xeb6   :  { %v3140_v43 = vmul.f32 -1.442695, %v2712_v41  ;;  %v2670_v50 = vpop.f32.mrb[87].mxu0  ;;  %v3634_v53 = vpop.f32.mrb[71].mxu1  ;;  %v1879_v41 = vadd.f32 %v5361_v28, %v4978_v36 }
 0xeb7   :  { %v3141_v62 = vmul.f32 -1.442695, %v2719_v16 }
 0xeb8   :  { %3926 = vpow2.f32 %v3140_v43  ;;  %v2741_v43 = vstv %s3142_s30 }
 0xeb9   :  { %3928 = vpow2.f32 %v3141_v62 }
 0xec2   :  { %v3927_v3 = vpop.eup %3926 }
 0xec3   :  { %v2716_v23 = vadd.f32 1.0, %v3927_v3  ;;  %v3929_v22 = vpop.eup %3928 }
 0xec4   :  { %v2723_v49 = vadd.f32 1.0, %v3929_v22 }
 0xec5   :  { %3930 = vrcp.f32 %v2716_v23 }
 0xecf   :  { %v3931_v4 = vpop.eup %3930 }
 0xed0   :  { %v2727_v34 = vmul.f32 %v3931_v4, %v2726_v25  ;;  %v5362_v4 = vld [vmem:[#allocation21_spill] sm:$0xff] }
 0xed2   :  { %v2728_v45 = vadd.f32 %v2727_v34, %v1874_v44  ;;  %v1816_v44 = vadd.f32 %v5362_v4, %v4957_v47  ;;  %v5363_v34 = vld [vmem:[#allocation22_spill] sm:$0xff] }
 0xed4   :  { %3932 = vtanh.f32 %v2728_v45  ;;  %v1818_v45 = vadd.f32 %v5363_v34, %v4965_v32 }
 0xed5   :  { %3934 = vrcp.f32 %v2723_v49 }
 0xede   :  { %v3933_v31 = vpop.eup %3932 }
 0xedf   :  { %v2730_v20 = vsub.f32 %v5180_v63, %v3933_v31  ;;  %v3935_v9 = vpop.eup %3934 }
 0xee1   :  { %v2731_v15 = vmul.f32 %v3935_v9, %v2730_v20 }
 0xee3   :  { %v2732_v21 = vadd.f32 %v3933_v31, %v2731_v15 }
 0xee5   :  { %v5258_v24 = vsel %vm2625_vm2, %v2732_v21, %v5180_v63  ;;  %v2737_v13 = vsel %vm2625_vm2, %v2732_v21, 0.0  ;;  %v4002_v63 = vld [vmem:[#allocation11 + $0x80] ss:$12 sps:$4 sm:$0xff]  }
 0xee6   :  { %v2738_v5 = vpack.c.bf16 %v2737_v13, %v2737_v13  ;;  %v2747_v26 = vpack.c.bf16 %v5258_v24, %v5258_v24 }
 0xee8   :  { %2739 = vst [vmem:[#allocation12 + $0x14] sm:$0xf] %v2738_v5  ;;  %2781 = vmatmul.mubr.bf16.vlgmr.msra.gmra.mrb[88].mxu0 %v2747_v26  ;;  %3652 = vmatmul.mubr.bf16.vlgmr.msra.gmra.mrb[72].mxu1 %v2747_v26 }
 0xee9   :  { %2866 = vmatpush1.bf16.msra.mxu0 %v5184_v8  ;;  %3656 = vmatpush3.bf16.msra.mxu1 %v3997_v61  ;;  %v1812_v8 = vadd.f32 %v5359_v12, %v4957_v47 }
 0xeea   :  { %2867 = vmatprep.subr.bf16.mxu0 %v5188_v40  ;;  %3657 = vmatprep.subr.bf16.mxu1 %v5342_v59  ;;  %v5360_v40 = vld [vmem:[#allocation17_spill] sm:$0xff] }
 0xeeb   :  { %2897 = vmatprep.mubr.bf16.mxu0 %v5343_v51  ;;  %3671 = vmatprep.mubr.msk.bf16.mxu1 %vm4121_vm1, %v5342_v59  ;;  %v4000_v51 = vld [vmem:[#allocation11 + $0x50] ss:$12 sps:$4 sm:$0xff]   ;;  %vm2742_vm1 = vcmp.lt.s32.totalorder %v4391_v35, %v2741_v43 }
 0xeed   :  { %2868 = vmatpush1.bf16.msra.mxu0 %v5195_v0  ;;  %3658 = vmatpush3.bf16.msra.mxu1 %v3998_v27  ;;  %v1814_v0 = vadd.f32 %v5360_v40, %v4965_v32 }
 0xeee   :  { %2869 = vmatprep.subr.bf16.mxu0 %v5199_v37  ;;  %3659 = vmatprep.subr.bf16.mxu1 %v5342_v59 }
 0xef1   :  { %2870 = vmatpush1.bf16.msra.mxu0 %v5203_v48  ;;  %3660 = vmatpush3.bf16.msra.mxu1 %v3999_v39 }
 0xef2   :  { %2871 = vmatprep.subr.bf16.mxu0 %v5207_v7  ;;  %3661 = vmatprep.subr.bf16.mxu1 %v5342_v59 }
 0xef5   :  { %2872 = vmatpush1.bf16.msra.mxu0 %v5211_v52  ;;  %3662 = vmatpush3.bf16.msra.mxu1 %v4000_v51 }
 0xef6   :  { %2873 = vmatprep.subr.bf16.mxu0 %v5215_v54  ;;  %3663 = vmatprep.subr.bf16.mxu1 %v5342_v59 }
 0xef9   :  { %2874 = vmatpush1.bf16.msra.mxu0 %v5219_v30  ;;  %3664 = vmatpush3.bf16.msra.mxu1 %v4001_v56  ;;  %v5364_v56 = vld [vmem:[#allocation18_spill] sm:$0xff] }
 0xefa   :  { %2875 = vmatprep.subr.bf16.mxu0 %v5223_v46  ;;  %3665 = vmatprep.subr.bf16.mxu1 %v5342_v59 }
 0xefd   :  { %2876 = vmatpush1.bf16.msra.mxu0 %v5227_v19  ;;  %3666 = vmatpush3.bf16.msra.mxu1 %v4002_v63  ;;  %v1882_v63 = vadd.f32 %v5364_v56, %v4978_v36 }
 0xefe   :  { %2877 = vmatprep.subr.bf16.mxu0 %v5231_v57  ;;  %3667 = vmatprep.subr.bf16.mxu1 %v5342_v59 }
 0xf01   :  { %2878 = vmatpush1.bf16.msra.mxu0 %v5235_v33  ;;  %3668 = vmatpush3.bf16.msra.mxu1 %v4003_v10 }
 0xf02   :  { %2879 = vmatprep.subr.bf16.mxu0 %v5239_v55  ;;  %3669 = vmatprep.subr.bf16.mxu1 %v5342_v59 }
 0xf05   :  { %2880 = vmatpush1.bf16.msra.mxu0 %v5243_v14  ;;  %3670 = vmatpush3.bf16.msra.mxu1 %v4004_v29 }
 0xfbb   :  { %v2782_v37 = vpop.f32.mrb[88].mxu0  ;;  %v2823_v48 = vpop.f32.mrb[72].mxu1 }
 0xfbc   :  { %v2829_v7 = vadd.f32 %v2782_v37, %v1812_v8  ;;  %v2784_v52 = vpop.f32.mrb[89].mxu0  ;;  %v3653_v54 = vpop.f32.mrb[73].mxu1  ;;  %v2843_v11 = vadd.f32 %v4974_v6, %v2823_v48 }
 0xfbd   :  { %v2836_v30 = vadd.f32 %v2784_v52, %v1814_v0  ;;  %v2786_v46 = vpop.f32.mrb[90].mxu0  ;;  %v2826_v19 = vpop.f32.mrb[74].mxu1  ;;  %v2858_v0 = vstv %s3145_s21 }
 0xfbe   :  { %v3143_v57 = vmul.f32 -1.442695, %v2829_v7  ;;  %v2787_v59 = vpop.f32.mrb[91].mxu0  ;;  %v3654_v33 = vpop.f32.mrb[75].mxu1  ;;  %vm2859_vm3 = vcmp.lt.s32.totalorder %v4391_v35, %v2858_v0 }
 0xfbf   :  { %v3144_v55 = vmul.f32 -1.442695, %v2836_v30 }
 0xfc0   :  { %3936 = vpow2.f32 %v3143_v57 }
 0xfc1   :  { %3938 = vpow2.f32 %v3144_v55 }
 0xfca   :  { %v3937_v14 = vpop.eup %3936 }
 0xfcb   :  { %v2833_v1 = vadd.f32 1.0, %v3937_v14  ;;  %v3939_v60 = vpop.eup %3938 }
 0xfcc   :  { %v2840_v16 = vadd.f32 1.0, %v3939_v60 }
 0xfcd   :  { %3940 = vrcp.f32 %v2833_v1 }
 0xfd7   :  { %v3941_v2 = vpop.eup %3940 }
 0xfd8   :  { %v2844_v17 = vmul.f32 %v3941_v2, %v2843_v11 }
 0xfda   :  { %v2845_v42 = vadd.f32 %v2844_v17, %v1879_v41 }
 0xfdc   :  { %3942 = vtanh.f32 %v2845_v42 }
 0xfdd   :  { %3944 = vrcp.f32 %v2840_v16 }
 0xfe6   :  { %v3943_v18 = vpop.eup %3942 }
 0xfe7   :  { %v2847_v38 = vsub.f32 %v5258_v24, %v3943_v18  ;;  %v3945_v50 = vpop.eup %3944 }
 0xfe9   :  { %v2848_v53 = vmul.f32 %v3945_v50, %v2847_v38 }
 0xfeb   :  { %v2849_v62 = vadd.f32 %v3943_v18, %v2848_v53 }
 0xfed   :  { %v2852_v3 = vsel %vm2742_vm1, %v2849_v62, %v5258_v24  ;;  %v2854_v23 = vsel %vm2742_vm1, %v2849_v62, 0.0 }
 0xfee   :  { %v2855_v22 = vpack.c.bf16 %v2854_v23, %v2854_v23  ;;  %v2864_v25 = vpack.c.bf16 %v2852_v3, %v2852_v3 }
 0xff0   :  { %2856 = vst [vmem:[#allocation12 + $0x18] sm:$0xf] %v2855_v22  ;;  %2898 = vmatmul.mubr.bf16.vlgmr.msra.gmra.mrb[92].mxu0 %v2864_v25  ;;  %3672 = vmatmul.mubr.bf16.vlgmr.msra.gmra.mrb[76].mxu1 %v2864_v25 }
0x10c3   :  { %v2899_v49 = vpop.f32.mrb[92].mxu0  ;;  %v2940_v31 = vpop.f32.mrb[76].mxu1 }
0x10c4   :  { %v2946_v20 = vadd.f32 %v2899_v49, %v1816_v44  ;;  %v2901_v58 = vpop.f32.mrb[93].mxu0  ;;  %v3673_v9 = vpop.f32.mrb[77].mxu1  ;;  %v2960_v32 = vadd.f32 %v4974_v6, %v2940_v31 }
0x10c5   :  { %v2953_v15 = vadd.f32 %v2901_v58, %v1818_v45  ;;  %v2903_v21 = vpop.f32.mrb[94].mxu0  ;;  %v2943_v24 = vpop.f32.mrb[78].mxu1 }
0x10c6   :  { %v3146_v13 = vmul.f32 -1.442695, %v2946_v20  ;;  %v2904_v5 = vpop.f32.mrb[95].mxu0  ;;  %v3674_v26 = vpop.f32.mrb[79].mxu1 }
0x10c7   :  { %v3147_v61 = vmul.f32 -1.442695, %v2953_v15 }
0x10c8   :  { %3946 = vpow2.f32 %v3146_v13 }
0x10c9   :  { %3948 = vpow2.f32 %v3147_v61 }
0x10d2   :  { %v3947_v27 = vpop.eup %3946 }
0x10d3   :  { %v2950_v39 = vadd.f32 1.0, %v3947_v27  ;;  %v3949_v47 = vpop.eup %3948 }
0x10d4   :  { %v2957_v12 = vadd.f32 1.0, %v3949_v47 }
0x10d5   :  { %3950 = vrcp.f32 %v2950_v39 }
0x10df   :  { %v3951_v51 = vpop.eup %3950 }
0x10e0   :  { %v2961_v10 = vmul.f32 %v3951_v51, %v2960_v32 }
0x10e2   :  { %v2962_v29 = vadd.f32 %v2961_v10, %v1882_v63 }
0x10e4   :  { %3952 = vtanh.f32 %v2962_v29 }
0x10e5   :  { %3954 = vrcp.f32 %v2957_v12 }
0x10ee   :  { %v3953_v8 = vpop.eup %3952 }
0x10ef   :  { %v2964_v40 = vsub.f32 %v2852_v3, %v3953_v8  ;;  %v3955_v37 = vpop.eup %3954 }
0x10f1   :  { %v2965_v48 = vmul.f32 %v3955_v37, %v2964_v40 }
0x10f3   :  { %v2966_v7 = vadd.f32 %v3953_v8, %v2965_v48 }
0x10f5   :  { %v2971_v6 = vsel %vm2859_vm3, %v2966_v7, 0.0 }
0x10f6   :  { %v2972_v52 = vpack.c.bf16 %v2971_v6, %v2971_v6 }
0x10f8   :  { %2973 = vst [vmem:[#allocation12 + $0x1c] sm:$0xf] %v2972_v52 }
0x10f9   :  { %4094 = shalt.err (!%p4091_p5)
}
0x10fa   :  { %s4095_s23 = scalar_lea.hbm %s5327_s10, 512 }
0x10fb   :  { %p4096_p6 = scmp.ne.s32.totalorder %s5327_s10, %s4095_s23  ;;  %p4099_p7 = scmp.lt.u32.totalorder %s4095_s23, %s5327_s10 }
0x10fd   :  { %p4101_p8 = pnand %p4099_p7, %p4096_p6 }
0x10ff   :  { %4104 = shalt.err (!%p4101_p8)
}
0x1100   :  { %s4124_s27 = smov 64   ;;  %s4125_s28 = smov 4  }
0x1101   :  { %2989 = dma.vmem_to_hbm [thread:$0]  %s2984_s19, 512, %s5327_s10, [#allocation8], %s4124_s27, %s4124_s27, %s4125_s28  }
0x1102   :  { %4111 = dma.done.wait [#allocation8], 512  }
0x1103   :  { %4112 = vsyncadd [#allocation8], 4294966784 }
0x1104   :  { %2993 = vsyncpa [#allocation7], 1 }
0x1105   :  { %2994 = vsyncpa [#allocation10], 1 }
0x1106   :  { %2995 = vsyncpa [#allocation8], 1 }

</bundles_post_ra>
